<compile_context>
chip_gen: v7x
topology: tpu7x:2x2x1
jax: 0.10.0
libtpu: 0.0.40
codegen_flags: <defaults>
</compile_context>

<pallas_src>
import math

import jax
import jax.numpy as jnp
from jax import lax
from jax.experimental import pallas as pl
from jax.experimental.pallas import tpu as pltpu

# ------------------------- small deterministic config -------------------------
B = 2             # batch
T = 4             # seq_len (Tin)
N = 8             # num_nodes
DIN = 2           # input_dim
U = 16            # rnn_units (hidden size F)
L = 2             # num_rnn_layers
K = 2             # max_diffusion_step
NUM_SUPPORTS = 2  # filter_type = "dual_random_walk"
M = NUM_SUPPORTS * K + 1      # num_matrices
IS = U + U                    # gconv input_size (encoder input_dim == rnn_units)
BN = B * N                    # batch folded into the node axis

F32 = jnp.float32


# ------------------------------ fused Pallas kernel ----------------------------
def _fused_forward_kernel(x_ref, xt_ref, adjd_ref, bmask_ref, sup_ref,
                          embw_ref, embb_ref,
                          wx3_ref, wgh_ref, wch_ref, bg_ref, bc_ref,
                          fw_ref, fb_ref,
                          sloss_ref, floss_ref):
    # x_ref   : (T, B*N, DIN)      time-major inputs
    # xt_ref  : (B*N, T)           L1 target (channel 0, node-major)
    # adjd_ref: (B*N, B*N)         block-diag binarized adjacency target
    # bmask_ref: (B*N, B*N)        block-diag mask (1 on per-batch blocks)
    # sup_ref : (S, B*N, B*N)      block-diagonal dual-random-walk supports
    # wx3_ref : (L*M, U, 3U)       merged x-part weights [gate_r|gate_u|cand]
    # wgh_ref : (L*M, U, 2U)       gate h-part weights
    # wch_ref : (L*M, U, U)        candidate h-part weights
    # bg_ref  : (L, 1, 2U)  bc_ref: (L, 1, U)
    sup = [sup_ref[s] for s in range(NUM_SUPPORTS)]

    def diffuse(v):
        # Chebyshev-style diffusion over the block-diag supports, exactly
        # reproducing the reference (incl. the x0-carry quirk across supports).
        x0 = v
        xs = [x0]
        for s in range(NUM_SUPPORTS):
            s_mat = sup[s]
            x1 = jnp.dot(s_mat, x0, preferred_element_type=F32)
            xs.append(x1)
            for _k in range(2, K + 1):
                x2 = 2.0 * jnp.dot(s_mat, x1, preferred_element_type=F32) - x0
                xs.append(x2)
                x1, x0 = x2, x1
        return xs                                           # M arrays, (BN, C)

    def dcgru_cell(layer, inp, h):
        base = layer * M
        xs_x = diffuse(inp)                                  # shared by gates & cand
        xs_h = diffuse(h)
        # summed partial matmuls (no concatenation): merged x-projection (3U)
        # and gate h-projection (2U).
        px = jnp.dot(xs_x[0], wx3_ref[base], preferred_element_type=F32)
        ph = jnp.dot(xs_h[0], wgh_ref[base], preferred_element_type=F32)
        for m in range(1, M):
            px = px + jnp.dot(xs_x[m], wx3_ref[base + m], preferred_element_type=F32)
            ph = ph + jnp.dot(xs_h[m], wgh_ref[base + m], preferred_element_type=F32)
        gates = jax.nn.sigmoid(px[:, :2 * U] + ph + bg_ref[layer])   # (BN, 2U)
        r = gates[:, :U]
        u = gates[:, U:]
        # candidate: x-contribution already in px[:, 2U:]; re-diffuse r*h only.
        ys = diffuse(r * h)
        pc = px[:, 2 * U:] + bc_ref[layer]
        for m in range(M):
            pc = pc + jnp.dot(ys[m], wch_ref[base + m], preferred_element_type=F32)
        c = jnp.tanh(pc)
        return u * h + (1.0 - u) * c

    emb_w = embw_ref[...]
    emb_b = embb_ref[...]

    # encoder: statically unrolled over time and layers, hidden kept resident.
    hidden = [jnp.zeros((BN, U), F32) for _ in range(L)]
    for t in range(T):
        # to_feat_embedding (feature mask == 1 -> mask_token cancels)
        out = jnp.dot(x_ref[t], emb_w, preferred_element_type=F32) + emb_b
        for layer in range(L):
            h_new = dcgru_cell(layer, out, hidden[layer])
            hidden[layer] = h_new
            out = h_new

    summary = hidden[L - 1]                                  # (BN, U)

    # structure decoder (inner product, identity act) + BCE-with-logits loss.
    # One Gram matmul covers all batches; off-diagonal (cross-batch) blocks are
    # masked out before the reduction.
    gram = lax.dot_general(summary, summary, (((1,), (1,)), ((), ())),
                           preferred_element_type=F32)        # (BN, BN)
    adjd = adjd_ref[...]
    bmask = bmask_ref[...]
    bce = (jnp.maximum(gram, 0.0) - gram * adjd
           + jnp.log(1.0 + jnp.exp(-jnp.abs(gram)))) * bmask
    sloss_ref[0] = jnp.sum(bce) / float(B * N * N)

    # feature decoder: Conv2d(1, T, kernel=(1, U)) == per-node linear U -> T.
    pred = jnp.dot(summary, fw_ref[...], preferred_element_type=F32) + fb_ref[...]
    floss_ref[0] = jnp.sum(jnp.abs(pred - xt_ref[...])) / float(B * N * T)


# ------------------------------- JAX glue --------------------------------------
def random_walk_matrix(adj):
    d = jnp.sum(adj, axis=1)
    d_inv = jnp.where(d > 0, 1.0 / d, 0.0)
    return d_inv[:, None] * adj          # D^{-1} A


def build_supports_bd(adj):
    # dual_random_walk supports, replicated as block-diagonals over the batch
    # so the diffusion matmuls cover all batch elements at once.
    s1 = random_walk_matrix(adj).T
    s2 = random_walk_matrix(adj.T).T
    eye_b = jnp.eye(B, dtype=F32)
    return jnp.stack([jnp.kron(eye_b, s1), jnp.kron(eye_b, s2)], axis=0).astype(F32)


def init_params(key):
    keys = jax.random.split(key, 2 + 2 * L)

    def xavier(k, shape):
        std = math.sqrt(2.0 / (shape[0] + shape[1]))
        return (std * jax.random.normal(k, shape)).astype(F32)

    params = {
        "emb_w": xavier(keys[0], (DIN, U)),
        "emb_b": jnp.zeros((1, U), F32),
        # Conv2d(1, T, kernel=(1, U)) weight stored transposed as (U, T)
        "fdec_wT": xavier(keys[1], (U, T)),
        "fdec_b": jnp.zeros((1, T), F32),
        "gconv_gate_w": [], "gconv_gate_b": [],
        "gconv_cand_w": [], "gconv_cand_b": [],
    }
    for l in range(L):
        params["gconv_gate_w"].append(xavier(keys[2 + 2 * l], (M * IS, 2 * U)))
        params["gconv_gate_b"].append(jnp.full((1, 2 * U), 1.0, F32))  # bias_start=1.0
        params["gconv_cand_w"].append(xavier(keys[3 + 2 * l], (M * IS, U)))
        params["gconv_cand_b"].append(jnp.zeros((1, U), F32))          # bias_start=0.0
    return params


def pack_weights(params):
    """Reshape the flat (M*IS, out) gconv weights into per-matrix x/h splits.

    Row ordering of the flat weight is m*IS + i with i < U the x-part and
    i >= U the h-part, so this is pure layout plumbing (identical math)."""
    wx3, wgh, wch, bg, bc = [], [], [], [], []
    for l in range(L):
        gw = params["gconv_gate_w"][l].reshape(M, IS, 2 * U)
        cw = params["gconv_cand_w"][l].reshape(M, IS, U)
        wx3.append(jnp.concatenate([gw[:, :U, :], cw[:, :U, :]], axis=2))  # (M,U,3U)
        wgh.append(gw[:, U:, :])                                           # (M,U,2U)
        wch.append(cw[:, U:, :])                                           # (M,U,U)
        bg.append(params["gconv_gate_b"][l])
        bc.append(params["gconv_cand_b"][l])
    return {
        "wx3": jnp.concatenate(wx3, axis=0).astype(F32),   # (L*M, U, 3U)
        "wgh": jnp.concatenate(wgh, axis=0).astype(F32),   # (L*M, U, 2U)
        "wch": jnp.concatenate(wch, axis=0).astype(F32),   # (L*M, U, U)
        "bg": jnp.stack(bg, axis=0).astype(F32),           # (L, 1, 2U)
        "bc": jnp.stack(bc, axis=0).astype(F32),           # (L, 1, U)
    }


def dcrnn_forward(params, x, adj):
    """x: (B, T, N, DIN), adj: (N, N).  Returns (loss, loss_info)."""
    supports_bd = build_supports_bd(adj)                                # (S, BN, BN)
    x_t = jnp.transpose(x, (1, 0, 2, 3)).reshape(T, BN, DIN)            # time-major
    x_target = jnp.transpose(x[..., 0], (0, 2, 1)).reshape(BN, T)       # (BN, T)

    eye_b = jnp.eye(B, dtype=F32)
    adj_bin = (adj > 0).astype(F32)
    adj_diag = jnp.kron(eye_b, adj_bin)                                 # (BN, BN)
    blk_mask = jnp.kron(eye_b, jnp.ones((N, N), F32))                   # (BN, BN)

    packed = pack_weights(params)

    vmem = pl.BlockSpec(memory_space=pltpu.MemorySpace.VMEM)
    smem = pl.BlockSpec(memory_space=pltpu.MemorySpace.SMEM)
    s_loss, f_loss = pl.pallas_call(
        _fused_forward_kernel,
        out_shape=(jax.ShapeDtypeStruct((1,), F32),
                   jax.ShapeDtypeStruct((1,), F32)),
        in_specs=[vmem] * 14,
        out_specs=(smem, smem),
        compiler_params=pltpu.CompilerParams(vmem_limit_bytes=32 * 1024 * 1024),
    )(x_t, x_target, adj_diag, blk_mask, supports_bd,
      params["emb_w"], params["emb_b"],
      packed["wx3"], packed["wgh"], packed["wch"], packed["bg"], packed["bc"],
      params["fdec_wT"], params["fdec_b"])

    s_loss, f_loss = s_loss[0], f_loss[0]
    loss = 1.0 * s_loss + 1.0 * f_loss                       # sl_weight = fl_weight = 1.0
    return loss, {"s_loss": s_loss, "f_loss": f_loss, "loss": loss}


# TODO(synk): random-walk structure masking / patch feature masking and Dropout
# randomness are not translated; default (mask ratios = 0, eval-mode dropout)
# forward path is implemented.

if __name__ == "__main__":
    key = jax.random.PRNGKey(0)
    k_adj, k_x, k_p = jax.random.split(key, 3)

    u_rand = jax.random.uniform(k_adj, (N, N), dtype=F32)
    adj = jnp.where(u_rand > 0.5, u_rand, 0.0).astype(F32)   # sparse-ish adjacency
    x = jax.random.normal(k_x, (B, T, N, DIN), dtype=F32)
    params = init_params(k_p)

    loss, info = dcrnn_forward(params, x, adj)
    jax.block_until_ready(loss)
    print("KERNEL_OK")
</pallas_src>

<mosaic_0001>
module attributes {stable_mosaic.version = 11 : i64} {
  func.func @_fused_forward_kernel(%arg0: memref<4x16x2xf32, #tpu.memory_space<vmem>>, %arg1: memref<16x4xf32, #tpu.memory_space<vmem>>, %arg2: memref<16x16xf32, #tpu.memory_space<vmem>>, %arg3: memref<16x16xf32, #tpu.memory_space<vmem>>, %arg4: memref<2x16x16xf32, #tpu.memory_space<vmem>>, %arg5: memref<2x16xf32, #tpu.memory_space<vmem>>, %arg6: memref<1x16xf32, #tpu.memory_space<vmem>>, %arg7: memref<10x16x48xf32, #tpu.memory_space<vmem>>, %arg8: memref<10x16x32xf32, #tpu.memory_space<vmem>>, %arg9: memref<10x16x16xf32, #tpu.memory_space<vmem>>, %arg10: memref<2x1x32xf32, #tpu.memory_space<vmem>>, %arg11: memref<2x1x16xf32, #tpu.memory_space<vmem>>, %arg12: memref<16x4xf32, #tpu.memory_space<vmem>>, %arg13: memref<1x4xf32, #tpu.memory_space<vmem>>, %arg14: memref<1xf32, #tpu.memory_space<smem>>, %arg15: memref<1xf32, #tpu.memory_space<smem>>) attributes {dimension_semantics = [], scalar_prefetch = 0 : i64, scratch_operands = 0 : i64, tpu.core_type = #tpu.core_type<tc>} {
    %c0 = arith.constant 0 : index
    %c0_0 = arith.constant 0 : index
    %c0_1 = arith.constant 0 : index
    %0 = vector.load %arg4[%c0, %c0_0, %c0_1] : memref<2x16x16xf32, #tpu.memory_space<vmem>>, vector<1x16x16xf32>
    %1 = vector.shape_cast %0 : vector<1x16x16xf32> to vector<16x16xf32>
    %c1 = arith.constant 1 : index
    %c0_2 = arith.constant 0 : index
    %c0_3 = arith.constant 0 : index
    %2 = vector.load %arg4[%c1, %c0_2, %c0_3] : memref<2x16x16xf32, #tpu.memory_space<vmem>>, vector<1x16x16xf32>
    %3 = vector.shape_cast %2 : vector<1x16x16xf32> to vector<16x16xf32>
    %c0_4 = arith.constant 0 : index
    %c0_5 = arith.constant 0 : index
    %4 = vector.load %arg5[%c0_4, %c0_5] : memref<2x16xf32, #tpu.memory_space<vmem>>, vector<2x16xf32>
    %c0_6 = arith.constant 0 : index
    %c0_7 = arith.constant 0 : index
    %5 = vector.load %arg6[%c0_6, %c0_7] : memref<1x16xf32, #tpu.memory_space<vmem>>, vector<1x16xf32>
    %cst = arith.constant 0.000000e+00 : f32
    %6 = vector.broadcast %cst : f32 to vector<16x16xf32>
    %cst_8 = arith.constant 0.000000e+00 : f32
    %7 = vector.broadcast %cst_8 : f32 to vector<16x16xf32>
    %c0_9 = arith.constant 0 : index
    %c0_10 = arith.constant 0 : index
    %c0_11 = arith.constant 0 : index
    %8 = vector.load %arg0[%c0_9, %c0_10, %c0_11] : memref<4x16x2xf32, #tpu.memory_space<vmem>>, vector<1x16x2xf32>
    %9 = vector.shape_cast %8 : vector<1x16x2xf32> to vector<16x2xf32>
    %cst_12 = arith.constant dense<0.000000e+00> : vector<16x16xf32>
    %10 = tpu.matmul %9, %4, %cst_12 {dimension_numbers = #tpu.dot_dimension_numbers<[1], [0], [0], [1], [0, 0, 1, 1], [], []>} : vector<16x2xf32>, vector<2x16xf32>, vector<16x16xf32> -> vector<16x16xf32>
    %11 = vector.broadcast %5 : vector<1x16xf32> to vector<16x16xf32>
    %12 = arith.addf %10, %11 : vector<16x16xf32>
    %cst_13 = arith.constant dense<0.000000e+00> : vector<16x16xf32>
    %13 = tpu.matmul %1, %12, %cst_13 {dimension_numbers = #tpu.dot_dimension_numbers<[1], [0], [0], [1], [0, 0, 1, 1], [], []>} : vector<16x16xf32>, vector<16x16xf32>, vector<16x16xf32> -> vector<16x16xf32>
    %cst_14 = arith.constant dense<0.000000e+00> : vector<16x16xf32>
    %14 = tpu.matmul %1, %13, %cst_14 {dimension_numbers = #tpu.dot_dimension_numbers<[1], [0], [0], [1], [0, 0, 1, 1], [], []>} : vector<16x16xf32>, vector<16x16xf32>, vector<16x16xf32> -> vector<16x16xf32>
    %cst_15 = arith.constant 2.000000e+00 : f32
    %15 = vector.broadcast %cst_15 : f32 to vector<16x16xf32>
    %16 = arith.mulf %15, %14 : vector<16x16xf32>
    %17 = arith.subf %16, %12 : vector<16x16xf32>
    %cst_16 = arith.constant dense<0.000000e+00> : vector<16x16xf32>
    %18 = tpu.matmul %3, %13, %cst_16 {dimension_numbers = #tpu.dot_dimension_numbers<[1], [0], [0], [1], [0, 0, 1, 1], [], []>} : vector<16x16xf32>, vector<16x16xf32>, vector<16x16xf32> -> vector<16x16xf32>
    %cst_17 = arith.constant dense<0.000000e+00> : vector<16x16xf32>
    %19 = tpu.matmul %3, %18, %cst_17 {dimension_numbers = #tpu.dot_dimension_numbers<[1], [0], [0], [1], [0, 0, 1, 1], [], []>} : vector<16x16xf32>, vector<16x16xf32>, vector<16x16xf32> -> vector<16x16xf32>
    %cst_18 = arith.constant 2.000000e+00 : f32
    %20 = vector.broadcast %cst_18 : f32 to vector<16x16xf32>
    %21 = arith.mulf %20, %19 : vector<16x16xf32>
    %22 = arith.subf %21, %13 : vector<16x16xf32>
    %cst_19 = arith.constant dense<0.000000e+00> : vector<16x16xf32>
    %23 = tpu.matmul %1, %6, %cst_19 {dimension_numbers = #tpu.dot_dimension_numbers<[1], [0], [0], [1], [0, 0, 1, 1], [], []>} : vector<16x16xf32>, vector<16x16xf32>, vector<16x16xf32> -> vector<16x16xf32>
    %cst_20 = arith.constant dense<0.000000e+00> : vector<16x16xf32>
    %24 = tpu.matmul %1, %23, %cst_20 {dimension_numbers = #tpu.dot_dimension_numbers<[1], [0], [0], [1], [0, 0, 1, 1], [], []>} : vector<16x16xf32>, vector<16x16xf32>, vector<16x16xf32> -> vector<16x16xf32>
    %cst_21 = arith.constant 2.000000e+00 : f32
    %25 = vector.broadcast %cst_21 : f32 to vector<16x16xf32>
    %26 = arith.mulf %25, %24 : vector<16x16xf32>
    %27 = arith.subf %26, %6 : vector<16x16xf32>
    %cst_22 = arith.constant dense<0.000000e+00> : vector<16x16xf32>
    %28 = tpu.matmul %3, %23, %cst_22 {dimension_numbers = #tpu.dot_dimension_numbers<[1], [0], [0], [1], [0, 0, 1, 1], [], []>} : vector<16x16xf32>, vector<16x16xf32>, vector<16x16xf32> -> vector<16x16xf32>
    %cst_23 = arith.constant dense<0.000000e+00> : vector<16x16xf32>
    %29 = tpu.matmul %3, %28, %cst_23 {dimension_numbers = #tpu.dot_dimension_numbers<[1], [0], [0], [1], [0, 0, 1, 1], [], []>} : vector<16x16xf32>, vector<16x16xf32>, vector<16x16xf32> -> vector<16x16xf32>
    %cst_24 = arith.constant 2.000000e+00 : f32
    %30 = vector.broadcast %cst_24 : f32 to vector<16x16xf32>
    %31 = arith.mulf %30, %29 : vector<16x16xf32>
    %32 = arith.subf %31, %23 : vector<16x16xf32>
    %c0_25 = arith.constant 0 : index
    %c0_26 = arith.constant 0 : index
    %c0_27 = arith.constant 0 : index
    %33 = vector.load %arg7[%c0_25, %c0_26, %c0_27] : memref<10x16x48xf32, #tpu.memory_space<vmem>>, vector<1x16x48xf32>
    %34 = vector.shape_cast %33 : vector<1x16x48xf32> to vector<16x48xf32>
    %cst_28 = arith.constant dense<0.000000e+00> : vector<16x48xf32>
    %35 = tpu.matmul %12, %34, %cst_28 {dimension_numbers = #tpu.dot_dimension_numbers<[1], [0], [0], [1], [0, 0, 1, 1], [], []>} : vector<16x16xf32>, vector<16x48xf32>, vector<16x48xf32> -> vector<16x48xf32>
    %c0_29 = arith.constant 0 : index
    %c0_30 = arith.constant 0 : index
    %c0_31 = arith.constant 0 : index
    %36 = vector.load %arg8[%c0_29, %c0_30, %c0_31] : memref<10x16x32xf32, #tpu.memory_space<vmem>>, vector<1x16x32xf32>
    %37 = vector.shape_cast %36 : vector<1x16x32xf32> to vector<16x32xf32>
    %cst_32 = arith.constant dense<0.000000e+00> : vector<16x32xf32>
    %38 = tpu.matmul %6, %37, %cst_32 {dimension_numbers = #tpu.dot_dimension_numbers<[1], [0], [0], [1], [0, 0, 1, 1], [], []>} : vector<16x16xf32>, vector<16x32xf32>, vector<16x32xf32> -> vector<16x32xf32>
    %c1_33 = arith.constant 1 : index
    %c0_34 = arith.constant 0 : index
    %c0_35 = arith.constant 0 : index
    %39 = vector.load %arg7[%c1_33, %c0_34, %c0_35] : memref<10x16x48xf32, #tpu.memory_space<vmem>>, vector<1x16x48xf32>
    %40 = vector.shape_cast %39 : vector<1x16x48xf32> to vector<16x48xf32>
    %cst_36 = arith.constant dense<0.000000e+00> : vector<16x48xf32>
    %41 = tpu.matmul %13, %40, %cst_36 {dimension_numbers = #tpu.dot_dimension_numbers<[1], [0], [0], [1], [0, 0, 1, 1], [], []>} : vector<16x16xf32>, vector<16x48xf32>, vector<16x48xf32> -> vector<16x48xf32>
    %42 = arith.addf %35, %41 : vector<16x48xf32>
    %c1_37 = arith.constant 1 : index
    %c0_38 = arith.constant 0 : index
    %c0_39 = arith.constant 0 : index
    %43 = vector.load %arg8[%c1_37, %c0_38, %c0_39] : memref<10x16x32xf32, #tpu.memory_space<vmem>>, vector<1x16x32xf32>
    %44 = vector.shape_cast %43 : vector<1x16x32xf32> to vector<16x32xf32>
    %cst_40 = arith.constant dense<0.000000e+00> : vector<16x32xf32>
    %45 = tpu.matmul %23, %44, %cst_40 {dimension_numbers = #tpu.dot_dimension_numbers<[1], [0], [0], [1], [0, 0, 1, 1], [], []>} : vector<16x16xf32>, vector<16x32xf32>, vector<16x32xf32> -> vector<16x32xf32>
    %46 = arith.addf %38, %45 : vector<16x32xf32>
    %c2 = arith.constant 2 : index
    %c0_41 = arith.constant 0 : index
    %c0_42 = arith.constant 0 : index
    %47 = vector.load %arg7[%c2, %c0_41, %c0_42] : memref<10x16x48xf32, #tpu.memory_space<vmem>>, vector<1x16x48xf32>
    %48 = vector.shape_cast %47 : vector<1x16x48xf32> to vector<16x48xf32>
    %cst_43 = arith.constant dense<0.000000e+00> : vector<16x48xf32>
    %49 = tpu.matmul %17, %48, %cst_43 {dimension_numbers = #tpu.dot_dimension_numbers<[1], [0], [0], [1], [0, 0, 1, 1], [], []>} : vector<16x16xf32>, vector<16x48xf32>, vector<16x48xf32> -> vector<16x48xf32>
    %50 = arith.addf %42, %49 : vector<16x48xf32>
    %c2_44 = arith.constant 2 : index
    %c0_45 = arith.constant 0 : index
    %c0_46 = arith.constant 0 : index
    %51 = vector.load %arg8[%c2_44, %c0_45, %c0_46] : memref<10x16x32xf32, #tpu.memory_space<vmem>>, vector<1x16x32xf32>
    %52 = vector.shape_cast %51 : vector<1x16x32xf32> to vector<16x32xf32>
    %cst_47 = arith.constant dense<0.000000e+00> : vector<16x32xf32>
    %53 = tpu.matmul %27, %52, %cst_47 {dimension_numbers = #tpu.dot_dimension_numbers<[1], [0], [0], [1], [0, 0, 1, 1], [], []>} : vector<16x16xf32>, vector<16x32xf32>, vector<16x32xf32> -> vector<16x32xf32>
    %54 = arith.addf %46, %53 : vector<16x32xf32>
    %c3 = arith.constant 3 : index
    %c0_48 = arith.constant 0 : index
    %c0_49 = arith.constant 0 : index
    %55 = vector.load %arg7[%c3, %c0_48, %c0_49] : memref<10x16x48xf32, #tpu.memory_space<vmem>>, vector<1x16x48xf32>
    %56 = vector.shape_cast %55 : vector<1x16x48xf32> to vector<16x48xf32>
    %cst_50 = arith.constant dense<0.000000e+00> : vector<16x48xf32>
    %57 = tpu.matmul %18, %56, %cst_50 {dimension_numbers = #tpu.dot_dimension_numbers<[1], [0], [0], [1], [0, 0, 1, 1], [], []>} : vector<16x16xf32>, vector<16x48xf32>, vector<16x48xf32> -> vector<16x48xf32>
    %58 = arith.addf %50, %57 : vector<16x48xf32>
    %c3_51 = arith.constant 3 : index
    %c0_52 = arith.constant 0 : index
    %c0_53 = arith.constant 0 : index
    %59 = vector.load %arg8[%c3_51, %c0_52, %c0_53] : memref<10x16x32xf32, #tpu.memory_space<vmem>>, vector<1x16x32xf32>
    %60 = vector.shape_cast %59 : vector<1x16x32xf32> to vector<16x32xf32>
    %cst_54 = arith.constant dense<0.000000e+00> : vector<16x32xf32>
    %61 = tpu.matmul %28, %60, %cst_54 {dimension_numbers = #tpu.dot_dimension_numbers<[1], [0], [0], [1], [0, 0, 1, 1], [], []>} : vector<16x16xf32>, vector<16x32xf32>, vector<16x32xf32> -> vector<16x32xf32>
    %62 = arith.addf %54, %61 : vector<16x32xf32>
    %c4 = arith.constant 4 : index
    %c0_55 = arith.constant 0 : index
    %c0_56 = arith.constant 0 : index
    %63 = vector.load %arg7[%c4, %c0_55, %c0_56] : memref<10x16x48xf32, #tpu.memory_space<vmem>>, vector<1x16x48xf32>
    %64 = vector.shape_cast %63 : vector<1x16x48xf32> to vector<16x48xf32>
    %cst_57 = arith.constant dense<0.000000e+00> : vector<16x48xf32>
    %65 = tpu.matmul %22, %64, %cst_57 {dimension_numbers = #tpu.dot_dimension_numbers<[1], [0], [0], [1], [0, 0, 1, 1], [], []>} : vector<16x16xf32>, vector<16x48xf32>, vector<16x48xf32> -> vector<16x48xf32>
    %66 = arith.addf %58, %65 : vector<16x48xf32>
    %c4_58 = arith.constant 4 : index
    %c0_59 = arith.constant 0 : index
    %c0_60 = arith.constant 0 : index
    %67 = vector.load %arg8[%c4_58, %c0_59, %c0_60] : memref<10x16x32xf32, #tpu.memory_space<vmem>>, vector<1x16x32xf32>
    %68 = vector.shape_cast %67 : vector<1x16x32xf32> to vector<16x32xf32>
    %cst_61 = arith.constant dense<0.000000e+00> : vector<16x32xf32>
    %69 = tpu.matmul %32, %68, %cst_61 {dimension_numbers = #tpu.dot_dimension_numbers<[1], [0], [0], [1], [0, 0, 1, 1], [], []>} : vector<16x16xf32>, vector<16x32xf32>, vector<16x32xf32> -> vector<16x32xf32>
    %70 = arith.addf %62, %69 : vector<16x32xf32>
    %71 = vector.extract_strided_slice %66 {offsets = [0, 0], sizes = [16, 32], strides = [1, 1]} : vector<16x48xf32> to vector<16x32xf32>
    %72 = arith.addf %71, %70 : vector<16x32xf32>
    %c0_62 = arith.constant 0 : index
    %c0_63 = arith.constant 0 : index
    %c0_64 = arith.constant 0 : index
    %73 = vector.load %arg10[%c0_62, %c0_63, %c0_64] : memref<2x1x32xf32, #tpu.memory_space<vmem>>, vector<1x1x32xf32>
    %74 = vector.shape_cast %73 : vector<1x1x32xf32> to vector<1x32xf32>
    %75 = vector.broadcast %74 : vector<1x32xf32> to vector<16x32xf32>
    %76 = arith.addf %72, %75 : vector<16x32xf32>
    %77 = arith.negf %76 : vector<16x32xf32>
    %78 = math.exp %77 : vector<16x32xf32>
    %cst_65 = arith.constant 1.000000e+00 : f32
    %79 = vector.broadcast %cst_65 : f32 to vector<16x32xf32>
    %80 = arith.addf %79, %78 : vector<16x32xf32>
    %81 = arith.divf %79, %80 : vector<16x32xf32>
    %82 = vector.extract_strided_slice %81 {offsets = [0, 0], sizes = [16, 16], strides = [1, 1]} : vector<16x32xf32> to vector<16x16xf32>
    %83 = vector.extract_strided_slice %81 {offsets = [0, 16], sizes = [16, 16], strides = [1, 1]} : vector<16x32xf32> to vector<16x16xf32>
    %84 = arith.mulf %82, %6 : vector<16x16xf32>
    %cst_66 = arith.constant dense<0.000000e+00> : vector<16x16xf32>
    %85 = tpu.matmul %1, %84, %cst_66 {dimension_numbers = #tpu.dot_dimension_numbers<[1], [0], [0], [1], [0, 0, 1, 1], [], []>} : vector<16x16xf32>, vector<16x16xf32>, vector<16x16xf32> -> vector<16x16xf32>
    %cst_67 = arith.constant dense<0.000000e+00> : vector<16x16xf32>
    %86 = tpu.matmul %1, %85, %cst_67 {dimension_numbers = #tpu.dot_dimension_numbers<[1], [0], [0], [1], [0, 0, 1, 1], [], []>} : vector<16x16xf32>, vector<16x16xf32>, vector<16x16xf32> -> vector<16x16xf32>
    %cst_68 = arith.constant 2.000000e+00 : f32
    %87 = vector.broadcast %cst_68 : f32 to vector<16x16xf32>
    %88 = arith.mulf %87, %86 : vector<16x16xf32>
    %89 = arith.subf %88, %84 : vector<16x16xf32>
    %cst_69 = arith.constant dense<0.000000e+00> : vector<16x16xf32>
    %90 = tpu.matmul %3, %85, %cst_69 {dimension_numbers = #tpu.dot_dimension_numbers<[1], [0], [0], [1], [0, 0, 1, 1], [], []>} : vector<16x16xf32>, vector<16x16xf32>, vector<16x16xf32> -> vector<16x16xf32>
    %cst_70 = arith.constant dense<0.000000e+00> : vector<16x16xf32>
    %91 = tpu.matmul %3, %90, %cst_70 {dimension_numbers = #tpu.dot_dimension_numbers<[1], [0], [0], [1], [0, 0, 1, 1], [], []>} : vector<16x16xf32>, vector<16x16xf32>, vector<16x16xf32> -> vector<16x16xf32>
    %cst_71 = arith.constant 2.000000e+00 : f32
    %92 = vector.broadcast %cst_71 : f32 to vector<16x16xf32>
    %93 = arith.mulf %92, %91 : vector<16x16xf32>
    %94 = arith.subf %93, %85 : vector<16x16xf32>
    %95 = vector.extract_strided_slice %66 {offsets = [0, 32], sizes = [16, 16], strides = [1, 1]} : vector<16x48xf32> to vector<16x16xf32>
    %c0_72 = arith.constant 0 : index
    %c0_73 = arith.constant 0 : index
    %c0_74 = arith.constant 0 : index
    %96 = vector.load %arg11[%c0_72, %c0_73, %c0_74] : memref<2x1x16xf32, #tpu.memory_space<vmem>>, vector<1x1x16xf32>
    %97 = vector.shape_cast %96 : vector<1x1x16xf32> to vector<1x16xf32>
    %98 = vector.broadcast %97 : vector<1x16xf32> to vector<16x16xf32>
    %99 = arith.addf %95, %98 : vector<16x16xf32>
    %c0_75 = arith.constant 0 : index
    %c0_76 = arith.constant 0 : index
    %c0_77 = arith.constant 0 : index
    %100 = vector.load %arg9[%c0_75, %c0_76, %c0_77] : memref<10x16x16xf32, #tpu.memory_space<vmem>>, vector<1x16x16xf32>
    %101 = vector.shape_cast %100 : vector<1x16x16xf32> to vector<16x16xf32>
    %cst_78 = arith.constant dense<0.000000e+00> : vector<16x16xf32>
    %102 = tpu.matmul %84, %101, %cst_78 {dimension_numbers = #tpu.dot_dimension_numbers<[1], [0], [0], [1], [0, 0, 1, 1], [], []>} : vector<16x16xf32>, vector<16x16xf32>, vector<16x16xf32> -> vector<16x16xf32>
    %103 = arith.addf %99, %102 : vector<16x16xf32>
    %c1_79 = arith.constant 1 : index
    %c0_80 = arith.constant 0 : index
    %c0_81 = arith.constant 0 : index
    %104 = vector.load %arg9[%c1_79, %c0_80, %c0_81] : memref<10x16x16xf32, #tpu.memory_space<vmem>>, vector<1x16x16xf32>
    %105 = vector.shape_cast %104 : vector<1x16x16xf32> to vector<16x16xf32>
    %cst_82 = arith.constant dense<0.000000e+00> : vector<16x16xf32>
    %106 = tpu.matmul %85, %105, %cst_82 {dimension_numbers = #tpu.dot_dimension_numbers<[1], [0], [0], [1], [0, 0, 1, 1], [], []>} : vector<16x16xf32>, vector<16x16xf32>, vector<16x16xf32> -> vector<16x16xf32>
    %107 = arith.addf %103, %106 : vector<16x16xf32>
    %c2_83 = arith.constant 2 : index
    %c0_84 = arith.constant 0 : index
    %c0_85 = arith.constant 0 : index
    %108 = vector.load %arg9[%c2_83, %c0_84, %c0_85] : memref<10x16x16xf32, #tpu.memory_space<vmem>>, vector<1x16x16xf32>
    %109 = vector.shape_cast %108 : vector<1x16x16xf32> to vector<16x16xf32>
    %cst_86 = arith.constant dense<0.000000e+00> : vector<16x16xf32>
    %110 = tpu.matmul %89, %109, %cst_86 {dimension_numbers = #tpu.dot_dimension_numbers<[1], [0], [0], [1], [0, 0, 1, 1], [], []>} : vector<16x16xf32>, vector<16x16xf32>, vector<16x16xf32> -> vector<16x16xf32>
    %111 = arith.addf %107, %110 : vector<16x16xf32>
    %c3_87 = arith.constant 3 : index
    %c0_88 = arith.constant 0 : index
    %c0_89 = arith.constant 0 : index
    %112 = vector.load %arg9[%c3_87, %c0_88, %c0_89] : memref<10x16x16xf32, #tpu.memory_space<vmem>>, vector<1x16x16xf32>
    %113 = vector.shape_cast %112 : vector<1x16x16xf32> to vector<16x16xf32>
    %cst_90 = arith.constant dense<0.000000e+00> : vector<16x16xf32>
    %114 = tpu.matmul %90, %113, %cst_90 {dimension_numbers = #tpu.dot_dimension_numbers<[1], [0], [0], [1], [0, 0, 1, 1], [], []>} : vector<16x16xf32>, vector<16x16xf32>, vector<16x16xf32> -> vector<16x16xf32>
    %115 = arith.addf %111, %114 : vector<16x16xf32>
    %c4_91 = arith.constant 4 : index
    %c0_92 = arith.constant 0 : index
    %c0_93 = arith.constant 0 : index
    %116 = vector.load %arg9[%c4_91, %c0_92, %c0_93] : memref<10x16x16xf32, #tpu.memory_space<vmem>>, vector<1x16x16xf32>
    %117 = vector.shape_cast %116 : vector<1x16x16xf32> to vector<16x16xf32>
    %cst_94 = arith.constant dense<0.000000e+00> : vector<16x16xf32>
    %118 = tpu.matmul %94, %117, %cst_94 {dimension_numbers = #tpu.dot_dimension_numbers<[1], [0], [0], [1], [0, 0, 1, 1], [], []>} : vector<16x16xf32>, vector<16x16xf32>, vector<16x16xf32> -> vector<16x16xf32>
    %119 = arith.addf %115, %118 : vector<16x16xf32>
    %120 = math.tanh %119 : vector<16x16xf32>
    %121 = arith.mulf %83, %6 : vector<16x16xf32>
    %cst_95 = arith.constant 1.000000e+00 : f32
    %122 = vector.broadcast %cst_95 : f32 to vector<16x16xf32>
    %123 = arith.subf %122, %83 : vector<16x16xf32>
    %124 = arith.mulf %123, %120 : vector<16x16xf32>
    %125 = arith.addf %121, %124 : vector<16x16xf32>
    %cst_96 = arith.constant dense<0.000000e+00> : vector<16x16xf32>
    %126 = tpu.matmul %1, %125, %cst_96 {dimension_numbers = #tpu.dot_dimension_numbers<[1], [0], [0], [1], [0, 0, 1, 1], [], []>} : vector<16x16xf32>, vector<16x16xf32>, vector<16x16xf32> -> vector<16x16xf32>
    %cst_97 = arith.constant dense<0.000000e+00> : vector<16x16xf32>
    %127 = tpu.matmul %1, %126, %cst_97 {dimension_numbers = #tpu.dot_dimension_numbers<[1], [0], [0], [1], [0, 0, 1, 1], [], []>} : vector<16x16xf32>, vector<16x16xf32>, vector<16x16xf32> -> vector<16x16xf32>
    %cst_98 = arith.constant 2.000000e+00 : f32
    %128 = vector.broadcast %cst_98 : f32 to vector<16x16xf32>
    %129 = arith.mulf %128, %127 : vector<16x16xf32>
    %130 = arith.subf %129, %125 : vector<16x16xf32>
    %cst_99 = arith.constant dense<0.000000e+00> : vector<16x16xf32>
    %131 = tpu.matmul %3, %126, %cst_99 {dimension_numbers = #tpu.dot_dimension_numbers<[1], [0], [0], [1], [0, 0, 1, 1], [], []>} : vector<16x16xf32>, vector<16x16xf32>, vector<16x16xf32> -> vector<16x16xf32>
    %cst_100 = arith.constant dense<0.000000e+00> : vector<16x16xf32>
    %132 = tpu.matmul %3, %131, %cst_100 {dimension_numbers = #tpu.dot_dimension_numbers<[1], [0], [0], [1], [0, 0, 1, 1], [], []>} : vector<16x16xf32>, vector<16x16xf32>, vector<16x16xf32> -> vector<16x16xf32>
    %cst_101 = arith.constant 2.000000e+00 : f32
    %133 = vector.broadcast %cst_101 : f32 to vector<16x16xf32>
    %134 = arith.mulf %133, %132 : vector<16x16xf32>
    %135 = arith.subf %134, %126 : vector<16x16xf32>
    %cst_102 = arith.constant dense<0.000000e+00> : vector<16x16xf32>
    %136 = tpu.matmul %1, %7, %cst_102 {dimension_numbers = #tpu.dot_dimension_numbers<[1], [0], [0], [1], [0, 0, 1, 1], [], []>} : vector<16x16xf32>, vector<16x16xf32>, vector<16x16xf32> -> vector<16x16xf32>
    %cst_103 = arith.constant dense<0.000000e+00> : vector<16x16xf32>
    %137 = tpu.matmul %1, %136, %cst_103 {dimension_numbers = #tpu.dot_dimension_numbers<[1], [0], [0], [1], [0, 0, 1, 1], [], []>} : vector<16x16xf32>, vector<16x16xf32>, vector<16x16xf32> -> vector<16x16xf32>
    %cst_104 = arith.constant 2.000000e+00 : f32
    %138 = vector.broadcast %cst_104 : f32 to vector<16x16xf32>
    %139 = arith.mulf %138, %137 : vector<16x16xf32>
    %140 = arith.subf %139, %7 : vector<16x16xf32>
    %cst_105 = arith.constant dense<0.000000e+00> : vector<16x16xf32>
    %141 = tpu.matmul %3, %136, %cst_105 {dimension_numbers = #tpu.dot_dimension_numbers<[1], [0], [0], [1], [0, 0, 1, 1], [], []>} : vector<16x16xf32>, vector<16x16xf32>, vector<16x16xf32> -> vector<16x16xf32>
    %cst_106 = arith.constant dense<0.000000e+00> : vector<16x16xf32>
    %142 = tpu.matmul %3, %141, %cst_106 {dimension_numbers = #tpu.dot_dimension_numbers<[1], [0], [0], [1], [0, 0, 1, 1], [], []>} : vector<16x16xf32>, vector<16x16xf32>, vector<16x16xf32> -> vector<16x16xf32>
    %cst_107 = arith.constant 2.000000e+00 : f32
    %143 = vector.broadcast %cst_107 : f32 to vector<16x16xf32>
    %144 = arith.mulf %143, %142 : vector<16x16xf32>
    %145 = arith.subf %144, %136 : vector<16x16xf32>
    %c5 = arith.constant 5 : index
    %c0_108 = arith.constant 0 : index
    %c0_109 = arith.constant 0 : index
    %146 = vector.load %arg7[%c5, %c0_108, %c0_109] : memref<10x16x48xf32, #tpu.memory_space<vmem>>, vector<1x16x48xf32>
    %147 = vector.shape_cast %146 : vector<1x16x48xf32> to vector<16x48xf32>
    %cst_110 = arith.constant dense<0.000000e+00> : vector<16x48xf32>
    %148 = tpu.matmul %125, %147, %cst_110 {dimension_numbers = #tpu.dot_dimension_numbers<[1], [0], [0], [1], [0, 0, 1, 1], [], []>} : vector<16x16xf32>, vector<16x48xf32>, vector<16x48xf32> -> vector<16x48xf32>
    %c5_111 = arith.constant 5 : index
    %c0_112 = arith.constant 0 : index
    %c0_113 = arith.constant 0 : index
    %149 = vector.load %arg8[%c5_111, %c0_112, %c0_113] : memref<10x16x32xf32, #tpu.memory_space<vmem>>, vector<1x16x32xf32>
    %150 = vector.shape_cast %149 : vector<1x16x32xf32> to vector<16x32xf32>
    %cst_114 = arith.constant dense<0.000000e+00> : vector<16x32xf32>
    %151 = tpu.matmul %7, %150, %cst_114 {dimension_numbers = #tpu.dot_dimension_numbers<[1], [0], [0], [1], [0, 0, 1, 1], [], []>} : vector<16x16xf32>, vector<16x32xf32>, vector<16x32xf32> -> vector<16x32xf32>
    %c6 = arith.constant 6 : index
    %c0_115 = arith.constant 0 : index
    %c0_116 = arith.constant 0 : index
    %152 = vector.load %arg7[%c6, %c0_115, %c0_116] : memref<10x16x48xf32, #tpu.memory_space<vmem>>, vector<1x16x48xf32>
    %153 = vector.shape_cast %152 : vector<1x16x48xf32> to vector<16x48xf32>
    %cst_117 = arith.constant dense<0.000000e+00> : vector<16x48xf32>
    %154 = tpu.matmul %126, %153, %cst_117 {dimension_numbers = #tpu.dot_dimension_numbers<[1], [0], [0], [1], [0, 0, 1, 1], [], []>} : vector<16x16xf32>, vector<16x48xf32>, vector<16x48xf32> -> vector<16x48xf32>
    %155 = arith.addf %148, %154 : vector<16x48xf32>
    %c6_118 = arith.constant 6 : index
    %c0_119 = arith.constant 0 : index
    %c0_120 = arith.constant 0 : index
    %156 = vector.load %arg8[%c6_118, %c0_119, %c0_120] : memref<10x16x32xf32, #tpu.memory_space<vmem>>, vector<1x16x32xf32>
    %157 = vector.shape_cast %156 : vector<1x16x32xf32> to vector<16x32xf32>
    %cst_121 = arith.constant dense<0.000000e+00> : vector<16x32xf32>
    %158 = tpu.matmul %136, %157, %cst_121 {dimension_numbers = #tpu.dot_dimension_numbers<[1], [0], [0], [1], [0, 0, 1, 1], [], []>} : vector<16x16xf32>, vector<16x32xf32>, vector<16x32xf32> -> vector<16x32xf32>
    %159 = arith.addf %151, %158 : vector<16x32xf32>
    %c7 = arith.constant 7 : index
    %c0_122 = arith.constant 0 : index
    %c0_123 = arith.constant 0 : index
    %160 = vector.load %arg7[%c7, %c0_122, %c0_123] : memref<10x16x48xf32, #tpu.memory_space<vmem>>, vector<1x16x48xf32>
    %161 = vector.shape_cast %160 : vector<1x16x48xf32> to vector<16x48xf32>
    %cst_124 = arith.constant dense<0.000000e+00> : vector<16x48xf32>
    %162 = tpu.matmul %130, %161, %cst_124 {dimension_numbers = #tpu.dot_dimension_numbers<[1], [0], [0], [1], [0, 0, 1, 1], [], []>} : vector<16x16xf32>, vector<16x48xf32>, vector<16x48xf32> -> vector<16x48xf32>
    %163 = arith.addf %155, %162 : vector<16x48xf32>
    %c7_125 = arith.constant 7 : index
    %c0_126 = arith.constant 0 : index
    %c0_127 = arith.constant 0 : index
    %164 = vector.load %arg8[%c7_125, %c0_126, %c0_127] : memref<10x16x32xf32, #tpu.memory_space<vmem>>, vector<1x16x32xf32>
    %165 = vector.shape_cast %164 : vector<1x16x32xf32> to vector<16x32xf32>
    %cst_128 = arith.constant dense<0.000000e+00> : vector<16x32xf32>
    %166 = tpu.matmul %140, %165, %cst_128 {dimension_numbers = #tpu.dot_dimension_numbers<[1], [0], [0], [1], [0, 0, 1, 1], [], []>} : vector<16x16xf32>, vector<16x32xf32>, vector<16x32xf32> -> vector<16x32xf32>
    %167 = arith.addf %159, %166 : vector<16x32xf32>
    %c8 = arith.constant 8 : index
    %c0_129 = arith.constant 0 : index
    %c0_130 = arith.constant 0 : index
    %168 = vector.load %arg7[%c8, %c0_129, %c0_130] : memref<10x16x48xf32, #tpu.memory_space<vmem>>, vector<1x16x48xf32>
    %169 = vector.shape_cast %168 : vector<1x16x48xf32> to vector<16x48xf32>
    %cst_131 = arith.constant dense<0.000000e+00> : vector<16x48xf32>
    %170 = tpu.matmul %131, %169, %cst_131 {dimension_numbers = #tpu.dot_dimension_numbers<[1], [0], [0], [1], [0, 0, 1, 1], [], []>} : vector<16x16xf32>, vector<16x48xf32>, vector<16x48xf32> -> vector<16x48xf32>
    %171 = arith.addf %163, %170 : vector<16x48xf32>
    %c8_132 = arith.constant 8 : index
    %c0_133 = arith.constant 0 : index
    %c0_134 = arith.constant 0 : index
    %172 = vector.load %arg8[%c8_132, %c0_133, %c0_134] : memref<10x16x32xf32, #tpu.memory_space<vmem>>, vector<1x16x32xf32>
    %173 = vector.shape_cast %172 : vector<1x16x32xf32> to vector<16x32xf32>
    %cst_135 = arith.constant dense<0.000000e+00> : vector<16x32xf32>
    %174 = tpu.matmul %141, %173, %cst_135 {dimension_numbers = #tpu.dot_dimension_numbers<[1], [0], [0], [1], [0, 0, 1, 1], [], []>} : vector<16x16xf32>, vector<16x32xf32>, vector<16x32xf32> -> vector<16x32xf32>
    %175 = arith.addf %167, %174 : vector<16x32xf32>
    %c9 = arith.constant 9 : index
    %c0_136 = arith.constant 0 : index
    %c0_137 = arith.constant 0 : index
    %176 = vector.load %arg7[%c9, %c0_136, %c0_137] : memref<10x16x48xf32, #tpu.memory_space<vmem>>, vector<1x16x48xf32>
    %177 = vector.shape_cast %176 : vector<1x16x48xf32> to vector<16x48xf32>
    %cst_138 = arith.constant dense<0.000000e+00> : vector<16x48xf32>
    %178 = tpu.matmul %135, %177, %cst_138 {dimension_numbers = #tpu.dot_dimension_numbers<[1], [0], [0], [1], [0, 0, 1, 1], [], []>} : vector<16x16xf32>, vector<16x48xf32>, vector<16x48xf32> -> vector<16x48xf32>
    %179 = arith.addf %171, %178 : vector<16x48xf32>
    %c9_139 = arith.constant 9 : index
    %c0_140 = arith.constant 0 : index
    %c0_141 = arith.constant 0 : index
    %180 = vector.load %arg8[%c9_139, %c0_140, %c0_141] : memref<10x16x32xf32, #tpu.memory_space<vmem>>, vector<1x16x32xf32>
    %181 = vector.shape_cast %180 : vector<1x16x32xf32> to vector<16x32xf32>
    %cst_142 = arith.constant dense<0.000000e+00> : vector<16x32xf32>
    %182 = tpu.matmul %145, %181, %cst_142 {dimension_numbers = #tpu.dot_dimension_numbers<[1], [0], [0], [1], [0, 0, 1, 1], [], []>} : vector<16x16xf32>, vector<16x32xf32>, vector<16x32xf32> -> vector<16x32xf32>
    %183 = arith.addf %175, %182 : vector<16x32xf32>
    %184 = vector.extract_strided_slice %179 {offsets = [0, 0], sizes = [16, 32], strides = [1, 1]} : vector<16x48xf32> to vector<16x32xf32>
    %185 = arith.addf %184, %183 : vector<16x32xf32>
    %c1_143 = arith.constant 1 : index
    %c0_144 = arith.constant 0 : index
    %c0_145 = arith.constant 0 : index
    %186 = vector.load %arg10[%c1_143, %c0_144, %c0_145] : memref<2x1x32xf32, #tpu.memory_space<vmem>>, vector<1x1x32xf32>
    %187 = vector.shape_cast %186 : vector<1x1x32xf32> to vector<1x32xf32>
    %188 = vector.broadcast %187 : vector<1x32xf32> to vector<16x32xf32>
    %189 = arith.addf %185, %188 : vector<16x32xf32>
    %190 = arith.negf %189 : vector<16x32xf32>
    %191 = math.exp %190 : vector<16x32xf32>
    %cst_146 = arith.constant 1.000000e+00 : f32
    %192 = vector.broadcast %cst_146 : f32 to vector<16x32xf32>
    %193 = arith.addf %192, %191 : vector<16x32xf32>
    %194 = arith.divf %192, %193 : vector<16x32xf32>
    %195 = vector.extract_strided_slice %194 {offsets = [0, 0], sizes = [16, 16], strides = [1, 1]} : vector<16x32xf32> to vector<16x16xf32>
    %196 = vector.extract_strided_slice %194 {offsets = [0, 16], sizes = [16, 16], strides = [1, 1]} : vector<16x32xf32> to vector<16x16xf32>
    %197 = arith.mulf %195, %7 : vector<16x16xf32>
    %cst_147 = arith.constant dense<0.000000e+00> : vector<16x16xf32>
    %198 = tpu.matmul %1, %197, %cst_147 {dimension_numbers = #tpu.dot_dimension_numbers<[1], [0], [0], [1], [0, 0, 1, 1], [], []>} : vector<16x16xf32>, vector<16x16xf32>, vector<16x16xf32> -> vector<16x16xf32>
    %cst_148 = arith.constant dense<0.000000e+00> : vector<16x16xf32>
    %199 = tpu.matmul %1, %198, %cst_148 {dimension_numbers = #tpu.dot_dimension_numbers<[1], [0], [0], [1], [0, 0, 1, 1], [], []>} : vector<16x16xf32>, vector<16x16xf32>, vector<16x16xf32> -> vector<16x16xf32>
    %cst_149 = arith.constant 2.000000e+00 : f32
    %200 = vector.broadcast %cst_149 : f32 to vector<16x16xf32>
    %201 = arith.mulf %200, %199 : vector<16x16xf32>
    %202 = arith.subf %201, %197 : vector<16x16xf32>
    %cst_150 = arith.constant dense<0.000000e+00> : vector<16x16xf32>
    %203 = tpu.matmul %3, %198, %cst_150 {dimension_numbers = #tpu.dot_dimension_numbers<[1], [0], [0], [1], [0, 0, 1, 1], [], []>} : vector<16x16xf32>, vector<16x16xf32>, vector<16x16xf32> -> vector<16x16xf32>
    %cst_151 = arith.constant dense<0.000000e+00> : vector<16x16xf32>
    %204 = tpu.matmul %3, %203, %cst_151 {dimension_numbers = #tpu.dot_dimension_numbers<[1], [0], [0], [1], [0, 0, 1, 1], [], []>} : vector<16x16xf32>, vector<16x16xf32>, vector<16x16xf32> -> vector<16x16xf32>
    %cst_152 = arith.constant 2.000000e+00 : f32
    %205 = vector.broadcast %cst_152 : f32 to vector<16x16xf32>
    %206 = arith.mulf %205, %204 : vector<16x16xf32>
    %207 = arith.subf %206, %198 : vector<16x16xf32>
    %208 = vector.extract_strided_slice %179 {offsets = [0, 32], sizes = [16, 16], strides = [1, 1]} : vector<16x48xf32> to vector<16x16xf32>
    %c1_153 = arith.constant 1 : index
    %c0_154 = arith.constant 0 : index
    %c0_155 = arith.constant 0 : index
    %209 = vector.load %arg11[%c1_153, %c0_154, %c0_155] : memref<2x1x16xf32, #tpu.memory_space<vmem>>, vector<1x1x16xf32>
    %210 = vector.shape_cast %209 : vector<1x1x16xf32> to vector<1x16xf32>
    %211 = vector.broadcast %210 : vector<1x16xf32> to vector<16x16xf32>
    %212 = arith.addf %208, %211 : vector<16x16xf32>
    %c5_156 = arith.constant 5 : index
    %c0_157 = arith.constant 0 : index
    %c0_158 = arith.constant 0 : index
    %213 = vector.load %arg9[%c5_156, %c0_157, %c0_158] : memref<10x16x16xf32, #tpu.memory_space<vmem>>, vector<1x16x16xf32>
    %214 = vector.shape_cast %213 : vector<1x16x16xf32> to vector<16x16xf32>
    %cst_159 = arith.constant dense<0.000000e+00> : vector<16x16xf32>
    %215 = tpu.matmul %197, %214, %cst_159 {dimension_numbers = #tpu.dot_dimension_numbers<[1], [0], [0], [1], [0, 0, 1, 1], [], []>} : vector<16x16xf32>, vector<16x16xf32>, vector<16x16xf32> -> vector<16x16xf32>
    %216 = arith.addf %212, %215 : vector<16x16xf32>
    %c6_160 = arith.constant 6 : index
    %c0_161 = arith.constant 0 : index
    %c0_162 = arith.constant 0 : index
    %217 = vector.load %arg9[%c6_160, %c0_161, %c0_162] : memref<10x16x16xf32, #tpu.memory_space<vmem>>, vector<1x16x16xf32>
    %218 = vector.shape_cast %217 : vector<1x16x16xf32> to vector<16x16xf32>
    %cst_163 = arith.constant dense<0.000000e+00> : vector<16x16xf32>
    %219 = tpu.matmul %198, %218, %cst_163 {dimension_numbers = #tpu.dot_dimension_numbers<[1], [0], [0], [1], [0, 0, 1, 1], [], []>} : vector<16x16xf32>, vector<16x16xf32>, vector<16x16xf32> -> vector<16x16xf32>
    %220 = arith.addf %216, %219 : vector<16x16xf32>
    %c7_164 = arith.constant 7 : index
    %c0_165 = arith.constant 0 : index
    %c0_166 = arith.constant 0 : index
    %221 = vector.load %arg9[%c7_164, %c0_165, %c0_166] : memref<10x16x16xf32, #tpu.memory_space<vmem>>, vector<1x16x16xf32>
    %222 = vector.shape_cast %221 : vector<1x16x16xf32> to vector<16x16xf32>
    %cst_167 = arith.constant dense<0.000000e+00> : vector<16x16xf32>
    %223 = tpu.matmul %202, %222, %cst_167 {dimension_numbers = #tpu.dot_dimension_numbers<[1], [0], [0], [1], [0, 0, 1, 1], [], []>} : vector<16x16xf32>, vector<16x16xf32>, vector<16x16xf32> -> vector<16x16xf32>
    %224 = arith.addf %220, %223 : vector<16x16xf32>
    %c8_168 = arith.constant 8 : index
    %c0_169 = arith.constant 0 : index
    %c0_170 = arith.constant 0 : index
    %225 = vector.load %arg9[%c8_168, %c0_169, %c0_170] : memref<10x16x16xf32, #tpu.memory_space<vmem>>, vector<1x16x16xf32>
    %226 = vector.shape_cast %225 : vector<1x16x16xf32> to vector<16x16xf32>
    %cst_171 = arith.constant dense<0.000000e+00> : vector<16x16xf32>
    %227 = tpu.matmul %203, %226, %cst_171 {dimension_numbers = #tpu.dot_dimension_numbers<[1], [0], [0], [1], [0, 0, 1, 1], [], []>} : vector<16x16xf32>, vector<16x16xf32>, vector<16x16xf32> -> vector<16x16xf32>
    %228 = arith.addf %224, %227 : vector<16x16xf32>
    %c9_172 = arith.constant 9 : index
    %c0_173 = arith.constant 0 : index
    %c0_174 = arith.constant 0 : index
    %229 = vector.load %arg9[%c9_172, %c0_173, %c0_174] : memref<10x16x16xf32, #tpu.memory_space<vmem>>, vector<1x16x16xf32>
    %230 = vector.shape_cast %229 : vector<1x16x16xf32> to vector<16x16xf32>
    %cst_175 = arith.constant dense<0.000000e+00> : vector<16x16xf32>
    %231 = tpu.matmul %207, %230, %cst_175 {dimension_numbers = #tpu.dot_dimension_numbers<[1], [0], [0], [1], [0, 0, 1, 1], [], []>} : vector<16x16xf32>, vector<16x16xf32>, vector<16x16xf32> -> vector<16x16xf32>
    %232 = arith.addf %228, %231 : vector<16x16xf32>
    %233 = math.tanh %232 : vector<16x16xf32>
    %234 = arith.mulf %196, %7 : vector<16x16xf32>
    %cst_176 = arith.constant 1.000000e+00 : f32
    %235 = vector.broadcast %cst_176 : f32 to vector<16x16xf32>
    %236 = arith.subf %235, %196 : vector<16x16xf32>
    %237 = arith.mulf %236, %233 : vector<16x16xf32>
    %238 = arith.addf %234, %237 : vector<16x16xf32>
    %c1_177 = arith.constant 1 : index
    %c0_178 = arith.constant 0 : index
    %c0_179 = arith.constant 0 : index
    %239 = vector.load %arg0[%c1_177, %c0_178, %c0_179] : memref<4x16x2xf32, #tpu.memory_space<vmem>>, vector<1x16x2xf32>
    %240 = vector.shape_cast %239 : vector<1x16x2xf32> to vector<16x2xf32>
    %cst_180 = arith.constant dense<0.000000e+00> : vector<16x16xf32>
    %241 = tpu.matmul %240, %4, %cst_180 {dimension_numbers = #tpu.dot_dimension_numbers<[1], [0], [0], [1], [0, 0, 1, 1], [], []>} : vector<16x2xf32>, vector<2x16xf32>, vector<16x16xf32> -> vector<16x16xf32>
    %242 = vector.broadcast %5 : vector<1x16xf32> to vector<16x16xf32>
    %243 = arith.addf %241, %242 : vector<16x16xf32>
    %cst_181 = arith.constant dense<0.000000e+00> : vector<16x16xf32>
    %244 = tpu.matmul %1, %243, %cst_181 {dimension_numbers = #tpu.dot_dimension_numbers<[1], [0], [0], [1], [0, 0, 1, 1], [], []>} : vector<16x16xf32>, vector<16x16xf32>, vector<16x16xf32> -> vector<16x16xf32>
    %cst_182 = arith.constant dense<0.000000e+00> : vector<16x16xf32>
    %245 = tpu.matmul %1, %244, %cst_182 {dimension_numbers = #tpu.dot_dimension_numbers<[1], [0], [0], [1], [0, 0, 1, 1], [], []>} : vector<16x16xf32>, vector<16x16xf32>, vector<16x16xf32> -> vector<16x16xf32>
    %cst_183 = arith.constant 2.000000e+00 : f32
    %246 = vector.broadcast %cst_183 : f32 to vector<16x16xf32>
    %247 = arith.mulf %246, %245 : vector<16x16xf32>
    %248 = arith.subf %247, %243 : vector<16x16xf32>
    %cst_184 = arith.constant dense<0.000000e+00> : vector<16x16xf32>
    %249 = tpu.matmul %3, %244, %cst_184 {dimension_numbers = #tpu.dot_dimension_numbers<[1], [0], [0], [1], [0, 0, 1, 1], [], []>} : vector<16x16xf32>, vector<16x16xf32>, vector<16x16xf32> -> vector<16x16xf32>
    %cst_185 = arith.constant dense<0.000000e+00> : vector<16x16xf32>
    %250 = tpu.matmul %3, %249, %cst_185 {dimension_numbers = #tpu.dot_dimension_numbers<[1], [0], [0], [1], [0, 0, 1, 1], [], []>} : vector<16x16xf32>, vector<16x16xf32>, vector<16x16xf32> -> vector<16x16xf32>
    %cst_186 = arith.constant 2.000000e+00 : f32
    %251 = vector.broadcast %cst_186 : f32 to vector<16x16xf32>
    %252 = arith.mulf %251, %250 : vector<16x16xf32>
    %253 = arith.subf %252, %244 : vector<16x16xf32>
    %cst_187 = arith.constant dense<0.000000e+00> : vector<16x16xf32>
    %254 = tpu.matmul %1, %125, %cst_187 {dimension_numbers = #tpu.dot_dimension_numbers<[1], [0], [0], [1], [0, 0, 1, 1], [], []>} : vector<16x16xf32>, vector<16x16xf32>, vector<16x16xf32> -> vector<16x16xf32>
    %cst_188 = arith.constant dense<0.000000e+00> : vector<16x16xf32>
    %255 = tpu.matmul %1, %254, %cst_188 {dimension_numbers = #tpu.dot_dimension_numbers<[1], [0], [0], [1], [0, 0, 1, 1], [], []>} : vector<16x16xf32>, vector<16x16xf32>, vector<16x16xf32> -> vector<16x16xf32>
    %cst_189 = arith.constant 2.000000e+00 : f32
    %256 = vector.broadcast %cst_189 : f32 to vector<16x16xf32>
    %257 = arith.mulf %256, %255 : vector<16x16xf32>
    %258 = arith.subf %257, %125 : vector<16x16xf32>
    %cst_190 = arith.constant dense<0.000000e+00> : vector<16x16xf32>
    %259 = tpu.matmul %3, %254, %cst_190 {dimension_numbers = #tpu.dot_dimension_numbers<[1], [0], [0], [1], [0, 0, 1, 1], [], []>} : vector<16x16xf32>, vector<16x16xf32>, vector<16x16xf32> -> vector<16x16xf32>
    %cst_191 = arith.constant dense<0.000000e+00> : vector<16x16xf32>
    %260 = tpu.matmul %3, %259, %cst_191 {dimension_numbers = #tpu.dot_dimension_numbers<[1], [0], [0], [1], [0, 0, 1, 1], [], []>} : vector<16x16xf32>, vector<16x16xf32>, vector<16x16xf32> -> vector<16x16xf32>
    %cst_192 = arith.constant 2.000000e+00 : f32
    %261 = vector.broadcast %cst_192 : f32 to vector<16x16xf32>
    %262 = arith.mulf %261, %260 : vector<16x16xf32>
    %263 = arith.subf %262, %254 : vector<16x16xf32>
    %c0_193 = arith.constant 0 : index
    %c0_194 = arith.constant 0 : index
    %c0_195 = arith.constant 0 : index
    %264 = vector.load %arg7[%c0_193, %c0_194, %c0_195] : memref<10x16x48xf32, #tpu.memory_space<vmem>>, vector<1x16x48xf32>
    %265 = vector.shape_cast %264 : vector<1x16x48xf32> to vector<16x48xf32>
    %cst_196 = arith.constant dense<0.000000e+00> : vector<16x48xf32>
    %266 = tpu.matmul %243, %265, %cst_196 {dimension_numbers = #tpu.dot_dimension_numbers<[1], [0], [0], [1], [0, 0, 1, 1], [], []>} : vector<16x16xf32>, vector<16x48xf32>, vector<16x48xf32> -> vector<16x48xf32>
    %c0_197 = arith.constant 0 : index
    %c0_198 = arith.constant 0 : index
    %c0_199 = arith.constant 0 : index
    %267 = vector.load %arg8[%c0_197, %c0_198, %c0_199] : memref<10x16x32xf32, #tpu.memory_space<vmem>>, vector<1x16x32xf32>
    %268 = vector.shape_cast %267 : vector<1x16x32xf32> to vector<16x32xf32>
    %cst_200 = arith.constant dense<0.000000e+00> : vector<16x32xf32>
    %269 = tpu.matmul %125, %268, %cst_200 {dimension_numbers = #tpu.dot_dimension_numbers<[1], [0], [0], [1], [0, 0, 1, 1], [], []>} : vector<16x16xf32>, vector<16x32xf32>, vector<16x32xf32> -> vector<16x32xf32>
    %c1_201 = arith.constant 1 : index
    %c0_202 = arith.constant 0 : index
    %c0_203 = arith.constant 0 : index
    %270 = vector.load %arg7[%c1_201, %c0_202, %c0_203] : memref<10x16x48xf32, #tpu.memory_space<vmem>>, vector<1x16x48xf32>
    %271 = vector.shape_cast %270 : vector<1x16x48xf32> to vector<16x48xf32>
    %cst_204 = arith.constant dense<0.000000e+00> : vector<16x48xf32>
    %272 = tpu.matmul %244, %271, %cst_204 {dimension_numbers = #tpu.dot_dimension_numbers<[1], [0], [0], [1], [0, 0, 1, 1], [], []>} : vector<16x16xf32>, vector<16x48xf32>, vector<16x48xf32> -> vector<16x48xf32>
    %273 = arith.addf %266, %272 : vector<16x48xf32>
    %c1_205 = arith.constant 1 : index
    %c0_206 = arith.constant 0 : index
    %c0_207 = arith.constant 0 : index
    %274 = vector.load %arg8[%c1_205, %c0_206, %c0_207] : memref<10x16x32xf32, #tpu.memory_space<vmem>>, vector<1x16x32xf32>
    %275 = vector.shape_cast %274 : vector<1x16x32xf32> to vector<16x32xf32>
    %cst_208 = arith.constant dense<0.000000e+00> : vector<16x32xf32>
    %276 = tpu.matmul %254, %275, %cst_208 {dimension_numbers = #tpu.dot_dimension_numbers<[1], [0], [0], [1], [0, 0, 1, 1], [], []>} : vector<16x16xf32>, vector<16x32xf32>, vector<16x32xf32> -> vector<16x32xf32>
    %277 = arith.addf %269, %276 : vector<16x32xf32>
    %c2_209 = arith.constant 2 : index
    %c0_210 = arith.constant 0 : index
    %c0_211 = arith.constant 0 : index
    %278 = vector.load %arg7[%c2_209, %c0_210, %c0_211] : memref<10x16x48xf32, #tpu.memory_space<vmem>>, vector<1x16x48xf32>
    %279 = vector.shape_cast %278 : vector<1x16x48xf32> to vector<16x48xf32>
    %cst_212 = arith.constant dense<0.000000e+00> : vector<16x48xf32>
    %280 = tpu.matmul %248, %279, %cst_212 {dimension_numbers = #tpu.dot_dimension_numbers<[1], [0], [0], [1], [0, 0, 1, 1], [], []>} : vector<16x16xf32>, vector<16x48xf32>, vector<16x48xf32> -> vector<16x48xf32>
    %281 = arith.addf %273, %280 : vector<16x48xf32>
    %c2_213 = arith.constant 2 : index
    %c0_214 = arith.constant 0 : index
    %c0_215 = arith.constant 0 : index
    %282 = vector.load %arg8[%c2_213, %c0_214, %c0_215] : memref<10x16x32xf32, #tpu.memory_space<vmem>>, vector<1x16x32xf32>
    %283 = vector.shape_cast %282 : vector<1x16x32xf32> to vector<16x32xf32>
    %cst_216 = arith.constant dense<0.000000e+00> : vector<16x32xf32>
    %284 = tpu.matmul %258, %283, %cst_216 {dimension_numbers = #tpu.dot_dimension_numbers<[1], [0], [0], [1], [0, 0, 1, 1], [], []>} : vector<16x16xf32>, vector<16x32xf32>, vector<16x32xf32> -> vector<16x32xf32>
    %285 = arith.addf %277, %284 : vector<16x32xf32>
    %c3_217 = arith.constant 3 : index
    %c0_218 = arith.constant 0 : index
    %c0_219 = arith.constant 0 : index
    %286 = vector.load %arg7[%c3_217, %c0_218, %c0_219] : memref<10x16x48xf32, #tpu.memory_space<vmem>>, vector<1x16x48xf32>
    %287 = vector.shape_cast %286 : vector<1x16x48xf32> to vector<16x48xf32>
    %cst_220 = arith.constant dense<0.000000e+00> : vector<16x48xf32>
    %288 = tpu.matmul %249, %287, %cst_220 {dimension_numbers = #tpu.dot_dimension_numbers<[1], [0], [0], [1], [0, 0, 1, 1], [], []>} : vector<16x16xf32>, vector<16x48xf32>, vector<16x48xf32> -> vector<16x48xf32>
    %289 = arith.addf %281, %288 : vector<16x48xf32>
    %c3_221 = arith.constant 3 : index
    %c0_222 = arith.constant 0 : index
    %c0_223 = arith.constant 0 : index
    %290 = vector.load %arg8[%c3_221, %c0_222, %c0_223] : memref<10x16x32xf32, #tpu.memory_space<vmem>>, vector<1x16x32xf32>
    %291 = vector.shape_cast %290 : vector<1x16x32xf32> to vector<16x32xf32>
    %cst_224 = arith.constant dense<0.000000e+00> : vector<16x32xf32>
    %292 = tpu.matmul %259, %291, %cst_224 {dimension_numbers = #tpu.dot_dimension_numbers<[1], [0], [0], [1], [0, 0, 1, 1], [], []>} : vector<16x16xf32>, vector<16x32xf32>, vector<16x32xf32> -> vector<16x32xf32>
    %293 = arith.addf %285, %292 : vector<16x32xf32>
    %c4_225 = arith.constant 4 : index
    %c0_226 = arith.constant 0 : index
    %c0_227 = arith.constant 0 : index
    %294 = vector.load %arg7[%c4_225, %c0_226, %c0_227] : memref<10x16x48xf32, #tpu.memory_space<vmem>>, vector<1x16x48xf32>
    %295 = vector.shape_cast %294 : vector<1x16x48xf32> to vector<16x48xf32>
    %cst_228 = arith.constant dense<0.000000e+00> : vector<16x48xf32>
    %296 = tpu.matmul %253, %295, %cst_228 {dimension_numbers = #tpu.dot_dimension_numbers<[1], [0], [0], [1], [0, 0, 1, 1], [], []>} : vector<16x16xf32>, vector<16x48xf32>, vector<16x48xf32> -> vector<16x48xf32>
    %297 = arith.addf %289, %296 : vector<16x48xf32>
    %c4_229 = arith.constant 4 : index
    %c0_230 = arith.constant 0 : index
    %c0_231 = arith.constant 0 : index
    %298 = vector.load %arg8[%c4_229, %c0_230, %c0_231] : memref<10x16x32xf32, #tpu.memory_space<vmem>>, vector<1x16x32xf32>
    %299 = vector.shape_cast %298 : vector<1x16x32xf32> to vector<16x32xf32>
    %cst_232 = arith.constant dense<0.000000e+00> : vector<16x32xf32>
    %300 = tpu.matmul %263, %299, %cst_232 {dimension_numbers = #tpu.dot_dimension_numbers<[1], [0], [0], [1], [0, 0, 1, 1], [], []>} : vector<16x16xf32>, vector<16x32xf32>, vector<16x32xf32> -> vector<16x32xf32>
    %301 = arith.addf %293, %300 : vector<16x32xf32>
    %302 = vector.extract_strided_slice %297 {offsets = [0, 0], sizes = [16, 32], strides = [1, 1]} : vector<16x48xf32> to vector<16x32xf32>
    %303 = arith.addf %302, %301 : vector<16x32xf32>
    %c0_233 = arith.constant 0 : index
    %c0_234 = arith.constant 0 : index
    %c0_235 = arith.constant 0 : index
    %304 = vector.load %arg10[%c0_233, %c0_234, %c0_235] : memref<2x1x32xf32, #tpu.memory_space<vmem>>, vector<1x1x32xf32>
    %305 = vector.shape_cast %304 : vector<1x1x32xf32> to vector<1x32xf32>
    %306 = vector.broadcast %305 : vector<1x32xf32> to vector<16x32xf32>
    %307 = arith.addf %303, %306 : vector<16x32xf32>
    %308 = arith.negf %307 : vector<16x32xf32>
    %309 = math.exp %308 : vector<16x32xf32>
    %cst_236 = arith.constant 1.000000e+00 : f32
    %310 = vector.broadcast %cst_236 : f32 to vector<16x32xf32>
    %311 = arith.addf %310, %309 : vector<16x32xf32>
    %312 = arith.divf %310, %311 : vector<16x32xf32>
    %313 = vector.extract_strided_slice %312 {offsets = [0, 0], sizes = [16, 16], strides = [1, 1]} : vector<16x32xf32> to vector<16x16xf32>
    %314 = vector.extract_strided_slice %312 {offsets = [0, 16], sizes = [16, 16], strides = [1, 1]} : vector<16x32xf32> to vector<16x16xf32>
    %315 = arith.mulf %313, %125 : vector<16x16xf32>
    %cst_237 = arith.constant dense<0.000000e+00> : vector<16x16xf32>
    %316 = tpu.matmul %1, %315, %cst_237 {dimension_numbers = #tpu.dot_dimension_numbers<[1], [0], [0], [1], [0, 0, 1, 1], [], []>} : vector<16x16xf32>, vector<16x16xf32>, vector<16x16xf32> -> vector<16x16xf32>
    %cst_238 = arith.constant dense<0.000000e+00> : vector<16x16xf32>
    %317 = tpu.matmul %1, %316, %cst_238 {dimension_numbers = #tpu.dot_dimension_numbers<[1], [0], [0], [1], [0, 0, 1, 1], [], []>} : vector<16x16xf32>, vector<16x16xf32>, vector<16x16xf32> -> vector<16x16xf32>
    %cst_239 = arith.constant 2.000000e+00 : f32
    %318 = vector.broadcast %cst_239 : f32 to vector<16x16xf32>
    %319 = arith.mulf %318, %317 : vector<16x16xf32>
    %320 = arith.subf %319, %315 : vector<16x16xf32>
    %cst_240 = arith.constant dense<0.000000e+00> : vector<16x16xf32>
    %321 = tpu.matmul %3, %316, %cst_240 {dimension_numbers = #tpu.dot_dimension_numbers<[1], [0], [0], [1], [0, 0, 1, 1], [], []>} : vector<16x16xf32>, vector<16x16xf32>, vector<16x16xf32> -> vector<16x16xf32>
    %cst_241 = arith.constant dense<0.000000e+00> : vector<16x16xf32>
    %322 = tpu.matmul %3, %321, %cst_241 {dimension_numbers = #tpu.dot_dimension_numbers<[1], [0], [0], [1], [0, 0, 1, 1], [], []>} : vector<16x16xf32>, vector<16x16xf32>, vector<16x16xf32> -> vector<16x16xf32>
    %cst_242 = arith.constant 2.000000e+00 : f32
    %323 = vector.broadcast %cst_242 : f32 to vector<16x16xf32>
    %324 = arith.mulf %323, %322 : vector<16x16xf32>
    %325 = arith.subf %324, %316 : vector<16x16xf32>
    %326 = vector.extract_strided_slice %297 {offsets = [0, 32], sizes = [16, 16], strides = [1, 1]} : vector<16x48xf32> to vector<16x16xf32>
    %c0_243 = arith.constant 0 : index
    %c0_244 = arith.constant 0 : index
    %c0_245 = arith.constant 0 : index
    %327 = vector.load %arg11[%c0_243, %c0_244, %c0_245] : memref<2x1x16xf32, #tpu.memory_space<vmem>>, vector<1x1x16xf32>
    %328 = vector.shape_cast %327 : vector<1x1x16xf32> to vector<1x16xf32>
    %329 = vector.broadcast %328 : vector<1x16xf32> to vector<16x16xf32>
    %330 = arith.addf %326, %329 : vector<16x16xf32>
    %c0_246 = arith.constant 0 : index
    %c0_247 = arith.constant 0 : index
    %c0_248 = arith.constant 0 : index
    %331 = vector.load %arg9[%c0_246, %c0_247, %c0_248] : memref<10x16x16xf32, #tpu.memory_space<vmem>>, vector<1x16x16xf32>
    %332 = vector.shape_cast %331 : vector<1x16x16xf32> to vector<16x16xf32>
    %cst_249 = arith.constant dense<0.000000e+00> : vector<16x16xf32>
    %333 = tpu.matmul %315, %332, %cst_249 {dimension_numbers = #tpu.dot_dimension_numbers<[1], [0], [0], [1], [0, 0, 1, 1], [], []>} : vector<16x16xf32>, vector<16x16xf32>, vector<16x16xf32> -> vector<16x16xf32>
    %334 = arith.addf %330, %333 : vector<16x16xf32>
    %c1_250 = arith.constant 1 : index
    %c0_251 = arith.constant 0 : index
    %c0_252 = arith.constant 0 : index
    %335 = vector.load %arg9[%c1_250, %c0_251, %c0_252] : memref<10x16x16xf32, #tpu.memory_space<vmem>>, vector<1x16x16xf32>
    %336 = vector.shape_cast %335 : vector<1x16x16xf32> to vector<16x16xf32>
    %cst_253 = arith.constant dense<0.000000e+00> : vector<16x16xf32>
    %337 = tpu.matmul %316, %336, %cst_253 {dimension_numbers = #tpu.dot_dimension_numbers<[1], [0], [0], [1], [0, 0, 1, 1], [], []>} : vector<16x16xf32>, vector<16x16xf32>, vector<16x16xf32> -> vector<16x16xf32>
    %338 = arith.addf %334, %337 : vector<16x16xf32>
    %c2_254 = arith.constant 2 : index
    %c0_255 = arith.constant 0 : index
    %c0_256 = arith.constant 0 : index
    %339 = vector.load %arg9[%c2_254, %c0_255, %c0_256] : memref<10x16x16xf32, #tpu.memory_space<vmem>>, vector<1x16x16xf32>
    %340 = vector.shape_cast %339 : vector<1x16x16xf32> to vector<16x16xf32>
    %cst_257 = arith.constant dense<0.000000e+00> : vector<16x16xf32>
    %341 = tpu.matmul %320, %340, %cst_257 {dimension_numbers = #tpu.dot_dimension_numbers<[1], [0], [0], [1], [0, 0, 1, 1], [], []>} : vector<16x16xf32>, vector<16x16xf32>, vector<16x16xf32> -> vector<16x16xf32>
    %342 = arith.addf %338, %341 : vector<16x16xf32>
    %c3_258 = arith.constant 3 : index
    %c0_259 = arith.constant 0 : index
    %c0_260 = arith.constant 0 : index
    %343 = vector.load %arg9[%c3_258, %c0_259, %c0_260] : memref<10x16x16xf32, #tpu.memory_space<vmem>>, vector<1x16x16xf32>
    %344 = vector.shape_cast %343 : vector<1x16x16xf32> to vector<16x16xf32>
    %cst_261 = arith.constant dense<0.000000e+00> : vector<16x16xf32>
    %345 = tpu.matmul %321, %344, %cst_261 {dimension_numbers = #tpu.dot_dimension_numbers<[1], [0], [0], [1], [0, 0, 1, 1], [], []>} : vector<16x16xf32>, vector<16x16xf32>, vector<16x16xf32> -> vector<16x16xf32>
    %346 = arith.addf %342, %345 : vector<16x16xf32>
    %c4_262 = arith.constant 4 : index
    %c0_263 = arith.constant 0 : index
    %c0_264 = arith.constant 0 : index
    %347 = vector.load %arg9[%c4_262, %c0_263, %c0_264] : memref<10x16x16xf32, #tpu.memory_space<vmem>>, vector<1x16x16xf32>
    %348 = vector.shape_cast %347 : vector<1x16x16xf32> to vector<16x16xf32>
    %cst_265 = arith.constant dense<0.000000e+00> : vector<16x16xf32>
    %349 = tpu.matmul %325, %348, %cst_265 {dimension_numbers = #tpu.dot_dimension_numbers<[1], [0], [0], [1], [0, 0, 1, 1], [], []>} : vector<16x16xf32>, vector<16x16xf32>, vector<16x16xf32> -> vector<16x16xf32>
    %350 = arith.addf %346, %349 : vector<16x16xf32>
    %351 = math.tanh %350 : vector<16x16xf32>
    %352 = arith.mulf %314, %125 : vector<16x16xf32>
    %cst_266 = arith.constant 1.000000e+00 : f32
    %353 = vector.broadcast %cst_266 : f32 to vector<16x16xf32>
    %354 = arith.subf %353, %314 : vector<16x16xf32>
    %355 = arith.mulf %354, %351 : vector<16x16xf32>
    %356 = arith.addf %352, %355 : vector<16x16xf32>
    %cst_267 = arith.constant dense<0.000000e+00> : vector<16x16xf32>
    %357 = tpu.matmul %1, %356, %cst_267 {dimension_numbers = #tpu.dot_dimension_numbers<[1], [0], [0], [1], [0, 0, 1, 1], [], []>} : vector<16x16xf32>, vector<16x16xf32>, vector<16x16xf32> -> vector<16x16xf32>
    %cst_268 = arith.constant dense<0.000000e+00> : vector<16x16xf32>
    %358 = tpu.matmul %1, %357, %cst_268 {dimension_numbers = #tpu.dot_dimension_numbers<[1], [0], [0], [1], [0, 0, 1, 1], [], []>} : vector<16x16xf32>, vector<16x16xf32>, vector<16x16xf32> -> vector<16x16xf32>
    %cst_269 = arith.constant 2.000000e+00 : f32
    %359 = vector.broadcast %cst_269 : f32 to vector<16x16xf32>
    %360 = arith.mulf %359, %358 : vector<16x16xf32>
    %361 = arith.subf %360, %356 : vector<16x16xf32>
    %cst_270 = arith.constant dense<0.000000e+00> : vector<16x16xf32>
    %362 = tpu.matmul %3, %357, %cst_270 {dimension_numbers = #tpu.dot_dimension_numbers<[1], [0], [0], [1], [0, 0, 1, 1], [], []>} : vector<16x16xf32>, vector<16x16xf32>, vector<16x16xf32> -> vector<16x16xf32>
    %cst_271 = arith.constant dense<0.000000e+00> : vector<16x16xf32>
    %363 = tpu.matmul %3, %362, %cst_271 {dimension_numbers = #tpu.dot_dimension_numbers<[1], [0], [0], [1], [0, 0, 1, 1], [], []>} : vector<16x16xf32>, vector<16x16xf32>, vector<16x16xf32> -> vector<16x16xf32>
    %cst_272 = arith.constant 2.000000e+00 : f32
    %364 = vector.broadcast %cst_272 : f32 to vector<16x16xf32>
    %365 = arith.mulf %364, %363 : vector<16x16xf32>
    %366 = arith.subf %365, %357 : vector<16x16xf32>
    %cst_273 = arith.constant dense<0.000000e+00> : vector<16x16xf32>
    %367 = tpu.matmul %1, %238, %cst_273 {dimension_numbers = #tpu.dot_dimension_numbers<[1], [0], [0], [1], [0, 0, 1, 1], [], []>} : vector<16x16xf32>, vector<16x16xf32>, vector<16x16xf32> -> vector<16x16xf32>
    %cst_274 = arith.constant dense<0.000000e+00> : vector<16x16xf32>
    %368 = tpu.matmul %1, %367, %cst_274 {dimension_numbers = #tpu.dot_dimension_numbers<[1], [0], [0], [1], [0, 0, 1, 1], [], []>} : vector<16x16xf32>, vector<16x16xf32>, vector<16x16xf32> -> vector<16x16xf32>
    %cst_275 = arith.constant 2.000000e+00 : f32
    %369 = vector.broadcast %cst_275 : f32 to vector<16x16xf32>
    %370 = arith.mulf %369, %368 : vector<16x16xf32>
    %371 = arith.subf %370, %238 : vector<16x16xf32>
    %cst_276 = arith.constant dense<0.000000e+00> : vector<16x16xf32>
    %372 = tpu.matmul %3, %367, %cst_276 {dimension_numbers = #tpu.dot_dimension_numbers<[1], [0], [0], [1], [0, 0, 1, 1], [], []>} : vector<16x16xf32>, vector<16x16xf32>, vector<16x16xf32> -> vector<16x16xf32>
    %cst_277 = arith.constant dense<0.000000e+00> : vector<16x16xf32>
    %373 = tpu.matmul %3, %372, %cst_277 {dimension_numbers = #tpu.dot_dimension_numbers<[1], [0], [0], [1], [0, 0, 1, 1], [], []>} : vector<16x16xf32>, vector<16x16xf32>, vector<16x16xf32> -> vector<16x16xf32>
    %cst_278 = arith.constant 2.000000e+00 : f32
    %374 = vector.broadcast %cst_278 : f32 to vector<16x16xf32>
    %375 = arith.mulf %374, %373 : vector<16x16xf32>
    %376 = arith.subf %375, %367 : vector<16x16xf32>
    %c5_279 = arith.constant 5 : index
    %c0_280 = arith.constant 0 : index
    %c0_281 = arith.constant 0 : index
    %377 = vector.load %arg7[%c5_279, %c0_280, %c0_281] : memref<10x16x48xf32, #tpu.memory_space<vmem>>, vector<1x16x48xf32>
    %378 = vector.shape_cast %377 : vector<1x16x48xf32> to vector<16x48xf32>
    %cst_282 = arith.constant dense<0.000000e+00> : vector<16x48xf32>
    %379 = tpu.matmul %356, %378, %cst_282 {dimension_numbers = #tpu.dot_dimension_numbers<[1], [0], [0], [1], [0, 0, 1, 1], [], []>} : vector<16x16xf32>, vector<16x48xf32>, vector<16x48xf32> -> vector<16x48xf32>
    %c5_283 = arith.constant 5 : index
    %c0_284 = arith.constant 0 : index
    %c0_285 = arith.constant 0 : index
    %380 = vector.load %arg8[%c5_283, %c0_284, %c0_285] : memref<10x16x32xf32, #tpu.memory_space<vmem>>, vector<1x16x32xf32>
    %381 = vector.shape_cast %380 : vector<1x16x32xf32> to vector<16x32xf32>
    %cst_286 = arith.constant dense<0.000000e+00> : vector<16x32xf32>
    %382 = tpu.matmul %238, %381, %cst_286 {dimension_numbers = #tpu.dot_dimension_numbers<[1], [0], [0], [1], [0, 0, 1, 1], [], []>} : vector<16x16xf32>, vector<16x32xf32>, vector<16x32xf32> -> vector<16x32xf32>
    %c6_287 = arith.constant 6 : index
    %c0_288 = arith.constant 0 : index
    %c0_289 = arith.constant 0 : index
    %383 = vector.load %arg7[%c6_287, %c0_288, %c0_289] : memref<10x16x48xf32, #tpu.memory_space<vmem>>, vector<1x16x48xf32>
    %384 = vector.shape_cast %383 : vector<1x16x48xf32> to vector<16x48xf32>
    %cst_290 = arith.constant dense<0.000000e+00> : vector<16x48xf32>
    %385 = tpu.matmul %357, %384, %cst_290 {dimension_numbers = #tpu.dot_dimension_numbers<[1], [0], [0], [1], [0, 0, 1, 1], [], []>} : vector<16x16xf32>, vector<16x48xf32>, vector<16x48xf32> -> vector<16x48xf32>
    %386 = arith.addf %379, %385 : vector<16x48xf32>
    %c6_291 = arith.constant 6 : index
    %c0_292 = arith.constant 0 : index
    %c0_293 = arith.constant 0 : index
    %387 = vector.load %arg8[%c6_291, %c0_292, %c0_293] : memref<10x16x32xf32, #tpu.memory_space<vmem>>, vector<1x16x32xf32>
    %388 = vector.shape_cast %387 : vector<1x16x32xf32> to vector<16x32xf32>
    %cst_294 = arith.constant dense<0.000000e+00> : vector<16x32xf32>
    %389 = tpu.matmul %367, %388, %cst_294 {dimension_numbers = #tpu.dot_dimension_numbers<[1], [0], [0], [1], [0, 0, 1, 1], [], []>} : vector<16x16xf32>, vector<16x32xf32>, vector<16x32xf32> -> vector<16x32xf32>
    %390 = arith.addf %382, %389 : vector<16x32xf32>
    %c7_295 = arith.constant 7 : index
    %c0_296 = arith.constant 0 : index
    %c0_297 = arith.constant 0 : index
    %391 = vector.load %arg7[%c7_295, %c0_296, %c0_297] : memref<10x16x48xf32, #tpu.memory_space<vmem>>, vector<1x16x48xf32>
    %392 = vector.shape_cast %391 : vector<1x16x48xf32> to vector<16x48xf32>
    %cst_298 = arith.constant dense<0.000000e+00> : vector<16x48xf32>
    %393 = tpu.matmul %361, %392, %cst_298 {dimension_numbers = #tpu.dot_dimension_numbers<[1], [0], [0], [1], [0, 0, 1, 1], [], []>} : vector<16x16xf32>, vector<16x48xf32>, vector<16x48xf32> -> vector<16x48xf32>
    %394 = arith.addf %386, %393 : vector<16x48xf32>
    %c7_299 = arith.constant 7 : index
    %c0_300 = arith.constant 0 : index
    %c0_301 = arith.constant 0 : index
    %395 = vector.load %arg8[%c7_299, %c0_300, %c0_301] : memref<10x16x32xf32, #tpu.memory_space<vmem>>, vector<1x16x32xf32>
    %396 = vector.shape_cast %395 : vector<1x16x32xf32> to vector<16x32xf32>
    %cst_302 = arith.constant dense<0.000000e+00> : vector<16x32xf32>
    %397 = tpu.matmul %371, %396, %cst_302 {dimension_numbers = #tpu.dot_dimension_numbers<[1], [0], [0], [1], [0, 0, 1, 1], [], []>} : vector<16x16xf32>, vector<16x32xf32>, vector<16x32xf32> -> vector<16x32xf32>
    %398 = arith.addf %390, %397 : vector<16x32xf32>
    %c8_303 = arith.constant 8 : index
    %c0_304 = arith.constant 0 : index
    %c0_305 = arith.constant 0 : index
    %399 = vector.load %arg7[%c8_303, %c0_304, %c0_305] : memref<10x16x48xf32, #tpu.memory_space<vmem>>, vector<1x16x48xf32>
    %400 = vector.shape_cast %399 : vector<1x16x48xf32> to vector<16x48xf32>
    %cst_306 = arith.constant dense<0.000000e+00> : vector<16x48xf32>
    %401 = tpu.matmul %362, %400, %cst_306 {dimension_numbers = #tpu.dot_dimension_numbers<[1], [0], [0], [1], [0, 0, 1, 1], [], []>} : vector<16x16xf32>, vector<16x48xf32>, vector<16x48xf32> -> vector<16x48xf32>
    %402 = arith.addf %394, %401 : vector<16x48xf32>
    %c8_307 = arith.constant 8 : index
    %c0_308 = arith.constant 0 : index
    %c0_309 = arith.constant 0 : index
    %403 = vector.load %arg8[%c8_307, %c0_308, %c0_309] : memref<10x16x32xf32, #tpu.memory_space<vmem>>, vector<1x16x32xf32>
    %404 = vector.shape_cast %403 : vector<1x16x32xf32> to vector<16x32xf32>
    %cst_310 = arith.constant dense<0.000000e+00> : vector<16x32xf32>
    %405 = tpu.matmul %372, %404, %cst_310 {dimension_numbers = #tpu.dot_dimension_numbers<[1], [0], [0], [1], [0, 0, 1, 1], [], []>} : vector<16x16xf32>, vector<16x32xf32>, vector<16x32xf32> -> vector<16x32xf32>
    %406 = arith.addf %398, %405 : vector<16x32xf32>
    %c9_311 = arith.constant 9 : index
    %c0_312 = arith.constant 0 : index
    %c0_313 = arith.constant 0 : index
    %407 = vector.load %arg7[%c9_311, %c0_312, %c0_313] : memref<10x16x48xf32, #tpu.memory_space<vmem>>, vector<1x16x48xf32>
    %408 = vector.shape_cast %407 : vector<1x16x48xf32> to vector<16x48xf32>
    %cst_314 = arith.constant dense<0.000000e+00> : vector<16x48xf32>
    %409 = tpu.matmul %366, %408, %cst_314 {dimension_numbers = #tpu.dot_dimension_numbers<[1], [0], [0], [1], [0, 0, 1, 1], [], []>} : vector<16x16xf32>, vector<16x48xf32>, vector<16x48xf32> -> vector<16x48xf32>
    %410 = arith.addf %402, %409 : vector<16x48xf32>
    %c9_315 = arith.constant 9 : index
    %c0_316 = arith.constant 0 : index
    %c0_317 = arith.constant 0 : index
    %411 = vector.load %arg8[%c9_315, %c0_316, %c0_317] : memref<10x16x32xf32, #tpu.memory_space<vmem>>, vector<1x16x32xf32>
    %412 = vector.shape_cast %411 : vector<1x16x32xf32> to vector<16x32xf32>
    %cst_318 = arith.constant dense<0.000000e+00> : vector<16x32xf32>
    %413 = tpu.matmul %376, %412, %cst_318 {dimension_numbers = #tpu.dot_dimension_numbers<[1], [0], [0], [1], [0, 0, 1, 1], [], []>} : vector<16x16xf32>, vector<16x32xf32>, vector<16x32xf32> -> vector<16x32xf32>
    %414 = arith.addf %406, %413 : vector<16x32xf32>
    %415 = vector.extract_strided_slice %410 {offsets = [0, 0], sizes = [16, 32], strides = [1, 1]} : vector<16x48xf32> to vector<16x32xf32>
    %416 = arith.addf %415, %414 : vector<16x32xf32>
    %c1_319 = arith.constant 1 : index
    %c0_320 = arith.constant 0 : index
    %c0_321 = arith.constant 0 : index
    %417 = vector.load %arg10[%c1_319, %c0_320, %c0_321] : memref<2x1x32xf32, #tpu.memory_space<vmem>>, vector<1x1x32xf32>
    %418 = vector.shape_cast %417 : vector<1x1x32xf32> to vector<1x32xf32>
    %419 = vector.broadcast %418 : vector<1x32xf32> to vector<16x32xf32>
    %420 = arith.addf %416, %419 : vector<16x32xf32>
    %421 = arith.negf %420 : vector<16x32xf32>
    %422 = math.exp %421 : vector<16x32xf32>
    %cst_322 = arith.constant 1.000000e+00 : f32
    %423 = vector.broadcast %cst_322 : f32 to vector<16x32xf32>
    %424 = arith.addf %423, %422 : vector<16x32xf32>
    %425 = arith.divf %423, %424 : vector<16x32xf32>
    %426 = vector.extract_strided_slice %425 {offsets = [0, 0], sizes = [16, 16], strides = [1, 1]} : vector<16x32xf32> to vector<16x16xf32>
    %427 = vector.extract_strided_slice %425 {offsets = [0, 16], sizes = [16, 16], strides = [1, 1]} : vector<16x32xf32> to vector<16x16xf32>
    %428 = arith.mulf %426, %238 : vector<16x16xf32>
    %cst_323 = arith.constant dense<0.000000e+00> : vector<16x16xf32>
    %429 = tpu.matmul %1, %428, %cst_323 {dimension_numbers = #tpu.dot_dimension_numbers<[1], [0], [0], [1], [0, 0, 1, 1], [], []>} : vector<16x16xf32>, vector<16x16xf32>, vector<16x16xf32> -> vector<16x16xf32>
    %cst_324 = arith.constant dense<0.000000e+00> : vector<16x16xf32>
    %430 = tpu.matmul %1, %429, %cst_324 {dimension_numbers = #tpu.dot_dimension_numbers<[1], [0], [0], [1], [0, 0, 1, 1], [], []>} : vector<16x16xf32>, vector<16x16xf32>, vector<16x16xf32> -> vector<16x16xf32>
    %cst_325 = arith.constant 2.000000e+00 : f32
    %431 = vector.broadcast %cst_325 : f32 to vector<16x16xf32>
    %432 = arith.mulf %431, %430 : vector<16x16xf32>
    %433 = arith.subf %432, %428 : vector<16x16xf32>
    %cst_326 = arith.constant dense<0.000000e+00> : vector<16x16xf32>
    %434 = tpu.matmul %3, %429, %cst_326 {dimension_numbers = #tpu.dot_dimension_numbers<[1], [0], [0], [1], [0, 0, 1, 1], [], []>} : vector<16x16xf32>, vector<16x16xf32>, vector<16x16xf32> -> vector<16x16xf32>
    %cst_327 = arith.constant dense<0.000000e+00> : vector<16x16xf32>
    %435 = tpu.matmul %3, %434, %cst_327 {dimension_numbers = #tpu.dot_dimension_numbers<[1], [0], [0], [1], [0, 0, 1, 1], [], []>} : vector<16x16xf32>, vector<16x16xf32>, vector<16x16xf32> -> vector<16x16xf32>
    %cst_328 = arith.constant 2.000000e+00 : f32
    %436 = vector.broadcast %cst_328 : f32 to vector<16x16xf32>
    %437 = arith.mulf %436, %435 : vector<16x16xf32>
    %438 = arith.subf %437, %429 : vector<16x16xf32>
    %439 = vector.extract_strided_slice %410 {offsets = [0, 32], sizes = [16, 16], strides = [1, 1]} : vector<16x48xf32> to vector<16x16xf32>
    %c1_329 = arith.constant 1 : index
    %c0_330 = arith.constant 0 : index
    %c0_331 = arith.constant 0 : index
    %440 = vector.load %arg11[%c1_329, %c0_330, %c0_331] : memref<2x1x16xf32, #tpu.memory_space<vmem>>, vector<1x1x16xf32>
    %441 = vector.shape_cast %440 : vector<1x1x16xf32> to vector<1x16xf32>
    %442 = vector.broadcast %441 : vector<1x16xf32> to vector<16x16xf32>
    %443 = arith.addf %439, %442 : vector<16x16xf32>
    %c5_332 = arith.constant 5 : index
    %c0_333 = arith.constant 0 : index
    %c0_334 = arith.constant 0 : index
    %444 = vector.load %arg9[%c5_332, %c0_333, %c0_334] : memref<10x16x16xf32, #tpu.memory_space<vmem>>, vector<1x16x16xf32>
    %445 = vector.shape_cast %444 : vector<1x16x16xf32> to vector<16x16xf32>
    %cst_335 = arith.constant dense<0.000000e+00> : vector<16x16xf32>
    %446 = tpu.matmul %428, %445, %cst_335 {dimension_numbers = #tpu.dot_dimension_numbers<[1], [0], [0], [1], [0, 0, 1, 1], [], []>} : vector<16x16xf32>, vector<16x16xf32>, vector<16x16xf32> -> vector<16x16xf32>
    %447 = arith.addf %443, %446 : vector<16x16xf32>
    %c6_336 = arith.constant 6 : index
    %c0_337 = arith.constant 0 : index
    %c0_338 = arith.constant 0 : index
    %448 = vector.load %arg9[%c6_336, %c0_337, %c0_338] : memref<10x16x16xf32, #tpu.memory_space<vmem>>, vector<1x16x16xf32>
    %449 = vector.shape_cast %448 : vector<1x16x16xf32> to vector<16x16xf32>
    %cst_339 = arith.constant dense<0.000000e+00> : vector<16x16xf32>
    %450 = tpu.matmul %429, %449, %cst_339 {dimension_numbers = #tpu.dot_dimension_numbers<[1], [0], [0], [1], [0, 0, 1, 1], [], []>} : vector<16x16xf32>, vector<16x16xf32>, vector<16x16xf32> -> vector<16x16xf32>
    %451 = arith.addf %447, %450 : vector<16x16xf32>
    %c7_340 = arith.constant 7 : index
    %c0_341 = arith.constant 0 : index
    %c0_342 = arith.constant 0 : index
    %452 = vector.load %arg9[%c7_340, %c0_341, %c0_342] : memref<10x16x16xf32, #tpu.memory_space<vmem>>, vector<1x16x16xf32>
    %453 = vector.shape_cast %452 : vector<1x16x16xf32> to vector<16x16xf32>
    %cst_343 = arith.constant dense<0.000000e+00> : vector<16x16xf32>
    %454 = tpu.matmul %433, %453, %cst_343 {dimension_numbers = #tpu.dot_dimension_numbers<[1], [0], [0], [1], [0, 0, 1, 1], [], []>} : vector<16x16xf32>, vector<16x16xf32>, vector<16x16xf32> -> vector<16x16xf32>
    %455 = arith.addf %451, %454 : vector<16x16xf32>
    %c8_344 = arith.constant 8 : index
    %c0_345 = arith.constant 0 : index
    %c0_346 = arith.constant 0 : index
    %456 = vector.load %arg9[%c8_344, %c0_345, %c0_346] : memref<10x16x16xf32, #tpu.memory_space<vmem>>, vector<1x16x16xf32>
    %457 = vector.shape_cast %456 : vector<1x16x16xf32> to vector<16x16xf32>
    %cst_347 = arith.constant dense<0.000000e+00> : vector<16x16xf32>
    %458 = tpu.matmul %434, %457, %cst_347 {dimension_numbers = #tpu.dot_dimension_numbers<[1], [0], [0], [1], [0, 0, 1, 1], [], []>} : vector<16x16xf32>, vector<16x16xf32>, vector<16x16xf32> -> vector<16x16xf32>
    %459 = arith.addf %455, %458 : vector<16x16xf32>
    %c9_348 = arith.constant 9 : index
    %c0_349 = arith.constant 0 : index
    %c0_350 = arith.constant 0 : index
    %460 = vector.load %arg9[%c9_348, %c0_349, %c0_350] : memref<10x16x16xf32, #tpu.memory_space<vmem>>, vector<1x16x16xf32>
    %461 = vector.shape_cast %460 : vector<1x16x16xf32> to vector<16x16xf32>
    %cst_351 = arith.constant dense<0.000000e+00> : vector<16x16xf32>
    %462 = tpu.matmul %438, %461, %cst_351 {dimension_numbers = #tpu.dot_dimension_numbers<[1], [0], [0], [1], [0, 0, 1, 1], [], []>} : vector<16x16xf32>, vector<16x16xf32>, vector<16x16xf32> -> vector<16x16xf32>
    %463 = arith.addf %459, %462 : vector<16x16xf32>
    %464 = math.tanh %463 : vector<16x16xf32>
    %465 = arith.mulf %427, %238 : vector<16x16xf32>
    %cst_352 = arith.constant 1.000000e+00 : f32
    %466 = vector.broadcast %cst_352 : f32 to vector<16x16xf32>
    %467 = arith.subf %466, %427 : vector<16x16xf32>
    %468 = arith.mulf %467, %464 : vector<16x16xf32>
    %469 = arith.addf %465, %468 : vector<16x16xf32>
    %c2_353 = arith.constant 2 : index
    %c0_354 = arith.constant 0 : index
    %c0_355 = arith.constant 0 : index
    %470 = vector.load %arg0[%c2_353, %c0_354, %c0_355] : memref<4x16x2xf32, #tpu.memory_space<vmem>>, vector<1x16x2xf32>
    %471 = vector.shape_cast %470 : vector<1x16x2xf32> to vector<16x2xf32>
    %cst_356 = arith.constant dense<0.000000e+00> : vector<16x16xf32>
    %472 = tpu.matmul %471, %4, %cst_356 {dimension_numbers = #tpu.dot_dimension_numbers<[1], [0], [0], [1], [0, 0, 1, 1], [], []>} : vector<16x2xf32>, vector<2x16xf32>, vector<16x16xf32> -> vector<16x16xf32>
    %473 = vector.broadcast %5 : vector<1x16xf32> to vector<16x16xf32>
    %474 = arith.addf %472, %473 : vector<16x16xf32>
    %cst_357 = arith.constant dense<0.000000e+00> : vector<16x16xf32>
    %475 = tpu.matmul %1, %474, %cst_357 {dimension_numbers = #tpu.dot_dimension_numbers<[1], [0], [0], [1], [0, 0, 1, 1], [], []>} : vector<16x16xf32>, vector<16x16xf32>, vector<16x16xf32> -> vector<16x16xf32>
    %cst_358 = arith.constant dense<0.000000e+00> : vector<16x16xf32>
    %476 = tpu.matmul %1, %475, %cst_358 {dimension_numbers = #tpu.dot_dimension_numbers<[1], [0], [0], [1], [0, 0, 1, 1], [], []>} : vector<16x16xf32>, vector<16x16xf32>, vector<16x16xf32> -> vector<16x16xf32>
    %cst_359 = arith.constant 2.000000e+00 : f32
    %477 = vector.broadcast %cst_359 : f32 to vector<16x16xf32>
    %478 = arith.mulf %477, %476 : vector<16x16xf32>
    %479 = arith.subf %478, %474 : vector<16x16xf32>
    %cst_360 = arith.constant dense<0.000000e+00> : vector<16x16xf32>
    %480 = tpu.matmul %3, %475, %cst_360 {dimension_numbers = #tpu.dot_dimension_numbers<[1], [0], [0], [1], [0, 0, 1, 1], [], []>} : vector<16x16xf32>, vector<16x16xf32>, vector<16x16xf32> -> vector<16x16xf32>
    %cst_361 = arith.constant dense<0.000000e+00> : vector<16x16xf32>
    %481 = tpu.matmul %3, %480, %cst_361 {dimension_numbers = #tpu.dot_dimension_numbers<[1], [0], [0], [1], [0, 0, 1, 1], [], []>} : vector<16x16xf32>, vector<16x16xf32>, vector<16x16xf32> -> vector<16x16xf32>
    %cst_362 = arith.constant 2.000000e+00 : f32
    %482 = vector.broadcast %cst_362 : f32 to vector<16x16xf32>
    %483 = arith.mulf %482, %481 : vector<16x16xf32>
    %484 = arith.subf %483, %475 : vector<16x16xf32>
    %cst_363 = arith.constant dense<0.000000e+00> : vector<16x16xf32>
    %485 = tpu.matmul %1, %356, %cst_363 {dimension_numbers = #tpu.dot_dimension_numbers<[1], [0], [0], [1], [0, 0, 1, 1], [], []>} : vector<16x16xf32>, vector<16x16xf32>, vector<16x16xf32> -> vector<16x16xf32>
    %cst_364 = arith.constant dense<0.000000e+00> : vector<16x16xf32>
    %486 = tpu.matmul %1, %485, %cst_364 {dimension_numbers = #tpu.dot_dimension_numbers<[1], [0], [0], [1], [0, 0, 1, 1], [], []>} : vector<16x16xf32>, vector<16x16xf32>, vector<16x16xf32> -> vector<16x16xf32>
    %cst_365 = arith.constant 2.000000e+00 : f32
    %487 = vector.broadcast %cst_365 : f32 to vector<16x16xf32>
    %488 = arith.mulf %487, %486 : vector<16x16xf32>
    %489 = arith.subf %488, %356 : vector<16x16xf32>
    %cst_366 = arith.constant dense<0.000000e+00> : vector<16x16xf32>
    %490 = tpu.matmul %3, %485, %cst_366 {dimension_numbers = #tpu.dot_dimension_numbers<[1], [0], [0], [1], [0, 0, 1, 1], [], []>} : vector<16x16xf32>, vector<16x16xf32>, vector<16x16xf32> -> vector<16x16xf32>
    %cst_367 = arith.constant dense<0.000000e+00> : vector<16x16xf32>
    %491 = tpu.matmul %3, %490, %cst_367 {dimension_numbers = #tpu.dot_dimension_numbers<[1], [0], [0], [1], [0, 0, 1, 1], [], []>} : vector<16x16xf32>, vector<16x16xf32>, vector<16x16xf32> -> vector<16x16xf32>
    %cst_368 = arith.constant 2.000000e+00 : f32
    %492 = vector.broadcast %cst_368 : f32 to vector<16x16xf32>
    %493 = arith.mulf %492, %491 : vector<16x16xf32>
    %494 = arith.subf %493, %485 : vector<16x16xf32>
    %c0_369 = arith.constant 0 : index
    %c0_370 = arith.constant 0 : index
    %c0_371 = arith.constant 0 : index
    %495 = vector.load %arg7[%c0_369, %c0_370, %c0_371] : memref<10x16x48xf32, #tpu.memory_space<vmem>>, vector<1x16x48xf32>
    %496 = vector.shape_cast %495 : vector<1x16x48xf32> to vector<16x48xf32>
    %cst_372 = arith.constant dense<0.000000e+00> : vector<16x48xf32>
    %497 = tpu.matmul %474, %496, %cst_372 {dimension_numbers = #tpu.dot_dimension_numbers<[1], [0], [0], [1], [0, 0, 1, 1], [], []>} : vector<16x16xf32>, vector<16x48xf32>, vector<16x48xf32> -> vector<16x48xf32>
    %c0_373 = arith.constant 0 : index
    %c0_374 = arith.constant 0 : index
    %c0_375 = arith.constant 0 : index
    %498 = vector.load %arg8[%c0_373, %c0_374, %c0_375] : memref<10x16x32xf32, #tpu.memory_space<vmem>>, vector<1x16x32xf32>
    %499 = vector.shape_cast %498 : vector<1x16x32xf32> to vector<16x32xf32>
    %cst_376 = arith.constant dense<0.000000e+00> : vector<16x32xf32>
    %500 = tpu.matmul %356, %499, %cst_376 {dimension_numbers = #tpu.dot_dimension_numbers<[1], [0], [0], [1], [0, 0, 1, 1], [], []>} : vector<16x16xf32>, vector<16x32xf32>, vector<16x32xf32> -> vector<16x32xf32>
    %c1_377 = arith.constant 1 : index
    %c0_378 = arith.constant 0 : index
    %c0_379 = arith.constant 0 : index
    %501 = vector.load %arg7[%c1_377, %c0_378, %c0_379] : memref<10x16x48xf32, #tpu.memory_space<vmem>>, vector<1x16x48xf32>
    %502 = vector.shape_cast %501 : vector<1x16x48xf32> to vector<16x48xf32>
    %cst_380 = arith.constant dense<0.000000e+00> : vector<16x48xf32>
    %503 = tpu.matmul %475, %502, %cst_380 {dimension_numbers = #tpu.dot_dimension_numbers<[1], [0], [0], [1], [0, 0, 1, 1], [], []>} : vector<16x16xf32>, vector<16x48xf32>, vector<16x48xf32> -> vector<16x48xf32>
    %504 = arith.addf %497, %503 : vector<16x48xf32>
    %c1_381 = arith.constant 1 : index
    %c0_382 = arith.constant 0 : index
    %c0_383 = arith.constant 0 : index
    %505 = vector.load %arg8[%c1_381, %c0_382, %c0_383] : memref<10x16x32xf32, #tpu.memory_space<vmem>>, vector<1x16x32xf32>
    %506 = vector.shape_cast %505 : vector<1x16x32xf32> to vector<16x32xf32>
    %cst_384 = arith.constant dense<0.000000e+00> : vector<16x32xf32>
    %507 = tpu.matmul %485, %506, %cst_384 {dimension_numbers = #tpu.dot_dimension_numbers<[1], [0], [0], [1], [0, 0, 1, 1], [], []>} : vector<16x16xf32>, vector<16x32xf32>, vector<16x32xf32> -> vector<16x32xf32>
    %508 = arith.addf %500, %507 : vector<16x32xf32>
    %c2_385 = arith.constant 2 : index
    %c0_386 = arith.constant 0 : index
    %c0_387 = arith.constant 0 : index
    %509 = vector.load %arg7[%c2_385, %c0_386, %c0_387] : memref<10x16x48xf32, #tpu.memory_space<vmem>>, vector<1x16x48xf32>
    %510 = vector.shape_cast %509 : vector<1x16x48xf32> to vector<16x48xf32>
    %cst_388 = arith.constant dense<0.000000e+00> : vector<16x48xf32>
    %511 = tpu.matmul %479, %510, %cst_388 {dimension_numbers = #tpu.dot_dimension_numbers<[1], [0], [0], [1], [0, 0, 1, 1], [], []>} : vector<16x16xf32>, vector<16x48xf32>, vector<16x48xf32> -> vector<16x48xf32>
    %512 = arith.addf %504, %511 : vector<16x48xf32>
    %c2_389 = arith.constant 2 : index
    %c0_390 = arith.constant 0 : index
    %c0_391 = arith.constant 0 : index
    %513 = vector.load %arg8[%c2_389, %c0_390, %c0_391] : memref<10x16x32xf32, #tpu.memory_space<vmem>>, vector<1x16x32xf32>
    %514 = vector.shape_cast %513 : vector<1x16x32xf32> to vector<16x32xf32>
    %cst_392 = arith.constant dense<0.000000e+00> : vector<16x32xf32>
    %515 = tpu.matmul %489, %514, %cst_392 {dimension_numbers = #tpu.dot_dimension_numbers<[1], [0], [0], [1], [0, 0, 1, 1], [], []>} : vector<16x16xf32>, vector<16x32xf32>, vector<16x32xf32> -> vector<16x32xf32>
    %516 = arith.addf %508, %515 : vector<16x32xf32>
    %c3_393 = arith.constant 3 : index
    %c0_394 = arith.constant 0 : index
    %c0_395 = arith.constant 0 : index
    %517 = vector.load %arg7[%c3_393, %c0_394, %c0_395] : memref<10x16x48xf32, #tpu.memory_space<vmem>>, vector<1x16x48xf32>
    %518 = vector.shape_cast %517 : vector<1x16x48xf32> to vector<16x48xf32>
    %cst_396 = arith.constant dense<0.000000e+00> : vector<16x48xf32>
    %519 = tpu.matmul %480, %518, %cst_396 {dimension_numbers = #tpu.dot_dimension_numbers<[1], [0], [0], [1], [0, 0, 1, 1], [], []>} : vector<16x16xf32>, vector<16x48xf32>, vector<16x48xf32> -> vector<16x48xf32>
    %520 = arith.addf %512, %519 : vector<16x48xf32>
    %c3_397 = arith.constant 3 : index
    %c0_398 = arith.constant 0 : index
    %c0_399 = arith.constant 0 : index
    %521 = vector.load %arg8[%c3_397, %c0_398, %c0_399] : memref<10x16x32xf32, #tpu.memory_space<vmem>>, vector<1x16x32xf32>
    %522 = vector.shape_cast %521 : vector<1x16x32xf32> to vector<16x32xf32>
    %cst_400 = arith.constant dense<0.000000e+00> : vector<16x32xf32>
    %523 = tpu.matmul %490, %522, %cst_400 {dimension_numbers = #tpu.dot_dimension_numbers<[1], [0], [0], [1], [0, 0, 1, 1], [], []>} : vector<16x16xf32>, vector<16x32xf32>, vector<16x32xf32> -> vector<16x32xf32>
    %524 = arith.addf %516, %523 : vector<16x32xf32>
    %c4_401 = arith.constant 4 : index
    %c0_402 = arith.constant 0 : index
    %c0_403 = arith.constant 0 : index
    %525 = vector.load %arg7[%c4_401, %c0_402, %c0_403] : memref<10x16x48xf32, #tpu.memory_space<vmem>>, vector<1x16x48xf32>
    %526 = vector.shape_cast %525 : vector<1x16x48xf32> to vector<16x48xf32>
    %cst_404 = arith.constant dense<0.000000e+00> : vector<16x48xf32>
    %527 = tpu.matmul %484, %526, %cst_404 {dimension_numbers = #tpu.dot_dimension_numbers<[1], [0], [0], [1], [0, 0, 1, 1], [], []>} : vector<16x16xf32>, vector<16x48xf32>, vector<16x48xf32> -> vector<16x48xf32>
    %528 = arith.addf %520, %527 : vector<16x48xf32>
    %c4_405 = arith.constant 4 : index
    %c0_406 = arith.constant 0 : index
    %c0_407 = arith.constant 0 : index
    %529 = vector.load %arg8[%c4_405, %c0_406, %c0_407] : memref<10x16x32xf32, #tpu.memory_space<vmem>>, vector<1x16x32xf32>
    %530 = vector.shape_cast %529 : vector<1x16x32xf32> to vector<16x32xf32>
    %cst_408 = arith.constant dense<0.000000e+00> : vector<16x32xf32>
    %531 = tpu.matmul %494, %530, %cst_408 {dimension_numbers = #tpu.dot_dimension_numbers<[1], [0], [0], [1], [0, 0, 1, 1], [], []>} : vector<16x16xf32>, vector<16x32xf32>, vector<16x32xf32> -> vector<16x32xf32>
    %532 = arith.addf %524, %531 : vector<16x32xf32>
    %533 = vector.extract_strided_slice %528 {offsets = [0, 0], sizes = [16, 32], strides = [1, 1]} : vector<16x48xf32> to vector<16x32xf32>
    %534 = arith.addf %533, %532 : vector<16x32xf32>
    %c0_409 = arith.constant 0 : index
    %c0_410 = arith.constant 0 : index
    %c0_411 = arith.constant 0 : index
    %535 = vector.load %arg10[%c0_409, %c0_410, %c0_411] : memref<2x1x32xf32, #tpu.memory_space<vmem>>, vector<1x1x32xf32>
    %536 = vector.shape_cast %535 : vector<1x1x32xf32> to vector<1x32xf32>
    %537 = vector.broadcast %536 : vector<1x32xf32> to vector<16x32xf32>
    %538 = arith.addf %534, %537 : vector<16x32xf32>
    %539 = arith.negf %538 : vector<16x32xf32>
    %540 = math.exp %539 : vector<16x32xf32>
    %cst_412 = arith.constant 1.000000e+00 : f32
    %541 = vector.broadcast %cst_412 : f32 to vector<16x32xf32>
    %542 = arith.addf %541, %540 : vector<16x32xf32>
    %543 = arith.divf %541, %542 : vector<16x32xf32>
    %544 = vector.extract_strided_slice %543 {offsets = [0, 0], sizes = [16, 16], strides = [1, 1]} : vector<16x32xf32> to vector<16x16xf32>
    %545 = vector.extract_strided_slice %543 {offsets = [0, 16], sizes = [16, 16], strides = [1, 1]} : vector<16x32xf32> to vector<16x16xf32>
    %546 = arith.mulf %544, %356 : vector<16x16xf32>
    %cst_413 = arith.constant dense<0.000000e+00> : vector<16x16xf32>
    %547 = tpu.matmul %1, %546, %cst_413 {dimension_numbers = #tpu.dot_dimension_numbers<[1], [0], [0], [1], [0, 0, 1, 1], [], []>} : vector<16x16xf32>, vector<16x16xf32>, vector<16x16xf32> -> vector<16x16xf32>
    %cst_414 = arith.constant dense<0.000000e+00> : vector<16x16xf32>
    %548 = tpu.matmul %1, %547, %cst_414 {dimension_numbers = #tpu.dot_dimension_numbers<[1], [0], [0], [1], [0, 0, 1, 1], [], []>} : vector<16x16xf32>, vector<16x16xf32>, vector<16x16xf32> -> vector<16x16xf32>
    %cst_415 = arith.constant 2.000000e+00 : f32
    %549 = vector.broadcast %cst_415 : f32 to vector<16x16xf32>
    %550 = arith.mulf %549, %548 : vector<16x16xf32>
    %551 = arith.subf %550, %546 : vector<16x16xf32>
    %cst_416 = arith.constant dense<0.000000e+00> : vector<16x16xf32>
    %552 = tpu.matmul %3, %547, %cst_416 {dimension_numbers = #tpu.dot_dimension_numbers<[1], [0], [0], [1], [0, 0, 1, 1], [], []>} : vector<16x16xf32>, vector<16x16xf32>, vector<16x16xf32> -> vector<16x16xf32>
    %cst_417 = arith.constant dense<0.000000e+00> : vector<16x16xf32>
    %553 = tpu.matmul %3, %552, %cst_417 {dimension_numbers = #tpu.dot_dimension_numbers<[1], [0], [0], [1], [0, 0, 1, 1], [], []>} : vector<16x16xf32>, vector<16x16xf32>, vector<16x16xf32> -> vector<16x16xf32>
    %cst_418 = arith.constant 2.000000e+00 : f32
    %554 = vector.broadcast %cst_418 : f32 to vector<16x16xf32>
    %555 = arith.mulf %554, %553 : vector<16x16xf32>
    %556 = arith.subf %555, %547 : vector<16x16xf32>
    %557 = vector.extract_strided_slice %528 {offsets = [0, 32], sizes = [16, 16], strides = [1, 1]} : vector<16x48xf32> to vector<16x16xf32>
    %c0_419 = arith.constant 0 : index
    %c0_420 = arith.constant 0 : index
    %c0_421 = arith.constant 0 : index
    %558 = vector.load %arg11[%c0_419, %c0_420, %c0_421] : memref<2x1x16xf32, #tpu.memory_space<vmem>>, vector<1x1x16xf32>
    %559 = vector.shape_cast %558 : vector<1x1x16xf32> to vector<1x16xf32>
    %560 = vector.broadcast %559 : vector<1x16xf32> to vector<16x16xf32>
    %561 = arith.addf %557, %560 : vector<16x16xf32>
    %c0_422 = arith.constant 0 : index
    %c0_423 = arith.constant 0 : index
    %c0_424 = arith.constant 0 : index
    %562 = vector.load %arg9[%c0_422, %c0_423, %c0_424] : memref<10x16x16xf32, #tpu.memory_space<vmem>>, vector<1x16x16xf32>
    %563 = vector.shape_cast %562 : vector<1x16x16xf32> to vector<16x16xf32>
    %cst_425 = arith.constant dense<0.000000e+00> : vector<16x16xf32>
    %564 = tpu.matmul %546, %563, %cst_425 {dimension_numbers = #tpu.dot_dimension_numbers<[1], [0], [0], [1], [0, 0, 1, 1], [], []>} : vector<16x16xf32>, vector<16x16xf32>, vector<16x16xf32> -> vector<16x16xf32>
    %565 = arith.addf %561, %564 : vector<16x16xf32>
    %c1_426 = arith.constant 1 : index
    %c0_427 = arith.constant 0 : index
    %c0_428 = arith.constant 0 : index
    %566 = vector.load %arg9[%c1_426, %c0_427, %c0_428] : memref<10x16x16xf32, #tpu.memory_space<vmem>>, vector<1x16x16xf32>
    %567 = vector.shape_cast %566 : vector<1x16x16xf32> to vector<16x16xf32>
    %cst_429 = arith.constant dense<0.000000e+00> : vector<16x16xf32>
    %568 = tpu.matmul %547, %567, %cst_429 {dimension_numbers = #tpu.dot_dimension_numbers<[1], [0], [0], [1], [0, 0, 1, 1], [], []>} : vector<16x16xf32>, vector<16x16xf32>, vector<16x16xf32> -> vector<16x16xf32>
    %569 = arith.addf %565, %568 : vector<16x16xf32>
    %c2_430 = arith.constant 2 : index
    %c0_431 = arith.constant 0 : index
    %c0_432 = arith.constant 0 : index
    %570 = vector.load %arg9[%c2_430, %c0_431, %c0_432] : memref<10x16x16xf32, #tpu.memory_space<vmem>>, vector<1x16x16xf32>
    %571 = vector.shape_cast %570 : vector<1x16x16xf32> to vector<16x16xf32>
    %cst_433 = arith.constant dense<0.000000e+00> : vector<16x16xf32>
    %572 = tpu.matmul %551, %571, %cst_433 {dimension_numbers = #tpu.dot_dimension_numbers<[1], [0], [0], [1], [0, 0, 1, 1], [], []>} : vector<16x16xf32>, vector<16x16xf32>, vector<16x16xf32> -> vector<16x16xf32>
    %573 = arith.addf %569, %572 : vector<16x16xf32>
    %c3_434 = arith.constant 3 : index
    %c0_435 = arith.constant 0 : index
    %c0_436 = arith.constant 0 : index
    %574 = vector.load %arg9[%c3_434, %c0_435, %c0_436] : memref<10x16x16xf32, #tpu.memory_space<vmem>>, vector<1x16x16xf32>
    %575 = vector.shape_cast %574 : vector<1x16x16xf32> to vector<16x16xf32>
    %cst_437 = arith.constant dense<0.000000e+00> : vector<16x16xf32>
    %576 = tpu.matmul %552, %575, %cst_437 {dimension_numbers = #tpu.dot_dimension_numbers<[1], [0], [0], [1], [0, 0, 1, 1], [], []>} : vector<16x16xf32>, vector<16x16xf32>, vector<16x16xf32> -> vector<16x16xf32>
    %577 = arith.addf %573, %576 : vector<16x16xf32>
    %c4_438 = arith.constant 4 : index
    %c0_439 = arith.constant 0 : index
    %c0_440 = arith.constant 0 : index
    %578 = vector.load %arg9[%c4_438, %c0_439, %c0_440] : memref<10x16x16xf32, #tpu.memory_space<vmem>>, vector<1x16x16xf32>
    %579 = vector.shape_cast %578 : vector<1x16x16xf32> to vector<16x16xf32>
    %cst_441 = arith.constant dense<0.000000e+00> : vector<16x16xf32>
    %580 = tpu.matmul %556, %579, %cst_441 {dimension_numbers = #tpu.dot_dimension_numbers<[1], [0], [0], [1], [0, 0, 1, 1], [], []>} : vector<16x16xf32>, vector<16x16xf32>, vector<16x16xf32> -> vector<16x16xf32>
    %581 = arith.addf %577, %580 : vector<16x16xf32>
    %582 = math.tanh %581 : vector<16x16xf32>
    %583 = arith.mulf %545, %356 : vector<16x16xf32>
    %cst_442 = arith.constant 1.000000e+00 : f32
    %584 = vector.broadcast %cst_442 : f32 to vector<16x16xf32>
    %585 = arith.subf %584, %545 : vector<16x16xf32>
    %586 = arith.mulf %585, %582 : vector<16x16xf32>
    %587 = arith.addf %583, %586 : vector<16x16xf32>
    %cst_443 = arith.constant dense<0.000000e+00> : vector<16x16xf32>
    %588 = tpu.matmul %1, %587, %cst_443 {dimension_numbers = #tpu.dot_dimension_numbers<[1], [0], [0], [1], [0, 0, 1, 1], [], []>} : vector<16x16xf32>, vector<16x16xf32>, vector<16x16xf32> -> vector<16x16xf32>
    %cst_444 = arith.constant dense<0.000000e+00> : vector<16x16xf32>
    %589 = tpu.matmul %1, %588, %cst_444 {dimension_numbers = #tpu.dot_dimension_numbers<[1], [0], [0], [1], [0, 0, 1, 1], [], []>} : vector<16x16xf32>, vector<16x16xf32>, vector<16x16xf32> -> vector<16x16xf32>
    %cst_445 = arith.constant 2.000000e+00 : f32
    %590 = vector.broadcast %cst_445 : f32 to vector<16x16xf32>
    %591 = arith.mulf %590, %589 : vector<16x16xf32>
    %592 = arith.subf %591, %587 : vector<16x16xf32>
    %cst_446 = arith.constant dense<0.000000e+00> : vector<16x16xf32>
    %593 = tpu.matmul %3, %588, %cst_446 {dimension_numbers = #tpu.dot_dimension_numbers<[1], [0], [0], [1], [0, 0, 1, 1], [], []>} : vector<16x16xf32>, vector<16x16xf32>, vector<16x16xf32> -> vector<16x16xf32>
    %cst_447 = arith.constant dense<0.000000e+00> : vector<16x16xf32>
    %594 = tpu.matmul %3, %593, %cst_447 {dimension_numbers = #tpu.dot_dimension_numbers<[1], [0], [0], [1], [0, 0, 1, 1], [], []>} : vector<16x16xf32>, vector<16x16xf32>, vector<16x16xf32> -> vector<16x16xf32>
    %cst_448 = arith.constant 2.000000e+00 : f32
    %595 = vector.broadcast %cst_448 : f32 to vector<16x16xf32>
    %596 = arith.mulf %595, %594 : vector<16x16xf32>
    %597 = arith.subf %596, %588 : vector<16x16xf32>
    %cst_449 = arith.constant dense<0.000000e+00> : vector<16x16xf32>
    %598 = tpu.matmul %1, %469, %cst_449 {dimension_numbers = #tpu.dot_dimension_numbers<[1], [0], [0], [1], [0, 0, 1, 1], [], []>} : vector<16x16xf32>, vector<16x16xf32>, vector<16x16xf32> -> vector<16x16xf32>
    %cst_450 = arith.constant dense<0.000000e+00> : vector<16x16xf32>
    %599 = tpu.matmul %1, %598, %cst_450 {dimension_numbers = #tpu.dot_dimension_numbers<[1], [0], [0], [1], [0, 0, 1, 1], [], []>} : vector<16x16xf32>, vector<16x16xf32>, vector<16x16xf32> -> vector<16x16xf32>
    %cst_451 = arith.constant 2.000000e+00 : f32
    %600 = vector.broadcast %cst_451 : f32 to vector<16x16xf32>
    %601 = arith.mulf %600, %599 : vector<16x16xf32>
    %602 = arith.subf %601, %469 : vector<16x16xf32>
    %cst_452 = arith.constant dense<0.000000e+00> : vector<16x16xf32>
    %603 = tpu.matmul %3, %598, %cst_452 {dimension_numbers = #tpu.dot_dimension_numbers<[1], [0], [0], [1], [0, 0, 1, 1], [], []>} : vector<16x16xf32>, vector<16x16xf32>, vector<16x16xf32> -> vector<16x16xf32>
    %cst_453 = arith.constant dense<0.000000e+00> : vector<16x16xf32>
    %604 = tpu.matmul %3, %603, %cst_453 {dimension_numbers = #tpu.dot_dimension_numbers<[1], [0], [0], [1], [0, 0, 1, 1], [], []>} : vector<16x16xf32>, vector<16x16xf32>, vector<16x16xf32> -> vector<16x16xf32>
    %cst_454 = arith.constant 2.000000e+00 : f32
    %605 = vector.broadcast %cst_454 : f32 to vector<16x16xf32>
    %606 = arith.mulf %605, %604 : vector<16x16xf32>
    %607 = arith.subf %606, %598 : vector<16x16xf32>
    %c5_455 = arith.constant 5 : index
    %c0_456 = arith.constant 0 : index
    %c0_457 = arith.constant 0 : index
    %608 = vector.load %arg7[%c5_455, %c0_456, %c0_457] : memref<10x16x48xf32, #tpu.memory_space<vmem>>, vector<1x16x48xf32>
    %609 = vector.shape_cast %608 : vector<1x16x48xf32> to vector<16x48xf32>
    %cst_458 = arith.constant dense<0.000000e+00> : vector<16x48xf32>
    %610 = tpu.matmul %587, %609, %cst_458 {dimension_numbers = #tpu.dot_dimension_numbers<[1], [0], [0], [1], [0, 0, 1, 1], [], []>} : vector<16x16xf32>, vector<16x48xf32>, vector<16x48xf32> -> vector<16x48xf32>
    %c5_459 = arith.constant 5 : index
    %c0_460 = arith.constant 0 : index
    %c0_461 = arith.constant 0 : index
    %611 = vector.load %arg8[%c5_459, %c0_460, %c0_461] : memref<10x16x32xf32, #tpu.memory_space<vmem>>, vector<1x16x32xf32>
    %612 = vector.shape_cast %611 : vector<1x16x32xf32> to vector<16x32xf32>
    %cst_462 = arith.constant dense<0.000000e+00> : vector<16x32xf32>
    %613 = tpu.matmul %469, %612, %cst_462 {dimension_numbers = #tpu.dot_dimension_numbers<[1], [0], [0], [1], [0, 0, 1, 1], [], []>} : vector<16x16xf32>, vector<16x32xf32>, vector<16x32xf32> -> vector<16x32xf32>
    %c6_463 = arith.constant 6 : index
    %c0_464 = arith.constant 0 : index
    %c0_465 = arith.constant 0 : index
    %614 = vector.load %arg7[%c6_463, %c0_464, %c0_465] : memref<10x16x48xf32, #tpu.memory_space<vmem>>, vector<1x16x48xf32>
    %615 = vector.shape_cast %614 : vector<1x16x48xf32> to vector<16x48xf32>
    %cst_466 = arith.constant dense<0.000000e+00> : vector<16x48xf32>
    %616 = tpu.matmul %588, %615, %cst_466 {dimension_numbers = #tpu.dot_dimension_numbers<[1], [0], [0], [1], [0, 0, 1, 1], [], []>} : vector<16x16xf32>, vector<16x48xf32>, vector<16x48xf32> -> vector<16x48xf32>
    %617 = arith.addf %610, %616 : vector<16x48xf32>
    %c6_467 = arith.constant 6 : index
    %c0_468 = arith.constant 0 : index
    %c0_469 = arith.constant 0 : index
    %618 = vector.load %arg8[%c6_467, %c0_468, %c0_469] : memref<10x16x32xf32, #tpu.memory_space<vmem>>, vector<1x16x32xf32>
    %619 = vector.shape_cast %618 : vector<1x16x32xf32> to vector<16x32xf32>
    %cst_470 = arith.constant dense<0.000000e+00> : vector<16x32xf32>
    %620 = tpu.matmul %598, %619, %cst_470 {dimension_numbers = #tpu.dot_dimension_numbers<[1], [0], [0], [1], [0, 0, 1, 1], [], []>} : vector<16x16xf32>, vector<16x32xf32>, vector<16x32xf32> -> vector<16x32xf32>
    %621 = arith.addf %613, %620 : vector<16x32xf32>
    %c7_471 = arith.constant 7 : index
    %c0_472 = arith.constant 0 : index
    %c0_473 = arith.constant 0 : index
    %622 = vector.load %arg7[%c7_471, %c0_472, %c0_473] : memref<10x16x48xf32, #tpu.memory_space<vmem>>, vector<1x16x48xf32>
    %623 = vector.shape_cast %622 : vector<1x16x48xf32> to vector<16x48xf32>
    %cst_474 = arith.constant dense<0.000000e+00> : vector<16x48xf32>
    %624 = tpu.matmul %592, %623, %cst_474 {dimension_numbers = #tpu.dot_dimension_numbers<[1], [0], [0], [1], [0, 0, 1, 1], [], []>} : vector<16x16xf32>, vector<16x48xf32>, vector<16x48xf32> -> vector<16x48xf32>
    %625 = arith.addf %617, %624 : vector<16x48xf32>
    %c7_475 = arith.constant 7 : index
    %c0_476 = arith.constant 0 : index
    %c0_477 = arith.constant 0 : index
    %626 = vector.load %arg8[%c7_475, %c0_476, %c0_477] : memref<10x16x32xf32, #tpu.memory_space<vmem>>, vector<1x16x32xf32>
    %627 = vector.shape_cast %626 : vector<1x16x32xf32> to vector<16x32xf32>
    %cst_478 = arith.constant dense<0.000000e+00> : vector<16x32xf32>
    %628 = tpu.matmul %602, %627, %cst_478 {dimension_numbers = #tpu.dot_dimension_numbers<[1], [0], [0], [1], [0, 0, 1, 1], [], []>} : vector<16x16xf32>, vector<16x32xf32>, vector<16x32xf32> -> vector<16x32xf32>
    %629 = arith.addf %621, %628 : vector<16x32xf32>
    %c8_479 = arith.constant 8 : index
    %c0_480 = arith.constant 0 : index
    %c0_481 = arith.constant 0 : index
    %630 = vector.load %arg7[%c8_479, %c0_480, %c0_481] : memref<10x16x48xf32, #tpu.memory_space<vmem>>, vector<1x16x48xf32>
    %631 = vector.shape_cast %630 : vector<1x16x48xf32> to vector<16x48xf32>
    %cst_482 = arith.constant dense<0.000000e+00> : vector<16x48xf32>
    %632 = tpu.matmul %593, %631, %cst_482 {dimension_numbers = #tpu.dot_dimension_numbers<[1], [0], [0], [1], [0, 0, 1, 1], [], []>} : vector<16x16xf32>, vector<16x48xf32>, vector<16x48xf32> -> vector<16x48xf32>
    %633 = arith.addf %625, %632 : vector<16x48xf32>
    %c8_483 = arith.constant 8 : index
    %c0_484 = arith.constant 0 : index
    %c0_485 = arith.constant 0 : index
    %634 = vector.load %arg8[%c8_483, %c0_484, %c0_485] : memref<10x16x32xf32, #tpu.memory_space<vmem>>, vector<1x16x32xf32>
    %635 = vector.shape_cast %634 : vector<1x16x32xf32> to vector<16x32xf32>
    %cst_486 = arith.constant dense<0.000000e+00> : vector<16x32xf32>
    %636 = tpu.matmul %603, %635, %cst_486 {dimension_numbers = #tpu.dot_dimension_numbers<[1], [0], [0], [1], [0, 0, 1, 1], [], []>} : vector<16x16xf32>, vector<16x32xf32>, vector<16x32xf32> -> vector<16x32xf32>
    %637 = arith.addf %629, %636 : vector<16x32xf32>
    %c9_487 = arith.constant 9 : index
    %c0_488 = arith.constant 0 : index
    %c0_489 = arith.constant 0 : index
    %638 = vector.load %arg7[%c9_487, %c0_488, %c0_489] : memref<10x16x48xf32, #tpu.memory_space<vmem>>, vector<1x16x48xf32>
    %639 = vector.shape_cast %638 : vector<1x16x48xf32> to vector<16x48xf32>
    %cst_490 = arith.constant dense<0.000000e+00> : vector<16x48xf32>
    %640 = tpu.matmul %597, %639, %cst_490 {dimension_numbers = #tpu.dot_dimension_numbers<[1], [0], [0], [1], [0, 0, 1, 1], [], []>} : vector<16x16xf32>, vector<16x48xf32>, vector<16x48xf32> -> vector<16x48xf32>
    %641 = arith.addf %633, %640 : vector<16x48xf32>
    %c9_491 = arith.constant 9 : index
    %c0_492 = arith.constant 0 : index
    %c0_493 = arith.constant 0 : index
    %642 = vector.load %arg8[%c9_491, %c0_492, %c0_493] : memref<10x16x32xf32, #tpu.memory_space<vmem>>, vector<1x16x32xf32>
    %643 = vector.shape_cast %642 : vector<1x16x32xf32> to vector<16x32xf32>
    %cst_494 = arith.constant dense<0.000000e+00> : vector<16x32xf32>
    %644 = tpu.matmul %607, %643, %cst_494 {dimension_numbers = #tpu.dot_dimension_numbers<[1], [0], [0], [1], [0, 0, 1, 1], [], []>} : vector<16x16xf32>, vector<16x32xf32>, vector<16x32xf32> -> vector<16x32xf32>
    %645 = arith.addf %637, %644 : vector<16x32xf32>
    %646 = vector.extract_strided_slice %641 {offsets = [0, 0], sizes = [16, 32], strides = [1, 1]} : vector<16x48xf32> to vector<16x32xf32>
    %647 = arith.addf %646, %645 : vector<16x32xf32>
    %c1_495 = arith.constant 1 : index
    %c0_496 = arith.constant 0 : index
    %c0_497 = arith.constant 0 : index
    %648 = vector.load %arg10[%c1_495, %c0_496, %c0_497] : memref<2x1x32xf32, #tpu.memory_space<vmem>>, vector<1x1x32xf32>
    %649 = vector.shape_cast %648 : vector<1x1x32xf32> to vector<1x32xf32>
    %650 = vector.broadcast %649 : vector<1x32xf32> to vector<16x32xf32>
    %651 = arith.addf %647, %650 : vector<16x32xf32>
    %652 = arith.negf %651 : vector<16x32xf32>
    %653 = math.exp %652 : vector<16x32xf32>
    %cst_498 = arith.constant 1.000000e+00 : f32
    %654 = vector.broadcast %cst_498 : f32 to vector<16x32xf32>
    %655 = arith.addf %654, %653 : vector<16x32xf32>
    %656 = arith.divf %654, %655 : vector<16x32xf32>
    %657 = vector.extract_strided_slice %656 {offsets = [0, 0], sizes = [16, 16], strides = [1, 1]} : vector<16x32xf32> to vector<16x16xf32>
    %658 = vector.extract_strided_slice %656 {offsets = [0, 16], sizes = [16, 16], strides = [1, 1]} : vector<16x32xf32> to vector<16x16xf32>
    %659 = arith.mulf %657, %469 : vector<16x16xf32>
    %cst_499 = arith.constant dense<0.000000e+00> : vector<16x16xf32>
    %660 = tpu.matmul %1, %659, %cst_499 {dimension_numbers = #tpu.dot_dimension_numbers<[1], [0], [0], [1], [0, 0, 1, 1], [], []>} : vector<16x16xf32>, vector<16x16xf32>, vector<16x16xf32> -> vector<16x16xf32>
    %cst_500 = arith.constant dense<0.000000e+00> : vector<16x16xf32>
    %661 = tpu.matmul %1, %660, %cst_500 {dimension_numbers = #tpu.dot_dimension_numbers<[1], [0], [0], [1], [0, 0, 1, 1], [], []>} : vector<16x16xf32>, vector<16x16xf32>, vector<16x16xf32> -> vector<16x16xf32>
    %cst_501 = arith.constant 2.000000e+00 : f32
    %662 = vector.broadcast %cst_501 : f32 to vector<16x16xf32>
    %663 = arith.mulf %662, %661 : vector<16x16xf32>
    %664 = arith.subf %663, %659 : vector<16x16xf32>
    %cst_502 = arith.constant dense<0.000000e+00> : vector<16x16xf32>
    %665 = tpu.matmul %3, %660, %cst_502 {dimension_numbers = #tpu.dot_dimension_numbers<[1], [0], [0], [1], [0, 0, 1, 1], [], []>} : vector<16x16xf32>, vector<16x16xf32>, vector<16x16xf32> -> vector<16x16xf32>
    %cst_503 = arith.constant dense<0.000000e+00> : vector<16x16xf32>
    %666 = tpu.matmul %3, %665, %cst_503 {dimension_numbers = #tpu.dot_dimension_numbers<[1], [0], [0], [1], [0, 0, 1, 1], [], []>} : vector<16x16xf32>, vector<16x16xf32>, vector<16x16xf32> -> vector<16x16xf32>
    %cst_504 = arith.constant 2.000000e+00 : f32
    %667 = vector.broadcast %cst_504 : f32 to vector<16x16xf32>
    %668 = arith.mulf %667, %666 : vector<16x16xf32>
    %669 = arith.subf %668, %660 : vector<16x16xf32>
    %670 = vector.extract_strided_slice %641 {offsets = [0, 32], sizes = [16, 16], strides = [1, 1]} : vector<16x48xf32> to vector<16x16xf32>
    %c1_505 = arith.constant 1 : index
    %c0_506 = arith.constant 0 : index
    %c0_507 = arith.constant 0 : index
    %671 = vector.load %arg11[%c1_505, %c0_506, %c0_507] : memref<2x1x16xf32, #tpu.memory_space<vmem>>, vector<1x1x16xf32>
    %672 = vector.shape_cast %671 : vector<1x1x16xf32> to vector<1x16xf32>
    %673 = vector.broadcast %672 : vector<1x16xf32> to vector<16x16xf32>
    %674 = arith.addf %670, %673 : vector<16x16xf32>
    %c5_508 = arith.constant 5 : index
    %c0_509 = arith.constant 0 : index
    %c0_510 = arith.constant 0 : index
    %675 = vector.load %arg9[%c5_508, %c0_509, %c0_510] : memref<10x16x16xf32, #tpu.memory_space<vmem>>, vector<1x16x16xf32>
    %676 = vector.shape_cast %675 : vector<1x16x16xf32> to vector<16x16xf32>
    %cst_511 = arith.constant dense<0.000000e+00> : vector<16x16xf32>
    %677 = tpu.matmul %659, %676, %cst_511 {dimension_numbers = #tpu.dot_dimension_numbers<[1], [0], [0], [1], [0, 0, 1, 1], [], []>} : vector<16x16xf32>, vector<16x16xf32>, vector<16x16xf32> -> vector<16x16xf32>
    %678 = arith.addf %674, %677 : vector<16x16xf32>
    %c6_512 = arith.constant 6 : index
    %c0_513 = arith.constant 0 : index
    %c0_514 = arith.constant 0 : index
    %679 = vector.load %arg9[%c6_512, %c0_513, %c0_514] : memref<10x16x16xf32, #tpu.memory_space<vmem>>, vector<1x16x16xf32>
    %680 = vector.shape_cast %679 : vector<1x16x16xf32> to vector<16x16xf32>
    %cst_515 = arith.constant dense<0.000000e+00> : vector<16x16xf32>
    %681 = tpu.matmul %660, %680, %cst_515 {dimension_numbers = #tpu.dot_dimension_numbers<[1], [0], [0], [1], [0, 0, 1, 1], [], []>} : vector<16x16xf32>, vector<16x16xf32>, vector<16x16xf32> -> vector<16x16xf32>
    %682 = arith.addf %678, %681 : vector<16x16xf32>
    %c7_516 = arith.constant 7 : index
    %c0_517 = arith.constant 0 : index
    %c0_518 = arith.constant 0 : index
    %683 = vector.load %arg9[%c7_516, %c0_517, %c0_518] : memref<10x16x16xf32, #tpu.memory_space<vmem>>, vector<1x16x16xf32>
    %684 = vector.shape_cast %683 : vector<1x16x16xf32> to vector<16x16xf32>
    %cst_519 = arith.constant dense<0.000000e+00> : vector<16x16xf32>
    %685 = tpu.matmul %664, %684, %cst_519 {dimension_numbers = #tpu.dot_dimension_numbers<[1], [0], [0], [1], [0, 0, 1, 1], [], []>} : vector<16x16xf32>, vector<16x16xf32>, vector<16x16xf32> -> vector<16x16xf32>
    %686 = arith.addf %682, %685 : vector<16x16xf32>
    %c8_520 = arith.constant 8 : index
    %c0_521 = arith.constant 0 : index
    %c0_522 = arith.constant 0 : index
    %687 = vector.load %arg9[%c8_520, %c0_521, %c0_522] : memref<10x16x16xf32, #tpu.memory_space<vmem>>, vector<1x16x16xf32>
    %688 = vector.shape_cast %687 : vector<1x16x16xf32> to vector<16x16xf32>
    %cst_523 = arith.constant dense<0.000000e+00> : vector<16x16xf32>
    %689 = tpu.matmul %665, %688, %cst_523 {dimension_numbers = #tpu.dot_dimension_numbers<[1], [0], [0], [1], [0, 0, 1, 1], [], []>} : vector<16x16xf32>, vector<16x16xf32>, vector<16x16xf32> -> vector<16x16xf32>
    %690 = arith.addf %686, %689 : vector<16x16xf32>
    %c9_524 = arith.constant 9 : index
    %c0_525 = arith.constant 0 : index
    %c0_526 = arith.constant 0 : index
    %691 = vector.load %arg9[%c9_524, %c0_525, %c0_526] : memref<10x16x16xf32, #tpu.memory_space<vmem>>, vector<1x16x16xf32>
    %692 = vector.shape_cast %691 : vector<1x16x16xf32> to vector<16x16xf32>
    %cst_527 = arith.constant dense<0.000000e+00> : vector<16x16xf32>
    %693 = tpu.matmul %669, %692, %cst_527 {dimension_numbers = #tpu.dot_dimension_numbers<[1], [0], [0], [1], [0, 0, 1, 1], [], []>} : vector<16x16xf32>, vector<16x16xf32>, vector<16x16xf32> -> vector<16x16xf32>
    %694 = arith.addf %690, %693 : vector<16x16xf32>
    %695 = math.tanh %694 : vector<16x16xf32>
    %696 = arith.mulf %658, %469 : vector<16x16xf32>
    %cst_528 = arith.constant 1.000000e+00 : f32
    %697 = vector.broadcast %cst_528 : f32 to vector<16x16xf32>
    %698 = arith.subf %697, %658 : vector<16x16xf32>
    %699 = arith.mulf %698, %695 : vector<16x16xf32>
    %700 = arith.addf %696, %699 : vector<16x16xf32>
    %c3_529 = arith.constant 3 : index
    %c0_530 = arith.constant 0 : index
    %c0_531 = arith.constant 0 : index
    %701 = vector.load %arg0[%c3_529, %c0_530, %c0_531] : memref<4x16x2xf32, #tpu.memory_space<vmem>>, vector<1x16x2xf32>
    %702 = vector.shape_cast %701 : vector<1x16x2xf32> to vector<16x2xf32>
    %cst_532 = arith.constant dense<0.000000e+00> : vector<16x16xf32>
    %703 = tpu.matmul %702, %4, %cst_532 {dimension_numbers = #tpu.dot_dimension_numbers<[1], [0], [0], [1], [0, 0, 1, 1], [], []>} : vector<16x2xf32>, vector<2x16xf32>, vector<16x16xf32> -> vector<16x16xf32>
    %704 = vector.broadcast %5 : vector<1x16xf32> to vector<16x16xf32>
    %705 = arith.addf %703, %704 : vector<16x16xf32>
    %cst_533 = arith.constant dense<0.000000e+00> : vector<16x16xf32>
    %706 = tpu.matmul %1, %705, %cst_533 {dimension_numbers = #tpu.dot_dimension_numbers<[1], [0], [0], [1], [0, 0, 1, 1], [], []>} : vector<16x16xf32>, vector<16x16xf32>, vector<16x16xf32> -> vector<16x16xf32>
    %cst_534 = arith.constant dense<0.000000e+00> : vector<16x16xf32>
    %707 = tpu.matmul %1, %706, %cst_534 {dimension_numbers = #tpu.dot_dimension_numbers<[1], [0], [0], [1], [0, 0, 1, 1], [], []>} : vector<16x16xf32>, vector<16x16xf32>, vector<16x16xf32> -> vector<16x16xf32>
    %cst_535 = arith.constant 2.000000e+00 : f32
    %708 = vector.broadcast %cst_535 : f32 to vector<16x16xf32>
    %709 = arith.mulf %708, %707 : vector<16x16xf32>
    %710 = arith.subf %709, %705 : vector<16x16xf32>
    %cst_536 = arith.constant dense<0.000000e+00> : vector<16x16xf32>
    %711 = tpu.matmul %3, %706, %cst_536 {dimension_numbers = #tpu.dot_dimension_numbers<[1], [0], [0], [1], [0, 0, 1, 1], [], []>} : vector<16x16xf32>, vector<16x16xf32>, vector<16x16xf32> -> vector<16x16xf32>
    %cst_537 = arith.constant dense<0.000000e+00> : vector<16x16xf32>
    %712 = tpu.matmul %3, %711, %cst_537 {dimension_numbers = #tpu.dot_dimension_numbers<[1], [0], [0], [1], [0, 0, 1, 1], [], []>} : vector<16x16xf32>, vector<16x16xf32>, vector<16x16xf32> -> vector<16x16xf32>
    %cst_538 = arith.constant 2.000000e+00 : f32
    %713 = vector.broadcast %cst_538 : f32 to vector<16x16xf32>
    %714 = arith.mulf %713, %712 : vector<16x16xf32>
    %715 = arith.subf %714, %706 : vector<16x16xf32>
    %cst_539 = arith.constant dense<0.000000e+00> : vector<16x16xf32>
    %716 = tpu.matmul %1, %587, %cst_539 {dimension_numbers = #tpu.dot_dimension_numbers<[1], [0], [0], [1], [0, 0, 1, 1], [], []>} : vector<16x16xf32>, vector<16x16xf32>, vector<16x16xf32> -> vector<16x16xf32>
    %cst_540 = arith.constant dense<0.000000e+00> : vector<16x16xf32>
    %717 = tpu.matmul %1, %716, %cst_540 {dimension_numbers = #tpu.dot_dimension_numbers<[1], [0], [0], [1], [0, 0, 1, 1], [], []>} : vector<16x16xf32>, vector<16x16xf32>, vector<16x16xf32> -> vector<16x16xf32>
    %cst_541 = arith.constant 2.000000e+00 : f32
    %718 = vector.broadcast %cst_541 : f32 to vector<16x16xf32>
    %719 = arith.mulf %718, %717 : vector<16x16xf32>
    %720 = arith.subf %719, %587 : vector<16x16xf32>
    %cst_542 = arith.constant dense<0.000000e+00> : vector<16x16xf32>
    %721 = tpu.matmul %3, %716, %cst_542 {dimension_numbers = #tpu.dot_dimension_numbers<[1], [0], [0], [1], [0, 0, 1, 1], [], []>} : vector<16x16xf32>, vector<16x16xf32>, vector<16x16xf32> -> vector<16x16xf32>
    %cst_543 = arith.constant dense<0.000000e+00> : vector<16x16xf32>
    %722 = tpu.matmul %3, %721, %cst_543 {dimension_numbers = #tpu.dot_dimension_numbers<[1], [0], [0], [1], [0, 0, 1, 1], [], []>} : vector<16x16xf32>, vector<16x16xf32>, vector<16x16xf32> -> vector<16x16xf32>
    %cst_544 = arith.constant 2.000000e+00 : f32
    %723 = vector.broadcast %cst_544 : f32 to vector<16x16xf32>
    %724 = arith.mulf %723, %722 : vector<16x16xf32>
    %725 = arith.subf %724, %716 : vector<16x16xf32>
    %c0_545 = arith.constant 0 : index
    %c0_546 = arith.constant 0 : index
    %c0_547 = arith.constant 0 : index
    %726 = vector.load %arg7[%c0_545, %c0_546, %c0_547] : memref<10x16x48xf32, #tpu.memory_space<vmem>>, vector<1x16x48xf32>
    %727 = vector.shape_cast %726 : vector<1x16x48xf32> to vector<16x48xf32>
    %cst_548 = arith.constant dense<0.000000e+00> : vector<16x48xf32>
    %728 = tpu.matmul %705, %727, %cst_548 {dimension_numbers = #tpu.dot_dimension_numbers<[1], [0], [0], [1], [0, 0, 1, 1], [], []>} : vector<16x16xf32>, vector<16x48xf32>, vector<16x48xf32> -> vector<16x48xf32>
    %c0_549 = arith.constant 0 : index
    %c0_550 = arith.constant 0 : index
    %c0_551 = arith.constant 0 : index
    %729 = vector.load %arg8[%c0_549, %c0_550, %c0_551] : memref<10x16x32xf32, #tpu.memory_space<vmem>>, vector<1x16x32xf32>
    %730 = vector.shape_cast %729 : vector<1x16x32xf32> to vector<16x32xf32>
    %cst_552 = arith.constant dense<0.000000e+00> : vector<16x32xf32>
    %731 = tpu.matmul %587, %730, %cst_552 {dimension_numbers = #tpu.dot_dimension_numbers<[1], [0], [0], [1], [0, 0, 1, 1], [], []>} : vector<16x16xf32>, vector<16x32xf32>, vector<16x32xf32> -> vector<16x32xf32>
    %c1_553 = arith.constant 1 : index
    %c0_554 = arith.constant 0 : index
    %c0_555 = arith.constant 0 : index
    %732 = vector.load %arg7[%c1_553, %c0_554, %c0_555] : memref<10x16x48xf32, #tpu.memory_space<vmem>>, vector<1x16x48xf32>
    %733 = vector.shape_cast %732 : vector<1x16x48xf32> to vector<16x48xf32>
    %cst_556 = arith.constant dense<0.000000e+00> : vector<16x48xf32>
    %734 = tpu.matmul %706, %733, %cst_556 {dimension_numbers = #tpu.dot_dimension_numbers<[1], [0], [0], [1], [0, 0, 1, 1], [], []>} : vector<16x16xf32>, vector<16x48xf32>, vector<16x48xf32> -> vector<16x48xf32>
    %735 = arith.addf %728, %734 : vector<16x48xf32>
    %c1_557 = arith.constant 1 : index
    %c0_558 = arith.constant 0 : index
    %c0_559 = arith.constant 0 : index
    %736 = vector.load %arg8[%c1_557, %c0_558, %c0_559] : memref<10x16x32xf32, #tpu.memory_space<vmem>>, vector<1x16x32xf32>
    %737 = vector.shape_cast %736 : vector<1x16x32xf32> to vector<16x32xf32>
    %cst_560 = arith.constant dense<0.000000e+00> : vector<16x32xf32>
    %738 = tpu.matmul %716, %737, %cst_560 {dimension_numbers = #tpu.dot_dimension_numbers<[1], [0], [0], [1], [0, 0, 1, 1], [], []>} : vector<16x16xf32>, vector<16x32xf32>, vector<16x32xf32> -> vector<16x32xf32>
    %739 = arith.addf %731, %738 : vector<16x32xf32>
    %c2_561 = arith.constant 2 : index
    %c0_562 = arith.constant 0 : index
    %c0_563 = arith.constant 0 : index
    %740 = vector.load %arg7[%c2_561, %c0_562, %c0_563] : memref<10x16x48xf32, #tpu.memory_space<vmem>>, vector<1x16x48xf32>
    %741 = vector.shape_cast %740 : vector<1x16x48xf32> to vector<16x48xf32>
    %cst_564 = arith.constant dense<0.000000e+00> : vector<16x48xf32>
    %742 = tpu.matmul %710, %741, %cst_564 {dimension_numbers = #tpu.dot_dimension_numbers<[1], [0], [0], [1], [0, 0, 1, 1], [], []>} : vector<16x16xf32>, vector<16x48xf32>, vector<16x48xf32> -> vector<16x48xf32>
    %743 = arith.addf %735, %742 : vector<16x48xf32>
    %c2_565 = arith.constant 2 : index
    %c0_566 = arith.constant 0 : index
    %c0_567 = arith.constant 0 : index
    %744 = vector.load %arg8[%c2_565, %c0_566, %c0_567] : memref<10x16x32xf32, #tpu.memory_space<vmem>>, vector<1x16x32xf32>
    %745 = vector.shape_cast %744 : vector<1x16x32xf32> to vector<16x32xf32>
    %cst_568 = arith.constant dense<0.000000e+00> : vector<16x32xf32>
    %746 = tpu.matmul %720, %745, %cst_568 {dimension_numbers = #tpu.dot_dimension_numbers<[1], [0], [0], [1], [0, 0, 1, 1], [], []>} : vector<16x16xf32>, vector<16x32xf32>, vector<16x32xf32> -> vector<16x32xf32>
    %747 = arith.addf %739, %746 : vector<16x32xf32>
    %c3_569 = arith.constant 3 : index
    %c0_570 = arith.constant 0 : index
    %c0_571 = arith.constant 0 : index
    %748 = vector.load %arg7[%c3_569, %c0_570, %c0_571] : memref<10x16x48xf32, #tpu.memory_space<vmem>>, vector<1x16x48xf32>
    %749 = vector.shape_cast %748 : vector<1x16x48xf32> to vector<16x48xf32>
    %cst_572 = arith.constant dense<0.000000e+00> : vector<16x48xf32>
    %750 = tpu.matmul %711, %749, %cst_572 {dimension_numbers = #tpu.dot_dimension_numbers<[1], [0], [0], [1], [0, 0, 1, 1], [], []>} : vector<16x16xf32>, vector<16x48xf32>, vector<16x48xf32> -> vector<16x48xf32>
    %751 = arith.addf %743, %750 : vector<16x48xf32>
    %c3_573 = arith.constant 3 : index
    %c0_574 = arith.constant 0 : index
    %c0_575 = arith.constant 0 : index
    %752 = vector.load %arg8[%c3_573, %c0_574, %c0_575] : memref<10x16x32xf32, #tpu.memory_space<vmem>>, vector<1x16x32xf32>
    %753 = vector.shape_cast %752 : vector<1x16x32xf32> to vector<16x32xf32>
    %cst_576 = arith.constant dense<0.000000e+00> : vector<16x32xf32>
    %754 = tpu.matmul %721, %753, %cst_576 {dimension_numbers = #tpu.dot_dimension_numbers<[1], [0], [0], [1], [0, 0, 1, 1], [], []>} : vector<16x16xf32>, vector<16x32xf32>, vector<16x32xf32> -> vector<16x32xf32>
    %755 = arith.addf %747, %754 : vector<16x32xf32>
    %c4_577 = arith.constant 4 : index
    %c0_578 = arith.constant 0 : index
    %c0_579 = arith.constant 0 : index
    %756 = vector.load %arg7[%c4_577, %c0_578, %c0_579] : memref<10x16x48xf32, #tpu.memory_space<vmem>>, vector<1x16x48xf32>
    %757 = vector.shape_cast %756 : vector<1x16x48xf32> to vector<16x48xf32>
    %cst_580 = arith.constant dense<0.000000e+00> : vector<16x48xf32>
    %758 = tpu.matmul %715, %757, %cst_580 {dimension_numbers = #tpu.dot_dimension_numbers<[1], [0], [0], [1], [0, 0, 1, 1], [], []>} : vector<16x16xf32>, vector<16x48xf32>, vector<16x48xf32> -> vector<16x48xf32>
    %759 = arith.addf %751, %758 : vector<16x48xf32>
    %c4_581 = arith.constant 4 : index
    %c0_582 = arith.constant 0 : index
    %c0_583 = arith.constant 0 : index
    %760 = vector.load %arg8[%c4_581, %c0_582, %c0_583] : memref<10x16x32xf32, #tpu.memory_space<vmem>>, vector<1x16x32xf32>
    %761 = vector.shape_cast %760 : vector<1x16x32xf32> to vector<16x32xf32>
    %cst_584 = arith.constant dense<0.000000e+00> : vector<16x32xf32>
    %762 = tpu.matmul %725, %761, %cst_584 {dimension_numbers = #tpu.dot_dimension_numbers<[1], [0], [0], [1], [0, 0, 1, 1], [], []>} : vector<16x16xf32>, vector<16x32xf32>, vector<16x32xf32> -> vector<16x32xf32>
    %763 = arith.addf %755, %762 : vector<16x32xf32>
    %764 = vector.extract_strided_slice %759 {offsets = [0, 0], sizes = [16, 32], strides = [1, 1]} : vector<16x48xf32> to vector<16x32xf32>
    %765 = arith.addf %764, %763 : vector<16x32xf32>
    %c0_585 = arith.constant 0 : index
    %c0_586 = arith.constant 0 : index
    %c0_587 = arith.constant 0 : index
    %766 = vector.load %arg10[%c0_585, %c0_586, %c0_587] : memref<2x1x32xf32, #tpu.memory_space<vmem>>, vector<1x1x32xf32>
    %767 = vector.shape_cast %766 : vector<1x1x32xf32> to vector<1x32xf32>
    %768 = vector.broadcast %767 : vector<1x32xf32> to vector<16x32xf32>
    %769 = arith.addf %765, %768 : vector<16x32xf32>
    %770 = arith.negf %769 : vector<16x32xf32>
    %771 = math.exp %770 : vector<16x32xf32>
    %cst_588 = arith.constant 1.000000e+00 : f32
    %772 = vector.broadcast %cst_588 : f32 to vector<16x32xf32>
    %773 = arith.addf %772, %771 : vector<16x32xf32>
    %774 = arith.divf %772, %773 : vector<16x32xf32>
    %775 = vector.extract_strided_slice %774 {offsets = [0, 0], sizes = [16, 16], strides = [1, 1]} : vector<16x32xf32> to vector<16x16xf32>
    %776 = vector.extract_strided_slice %774 {offsets = [0, 16], sizes = [16, 16], strides = [1, 1]} : vector<16x32xf32> to vector<16x16xf32>
    %777 = arith.mulf %775, %587 : vector<16x16xf32>
    %cst_589 = arith.constant dense<0.000000e+00> : vector<16x16xf32>
    %778 = tpu.matmul %1, %777, %cst_589 {dimension_numbers = #tpu.dot_dimension_numbers<[1], [0], [0], [1], [0, 0, 1, 1], [], []>} : vector<16x16xf32>, vector<16x16xf32>, vector<16x16xf32> -> vector<16x16xf32>
    %cst_590 = arith.constant dense<0.000000e+00> : vector<16x16xf32>
    %779 = tpu.matmul %1, %778, %cst_590 {dimension_numbers = #tpu.dot_dimension_numbers<[1], [0], [0], [1], [0, 0, 1, 1], [], []>} : vector<16x16xf32>, vector<16x16xf32>, vector<16x16xf32> -> vector<16x16xf32>
    %cst_591 = arith.constant 2.000000e+00 : f32
    %780 = vector.broadcast %cst_591 : f32 to vector<16x16xf32>
    %781 = arith.mulf %780, %779 : vector<16x16xf32>
    %782 = arith.subf %781, %777 : vector<16x16xf32>
    %cst_592 = arith.constant dense<0.000000e+00> : vector<16x16xf32>
    %783 = tpu.matmul %3, %778, %cst_592 {dimension_numbers = #tpu.dot_dimension_numbers<[1], [0], [0], [1], [0, 0, 1, 1], [], []>} : vector<16x16xf32>, vector<16x16xf32>, vector<16x16xf32> -> vector<16x16xf32>
    %cst_593 = arith.constant dense<0.000000e+00> : vector<16x16xf32>
    %784 = tpu.matmul %3, %783, %cst_593 {dimension_numbers = #tpu.dot_dimension_numbers<[1], [0], [0], [1], [0, 0, 1, 1], [], []>} : vector<16x16xf32>, vector<16x16xf32>, vector<16x16xf32> -> vector<16x16xf32>
    %cst_594 = arith.constant 2.000000e+00 : f32
    %785 = vector.broadcast %cst_594 : f32 to vector<16x16xf32>
    %786 = arith.mulf %785, %784 : vector<16x16xf32>
    %787 = arith.subf %786, %778 : vector<16x16xf32>
    %788 = vector.extract_strided_slice %759 {offsets = [0, 32], sizes = [16, 16], strides = [1, 1]} : vector<16x48xf32> to vector<16x16xf32>
    %c0_595 = arith.constant 0 : index
    %c0_596 = arith.constant 0 : index
    %c0_597 = arith.constant 0 : index
    %789 = vector.load %arg11[%c0_595, %c0_596, %c0_597] : memref<2x1x16xf32, #tpu.memory_space<vmem>>, vector<1x1x16xf32>
    %790 = vector.shape_cast %789 : vector<1x1x16xf32> to vector<1x16xf32>
    %791 = vector.broadcast %790 : vector<1x16xf32> to vector<16x16xf32>
    %792 = arith.addf %788, %791 : vector<16x16xf32>
    %c0_598 = arith.constant 0 : index
    %c0_599 = arith.constant 0 : index
    %c0_600 = arith.constant 0 : index
    %793 = vector.load %arg9[%c0_598, %c0_599, %c0_600] : memref<10x16x16xf32, #tpu.memory_space<vmem>>, vector<1x16x16xf32>
    %794 = vector.shape_cast %793 : vector<1x16x16xf32> to vector<16x16xf32>
    %cst_601 = arith.constant dense<0.000000e+00> : vector<16x16xf32>
    %795 = tpu.matmul %777, %794, %cst_601 {dimension_numbers = #tpu.dot_dimension_numbers<[1], [0], [0], [1], [0, 0, 1, 1], [], []>} : vector<16x16xf32>, vector<16x16xf32>, vector<16x16xf32> -> vector<16x16xf32>
    %796 = arith.addf %792, %795 : vector<16x16xf32>
    %c1_602 = arith.constant 1 : index
    %c0_603 = arith.constant 0 : index
    %c0_604 = arith.constant 0 : index
    %797 = vector.load %arg9[%c1_602, %c0_603, %c0_604] : memref<10x16x16xf32, #tpu.memory_space<vmem>>, vector<1x16x16xf32>
    %798 = vector.shape_cast %797 : vector<1x16x16xf32> to vector<16x16xf32>
    %cst_605 = arith.constant dense<0.000000e+00> : vector<16x16xf32>
    %799 = tpu.matmul %778, %798, %cst_605 {dimension_numbers = #tpu.dot_dimension_numbers<[1], [0], [0], [1], [0, 0, 1, 1], [], []>} : vector<16x16xf32>, vector<16x16xf32>, vector<16x16xf32> -> vector<16x16xf32>
    %800 = arith.addf %796, %799 : vector<16x16xf32>
    %c2_606 = arith.constant 2 : index
    %c0_607 = arith.constant 0 : index
    %c0_608 = arith.constant 0 : index
    %801 = vector.load %arg9[%c2_606, %c0_607, %c0_608] : memref<10x16x16xf32, #tpu.memory_space<vmem>>, vector<1x16x16xf32>
    %802 = vector.shape_cast %801 : vector<1x16x16xf32> to vector<16x16xf32>
    %cst_609 = arith.constant dense<0.000000e+00> : vector<16x16xf32>
    %803 = tpu.matmul %782, %802, %cst_609 {dimension_numbers = #tpu.dot_dimension_numbers<[1], [0], [0], [1], [0, 0, 1, 1], [], []>} : vector<16x16xf32>, vector<16x16xf32>, vector<16x16xf32> -> vector<16x16xf32>
    %804 = arith.addf %800, %803 : vector<16x16xf32>
    %c3_610 = arith.constant 3 : index
    %c0_611 = arith.constant 0 : index
    %c0_612 = arith.constant 0 : index
    %805 = vector.load %arg9[%c3_610, %c0_611, %c0_612] : memref<10x16x16xf32, #tpu.memory_space<vmem>>, vector<1x16x16xf32>
    %806 = vector.shape_cast %805 : vector<1x16x16xf32> to vector<16x16xf32>
    %cst_613 = arith.constant dense<0.000000e+00> : vector<16x16xf32>
    %807 = tpu.matmul %783, %806, %cst_613 {dimension_numbers = #tpu.dot_dimension_numbers<[1], [0], [0], [1], [0, 0, 1, 1], [], []>} : vector<16x16xf32>, vector<16x16xf32>, vector<16x16xf32> -> vector<16x16xf32>
    %808 = arith.addf %804, %807 : vector<16x16xf32>
    %c4_614 = arith.constant 4 : index
    %c0_615 = arith.constant 0 : index
    %c0_616 = arith.constant 0 : index
    %809 = vector.load %arg9[%c4_614, %c0_615, %c0_616] : memref<10x16x16xf32, #tpu.memory_space<vmem>>, vector<1x16x16xf32>
    %810 = vector.shape_cast %809 : vector<1x16x16xf32> to vector<16x16xf32>
    %cst_617 = arith.constant dense<0.000000e+00> : vector<16x16xf32>
    %811 = tpu.matmul %787, %810, %cst_617 {dimension_numbers = #tpu.dot_dimension_numbers<[1], [0], [0], [1], [0, 0, 1, 1], [], []>} : vector<16x16xf32>, vector<16x16xf32>, vector<16x16xf32> -> vector<16x16xf32>
    %812 = arith.addf %808, %811 : vector<16x16xf32>
    %813 = math.tanh %812 : vector<16x16xf32>
    %814 = arith.mulf %776, %587 : vector<16x16xf32>
    %cst_618 = arith.constant 1.000000e+00 : f32
    %815 = vector.broadcast %cst_618 : f32 to vector<16x16xf32>
    %816 = arith.subf %815, %776 : vector<16x16xf32>
    %817 = arith.mulf %816, %813 : vector<16x16xf32>
    %818 = arith.addf %814, %817 : vector<16x16xf32>
    %cst_619 = arith.constant dense<0.000000e+00> : vector<16x16xf32>
    %819 = tpu.matmul %1, %818, %cst_619 {dimension_numbers = #tpu.dot_dimension_numbers<[1], [0], [0], [1], [0, 0, 1, 1], [], []>} : vector<16x16xf32>, vector<16x16xf32>, vector<16x16xf32> -> vector<16x16xf32>
    %cst_620 = arith.constant dense<0.000000e+00> : vector<16x16xf32>
    %820 = tpu.matmul %1, %819, %cst_620 {dimension_numbers = #tpu.dot_dimension_numbers<[1], [0], [0], [1], [0, 0, 1, 1], [], []>} : vector<16x16xf32>, vector<16x16xf32>, vector<16x16xf32> -> vector<16x16xf32>
    %cst_621 = arith.constant 2.000000e+00 : f32
    %821 = vector.broadcast %cst_621 : f32 to vector<16x16xf32>
    %822 = arith.mulf %821, %820 : vector<16x16xf32>
    %823 = arith.subf %822, %818 : vector<16x16xf32>
    %cst_622 = arith.constant dense<0.000000e+00> : vector<16x16xf32>
    %824 = tpu.matmul %3, %819, %cst_622 {dimension_numbers = #tpu.dot_dimension_numbers<[1], [0], [0], [1], [0, 0, 1, 1], [], []>} : vector<16x16xf32>, vector<16x16xf32>, vector<16x16xf32> -> vector<16x16xf32>
    %cst_623 = arith.constant dense<0.000000e+00> : vector<16x16xf32>
    %825 = tpu.matmul %3, %824, %cst_623 {dimension_numbers = #tpu.dot_dimension_numbers<[1], [0], [0], [1], [0, 0, 1, 1], [], []>} : vector<16x16xf32>, vector<16x16xf32>, vector<16x16xf32> -> vector<16x16xf32>
    %cst_624 = arith.constant 2.000000e+00 : f32
    %826 = vector.broadcast %cst_624 : f32 to vector<16x16xf32>
    %827 = arith.mulf %826, %825 : vector<16x16xf32>
    %828 = arith.subf %827, %819 : vector<16x16xf32>
    %cst_625 = arith.constant dense<0.000000e+00> : vector<16x16xf32>
    %829 = tpu.matmul %1, %700, %cst_625 {dimension_numbers = #tpu.dot_dimension_numbers<[1], [0], [0], [1], [0, 0, 1, 1], [], []>} : vector<16x16xf32>, vector<16x16xf32>, vector<16x16xf32> -> vector<16x16xf32>
    %cst_626 = arith.constant dense<0.000000e+00> : vector<16x16xf32>
    %830 = tpu.matmul %1, %829, %cst_626 {dimension_numbers = #tpu.dot_dimension_numbers<[1], [0], [0], [1], [0, 0, 1, 1], [], []>} : vector<16x16xf32>, vector<16x16xf32>, vector<16x16xf32> -> vector<16x16xf32>
    %cst_627 = arith.constant 2.000000e+00 : f32
    %831 = vector.broadcast %cst_627 : f32 to vector<16x16xf32>
    %832 = arith.mulf %831, %830 : vector<16x16xf32>
    %833 = arith.subf %832, %700 : vector<16x16xf32>
    %cst_628 = arith.constant dense<0.000000e+00> : vector<16x16xf32>
    %834 = tpu.matmul %3, %829, %cst_628 {dimension_numbers = #tpu.dot_dimension_numbers<[1], [0], [0], [1], [0, 0, 1, 1], [], []>} : vector<16x16xf32>, vector<16x16xf32>, vector<16x16xf32> -> vector<16x16xf32>
    %cst_629 = arith.constant dense<0.000000e+00> : vector<16x16xf32>
    %835 = tpu.matmul %3, %834, %cst_629 {dimension_numbers = #tpu.dot_dimension_numbers<[1], [0], [0], [1], [0, 0, 1, 1], [], []>} : vector<16x16xf32>, vector<16x16xf32>, vector<16x16xf32> -> vector<16x16xf32>
    %cst_630 = arith.constant 2.000000e+00 : f32
    %836 = vector.broadcast %cst_630 : f32 to vector<16x16xf32>
    %837 = arith.mulf %836, %835 : vector<16x16xf32>
    %838 = arith.subf %837, %829 : vector<16x16xf32>
    %c5_631 = arith.constant 5 : index
    %c0_632 = arith.constant 0 : index
    %c0_633 = arith.constant 0 : index
    %839 = vector.load %arg7[%c5_631, %c0_632, %c0_633] : memref<10x16x48xf32, #tpu.memory_space<vmem>>, vector<1x16x48xf32>
    %840 = vector.shape_cast %839 : vector<1x16x48xf32> to vector<16x48xf32>
    %cst_634 = arith.constant dense<0.000000e+00> : vector<16x48xf32>
    %841 = tpu.matmul %818, %840, %cst_634 {dimension_numbers = #tpu.dot_dimension_numbers<[1], [0], [0], [1], [0, 0, 1, 1], [], []>} : vector<16x16xf32>, vector<16x48xf32>, vector<16x48xf32> -> vector<16x48xf32>
    %c5_635 = arith.constant 5 : index
    %c0_636 = arith.constant 0 : index
    %c0_637 = arith.constant 0 : index
    %842 = vector.load %arg8[%c5_635, %c0_636, %c0_637] : memref<10x16x32xf32, #tpu.memory_space<vmem>>, vector<1x16x32xf32>
    %843 = vector.shape_cast %842 : vector<1x16x32xf32> to vector<16x32xf32>
    %cst_638 = arith.constant dense<0.000000e+00> : vector<16x32xf32>
    %844 = tpu.matmul %700, %843, %cst_638 {dimension_numbers = #tpu.dot_dimension_numbers<[1], [0], [0], [1], [0, 0, 1, 1], [], []>} : vector<16x16xf32>, vector<16x32xf32>, vector<16x32xf32> -> vector<16x32xf32>
    %c6_639 = arith.constant 6 : index
    %c0_640 = arith.constant 0 : index
    %c0_641 = arith.constant 0 : index
    %845 = vector.load %arg7[%c6_639, %c0_640, %c0_641] : memref<10x16x48xf32, #tpu.memory_space<vmem>>, vector<1x16x48xf32>
    %846 = vector.shape_cast %845 : vector<1x16x48xf32> to vector<16x48xf32>
    %cst_642 = arith.constant dense<0.000000e+00> : vector<16x48xf32>
    %847 = tpu.matmul %819, %846, %cst_642 {dimension_numbers = #tpu.dot_dimension_numbers<[1], [0], [0], [1], [0, 0, 1, 1], [], []>} : vector<16x16xf32>, vector<16x48xf32>, vector<16x48xf32> -> vector<16x48xf32>
    %848 = arith.addf %841, %847 : vector<16x48xf32>
    %c6_643 = arith.constant 6 : index
    %c0_644 = arith.constant 0 : index
    %c0_645 = arith.constant 0 : index
    %849 = vector.load %arg8[%c6_643, %c0_644, %c0_645] : memref<10x16x32xf32, #tpu.memory_space<vmem>>, vector<1x16x32xf32>
    %850 = vector.shape_cast %849 : vector<1x16x32xf32> to vector<16x32xf32>
    %cst_646 = arith.constant dense<0.000000e+00> : vector<16x32xf32>
    %851 = tpu.matmul %829, %850, %cst_646 {dimension_numbers = #tpu.dot_dimension_numbers<[1], [0], [0], [1], [0, 0, 1, 1], [], []>} : vector<16x16xf32>, vector<16x32xf32>, vector<16x32xf32> -> vector<16x32xf32>
    %852 = arith.addf %844, %851 : vector<16x32xf32>
    %c7_647 = arith.constant 7 : index
    %c0_648 = arith.constant 0 : index
    %c0_649 = arith.constant 0 : index
    %853 = vector.load %arg7[%c7_647, %c0_648, %c0_649] : memref<10x16x48xf32, #tpu.memory_space<vmem>>, vector<1x16x48xf32>
    %854 = vector.shape_cast %853 : vector<1x16x48xf32> to vector<16x48xf32>
    %cst_650 = arith.constant dense<0.000000e+00> : vector<16x48xf32>
    %855 = tpu.matmul %823, %854, %cst_650 {dimension_numbers = #tpu.dot_dimension_numbers<[1], [0], [0], [1], [0, 0, 1, 1], [], []>} : vector<16x16xf32>, vector<16x48xf32>, vector<16x48xf32> -> vector<16x48xf32>
    %856 = arith.addf %848, %855 : vector<16x48xf32>
    %c7_651 = arith.constant 7 : index
    %c0_652 = arith.constant 0 : index
    %c0_653 = arith.constant 0 : index
    %857 = vector.load %arg8[%c7_651, %c0_652, %c0_653] : memref<10x16x32xf32, #tpu.memory_space<vmem>>, vector<1x16x32xf32>
    %858 = vector.shape_cast %857 : vector<1x16x32xf32> to vector<16x32xf32>
    %cst_654 = arith.constant dense<0.000000e+00> : vector<16x32xf32>
    %859 = tpu.matmul %833, %858, %cst_654 {dimension_numbers = #tpu.dot_dimension_numbers<[1], [0], [0], [1], [0, 0, 1, 1], [], []>} : vector<16x16xf32>, vector<16x32xf32>, vector<16x32xf32> -> vector<16x32xf32>
    %860 = arith.addf %852, %859 : vector<16x32xf32>
    %c8_655 = arith.constant 8 : index
    %c0_656 = arith.constant 0 : index
    %c0_657 = arith.constant 0 : index
    %861 = vector.load %arg7[%c8_655, %c0_656, %c0_657] : memref<10x16x48xf32, #tpu.memory_space<vmem>>, vector<1x16x48xf32>
    %862 = vector.shape_cast %861 : vector<1x16x48xf32> to vector<16x48xf32>
    %cst_658 = arith.constant dense<0.000000e+00> : vector<16x48xf32>
    %863 = tpu.matmul %824, %862, %cst_658 {dimension_numbers = #tpu.dot_dimension_numbers<[1], [0], [0], [1], [0, 0, 1, 1], [], []>} : vector<16x16xf32>, vector<16x48xf32>, vector<16x48xf32> -> vector<16x48xf32>
    %864 = arith.addf %856, %863 : vector<16x48xf32>
    %c8_659 = arith.constant 8 : index
    %c0_660 = arith.constant 0 : index
    %c0_661 = arith.constant 0 : index
    %865 = vector.load %arg8[%c8_659, %c0_660, %c0_661] : memref<10x16x32xf32, #tpu.memory_space<vmem>>, vector<1x16x32xf32>
    %866 = vector.shape_cast %865 : vector<1x16x32xf32> to vector<16x32xf32>
    %cst_662 = arith.constant dense<0.000000e+00> : vector<16x32xf32>
    %867 = tpu.matmul %834, %866, %cst_662 {dimension_numbers = #tpu.dot_dimension_numbers<[1], [0], [0], [1], [0, 0, 1, 1], [], []>} : vector<16x16xf32>, vector<16x32xf32>, vector<16x32xf32> -> vector<16x32xf32>
    %868 = arith.addf %860, %867 : vector<16x32xf32>
    %c9_663 = arith.constant 9 : index
    %c0_664 = arith.constant 0 : index
    %c0_665 = arith.constant 0 : index
    %869 = vector.load %arg7[%c9_663, %c0_664, %c0_665] : memref<10x16x48xf32, #tpu.memory_space<vmem>>, vector<1x16x48xf32>
    %870 = vector.shape_cast %869 : vector<1x16x48xf32> to vector<16x48xf32>
    %cst_666 = arith.constant dense<0.000000e+00> : vector<16x48xf32>
    %871 = tpu.matmul %828, %870, %cst_666 {dimension_numbers = #tpu.dot_dimension_numbers<[1], [0], [0], [1], [0, 0, 1, 1], [], []>} : vector<16x16xf32>, vector<16x48xf32>, vector<16x48xf32> -> vector<16x48xf32>
    %872 = arith.addf %864, %871 : vector<16x48xf32>
    %c9_667 = arith.constant 9 : index
    %c0_668 = arith.constant 0 : index
    %c0_669 = arith.constant 0 : index
    %873 = vector.load %arg8[%c9_667, %c0_668, %c0_669] : memref<10x16x32xf32, #tpu.memory_space<vmem>>, vector<1x16x32xf32>
    %874 = vector.shape_cast %873 : vector<1x16x32xf32> to vector<16x32xf32>
    %cst_670 = arith.constant dense<0.000000e+00> : vector<16x32xf32>
    %875 = tpu.matmul %838, %874, %cst_670 {dimension_numbers = #tpu.dot_dimension_numbers<[1], [0], [0], [1], [0, 0, 1, 1], [], []>} : vector<16x16xf32>, vector<16x32xf32>, vector<16x32xf32> -> vector<16x32xf32>
    %876 = arith.addf %868, %875 : vector<16x32xf32>
    %877 = vector.extract_strided_slice %872 {offsets = [0, 0], sizes = [16, 32], strides = [1, 1]} : vector<16x48xf32> to vector<16x32xf32>
    %878 = arith.addf %877, %876 : vector<16x32xf32>
    %c1_671 = arith.constant 1 : index
    %c0_672 = arith.constant 0 : index
    %c0_673 = arith.constant 0 : index
    %879 = vector.load %arg10[%c1_671, %c0_672, %c0_673] : memref<2x1x32xf32, #tpu.memory_space<vmem>>, vector<1x1x32xf32>
    %880 = vector.shape_cast %879 : vector<1x1x32xf32> to vector<1x32xf32>
    %881 = vector.broadcast %880 : vector<1x32xf32> to vector<16x32xf32>
    %882 = arith.addf %878, %881 : vector<16x32xf32>
    %883 = arith.negf %882 : vector<16x32xf32>
    %884 = math.exp %883 : vector<16x32xf32>
    %cst_674 = arith.constant 1.000000e+00 : f32
    %885 = vector.broadcast %cst_674 : f32 to vector<16x32xf32>
    %886 = arith.addf %885, %884 : vector<16x32xf32>
    %887 = arith.divf %885, %886 : vector<16x32xf32>
    %888 = vector.extract_strided_slice %887 {offsets = [0, 0], sizes = [16, 16], strides = [1, 1]} : vector<16x32xf32> to vector<16x16xf32>
    %889 = vector.extract_strided_slice %887 {offsets = [0, 16], sizes = [16, 16], strides = [1, 1]} : vector<16x32xf32> to vector<16x16xf32>
    %890 = arith.mulf %888, %700 : vector<16x16xf32>
    %cst_675 = arith.constant dense<0.000000e+00> : vector<16x16xf32>
    %891 = tpu.matmul %1, %890, %cst_675 {dimension_numbers = #tpu.dot_dimension_numbers<[1], [0], [0], [1], [0, 0, 1, 1], [], []>} : vector<16x16xf32>, vector<16x16xf32>, vector<16x16xf32> -> vector<16x16xf32>
    %cst_676 = arith.constant dense<0.000000e+00> : vector<16x16xf32>
    %892 = tpu.matmul %1, %891, %cst_676 {dimension_numbers = #tpu.dot_dimension_numbers<[1], [0], [0], [1], [0, 0, 1, 1], [], []>} : vector<16x16xf32>, vector<16x16xf32>, vector<16x16xf32> -> vector<16x16xf32>
    %cst_677 = arith.constant 2.000000e+00 : f32
    %893 = vector.broadcast %cst_677 : f32 to vector<16x16xf32>
    %894 = arith.mulf %893, %892 : vector<16x16xf32>
    %895 = arith.subf %894, %890 : vector<16x16xf32>
    %cst_678 = arith.constant dense<0.000000e+00> : vector<16x16xf32>
    %896 = tpu.matmul %3, %891, %cst_678 {dimension_numbers = #tpu.dot_dimension_numbers<[1], [0], [0], [1], [0, 0, 1, 1], [], []>} : vector<16x16xf32>, vector<16x16xf32>, vector<16x16xf32> -> vector<16x16xf32>
    %cst_679 = arith.constant dense<0.000000e+00> : vector<16x16xf32>
    %897 = tpu.matmul %3, %896, %cst_679 {dimension_numbers = #tpu.dot_dimension_numbers<[1], [0], [0], [1], [0, 0, 1, 1], [], []>} : vector<16x16xf32>, vector<16x16xf32>, vector<16x16xf32> -> vector<16x16xf32>
    %cst_680 = arith.constant 2.000000e+00 : f32
    %898 = vector.broadcast %cst_680 : f32 to vector<16x16xf32>
    %899 = arith.mulf %898, %897 : vector<16x16xf32>
    %900 = arith.subf %899, %891 : vector<16x16xf32>
    %901 = vector.extract_strided_slice %872 {offsets = [0, 32], sizes = [16, 16], strides = [1, 1]} : vector<16x48xf32> to vector<16x16xf32>
    %c1_681 = arith.constant 1 : index
    %c0_682 = arith.constant 0 : index
    %c0_683 = arith.constant 0 : index
    %902 = vector.load %arg11[%c1_681, %c0_682, %c0_683] : memref<2x1x16xf32, #tpu.memory_space<vmem>>, vector<1x1x16xf32>
    %903 = vector.shape_cast %902 : vector<1x1x16xf32> to vector<1x16xf32>
    %904 = vector.broadcast %903 : vector<1x16xf32> to vector<16x16xf32>
    %905 = arith.addf %901, %904 : vector<16x16xf32>
    %c5_684 = arith.constant 5 : index
    %c0_685 = arith.constant 0 : index
    %c0_686 = arith.constant 0 : index
    %906 = vector.load %arg9[%c5_684, %c0_685, %c0_686] : memref<10x16x16xf32, #tpu.memory_space<vmem>>, vector<1x16x16xf32>
    %907 = vector.shape_cast %906 : vector<1x16x16xf32> to vector<16x16xf32>
    %cst_687 = arith.constant dense<0.000000e+00> : vector<16x16xf32>
    %908 = tpu.matmul %890, %907, %cst_687 {dimension_numbers = #tpu.dot_dimension_numbers<[1], [0], [0], [1], [0, 0, 1, 1], [], []>} : vector<16x16xf32>, vector<16x16xf32>, vector<16x16xf32> -> vector<16x16xf32>
    %909 = arith.addf %905, %908 : vector<16x16xf32>
    %c6_688 = arith.constant 6 : index
    %c0_689 = arith.constant 0 : index
    %c0_690 = arith.constant 0 : index
    %910 = vector.load %arg9[%c6_688, %c0_689, %c0_690] : memref<10x16x16xf32, #tpu.memory_space<vmem>>, vector<1x16x16xf32>
    %911 = vector.shape_cast %910 : vector<1x16x16xf32> to vector<16x16xf32>
    %cst_691 = arith.constant dense<0.000000e+00> : vector<16x16xf32>
    %912 = tpu.matmul %891, %911, %cst_691 {dimension_numbers = #tpu.dot_dimension_numbers<[1], [0], [0], [1], [0, 0, 1, 1], [], []>} : vector<16x16xf32>, vector<16x16xf32>, vector<16x16xf32> -> vector<16x16xf32>
    %913 = arith.addf %909, %912 : vector<16x16xf32>
    %c7_692 = arith.constant 7 : index
    %c0_693 = arith.constant 0 : index
    %c0_694 = arith.constant 0 : index
    %914 = vector.load %arg9[%c7_692, %c0_693, %c0_694] : memref<10x16x16xf32, #tpu.memory_space<vmem>>, vector<1x16x16xf32>
    %915 = vector.shape_cast %914 : vector<1x16x16xf32> to vector<16x16xf32>
    %cst_695 = arith.constant dense<0.000000e+00> : vector<16x16xf32>
    %916 = tpu.matmul %895, %915, %cst_695 {dimension_numbers = #tpu.dot_dimension_numbers<[1], [0], [0], [1], [0, 0, 1, 1], [], []>} : vector<16x16xf32>, vector<16x16xf32>, vector<16x16xf32> -> vector<16x16xf32>
    %917 = arith.addf %913, %916 : vector<16x16xf32>
    %c8_696 = arith.constant 8 : index
    %c0_697 = arith.constant 0 : index
    %c0_698 = arith.constant 0 : index
    %918 = vector.load %arg9[%c8_696, %c0_697, %c0_698] : memref<10x16x16xf32, #tpu.memory_space<vmem>>, vector<1x16x16xf32>
    %919 = vector.shape_cast %918 : vector<1x16x16xf32> to vector<16x16xf32>
    %cst_699 = arith.constant dense<0.000000e+00> : vector<16x16xf32>
    %920 = tpu.matmul %896, %919, %cst_699 {dimension_numbers = #tpu.dot_dimension_numbers<[1], [0], [0], [1], [0, 0, 1, 1], [], []>} : vector<16x16xf32>, vector<16x16xf32>, vector<16x16xf32> -> vector<16x16xf32>
    %921 = arith.addf %917, %920 : vector<16x16xf32>
    %c9_700 = arith.constant 9 : index
    %c0_701 = arith.constant 0 : index
    %c0_702 = arith.constant 0 : index
    %922 = vector.load %arg9[%c9_700, %c0_701, %c0_702] : memref<10x16x16xf32, #tpu.memory_space<vmem>>, vector<1x16x16xf32>
    %923 = vector.shape_cast %922 : vector<1x16x16xf32> to vector<16x16xf32>
    %cst_703 = arith.constant dense<0.000000e+00> : vector<16x16xf32>
    %924 = tpu.matmul %900, %923, %cst_703 {dimension_numbers = #tpu.dot_dimension_numbers<[1], [0], [0], [1], [0, 0, 1, 1], [], []>} : vector<16x16xf32>, vector<16x16xf32>, vector<16x16xf32> -> vector<16x16xf32>
    %925 = arith.addf %921, %924 : vector<16x16xf32>
    %926 = math.tanh %925 : vector<16x16xf32>
    %927 = arith.mulf %889, %700 : vector<16x16xf32>
    %cst_704 = arith.constant 1.000000e+00 : f32
    %928 = vector.broadcast %cst_704 : f32 to vector<16x16xf32>
    %929 = arith.subf %928, %889 : vector<16x16xf32>
    %930 = arith.mulf %929, %926 : vector<16x16xf32>
    %931 = arith.addf %927, %930 : vector<16x16xf32>
    %cst_705 = arith.constant dense<0.000000e+00> : vector<16x16xf32>
    %932 = tpu.matmul %931, %931, %cst_705 {dimension_numbers = #tpu.dot_dimension_numbers<[1], [1], [0], [0], [0, 0, 1, 0], [], []>} : vector<16x16xf32>, vector<16x16xf32>, vector<16x16xf32> -> vector<16x16xf32>
    %c0_706 = arith.constant 0 : index
    %c0_707 = arith.constant 0 : index
    %933 = vector.load %arg2[%c0_706, %c0_707] : memref<16x16xf32, #tpu.memory_space<vmem>>, vector<16x16xf32>
    %c0_708 = arith.constant 0 : index
    %c0_709 = arith.constant 0 : index
    %934 = vector.load %arg3[%c0_708, %c0_709] : memref<16x16xf32, #tpu.memory_space<vmem>>, vector<16x16xf32>
    %cst_710 = arith.constant 0.000000e+00 : f32
    %935 = vector.broadcast %cst_710 : f32 to vector<16x16xf32>
    %936 = arith.maximumf %932, %935 : vector<16x16xf32>
    %937 = arith.mulf %932, %933 : vector<16x16xf32>
    %938 = arith.subf %936, %937 : vector<16x16xf32>
    %939 = math.absf %932 : vector<16x16xf32>
    %cst_711 = arith.constant 0.000000e+00 : f32
    %940 = vector.broadcast %cst_711 : f32 to vector<16x16xf32>
    %941 = arith.subf %940, %939 : vector<16x16xf32>
    %942 = math.exp %941 : vector<16x16xf32>
    %cst_712 = arith.constant 1.000000e+00 : f32
    %943 = vector.broadcast %cst_712 : f32 to vector<16x16xf32>
    %944 = arith.addf %943, %942 : vector<16x16xf32>
    %945 = math.log %944 : vector<16x16xf32>
    %946 = arith.addf %938, %945 : vector<16x16xf32>
    %947 = arith.mulf %946, %934 : vector<16x16xf32>
    %948 = vector.shape_cast %947 : vector<16x16xf32> to vector<1x16x16xf32>
    %cst_713 = arith.constant dense<0.000000e+00> : vector<1xf32>
    %949 = vector.multi_reduction <add>, %948, %cst_713 [1, 2] : vector<1x16x16xf32> to vector<1xf32>
    %950 = vector.shape_cast %949 : vector<1xf32> to vector<1x1x1xf32>
    %951 = vector.extract %950[0, 0, 0] : f32 from vector<1x1x1xf32>
    %cst_714 = arith.constant 1.280000e+02 : f32
    %952 = arith.divf %951, %cst_714 : f32
    %c0_715 = arith.constant 0 : index
    %953 = memref.load %arg14[%c0_715] : memref<1xf32, #tpu.memory_space<smem>>
    memref.store %952, %arg14[%c0_715] : memref<1xf32, #tpu.memory_space<smem>>
    %c0_716 = arith.constant 0 : index
    %c0_717 = arith.constant 0 : index
    %954 = vector.load %arg12[%c0_716, %c0_717] : memref<16x4xf32, #tpu.memory_space<vmem>>, vector<16x4xf32>
    %cst_718 = arith.constant dense<0.000000e+00> : vector<16x4xf32>
    %955 = tpu.matmul %931, %954, %cst_718 {dimension_numbers = #tpu.dot_dimension_numbers<[1], [0], [0], [1], [0, 0, 1, 1], [], []>} : vector<16x16xf32>, vector<16x4xf32>, vector<16x4xf32> -> vector<16x4xf32>
    %c0_719 = arith.constant 0 : index
    %c0_720 = arith.constant 0 : index
    %956 = vector.load %arg13[%c0_719, %c0_720] : memref<1x4xf32, #tpu.memory_space<vmem>>, vector<1x4xf32>
    %957 = vector.broadcast %956 : vector<1x4xf32> to vector<16x4xf32>
    %958 = arith.addf %955, %957 : vector<16x4xf32>
    %c0_721 = arith.constant 0 : index
    %c0_722 = arith.constant 0 : index
    %959 = vector.load %arg1[%c0_721, %c0_722] : memref<16x4xf32, #tpu.memory_space<vmem>>, vector<16x4xf32>
    %960 = arith.subf %958, %959 : vector<16x4xf32>
    %961 = math.absf %960 : vector<16x4xf32>
    %962 = vector.shape_cast %961 : vector<16x4xf32> to vector<1x16x4xf32>
    %cst_723 = arith.constant dense<0.000000e+00> : vector<1xf32>
    %963 = vector.multi_reduction <add>, %962, %cst_723 [1, 2] : vector<1x16x4xf32> to vector<1xf32>
    %964 = vector.shape_cast %963 : vector<1xf32> to vector<1x1x1xf32>
    %965 = vector.extract %964[0, 0, 0] : f32 from vector<1x1x1xf32>
    %cst_724 = arith.constant 6.400000e+01 : f32
    %966 = arith.divf %965, %cst_724 : f32
    %c0_725 = arith.constant 0 : index
    %967 = memref.load %arg15[%c0_725] : memref<1xf32, #tpu.memory_space<smem>>
    memref.store %966, %arg15[%c0_725] : memref<1xf32, #tpu.memory_space<smem>>
    return
  }
}

</mosaic_0001>

<bundles_post_ra>
// kernel: tpu_custom_call.1
= control target key start
LH: loop header
LB: loop body
LE: loop exit
PB: predicated region body
PF: predicated region fallthrough
CT: control target
= control target key end

     0   :  { %21 = vsyncpa [#allocation3], 0  ;;  %s23341_s0 = inlined_call_operand.vmem [shape: f32[4,16,2], index: 0, kind: input, shape index: {}]   ;;  %s23342_s1 = inlined_call_operand.vmem [shape: f32[16,4], index: 1, kind: input, shape index: {}]   ;;  %s23343_s2 = inlined_call_operand.vmem [shape: f32[16,16], index: 2, kind: input, shape index: {}]   ;;  %s23344_s3 = inlined_call_operand.vmem [shape: f32[16,16], index: 3, kind: input, shape index: {}]   ;;  %s23345_s4 = inlined_call_operand.vmem [shape: f32[2,16,16], index: 4, kind: input, shape index: {}]   ;;  %s23346_s5 = inlined_call_operand.vmem [shape: f32[2,16], index: 5, kind: input, shape index: {}]   ;;  %s23347_s6 = inlined_call_operand.vmem [shape: f32[1,16], index: 6, kind: input, shape index: {}]   ;;  %s23348_s7 = inlined_call_operand.hbm [shape: f32[10,16,48], index: 7, kind: input, shape index: {}]   ;;  %s23349_s8 = inlined_call_operand.hbm [shape: f32[10,16,32], index: 8, kind: input, shape index: {}]   ;;  %s23350_s9 = inlined_call_operand.hbm [shape: f32[10,16,16], index: 9, kind: input, shape index: {}]   ;;  %s23351_s10 = inlined_call_operand.vmem [shape: f32[2,1,32], index: 10, kind: input, shape index: {}]   ;;  %s23352_s11 = inlined_call_operand.vmem [shape: f32[2,1,16], index: 11, kind: input, shape index: {}]   ;;  %s23353_s12 = inlined_call_operand.vmem [shape: f32[16,4], index: 12, kind: input, shape index: {}]   ;;  %s23354_s13 = inlined_call_operand.vmem [shape: f32[1,4], index: 13, kind: input, shape index: {}]   ;;  %s23355_s14 = inlined_call_operand.hbm [shape: f32[1], index: 14, kind: output, shape index: {0}]   ;;  %s23356_s15 = inlined_call_operand.hbm [shape: f32[1], index: 15, kind: output, shape index: {1}]  }
   0x1   :  { %22 = vsyncpa [#allocation6], 0 }
   0x2   :  { %23 = vsyncpa [#allocation4], 0 }
   0x3   :  { %24 = vsyncpa [#allocation10], 0  ;;  %s21297_s18 = smov [#allocation5]   ;;  %s21298_s20 = smov [#allocation2]  }
   0x4   :  { %s56_s19 = sshll.u32 %s21297_s18, 4  ;;  %s44_s21 = sshll.u32 %s21298_s20, 4  ;;  %s57_s19 = int_to_ptr.vmem [resolvable:$true] %s56_s19  ;;  %s21387_s21 = int_to_ptr.vmem [resolvable:$true] %s44_s21 }
   0x5   :  { %s21203_s24 = scalar_lea.hbm %s23349_s8, 2560 }
   0x6   :  { %p21204_p0 = scmp.ne.s32.totalorder %s23349_s8, %s21203_s24  ;;  %p21207_p1 = scmp.lt.u32.totalorder %s21203_s24, %s23349_s8 }
   0x8   :  { %p21209_p2 = pnand %p21207_p1, %p21204_p0 }
   0xa   :  { %21212 = shalt.err (!%p21209_p2)
}
   0xb   :  { %s21213_s29 = scalar_lea.vmem %s57_s19, 2560  ;;  %p21218_p4 = scmp.lt.s32.totalorder %s57_s19, %s57_s19 }
   0xc   :  { %p21214_p3 = scmp.ne.s32.totalorder %s57_s19, %s21213_s29  ;;  %p21219_p5 = scmp.lt.s32.totalorder %s21213_s29, %s21213_s29 }
   0xe   :  { %p21220_p6 = por %p21219_p5, %p21218_p4 }
  0x10   :  { %p21221_p7 = pnand %p21220_p6, %p21214_p3 }
  0x12   :  { %21224 = shalt.err (!%p21221_p7)
}
  0x13   :  { %s21299_s30 = smov 128   ;;  %s21300_s16 = smov 8  }
  0x14   :  { %62 = dma.hbm_to_vmem [thread:$0]  %s23349_s8, 2560, %s57_s19, [#allocation6], %s21299_s30, %s21299_s30, %s21300_s16  }
  0x15   :  { %s21225_s23 = scalar_lea.hbm %s23348_s7, 2560 }
  0x16   :  { %p21226_p8 = scmp.ne.s32.totalorder %s23348_s7, %s21225_s23  ;;  %p21229_p9 = scmp.lt.u32.totalorder %s21225_s23, %s23348_s7 }
  0x18   :  { %p21231_p10 = pnand %p21229_p9, %p21226_p8 }
  0x1a   :  { %21234 = shalt.err (!%p21231_p10)
}
  0x1b   :  { %s21235_s28 = scalar_lea.vmem %s21387_s21, 2560  ;;  %p21240_p12 = scmp.lt.s32.totalorder %s21387_s21, %s21387_s21 }
  0x1c   :  { %p21236_p11 = scmp.ne.s32.totalorder %s21387_s21, %s21235_s28  ;;  %p21241_p13 = scmp.lt.s32.totalorder %s21235_s28, %s21235_s28 }
  0x1e   :  { %p21242_p0 = por %p21241_p13, %p21240_p12 }
  0x20   :  { %p21243_p1 = pnand %p21242_p0, %p21236_p11 }
  0x22   :  { %21246 = shalt.err (!%p21243_p1)
}
  0x23   :  { %50 = dma.hbm_to_vmem [thread:$0]  %s23348_s7, 2560, %s21387_s21, [#allocation3], %s21299_s30, %s21299_s30, %s21300_s16  }
  0x24   :  { %s21301_s29 = smov [#allocation7]   ;;  %s21247_s22 = scalar_lea.hbm %s23350_s9, 2560 }
  0x25   :  { %s68_s17 = sshll.u32 %s21301_s29, 4  ;;  %p21248_p2 = scmp.ne.s32.totalorder %s23350_s9, %s21247_s22  ;;  %s69_s17 = int_to_ptr.vmem [resolvable:$true] %s68_s17 }
  0x26   :  { %p21251_p3 = scmp.lt.u32.totalorder %s21247_s22, %s23350_s9 }
  0x28   :  { %p21253_p4 = pnand %p21251_p3, %p21248_p2 }
  0x2a   :  { %21256 = shalt.err (!%p21253_p4)
}
  0x2b   :  { %s21257_s27 = scalar_lea.vmem %s69_s17, 2560  ;;  %p21262_p6 = scmp.lt.s32.totalorder %s69_s17, %s69_s17 }
  0x2c   :  { %p21258_p5 = scmp.ne.s32.totalorder %s69_s17, %s21257_s27  ;;  %p21263_p7 = scmp.lt.s32.totalorder %s21257_s27, %s21257_s27 }
  0x2e   :  { %p21264_p8 = por %p21263_p7, %p21262_p6 }
  0x30   :  { %p21265_p9 = pnand %p21264_p8, %p21258_p5 }
  0x32   :  { %21268 = shalt.err (!%p21265_p9)
}
  0x33   :  { %74 = dma.hbm_to_vmem [thread:$0]  %s23350_s9, 2560, %s69_s17, [#allocation6], %s21299_s30, %s21299_s30, %s21300_s16  }
  0x34   :  { %21289 = dma.done.wait [#allocation3], 2560  }
  0x35   :  { %21290 = vsyncadd [#allocation3], 4294964736 }
  0x36   :  { %21291 = dma.done.wait [#allocation6], 5120  }
  0x37   :  { %21292 = vsyncadd [#allocation6], 4294962176  ;;  %vm114_vm0 = vcmask 1041408   ;;  %vm107_vm1 = vcmask 15360   ;;  %v21442_v0 = vld [vmem:[%s23346_s5] sm:$0x3] }
  0x38   :  { %v99_v1 = vld [vmem:[%s23341_s0] sm:$0xff]  ;;  %v100_v2 = vld [vmem:[%s23341_s0 + $0x8] sm:$0xff]  ;;  %18702 = vmatprep.subr.msk.mxu0 %vm114_vm0, %v21442_v0  ;;  %vm193_vm2 = vcmask 130048   ;;  %v21484_v11 = vld [vmem:[%s23345_s4 + $0x10] sm:$0xff]  ;;  %v21302_v16 = vmov 0.0   ;;  %s21303_s28 = smov 32  }
  0x39   :  { %18704 = vmatprep.mubr.msk.f32.mxu0 %vm107_vm1, %v99_v1  ;;  %18703 = vmatpush3.msk.msra.mxu0 %vm114_vm0, %v21442_v0  ;;  %v21459_v3 = vld [vmem:[%s23345_s4] sm:$0xff]  ;;  %v21477_v10 = vld [vmem:[%s23345_s4 + $0x8] sm:$0xff]  ;;  %v21497_v15 = vld [vmem:[%s23345_s4 + $0x18] sm:$0xff]  ;;  %s21304_s29 = smov 112   ;;  %vm17392_vm4 = vcmask 31744  }
  0x3a   :  { %18705 = vmatmul.mubr.msk.f32.vlgmr.msra.gmra.mrb[0].mxu0 %vm107_vm1, %v100_v2  ;;  %18711 = vmatprep.mubr.msk.f32.mxu1 %vm193_vm2, %v21459_v3  ;;  %v17439_v4 = vld [vmem:[%s23347_s6] ss:$0 sm:$0xff]  ;;  %v825_v23 = vld [vmem:[#allocation2 + $0x10] sm:$0xff]  ;;  %v826_v24 = vld [vmem:[#allocation2 + $0x18] sm:$0xff] }
  0x3b   :  { %18718 = vmatprep.mubr.msk.f32.mxu0 %vm193_vm2, %v21459_v3  ;;  %v21519_v27 = vpack.c.bf16 %v826_v24, %v825_v23  ;;  %v820_v28 = vld [vmem:[#allocation2] sm:$0xff]  ;;  %v821_v29 = vld [vmem:[#allocation2 + $0x8] sm:$0xff]  ;;  %v1324_v35 = vld [vmem:[#allocation2 + $0x30] sm:$0xff] }
  0x3c   :  { %v21526_v30 = vpack.c.bf16 %v821_v29, %v820_v28  ;;  %v1152_v31 = vld [vmem:[#allocation2 + $0x20] sm:$0xff]  ;;  %v1153_v32 = vld [vmem:[#allocation2 + $0x28] sm:$0xff]  ;;  %v1325_v36 = vld [vmem:[#allocation2 + $0x38] sm:$0xff] }
  0x3d   :  { %23422 = vst [vmem:[#allocation15_spill] sm:$0xff] %v21519_v27  ;;  %v21538_v33 = vpack.c.bf16 %v1153_v32, %v1152_v31  ;;  %v21546_v37 = vpack.c.bf16 %v1325_v36, %v1324_v35  ;;  %v1496_v41 = vld [vmem:[#allocation2 + $0x40] sm:$0xff]  ;;  %v1497_v42 = vld [vmem:[#allocation2 + $0x48] sm:$0xff]  ;;  %v990_v51 = vld [vmem:[#allocation5 + $0x10] sm:$0xff] }
  0x3e   :  { %v21559_v43 = vpack.c.bf16 %v1497_v42, %v1496_v41  ;;  %v17488_v44 = vld [vmem:[%s23352_s11] ss:$0 sm:$0xff]  ;;  %v991_v52 = vld [vmem:[#allocation5 + $0x18] sm:$0xff]  ;;  %v823_v60 = vld [vmem:[#allocation5 + $0x8] sm:$0xff] }
  0x3f   :  { %2006 = vrot.lane.b32.xlu0 %v17488_v44, %s21303_s28  ;;  %v21577_v58 = vpack.c.bf16 %v991_v52, %v990_v51  ;;  %v822_v59 = vld [vmem:[#allocation5] sm:$0xff]  ;;  %v1239_v63 = vld [vmem:[#allocation5 + $0x28] sm:$0xff]  ;;  %v1410_v2 = vld [vmem:[#allocation5 + $0x30] sm:$0xff] }
  0x40   :  { %v21582_v61 = vpack.c.bf16 %v823_v60, %v822_v59  ;;  %v1238_v62 = vld [vmem:[#allocation5 + $0x20] sm:$0xff]  ;;  %vm20931_vm3 = vmpackc.low %vm193_vm2, %vm193_vm2 }
  0x41   :  { %v21590_v1 = vpack.c.bf16 %v1239_v63, %v1238_v62  ;;  %v2105_v63 = vld [vmem:[#allocation7 + $0x10] sm:$0xff] }
  0x43   :  { %23423 = vst [vmem:[#allocation16_spill] sm:$0xff] %v21590_v1 }
 0x10d   :  { %v18706_v5 = vpop.f32.mrb[0].mxu0 }
 0x10e   :  { %v21468_v6 = vadd.f32 %v18706_v5, %v17439_v4  ;;  %v184_v7 = vpop.f32.mrb[1].mxu0 }
 0x10f   :  { %v21470_v8 = vadd.f32 %v17439_v4, %v184_v7  ;;  %v1411_v4 = vld [vmem:[#allocation5 + $0x38] sm:$0xff] }
 0x111   :  { %v20134_v9 = vpack.c.bf16 %v21468_v6, %v21470_v8 }
 0x113   :  { %20135 = vmatprep.subr.bf16.mxu1 %v20134_v9 }
 0x114   :  { %20137 = vmatpush3.bf16.msra.mxu1 %v20134_v9  ;;  %v1583_v9 = vld [vmem:[#allocation5 + $0x48] sm:$0xff] }
 0x117   :  { %18712 = vmatmul.mubr.msk.f32.vlgmr.msra.gmra.mrb[0].mxu1 %vm193_vm2, %v21477_v10 }
 0x118   :  { %18725 = vmatprep.mubr.msk.f32.mxu1 %vm193_vm2, %v21484_v11 }
 0x1ea   :  { %v21488_v12 = vpop.f32.mrb[0].mxu1 }
 0x1eb   :  { %v21490_v13 = vpop.f32.mrb[1].mxu1 }
 0x1ec   :  { %v20138_v14 = vpack.c.bf16 %v21488_v12, %v21490_v13 }
 0x1ee   :  { %20139 = vmatprep.subr.bf16.mxu0 %v20138_v14  ;;  %20143 = vmatprep.subr.bf16.mxu1 %v20138_v14 }
 0x1ef   :  { %20141 = vmatpush3.bf16.msra.mxu0 %v20138_v14  ;;  %20145 = vmatpush3.bf16.msra.mxu1 %v20138_v14 }
 0x1f0   :  { %18735 = vmatprep.subr.mxu1 %v21302_v16 }
 0x1f2   :  { %18719 = vmatmul.mubr.msk.f32.vlgmr.msra.gmra.mrb[2].mxu0 %vm193_vm2, %v21477_v10  ;;  %18726 = vmatmul.mubr.msk.f32.vlgmr.msra.gmra.mrb[2].mxu1 %vm193_vm2, %v21497_v15 }
 0x1f3   :  { %18736 = vmatpush3.msra.mxu1 %v21302_v16  ;;  %18737 = vmatprep.mubr.msk.f32.mxu1 %vm193_vm2, %v21459_v3 }
 0x1f4   :  { %18732 = vmatprep.mubr.msk.f32.mxu0 %vm193_vm2, %v21484_v11 }
 0x1f6   :  { %18738 = vmatmul.mubr.msk.f32.vlgmr.msra.gmra.mrb[4].mxu1 %vm193_vm2, %v21477_v10 }
 0x1f7   :  { %18751 = vmatprep.mubr.msk.f32.mxu1 %vm193_vm2, %v21484_v11 }
 0x2c5   :  { %v18720_v17 = vpop.f32.mrb[2].mxu0  ;;  %v18727_v18 = vpop.f32.mrb[2].mxu1 }
 0x2c6   :  { %v341_v19 = vpop.f32.mrb[3].mxu0  ;;  %v426_v20 = vpop.f32.mrb[3].mxu1  ;;  %v351_v39 = vmul.f32 2.0, %v18720_v17 }
 0x2c7   :  { %v20146_v21 = vpack.c.bf16 %v18727_v18, %v426_v20  ;;  %v350_v34 = vmul.f32 2.0, %v341_v19 }
 0x2c8   :  { %v353_v40 = vsub.f32 %v351_v39, %v21468_v6 }
 0x2c9   :  { %20147 = vmatprep.subr.bf16.mxu0 %v20146_v21  ;;  %v21513_v22 = vpop.f32.mrb[4].mxu1  ;;  %v352_v38 = vsub.f32 %v350_v34, %v21470_v8 }
 0x2ca   :  { %20149 = vmatpush3.bf16.msra.mxu0 %v20146_v21  ;;  %v21515_v25 = vpop.f32.mrb[5].mxu1 }
 0x2cb   :  { %v20150_v26 = vpack.c.bf16 %v21513_v22, %v21515_v25 }
 0x2cd   :  { %18733 = vmatmul.mubr.msk.f32.vlgmr.msra.gmra.mrb[4].mxu0 %vm193_vm2, %v21497_v15  ;;  %20151 = vmatprep.subr.bf16.mxu0 %v20150_v26 }
 0x2ce   :  { %20155 = vmatprep.subr.bf16.mxu1 %v20150_v26  ;;  %20153 = vmatpush3.bf16.msra.mxu0 %v20150_v26 }
 0x2cf   :  { %20157 = vmatpush3.bf16.msra.mxu1 %v20150_v26  ;;  %18744 = vmatprep.mubr.msk.f32.mxu0 %vm193_vm2, %v21459_v3  ;;  %v21638_v26 = vld [vmem:[%s23351_s10] ss:$0 sm:$0xff] }
 0x2d0   :  { %20163 = vmatprep.subr.bf16.mxu1 %v21519_v27 }
 0x2d1   :  { %18745 = vmatmul.mubr.msk.f32.vlgmr.msra.gmra.mrb[6].mxu0 %vm193_vm2, %v21477_v10 }
 0x2d2   :  { %18752 = vmatmul.mubr.msk.f32.vlgmr.msra.gmra.mrb[6].mxu1 %vm193_vm2, %v21497_v15  ;;  %18758 = vmatprep.mubr.msk.f32.mxu0 %vm193_vm2, %v21484_v11 }
 0x2d3   :  { %20165 = vmatpush3.bf16.msra.mxu1 %v21519_v27  ;;  %18765 = vmatprep.mubr.msk.f32.mxu1 %vm193_vm2, %v21490_v13 }
 0x2d4   :  { %20167 = vmatprep.subr.bf16.mxu1 %v21526_v30 }
 0x2d6   :  { %18766 = vmatmul.mubr.msk.f32.vlgmr.msra.gmra.mrb[8].mxu1 %vm193_vm2, %v21488_v12 }
 0x2d7   :  { %18772 = vmatprep.mubr.msk.f32.mxu1 %vm193_vm2, %v21470_v8  ;;  %20169 = vmatpush3.bf16.msra.mxu1 %v21526_v30  ;;  %v1582_v8 = vld [vmem:[#allocation5 + $0x40] sm:$0xff] }
 0x2d8   :  { %20179 = vmatprep.subr.bf16.mxu1 %v21538_v33 }
 0x2de   :  { %18773 = vmatmul.mubr.msk.f32.vlgmr.msra.gmra.mrb[8].mxu1 %vm193_vm2, %v21468_v6  ;;  %v21599_v6 = vpack.c.bf16 %v1411_v4, %v1410_v2  ;;  %v2106_v2 = vld [vmem:[#allocation7 + $0x18] sm:$0xff] }
 0x2df   :  { %18793 = vmatprep.mubr.msk.f32.mxu1 %vm193_vm2, %v352_v38  ;;  %20181 = vmatpush3.bf16.msra.mxu1 %v21538_v33 }
 0x2e0   :  { %20187 = vmatprep.subr.bf16.mxu1 %v21546_v37  ;;  %23424 = vst [vmem:[#allocation17_spill] sm:$0xff] %v21599_v6 }
 0x2e6   :  { %18794 = vmatmul.mubr.msk.f32.vlgmr.msra.gmra.mrb[8].mxu1 %vm193_vm2, %v353_v40 }
 0x2e7   :  { %18807 = vmatprep.mubr.msk.f32.mxu1 %vm193_vm2, %v426_v20  ;;  %20189 = vmatpush3.bf16.msra.mxu1 %v21546_v37 }
 0x2e8   :  { %20195 = vmatprep.subr.bf16.mxu1 %v21559_v43 }
 0x2ee   :  { %18808 = vmatmul.mubr.msk.f32.vlgmr.msra.gmra.mrb[8].mxu1 %vm193_vm2, %v18727_v18 }
 0x2ef   :  { %20197 = vmatpush3.bf16.msra.mxu1 %v21559_v43 }
 0x3a0   :  { %v18734_v45 = vpop.f32.mrb[4].mxu0 }
 0x3a1   :  { %v511_v46 = vmul.f32 2.0, %v18734_v45  ;;  %v501_v47 = vpop.f32.mrb[5].mxu0 }
 0x3a2   :  { %v510_v48 = vmul.f32 2.0, %v501_v47 }
 0x3a3   :  { %v513_v49 = vsub.f32 %v511_v46, %v21488_v12  ;;  %v21615_v12 = vpack.c.bf16 %v1583_v9, %v1582_v8 }
 0x3a4   :  { %v512_v50 = vsub.f32 %v510_v48, %v21490_v13  ;;  %v18746_v53 = vpop.f32.mrb[6].mxu0  ;;  %v2011_v48 = vld [vmem:[#allocation7] sm:$0xff] }
 0x3a5   :  { %v21569_v54 = vpop.f32.mrb[6].mxu1  ;;  %v655_v55 = vpop.f32.mrb[7].mxu0  ;;  %v21606_v7 = vmul.f32 2.0, %v18746_v53  ;;  %23425 = vst [vmem:[#allocation18_spill] sm:$0xff] %v21615_v12 }
 0x3a6   :  { %v21571_v56 = vpop.f32.mrb[7].mxu1  ;;  %18821 = vmatprep.mubr.msk.f32.mxu1 %vm193_vm2, %v512_v50  ;;  %v21597_v5 = vmul.f32 2.0, %v655_v55  ;;  %v2199_v55 = vld [vmem:[#allocation7 + $0x20] sm:$0xff] }
 0x3a7   :  { %v20158_v57 = vpack.c.bf16 %v21569_v54, %v21571_v56  ;;  %18822 = vmatmul.mubr.msk.f32.vlgmr.msra.gmra.mrb[8].mxu1 %vm193_vm2, %v513_v49  ;;  %v2012_v49 = vld [vmem:[#allocation7 + $0x8] sm:$0xff] }
 0x3a8   :  { %18835 = vmatprep.mubr.msk.f32.mxu1 %vm193_vm2, %v21459_v3  ;;  %v21666_v53 = vpack.c.bf16 %v2012_v49, %v2011_v48 }
 0x3a9   :  { %20159 = vmatprep.subr.bf16.mxu0 %v20158_v57 }
 0x3aa   :  { %20161 = vmatpush3.bf16.msra.mxu0 %v20158_v57  ;;  %23426 = vst [vmem:[#allocation19_spill] sm:$0xff] %v21666_v53  ;;  %v2200_v57 = vld [vmem:[#allocation7 + $0x28] sm:$0xff] }
 0x3ab   :  { %20171 = vmatprep.subr.bf16.mxu0 %v21577_v58  ;;  %v21680_v59 = vpack.c.bf16 %v2200_v57, %v2199_v55 }
 0x3ad   :  { %18759 = vmatmul.mubr.msk.f32.vlgmr.msra.gmra.mrb[8].mxu0 %vm193_vm2, %v21497_v15  ;;  %23427 = vst [vmem:[#allocation20_spill] sm:$0xff] %v21680_v59 }
 0x3ae   :  { %20173 = vmatpush3.bf16.msra.mxu0 %v21577_v58  ;;  %18779 = vmatprep.mubr.msk.f32.mxu0 %vm193_vm2, %v21515_v25 }
 0x3af   :  { %20175 = vmatprep.subr.bf16.mxu0 %v21582_v61 }
 0x3b1   :  { %18780 = vmatmul.mubr.msk.f32.vlgmr.msra.gmra.mrb[10].mxu0 %vm193_vm2, %v21513_v22 }
 0x3b2   :  { %20177 = vmatpush3.bf16.msra.mxu0 %v21582_v61  ;;  %18786 = vmatprep.mubr.f32.mxu0 %v21302_v16 }
 0x3b3   :  { %20183 = vmatprep.subr.bf16.mxu0 %v21590_v1 }
 0x3b9   :  { %18787 = vmatmul.mubr.f32.vlgmr.msra.gmra.mrb[10].mxu0 %v21302_v16 }
 0x3ba   :  { %20185 = vmatpush3.bf16.msra.mxu0 %v21590_v1  ;;  %18800 = vmatprep.mubr.msk.f32.mxu0 %vm193_vm2, %v21597_v5 }
 0x3bb   :  { %20191 = vmatprep.subr.bf16.mxu0 %v21599_v6 }
 0x3c1   :  { %18801 = vmatmul.mubr.msk.f32.vlgmr.msra.gmra.mrb[10].mxu0 %vm193_vm2, %v21606_v7 }
 0x3c2   :  { %18814 = vmatprep.mubr.msk.f32.mxu0 %vm193_vm2, %v21571_v56  ;;  %20193 = vmatpush3.bf16.msra.mxu0 %v21599_v6 }
 0x3c3   :  { %20199 = vmatprep.subr.bf16.mxu0 %v21615_v12 }
 0x3c9   :  { %18815 = vmatmul.mubr.msk.f32.vlgmr.msra.gmra.mrb[10].mxu0 %vm193_vm2, %v21569_v54 }
 0x3ca   :  { %20201 = vmatpush3.bf16.msra.mxu0 %v21615_v12 }
 0x47a   :  { %v21619_v13 = vpop.f32.mrb[8].mxu1 }
 0x47b   :  { %v21621_v14 = vpop.f32.mrb[9].mxu1 }
 0x480   :  { %v18760_v17 = vpop.f32.mrb[8].mxu0 }
 0x481   :  { %v817_v18 = vmul.f32 2.0, %v18760_v17  ;;  %v807_v19 = vpop.f32.mrb[9].mxu0 }
 0x482   :  { %v816_v20 = vmul.f32 2.0, %v807_v19  ;;  %v21684_v19 = vpack.c.bf16 %v2106_v2, %v2105_v63  ;;  %v21726_v2 = vpop.permute.xlu0 %2006 }
 0x483   :  { %v21624_v21 = vsub.f32 %v817_v18, %v21513_v22 }
 0x484   :  { %v21627_v23 = vsub.f32 %v816_v20, %v21515_v25  ;;  %23428 = vst [vmem:[#allocation21_spill] sm:$0xff] %v21684_v19  ;;  %v2293_v20 = vld [vmem:[#allocation7 + $0x30] sm:$0xff] }
 0x486   :  { %18828 = vmatprep.mubr.msk.f32.mxu0 %vm193_vm2, %v21627_v23 }
 0x487   :  { %18829 = vmatmul.mubr.msk.f32.vlgmr.msra.gmra.mrb[10].mxu0 %vm193_vm2, %v21624_v21 }
 0x488   :  { %18842 = vmatprep.mubr.msk.f32.mxu0 %vm193_vm2, %v21459_v3 }
 0x55a   :  { %v18830_v24 = vpop.f32.mrb[10].mxu0 }
 0x55b   :  { %v1668_v28 = vadd.f32 %v18830_v24, %v21619_v13  ;;  %v1656_v29 = vpop.f32.mrb[11].mxu0  ;;  %v2294_v24 = vld [vmem:[#allocation7 + $0x38] sm:$0xff] }
 0x55c   :  { %v1667_v31 = vadd.f32 %v1656_v29, %v21621_v14 }
 0x55d   :  { %v1677_v32 = vadd.f32 %v21638_v26, %v1668_v28 }
 0x55e   :  { %v1676_v34 = vadd.f32 %v21638_v26, %v1667_v31 }
 0x55f   :  { %v17479_v35 = vmul.f32 -1.442695, %v1677_v32 }
 0x560   :  { %v17478_v36 = vmul.f32 -1.442695, %v1676_v34  ;;  %v21691_v34 = vpack.c.bf16 %v2294_v24, %v2293_v20  ;;  %v2009_v20 = vadd.f32 %v21726_v2, %v21621_v14 }
 0x561   :  { %21082 = vpow2.f32 %v17479_v35  ;;  %v2387_v35 = vld [vmem:[#allocation7 + $0x40] sm:$0xff] }
 0x562   :  { %21084 = vpow2.f32 %v17478_v36  ;;  %23429 = vst [vmem:[#allocation22_spill] sm:$0xff] %v21691_v34  ;;  %v2388_v36 = vld [vmem:[#allocation7 + $0x48] sm:$0xff] }
 0x56b   :  { %v21083_v38 = vpop.eup %21082 }
 0x56c   :  { %v21085_v39 = vpop.eup %21084  ;;  %v1685_v40 = vadd.f32 1.0, %v21083_v38  ;;  %v21708_v38 = vpack.c.bf16 %v2388_v36, %v2387_v35 }
 0x56d   :  { %v1684_v41 = vadd.f32 1.0, %v21085_v39 }
 0x56e   :  { %21086 = vrcp.f32 %v1685_v40  ;;  %23430 = vst [vmem:[#allocation23_spill] sm:$0xff] %v21708_v38 }
 0x56f   :  { %21088 = vrcp.f32 %v1684_v41 }
 0x578   :  { %v21644_v42 = vpop.eup %21086 }
 0x579   :  { %v21646_v44 = vpop.eup %21088  ;;  %v21649_v45 = vmul.f32 0.0, %v21644_v42 }
 0x57a   :  { %v21652_v46 = vmul.f32 0.0, %v21646_v44 }
 0x57c   :  { %v20202_v47 = vpack.c.bf16 %v21649_v45, %v21652_v46 }
 0x57e   :  { %20203 = vmatprep.subr.bf16.mxu1 %v20202_v47 }
 0x57f   :  { %20205 = vmatpush3.bf16.msra.mxu1 %v20202_v47 }
 0x582   :  { %18836 = vmatmul.mubr.msk.f32.vlgmr.msra.gmra.mrb[10].mxu1 %vm193_vm2, %v21477_v10 }
 0x583   :  { %18849 = vmatprep.mubr.msk.f32.mxu1 %vm193_vm2, %v21484_v11 }
 0x655   :  { %v21660_v50 = vpop.f32.mrb[10].mxu1 }
 0x656   :  { %v21662_v51 = vpop.f32.mrb[11].mxu1 }
 0x657   :  { %v20206_v52 = vpack.c.bf16 %v21660_v50, %v21662_v51 }
 0x659   :  { %20207 = vmatprep.subr.bf16.mxu0 %v20206_v52  ;;  %20211 = vmatprep.subr.bf16.mxu1 %v20206_v52 }
 0x65a   :  { %20209 = vmatpush3.bf16.msra.mxu0 %v20206_v52  ;;  %20213 = vmatpush3.bf16.msra.mxu1 %v20206_v52 }
 0x65b   :  { %20219 = vmatprep.subr.bf16.mxu1 %v21666_v53 }
 0x65d   :  { %18843 = vmatmul.mubr.msk.f32.vlgmr.msra.gmra.mrb[12].mxu0 %vm193_vm2, %v21477_v10  ;;  %18850 = vmatmul.mubr.msk.f32.vlgmr.msra.gmra.mrb[12].mxu1 %vm193_vm2, %v21497_v15 }
 0x65e   :  { %20221 = vmatpush3.bf16.msra.mxu1 %v21666_v53  ;;  %18863 = vmatprep.mubr.msk.f32.mxu1 %vm193_vm2, %v21652_v46 }
 0x65f   :  { %18856 = vmatprep.mubr.msk.f32.mxu0 %vm193_vm2, %v21484_v11  ;;  %20227 = vmatprep.subr.bf16.mxu1 %v21680_v59 }
 0x661   :  { %18864 = vmatmul.mubr.msk.f32.vlgmr.msra.gmra.mrb[14].mxu1 %vm193_vm2, %v21649_v45 }
 0x662   :  { %20229 = vmatpush3.bf16.msra.mxu1 %v21680_v59 }
 0x663   :  { %20235 = vmatprep.subr.bf16.mxu1 %v21708_v38 }
 0x730   :  { %v18844_v60 = vpop.f32.mrb[12].mxu0  ;;  %v18851_v62 = vpop.f32.mrb[12].mxu1 }
 0x731   :  { %v1843_v4 = vmul.f32 2.0, %v18844_v60  ;;  %v1833_v8 = vpop.f32.mrb[13].mxu0  ;;  %v1912_v9 = vpop.f32.mrb[13].mxu1 }
 0x732   :  { %v1842_v17 = vmul.f32 2.0, %v1833_v8  ;;  %v20214_v18 = vpack.c.bf16 %v18851_v62, %v1912_v9 }
 0x733   :  { %v1845_v31 = vsub.f32 %v1843_v4, %v21649_v45 }
 0x734   :  { %v1844_v28 = vsub.f32 %v1842_v17, %v21652_v46  ;;  %20215 = vmatprep.subr.bf16.mxu0 %v20214_v18  ;;  %v18865_v29 = vpop.f32.mrb[14].mxu1 }
 0x735   :  { %2098 = vrot.lane.b32.xlu1 %v18865_v29, %s21303_s28  ;;  %20217 = vmatpush3.bf16.msra.mxu0 %v20214_v18  ;;  %v2085_v32 = vpop.f32.mrb[15].mxu1  ;;  %v2010_v18 = vadd.f32 %v21619_v13, %v21726_v2 }
 0x736   :  { %2096 = vrot.lane.b32.xlu0 %v2085_v32, %s21303_s28  ;;  %18877 = vmatprep.mubr.msk.f32.mxu1 %vm193_vm2, %v1844_v28 }
 0x737   :  { %18878 = vmatmul.mubr.msk.f32.vlgmr.msra.gmra.mrb[16].mxu1 %vm193_vm2, %v1845_v31  ;;  %20223 = vmatprep.subr.bf16.mxu0 %v21684_v19 }
 0x738   :  { %18857 = vmatmul.mubr.msk.f32.vlgmr.msra.gmra.mrb[14].mxu0 %vm193_vm2, %v21497_v15  ;;  %20237 = vmatpush3.bf16.msra.mxu1 %v21708_v38 }
 0x739   :  { %20225 = vmatpush3.bf16.msra.mxu0 %v21684_v19  ;;  %18870 = vmatprep.mubr.msk.f32.mxu0 %vm193_vm2, %v21662_v51 }
 0x73a   :  { %20231 = vmatprep.subr.bf16.mxu0 %v21691_v34 }
 0x73c   :  { %18871 = vmatmul.mubr.msk.f32.vlgmr.msra.gmra.mrb[16].mxu0 %vm193_vm2, %v21660_v50 }
 0x73d   :  { %20233 = vmatpush3.bf16.msra.mxu0 %v21691_v34  ;;  %18884 = vmatprep.mubr.msk.f32.mxu0 %vm193_vm2, %v1912_v9 }
 0x740   :  { %18885 = vmatmul.mubr.msk.f32.vlgmr.msra.gmra.mrb[18].mxu0 %vm193_vm2, %v18851_v62 }
 0x741   :  { %18898 = vmatprep.mubr.msk.f32.mxu0 %vm193_vm2, %v21459_v3 }
 0x7a7   :  { %v2099_v8 = vpop.permute.xlu1 %2098 }
 0x7a8   :  { %v2097_v4 = vpop.permute.xlu0 %2096  ;;  %v2103_v28 = vadd.f32 %v2099_v8, %v2010_v18 }
 0x7a9   :  { %v2102_v31 = vadd.f32 %v2097_v4, %v2009_v20 }
 0x80a   :  { %v18879_v39 = vpop.f32.mrb[16].mxu1 }
 0x80b   :  { %v18858_v40 = vpop.f32.mrb[14].mxu0  ;;  %2286 = vrot.lane.b32.xlu0 %v18879_v39, %s21303_s28  ;;  %v2273_v41 = vpop.f32.mrb[17].mxu1 }
 0x80c   :  { %v1997_v47 = vmul.f32 2.0, %v18858_v40  ;;  %v1987_v48 = vpop.f32.mrb[15].mxu0  ;;  %2284 = vrot.lane.b32.xlu1 %v2273_v41, %s21303_s28 }
 0x80d   :  { %v1996_v49 = vmul.f32 2.0, %v1987_v48 }
 0x80e   :  { %v1999_v52 = vsub.f32 %v1997_v47, %v21660_v50 }
 0x80f   :  { %v1998_v55 = vsub.f32 %v1996_v49, %v21662_v51  ;;  %v18872_v57 = vpop.f32.mrb[16].mxu0 }
 0x810   :  { %v2179_v60 = vpop.f32.mrb[17].mxu0  ;;  %2192 = vrot.lane.b32.xlu0 %v18872_v57, %s21303_s28 }
 0x811   :  { %18891 = vmatprep.mubr.msk.f32.mxu1 %vm193_vm2, %v1998_v55  ;;  %2190 = vrot.lane.b32.xlu1 %v2179_v60, %s21303_s28  ;;  %v2483_v60 = vsub.f32 1.0, %v21644_v42 }
 0x812   :  { %18892 = vmatmul.mubr.msk.f32.vlgmr.msra.gmra.mrb[18].mxu1 %vm193_vm2, %v1999_v52 }
 0x813   :  { %v18886_v62 = vpop.f32.mrb[18].mxu0  ;;  %18905 = vmatprep.mubr.msk.f32.mxu1 %vm193_vm2, %v21459_v3 }
 0x814   :  { %v2367_v63 = vpop.f32.mrb[19].mxu0  ;;  %2380 = vrot.lane.b32.xlu0 %v18886_v62, %s21303_s28 }
 0x815   :  { %2378 = vrot.lane.b32.xlu1 %v2367_v63, %s21303_s28  ;;  %v2482_v63 = vsub.f32 1.0, %v21646_v44 }
 0x87d   :  { %v2287_v9 = vpop.permute.xlu0 %2286 }
 0x87e   :  { %v2285_v17 = vpop.permute.xlu1 %2284 }
 0x882   :  { %v2193_v24 = vpop.permute.xlu0 %2192 }
 0x883   :  { %v2191_v29 = vpop.permute.xlu1 %2190  ;;  %v2197_v32 = vadd.f32 %v2193_v24, %v2103_v28 }
 0x884   :  { %v2196_v35 = vadd.f32 %v2191_v29, %v2102_v31  ;;  %v2813_v29 = vld [vmem:[#allocation2 + $0x50] sm:$0xff]  ;;  %v2814_v31 = vld [vmem:[#allocation2 + $0x58] sm:$0xff] }
 0x885   :  { %v2291_v36 = vadd.f32 %v2287_v9, %v2197_v32  ;;  %v21765_v32 = vpack.c.bf16 %v2814_v31, %v2813_v29  ;;  %v3221_v29 = vld [vmem:[#allocation5 + $0x70] sm:$0xff]  ;;  %v3222_v31 = vld [vmem:[#allocation5 + $0x78] sm:$0xff] }
 0x886   :  { %v2381_v39 = vpop.permute.xlu0 %2380  ;;  %v2290_v40 = vadd.f32 %v2285_v17, %v2196_v35  ;;  %v3135_v35 = vld [vmem:[#allocation2 + $0x70] sm:$0xff] }
 0x887   :  { %v2379_v41 = vpop.permute.xlu1 %2378  ;;  %v2385_v47 = vadd.f32 %v2381_v39, %v2291_v36  ;;  %v3136_v36 = vld [vmem:[#allocation2 + $0x78] sm:$0xff] }
 0x888   :  { %v2384_v48 = vadd.f32 %v2379_v41, %v2290_v40  ;;  %v21784_v39 = vpack.c.bf16 %v3136_v36, %v3135_v35  ;;  %v3301_v40 = vld [vmem:[#allocation2 + $0x80] sm:$0xff]  ;;  %v3302_v41 = vld [vmem:[#allocation2 + $0x88] sm:$0xff]  ;;  %v21823_v36 = vpack.c.bf16 %v3222_v31, %v3221_v29 }
 0x88a   :  { %23435 = vst [vmem:[#allocation28_spill] sm:$0xff] %v21823_v36 }
 0x8e5   :  { %v18893_v50 = vpop.f32.mrb[18].mxu1 }
 0x8e6   :  { %2474 = vrot.lane.b32.xlu0 %v18893_v50, %s21303_s28  ;;  %v2461_v51 = vpop.f32.mrb[19].mxu1 }
 0x8e7   :  { %2472 = vrot.lane.b32.xlu1 %v2461_v51, %s21303_s28 }
 0x958   :  { %v2475_v49 = vpop.permute.xlu0 %2474 }
 0x959   :  { %v2479_v52 = vadd.f32 %v2475_v49, %v2385_v47  ;;  %v2473_v55 = vpop.permute.xlu1 %2472  ;;  %v21788_v47 = vpack.c.bf16 %v3302_v41, %v3301_v40  ;;  %v2983_v49 = vld [vmem:[#allocation5 + $0x68] sm:$0xff] }
 0x95a   :  { %v2478_v57 = vadd.f32 %v2473_v55, %v2384_v48  ;;  %v2982_v48 = vld [vmem:[#allocation5 + $0x60] sm:$0xff]  ;;  %v3388_v40 = vld [vmem:[#allocation5 + $0x88] sm:$0xff] }
 0x95b   :  { %21090 = vtanh.f32 %v2479_v52  ;;  %23431 = vst [vmem:[#allocation24_spill] sm:$0xff] %v21788_v47 }
 0x95c   :  { %21092 = vtanh.f32 %v2478_v57 }
 0x965   :  { %v21091_v13 = vpop.eup %21090 }
 0x966   :  { %v21093_v14 = vpop.eup %21092  ;;  %2488 = vrot.lane.b32.xlu0 %v21091_v13, %s21304_s29 }
 0x967   :  { %2486 = vrot.lane.b32.xlu1 %v21093_v14, %s21304_s29 }
 0x9d8   :  { %v2489_v62 = vpop.permute.xlu0 %2488 }
 0x9d9   :  { %v2493_v50 = vmul.f32 %v2489_v62, %v2483_v60  ;;  %v2487_v51 = vpop.permute.xlu1 %2486 }
 0x9da   :  { %v2492_v4 = vmul.f32 %v2487_v51, %v2482_v63  ;;  %v21797_v63 = vpack.c.bf16 %v2983_v49, %v2982_v48  ;;  %v2817_v51 = vld [vmem:[#allocation5 + $0x58] sm:$0xff] }
 0x9db   :  { %v21737_v8 = vadd.f32 %v2493_v50, %v21649_v45  ;;  %v2819_v45 = vld [vmem:[#allocation2 + $0x60] sm:$0xff]  ;;  %v2816_v50 = vld [vmem:[#allocation5 + $0x50] sm:$0xff]  ;;  %v3554_v48 = vld [vmem:[#allocation5 + $0x98] sm:$0xff] }
 0x9dc   :  { %v21740_v9 = vadd.f32 %v2492_v4, %v21652_v46  ;;  %v2820_v46 = vld [vmem:[#allocation2 + $0x68] sm:$0xff]  ;;  %23432 = vst [vmem:[#allocation25_spill] sm:$0xff] %v21797_v63 }
 0x9dd   :  { %2500 = vrot.lane.b32.xlu0 %v21737_v8, %s21304_s29  ;;  %v21762_v28 = vpack.c.bf16 %v2820_v46, %v2819_v45  ;;  %v3468_v45 = vld [vmem:[#allocation2 + $0x98] sm:$0xff] }
 0x9de   :  { %2498 = vrot.lane.b32.xlu1 %v21740_v9, %s21304_s29 }
 0xa4f   :  { %v21746_v17 = vpop.permute.xlu0 %2500 }
 0xa50   :  { %v21748_v42 = vpop.permute.xlu1 %2498 }
 0xa51   :  { %v20238_v44 = vpack.c.bf16 %v21746_v17, %v21748_v42 }
 0xa53   :  { %20239 = vmatprep.subr.bf16.mxu0 %v20238_v44 }
 0xa54   :  { %20241 = vmatpush3.bf16.msra.mxu0 %v20238_v44  ;;  %v3467_v44 = vld [vmem:[#allocation2 + $0x90] sm:$0xff] }
 0xa55   :  { %v21812_v35 = vpack.c.bf16 %v3468_v45, %v3467_v44 }
 0xa57   :  { %18899 = vmatmul.mubr.msk.f32.vlgmr.msra.gmra.mrb[20].mxu0 %vm193_vm2, %v21477_v10  ;;  %23434 = vst [vmem:[#allocation27_spill] sm:$0xff] %v21812_v35 }
 0xa58   :  { %18912 = vmatprep.mubr.msk.f32.mxu0 %vm193_vm2, %v21484_v11 }
 0xb2a   :  { %v21756_v18 = vpop.f32.mrb[20].mxu0 }
 0xb2b   :  { %v21758_v20 = vpop.f32.mrb[21].mxu0 }
 0xb2c   :  { %v20242_v24 = vpack.c.bf16 %v21756_v18, %v21758_v20 }
 0xb2e   :  { %20243 = vmatprep.subr.bf16.mxu1 %v20242_v24  ;;  %20247 = vmatprep.subr.bf16.mxu0 %v20242_v24 }
 0xb2f   :  { %20245 = vmatpush3.bf16.msra.mxu1 %v20242_v24  ;;  %20249 = vmatpush3.bf16.msra.mxu0 %v20242_v24  ;;  %v21808_v24 = vpack.c.bf16 %v2817_v51, %v2816_v50 }
 0xb30   :  { %20255 = vmatprep.subr.bf16.mxu0 %v21762_v28 }
 0xb31   :  { %23433 = vst [vmem:[#allocation26_spill] sm:$0xff] %v21808_v24 }
 0xb32   :  { %18906 = vmatmul.mubr.msk.f32.vlgmr.msra.gmra.mrb[20].mxu1 %vm193_vm2, %v21477_v10  ;;  %18913 = vmatmul.mubr.msk.f32.vlgmr.msra.gmra.mrb[22].mxu0 %vm193_vm2, %v21497_v15 }
 0xb33   :  { %20257 = vmatpush3.bf16.msra.mxu0 %v21762_v28  ;;  %18926 = vmatprep.mubr.msk.f32.mxu0 %vm193_vm2, %v21758_v20 }
 0xb34   :  { %20259 = vmatprep.subr.bf16.mxu0 %v21765_v32  ;;  %18919 = vmatprep.mubr.msk.f32.mxu1 %vm193_vm2, %v21484_v11 }
 0xb36   :  { %18927 = vmatmul.mubr.msk.f32.vlgmr.msra.gmra.mrb[24].mxu0 %vm193_vm2, %v21756_v18 }
 0xb37   :  { %18933 = vmatprep.mubr.msk.f32.mxu0 %vm193_vm2, %v21748_v42  ;;  %20261 = vmatpush3.bf16.msra.mxu0 %v21765_v32 }
 0xb38   :  { %20271 = vmatprep.subr.bf16.mxu0 %v21784_v39 }
 0xb3e   :  { %18934 = vmatmul.mubr.msk.f32.vlgmr.msra.gmra.mrb[24].mxu0 %vm193_vm2, %v21746_v17 }
 0xb3f   :  { %20273 = vmatpush3.bf16.msra.mxu0 %v21784_v39 }
 0xb40   :  { %20279 = vmatprep.subr.bf16.mxu0 %v21788_v47 }
 0xc05   :  { %v18907_v52 = vpop.f32.mrb[20].mxu1  ;;  %v21791_v55 = vpop.f32.mrb[22].mxu0 }
 0xc06   :  { %v2655_v57 = vmul.f32 2.0, %v18907_v52  ;;  %v2645_v13 = vpop.f32.mrb[21].mxu1  ;;  %v21793_v14 = vpop.f32.mrb[23].mxu0 }
 0xc07   :  { %v2654_v60 = vmul.f32 2.0, %v2645_v13  ;;  %v20250_v62 = vpack.c.bf16 %v21791_v55, %v21793_v14  ;;  %v21875_v13 = vld [vmem:[%s23351_s10 + $0x1] ss:$0 sm:$0xff] }
 0xc08   :  { %v21803_v46 = vsub.f32 %v2655_v57, %v21746_v17  ;;  %23438 = vst [vmem:[#allocation31_spill] sm:$0xff] %v21875_v13 }
 0xc09   :  { %v21800_v4 = vsub.f32 %v2654_v60, %v21748_v42  ;;  %20251 = vmatprep.subr.bf16.mxu1 %v20250_v62 }
 0xc0a   :  { %20253 = vmatpush3.bf16.msra.mxu1 %v20250_v62 }
 0xc0b   :  { %18954 = vmatprep.mubr.msk.f32.mxu0 %vm193_vm2, %v21800_v4  ;;  %20263 = vmatprep.subr.bf16.mxu1 %v21797_v63 }
 0xc0c   :  { %18955 = vmatmul.mubr.msk.f32.vlgmr.msra.gmra.mrb[24].mxu0 %vm193_vm2, %v21803_v46 }
 0xc0d   :  { %18920 = vmatmul.mubr.msk.f32.vlgmr.msra.gmra.mrb[22].mxu1 %vm193_vm2, %v21497_v15  ;;  %18968 = vmatprep.mubr.msk.f32.mxu0 %vm193_vm2, %v21793_v14 }
 0xc0e   :  { %20265 = vmatpush3.bf16.msra.mxu1 %v21797_v63  ;;  %18940 = vmatprep.mubr.msk.f32.mxu1 %vm193_vm2, %v21515_v25  ;;  %v3387_v25 = vld [vmem:[#allocation5 + $0x80] sm:$0xff] }
 0xc0f   :  { %20281 = vmatpush3.bf16.msra.mxu0 %v21788_v47  ;;  %20267 = vmatprep.subr.bf16.mxu1 %v21808_v24  ;;  %v21834_v41 = vpack.c.bf16 %v3388_v40, %v3387_v25 }
 0xc10   :  { %20287 = vmatprep.subr.bf16.mxu0 %v21812_v35 }
 0xc11   :  { %18941 = vmatmul.mubr.msk.f32.vlgmr.msra.gmra.mrb[24].mxu1 %vm193_vm2, %v21513_v22  ;;  %23436 = vst [vmem:[#allocation29_spill] sm:$0xff] %v21834_v41  ;;  %v3553_v22 = vld [vmem:[#allocation5 + $0x90] sm:$0xff] }
 0xc12   :  { %20269 = vmatpush3.bf16.msra.mxu1 %v21808_v24  ;;  %18947 = vmatprep.mubr.f32.mxu1 %v21302_v16  ;;  %v21841_v49 = vpack.c.bf16 %v3554_v48, %v3553_v22 }
 0xc13   :  { %20275 = vmatprep.subr.bf16.mxu1 %v21823_v36 }
 0xc14   :  { %18969 = vmatmul.mubr.msk.f32.vlgmr.msra.gmra.mrb[24].mxu0 %vm193_vm2, %v21791_v55  ;;  %23437 = vst [vmem:[#allocation30_spill] sm:$0xff] %v21841_v49 }
 0xc15   :  { %20289 = vmatpush3.bf16.msra.mxu0 %v21812_v35 }
 0xc19   :  { %18948 = vmatmul.mubr.f32.vlgmr.msra.gmra.mrb[24].mxu1 %v21302_v16 }
 0xc1a   :  { %18961 = vmatprep.mubr.msk.f32.mxu1 %vm193_vm2, %v21597_v5  ;;  %20277 = vmatpush3.bf16.msra.mxu1 %v21823_v36 }
 0xc1b   :  { %20283 = vmatprep.subr.bf16.mxu1 %v21834_v41 }
 0xc21   :  { %18962 = vmatmul.mubr.msk.f32.vlgmr.msra.gmra.mrb[24].mxu1 %vm193_vm2, %v21606_v7 }
 0xc22   :  { %18975 = vmatprep.mubr.msk.f32.mxu1 %vm193_vm2, %v21571_v56  ;;  %20285 = vmatpush3.bf16.msra.mxu1 %v21834_v41 }
 0xc23   :  { %20291 = vmatprep.subr.bf16.mxu1 %v21841_v49 }
 0xc29   :  { %18976 = vmatmul.mubr.msk.f32.vlgmr.msra.gmra.mrb[24].mxu1 %vm193_vm2, %v21569_v54 }
 0xc2a   :  { %18989 = vmatprep.mubr.msk.f32.mxu1 %vm193_vm2, %v21627_v23  ;;  %20293 = vmatpush3.bf16.msra.mxu1 %v21841_v49  ;;  %v4262_v49 = vld [vmem:[#allocation7 + $0x88] sm:$0xff] }
 0xc31   :  { %18990 = vmatmul.mubr.msk.f32.vlgmr.msra.gmra.mrb[24].mxu1 %vm193_vm2, %v21624_v21 }
 0xc32   :  { %19003 = vmatprep.mubr.msk.f32.mxu1 %vm193_vm2, %v21459_v3 }
 0xce0   :  { %v18921_v16 = vpop.f32.mrb[22].mxu1 }
 0xce1   :  { %v2809_v56 = vmul.f32 2.0, %v18921_v16  ;;  %v2799_v5 = vpop.f32.mrb[23].mxu1 }
 0xce2   :  { %v2808_v7 = vmul.f32 2.0, %v2799_v5 }
 0xce3   :  { %v21859_v52 = vsub.f32 %v2809_v56, %v21756_v18 }
 0xce4   :  { %v21862_v54 = vsub.f32 %v2808_v7, %v21758_v20 }
 0xce6   :  { %18982 = vmatprep.mubr.msk.f32.mxu0 %vm193_vm2, %v21862_v54 }
 0xce7   :  { %18983 = vmatmul.mubr.msk.f32.vlgmr.msra.gmra.mrb[24].mxu0 %vm193_vm2, %v21859_v52 }
 0xce8   :  { %18996 = vmatprep.mubr.msk.f32.mxu0 %vm193_vm2, %v21459_v3 }
 0xd04   :  { %v18991_v21 = vpop.f32.mrb[24].mxu1 }
 0xd05   :  { %v3621_v23 = vpop.f32.mrb[25].mxu1 }
 0xdba   :  { %v21870_v57 = vpop.f32.mrb[24].mxu0 }
 0xdbb   :  { %v3633_v60 = vadd.f32 %v18991_v21, %v21870_v57  ;;  %v21878_v62 = vpop.f32.mrb[25].mxu0  ;;  %v3979_v21 = vld [vmem:[#allocation7 + $0x50] sm:$0xff] }
 0xdbc   :  { %v3632_v50 = vadd.f32 %v3621_v23, %v21878_v62  ;;  %v3980_v23 = vld [vmem:[#allocation7 + $0x58] sm:$0xff] }
 0xdbd   :  { %v3643_v51 = vadd.f32 %v21875_v13, %v3633_v60 }
 0xdbe   :  { %v3642_v44 = vadd.f32 %v21875_v13, %v3632_v50  ;;  %v4261_v13 = vld [vmem:[#allocation7 + $0x80] sm:$0xff] }
 0xdbf   :  { %v17528_v45 = vmul.f32 -1.442695, %v3643_v51 }
 0xdc0   :  { %v17527_v29 = vmul.f32 -1.442695, %v3642_v44  ;;  %v21905_v44 = vpack.c.bf16 %v3980_v23, %v3979_v21 }
 0xdc1   :  { %21094 = vpow2.f32 %v17528_v45  ;;  %v4167_v45 = vld [vmem:[#allocation7 + $0x70] sm:$0xff] }
 0xdc2   :  { %21096 = vpow2.f32 %v17527_v29  ;;  %23439 = vst [vmem:[#allocation32_spill] sm:$0xff] %v21905_v44  ;;  %v4168_v29 = vld [vmem:[#allocation7 + $0x78] sm:$0xff] }
 0xdcb   :  { %v21095_v31 = vpop.eup %21094 }
 0xdcc   :  { %v21097_v25 = vpop.eup %21096  ;;  %v3651_v40 = vadd.f32 1.0, %v21095_v31  ;;  %v21919_v31 = vpack.c.bf16 %v4168_v29, %v4167_v45 }
 0xdcd   :  { %v3650_v22 = vadd.f32 1.0, %v21097_v25  ;;  %v4074_v25 = vld [vmem:[#allocation7 + $0x68] sm:$0xff] }
 0xdce   :  { %21098 = vrcp.f32 %v3651_v40  ;;  %23440 = vst [vmem:[#allocation33_spill] sm:$0xff] %v21919_v31 }
 0xdcf   :  { %21100 = vrcp.f32 %v3650_v22 }
 0xdd8   :  { %v21883_v48 = vpop.eup %21098 }
 0xdd9   :  { %v21885_v16 = vpop.eup %21100  ;;  %v21888_v56 = vmul.f32 0.0, %v21883_v48 }
 0xdda   :  { %v21891_v5 = vmul.f32 0.0, %v21885_v16 }
 0xddc   :  { %v20294_v7 = vpack.c.bf16 %v21888_v56, %v21891_v5 }
 0xdde   :  { %20295 = vmatprep.subr.bf16.mxu0 %v20294_v7 }
 0xddf   :  { %20297 = vmatpush3.bf16.msra.mxu0 %v20294_v7 }
 0xde2   :  { %18997 = vmatmul.mubr.msk.f32.vlgmr.msra.gmra.mrb[26].mxu0 %vm193_vm2, %v21477_v10 }
 0xde3   :  { %19010 = vmatprep.mubr.msk.f32.mxu0 %vm193_vm2, %v21484_v11 }
 0xeb5   :  { %v21899_v60 = vpop.f32.mrb[26].mxu0 }
 0xeb6   :  { %v21901_v50 = vpop.f32.mrb[27].mxu0 }
 0xeb7   :  { %v20298_v51 = vpack.c.bf16 %v21899_v60, %v21901_v50 }
 0xeb9   :  { %20299 = vmatprep.subr.bf16.mxu1 %v20298_v51  ;;  %20303 = vmatprep.subr.bf16.mxu0 %v20298_v51 }
 0xeba   :  { %20301 = vmatpush3.bf16.msra.mxu1 %v20298_v51  ;;  %20305 = vmatpush3.bf16.msra.mxu0 %v20298_v51 }
 0xebb   :  { %20311 = vmatprep.subr.bf16.mxu0 %v21905_v44 }
 0xebd   :  { %19004 = vmatmul.mubr.msk.f32.vlgmr.msra.gmra.mrb[26].mxu1 %vm193_vm2, %v21477_v10  ;;  %19011 = vmatmul.mubr.msk.f32.vlgmr.msra.gmra.mrb[28].mxu0 %vm193_vm2, %v21497_v15  ;;  %v4073_v10 = vld [vmem:[#allocation7 + $0x60] sm:$0xff] }
 0xebe   :  { %20313 = vmatpush3.bf16.msra.mxu0 %v21905_v44  ;;  %19024 = vmatprep.mubr.msk.f32.mxu0 %vm193_vm2, %v21891_v5  ;;  %v21923_v44 = vpack.c.bf16 %v4074_v25, %v4073_v10 }
 0xebf   :  { %19017 = vmatprep.mubr.msk.f32.mxu1 %vm193_vm2, %v21484_v11  ;;  %20319 = vmatprep.subr.bf16.mxu0 %v21919_v31 }
 0xec0   :  { %23441 = vst [vmem:[#allocation34_spill] sm:$0xff] %v21923_v44 }
 0xec1   :  { %19025 = vmatmul.mubr.msk.f32.vlgmr.msra.gmra.mrb[30].mxu0 %vm193_vm2, %v21888_v56 }
 0xec2   :  { %20321 = vmatpush3.bf16.msra.mxu0 %v21919_v31 }
 0xf90   :  { %v19005_v40 = vpop.f32.mrb[26].mxu1  ;;  %v19012_v22 = vpop.f32.mrb[28].mxu0 }
 0xf91   :  { %v3809_v7 = vmul.f32 2.0, %v19005_v40  ;;  %v3799_v21 = vpop.f32.mrb[27].mxu1  ;;  %v3878_v23 = vpop.f32.mrb[29].mxu0  ;;  %v21933_v40 = vpack.c.bf16 %v4262_v49, %v4261_v13  ;;  %v17550_v49 = vld [vmem:[%s23341_s0 + $0x18] sm:$0xff]  ;;  %v4355_v13 = vld [vmem:[#allocation7 + $0x90] sm:$0xff] }
 0xf92   :  { %v3808_v51 = vmul.f32 2.0, %v3799_v21  ;;  %v20306_v11 = vpack.c.bf16 %v19012_v22, %v3878_v23 }
 0xf93   :  { %v3811_v31 = vsub.f32 %v3809_v7, %v21888_v56  ;;  %23442 = vst [vmem:[#allocation35_spill] sm:$0xff] %v21933_v40 }
 0xf94   :  { %v3810_v45 = vsub.f32 %v3808_v51, %v21891_v5  ;;  %20307 = vmatprep.subr.bf16.mxu1 %v20306_v11  ;;  %v21926_v29 = vpop.f32.mrb[30].mxu0 }
 0xf95   :  { %20309 = vmatpush3.bf16.msra.mxu1 %v20306_v11  ;;  %v21929_v41 = vpop.f32.mrb[31].mxu0 }
 0xf96   :  { %19038 = vmatprep.mubr.msk.f32.mxu0 %vm193_vm2, %v3810_v45  ;;  %20315 = vmatprep.subr.bf16.mxu1 %v21923_v44 }
 0xf97   :  { %19039 = vmatmul.mubr.msk.f32.vlgmr.msra.gmra.mrb[32].mxu0 %vm193_vm2, %v3811_v31  ;;  %v4356_v31 = vld [vmem:[#allocation7 + $0x98] sm:$0xff] }
 0xf98   :  { %19018 = vmatmul.mubr.msk.f32.vlgmr.msra.gmra.mrb[28].mxu1 %vm193_vm2, %v21497_v15  ;;  %v17549_v15 = vld [vmem:[%s23341_s0 + $0x10] sm:$0xff]  ;;  %v21961_v10 = vpack.c.bf16 %v4356_v31, %v4355_v13  ;;  %v21991_v13 = vld [vmem:[%s23347_s6] ss:$0 sm:$0xff] }
 0xf99   :  { %20317 = vmatpush3.bf16.msra.mxu1 %v21923_v44  ;;  %19031 = vmatprep.mubr.msk.f32.mxu1 %vm193_vm2, %v21901_v50  ;;  %23444 = vst [vmem:[#allocation37_spill] sm:$0xff] %v21991_v13 }
 0xf9a   :  { %20323 = vmatprep.subr.bf16.mxu1 %v21933_v40  ;;  %23443 = vst [vmem:[#allocation36_spill] sm:$0xff] %v21961_v10  ;;  %20327 = vmatprep.subr.bf16.mxu0 %v21961_v10 }
 0xf9b   :  { %20329 = vmatpush3.bf16.msra.mxu0 %v21961_v10 }
 0xf9c   :  { %19032 = vmatmul.mubr.msk.f32.vlgmr.msra.gmra.mrb[30].mxu1 %vm193_vm2, %v21899_v60 }
 0xf9d   :  { %20325 = vmatpush3.bf16.msra.mxu1 %v21933_v40  ;;  %19045 = vmatprep.mubr.msk.f32.mxu1 %vm193_vm2, %v3878_v23  ;;  %v22025_v40 = vld [vmem:[%s23345_s4 + $0x18] sm:$0xff] }
 0xf9e   :  { %19055 = vmatprep.subr.msk.mxu1 %vm114_vm0, %v21442_v0 }
 0xfa0   :  { %19046 = vmatmul.mubr.msk.f32.vlgmr.msra.gmra.mrb[32].mxu1 %vm193_vm2, %v19012_v22 }
 0xfa1   :  { %19056 = vmatpush3.msk.msra.mxu1 %vm114_vm0, %v21442_v0  ;;  %19057 = vmatprep.mubr.msk.f32.mxu1 %vm107_vm1, %v17549_v15 }
 0xfa4   :  { %19058 = vmatmul.mubr.msk.f32.vlgmr.msra.gmra.mrb[34].mxu1 %vm107_vm1, %v17550_v49  ;;  %v21982_v49 = vld [vmem:[%s23345_s4] sm:$0xff] }
 0xfa5   :  { %19071 = vmatprep.mubr.msk.f32.mxu1 %vm193_vm2, %v21459_v3 }
0x106a   :  { %v21965_v0 = vpop.f32.mrb[32].mxu0 }
0x106b   :  { %v19019_v25 = vpop.f32.mrb[28].mxu1  ;;  %v21967_v22 = vpop.f32.mrb[33].mxu0 }
0x106c   :  { %v3963_v7 = vmul.f32 2.0, %v19019_v25  ;;  %v3953_v21 = vpop.f32.mrb[29].mxu1 }
0x106d   :  { %v3962_v23 = vmul.f32 2.0, %v3953_v21 }
0x106e   :  { %v3965_v51 = vsub.f32 %v3963_v7, %v21899_v60 }
0x106f   :  { %v3964_v3 = vsub.f32 %v3962_v23, %v21901_v50  ;;  %v21971_v11 = vpop.f32.mrb[30].mxu1  ;;  %v21998_v23 = vld [vmem:[%s23345_s4 + $0x8] sm:$0xff] }
0x1070   :  { %v21973_v45 = vpop.f32.mrb[31].mxu1 }
0x1071   :  { %19052 = vmatprep.mubr.msk.f32.mxu0 %vm193_vm2, %v3964_v3 }
0x1072   :  { %19053 = vmatmul.mubr.msk.f32.vlgmr.msra.gmra.mrb[34].mxu0 %vm193_vm2, %v3965_v51  ;;  %v22005_v51 = vld [vmem:[%s23345_s4 + $0x10] sm:$0xff] }
0x1073   :  { %v21977_v15 = vpop.f32.mrb[32].mxu1  ;;  %19064 = vmatprep.mubr.msk.f32.mxu0 %vm193_vm2, %v21982_v49 }
0x1074   :  { %v21986_v60 = vpop.f32.mrb[33].mxu1 }
0x1077   :  { %v19059_v50 = vpop.f32.mrb[34].mxu1 }
0x1078   :  { %v4545_v31 = vadd.f32 %v21991_v13, %v19059_v50  ;;  %v4539_v25 = vpop.f32.mrb[35].mxu1 }
0x1079   :  { %v4540_v7 = vadd.f32 %v21991_v13, %v4539_v25 }
0x107b   :  { %v20330_v21 = vpack.c.bf16 %v4545_v31, %v4540_v7 }
0x107d   :  { %20331 = vmatprep.subr.bf16.mxu0 %v20330_v21 }
0x107e   :  { %20333 = vmatpush3.bf16.msra.mxu0 %v20330_v21 }
0x1081   :  { %19065 = vmatmul.mubr.msk.f32.vlgmr.msra.gmra.mrb[36].mxu0 %vm193_vm2, %v21998_v23 }
0x1082   :  { %19078 = vmatprep.mubr.msk.f32.mxu0 %vm193_vm2, %v22005_v51 }
0x1145   :  { %v22009_v3 = vpop.f32.mrb[34].mxu0 }
0x1146   :  { %v22011_v50 = vpop.f32.mrb[35].mxu0 }
0x1154   :  { %v22013_v25 = vpop.f32.mrb[36].mxu0 }
0x1155   :  { %v22015_v21 = vpop.f32.mrb[37].mxu0 }
0x1156   :  { %v20334_v13 = vpack.c.bf16 %v22013_v25, %v22015_v21 }
0x1158   :  { %20335 = vmatprep.subr.bf16.mxu1 %v20334_v13  ;;  %20339 = vmatprep.subr.bf16.mxu0 %v20334_v13 }
0x1159   :  { %20337 = vmatpush3.bf16.msra.mxu1 %v20334_v13  ;;  %20341 = vmatpush3.bf16.msra.mxu0 %v20334_v13 }
0x115a   :  { %20347 = vmatprep.subr.bf16.mxu0 %v21519_v27 }
0x115c   :  { %19072 = vmatmul.mubr.msk.f32.vlgmr.msra.gmra.mrb[36].mxu1 %vm193_vm2, %v21998_v23  ;;  %19079 = vmatmul.mubr.msk.f32.vlgmr.msra.gmra.mrb[38].mxu0 %vm193_vm2, %v22025_v40 }
0x115d   :  { %20349 = vmatpush3.bf16.msra.mxu0 %v21519_v27  ;;  %19092 = vmatprep.mubr.msk.f32.mxu0 %vm193_vm2, %v22015_v21 }
0x115e   :  { %20351 = vmatprep.subr.bf16.mxu0 %v21526_v30  ;;  %19085 = vmatprep.mubr.msk.f32.mxu1 %vm193_vm2, %v22005_v51 }
0x1160   :  { %19093 = vmatmul.mubr.msk.f32.vlgmr.msra.gmra.mrb[40].mxu0 %vm193_vm2, %v22013_v25 }
0x1161   :  { %19099 = vmatprep.mubr.msk.f32.mxu0 %vm193_vm2, %v4540_v7  ;;  %20353 = vmatpush3.bf16.msra.mxu0 %v21526_v30 }
0x1162   :  { %20363 = vmatprep.subr.bf16.mxu0 %v21538_v33 }
0x1168   :  { %19100 = vmatmul.mubr.msk.f32.vlgmr.msra.gmra.mrb[40].mxu0 %vm193_vm2, %v4545_v31 }
0x1169   :  { %20365 = vmatpush3.bf16.msra.mxu0 %v21538_v33 }
0x116a   :  { %20371 = vmatprep.subr.bf16.mxu0 %v21546_v37 }
0x122f   :  { %v19073_v13 = vpop.f32.mrb[36].mxu1  ;;  %v19080_v27 = vpop.f32.mrb[38].mxu0 }
0x1230   :  { %v4699_v44 = vmul.f32 2.0, %v19073_v13  ;;  %v4689_v10 = vpop.f32.mrb[37].mxu1  ;;  %v4768_v36 = vpop.f32.mrb[39].mxu0 }
0x1231   :  { %v4698_v24 = vmul.f32 2.0, %v4689_v10  ;;  %v20342_v63 = vpack.c.bf16 %v19080_v27, %v4768_v36 }
0x1232   :  { %v4701_v47 = vsub.f32 %v4699_v44, %v4545_v31 }
0x1233   :  { %v4700_v35 = vsub.f32 %v4698_v24, %v4540_v7  ;;  %20343 = vmatprep.subr.bf16.mxu1 %v20342_v63 }
0x1234   :  { %20345 = vmatpush3.bf16.msra.mxu1 %v20342_v63 }
0x1235   :  { %19120 = vmatprep.mubr.msk.f32.mxu0 %vm193_vm2, %v4700_v35  ;;  %20355 = vmatprep.subr.bf16.mxu1 %v21577_v58 }
0x1236   :  { %19121 = vmatmul.mubr.msk.f32.vlgmr.msra.gmra.mrb[40].mxu0 %vm193_vm2, %v4701_v47 }
0x1237   :  { %19086 = vmatmul.mubr.msk.f32.vlgmr.msra.gmra.mrb[38].mxu1 %vm193_vm2, %v22025_v40  ;;  %19134 = vmatprep.mubr.msk.f32.mxu0 %vm193_vm2, %v4768_v36 }
0x1238   :  { %20357 = vmatpush3.bf16.msra.mxu1 %v21577_v58  ;;  %19106 = vmatprep.mubr.msk.f32.mxu1 %vm193_vm2, %v21758_v20 }
0x1239   :  { %20373 = vmatpush3.bf16.msra.mxu0 %v21546_v37  ;;  %20359 = vmatprep.subr.bf16.mxu1 %v21582_v61 }
0x123a   :  { %20379 = vmatprep.subr.bf16.mxu0 %v21559_v43 }
0x123b   :  { %19107 = vmatmul.mubr.msk.f32.vlgmr.msra.gmra.mrb[40].mxu1 %vm193_vm2, %v21756_v18 }
0x123c   :  { %19113 = vmatprep.mubr.msk.f32.mxu1 %vm193_vm2, %v21748_v42  ;;  %20361 = vmatpush3.bf16.msra.mxu1 %v21582_v61 }
0x123d   :  { %20367 = vmatprep.subr.bf16.mxu1 %v21590_v1 }
0x123e   :  { %19135 = vmatmul.mubr.msk.f32.vlgmr.msra.gmra.mrb[40].mxu0 %vm193_vm2, %v19080_v27 }
0x123f   :  { %20381 = vmatpush3.bf16.msra.mxu0 %v21559_v43 }
0x1243   :  { %19114 = vmatmul.mubr.msk.f32.vlgmr.msra.gmra.mrb[40].mxu1 %vm193_vm2, %v21746_v17 }
0x1244   :  { %19127 = vmatprep.mubr.msk.f32.mxu1 %vm193_vm2, %v21800_v4  ;;  %20369 = vmatpush3.bf16.msra.mxu1 %v21590_v1 }
0x1245   :  { %20375 = vmatprep.subr.bf16.mxu1 %v21599_v6 }
0x124b   :  { %19128 = vmatmul.mubr.msk.f32.vlgmr.msra.gmra.mrb[40].mxu1 %vm193_vm2, %v21803_v46 }
0x124c   :  { %19141 = vmatprep.mubr.msk.f32.mxu1 %vm193_vm2, %v21793_v14  ;;  %20377 = vmatpush3.bf16.msra.mxu1 %v21599_v6 }
0x124d   :  { %20383 = vmatprep.subr.bf16.mxu1 %v21615_v12 }
0x1253   :  { %19142 = vmatmul.mubr.msk.f32.vlgmr.msra.gmra.mrb[40].mxu1 %vm193_vm2, %v21791_v55 }
0x1254   :  { %19155 = vmatprep.mubr.msk.f32.mxu1 %vm193_vm2, %v21862_v54  ;;  %20385 = vmatpush3.bf16.msra.mxu1 %v21615_v12 }
0x125b   :  { %19156 = vmatmul.mubr.msk.f32.vlgmr.msra.gmra.mrb[40].mxu1 %vm193_vm2, %v21859_v52 }
0x125c   :  { %19169 = vmatprep.mubr.msk.f32.mxu1 %vm193_vm2, %v21982_v49 }
0x130a   :  { %v19087_v27 = vpop.f32.mrb[38].mxu1 }
0x130b   :  { %v4853_v18 = vmul.f32 2.0, %v19087_v27  ;;  %v4843_v20 = vpop.f32.mrb[39].mxu1 }
0x130c   :  { %v4852_v47 = vmul.f32 2.0, %v4843_v20 }
0x130d   :  { %v4855_v14 = vsub.f32 %v4853_v18, %v22013_v25 }
0x130e   :  { %v4854_v63 = vsub.f32 %v4852_v47, %v22015_v21 }
0x1310   :  { %19148 = vmatprep.mubr.msk.f32.mxu0 %vm193_vm2, %v4854_v63 }
0x1311   :  { %19149 = vmatmul.mubr.msk.f32.vlgmr.msra.gmra.mrb[40].mxu0 %vm193_vm2, %v4855_v14 }
0x1312   :  { %19162 = vmatprep.mubr.msk.f32.mxu0 %vm193_vm2, %v21982_v49 }
0x132e   :  { %v19157_v55 = vpop.f32.mrb[40].mxu1 }
0x132f   :  { %v5637_v4 = vpop.f32.mrb[41].mxu1 }
0x13e4   :  { %v22090_v46 = vpop.f32.mrb[40].mxu0 }
0x13e5   :  { %v5649_v24 = vadd.f32 %v19157_v55, %v22090_v46  ;;  %v22093_v35 = vpop.f32.mrb[41].mxu0 }
0x13e6   :  { %v5648_v36 = vadd.f32 %v5637_v4, %v22093_v35 }
0x13e7   :  { %v5651_v52 = vadd.f32 %v21638_v26, %v5649_v24 }
0x13e8   :  { %v5650_v54 = vadd.f32 %v21638_v26, %v5648_v36 }
0x13e9   :  { %v17583_v44 = vmul.f32 -1.442695, %v5651_v52 }
0x13ea   :  { %v17582_v10 = vmul.f32 -1.442695, %v5650_v54 }
0x13eb   :  { %21102 = vpow2.f32 %v17583_v44 }
0x13ec   :  { %21104 = vpow2.f32 %v17582_v10 }
0x13f5   :  { %v21103_v31 = vpop.eup %21102 }
0x13f6   :  { %v21105_v7 = vpop.eup %21104  ;;  %v5659_v25 = vadd.f32 1.0, %v21103_v31 }
0x13f7   :  { %v5658_v21 = vadd.f32 1.0, %v21105_v7 }
0x13f8   :  { %21106 = vrcp.f32 %v5659_v25 }
0x13f9   :  { %21108 = vrcp.f32 %v5658_v21 }
0x1402   :  { %v22098_v13 = vpop.eup %21106 }
0x1403   :  { %v22100_v27 = vpop.eup %21108  ;;  %v5665_v18 = vmul.f32 %v22098_v13, %v21746_v17 }
0x1404   :  { %v5664_v26 = vmul.f32 %v22100_v27, %v21748_v42 }
0x1406   :  { %v20386_v20 = vpack.c.bf16 %v5665_v18, %v5664_v26 }
0x1408   :  { %20387 = vmatprep.subr.bf16.mxu0 %v20386_v20 }
0x1409   :  { %20389 = vmatpush3.bf16.msra.mxu0 %v20386_v20 }
0x140c   :  { %19163 = vmatmul.mubr.msk.f32.vlgmr.msra.gmra.mrb[42].mxu0 %vm193_vm2, %v21998_v23 }
0x140d   :  { %19176 = vmatprep.mubr.msk.f32.mxu0 %vm193_vm2, %v22005_v51 }
0x14df   :  { %v19164_v47 = vpop.f32.mrb[42].mxu0 }
0x14e0   :  { %v5732_v14 = vpop.f32.mrb[43].mxu0 }
0x14e1   :  { %v20390_v63 = vpack.c.bf16 %v19164_v47, %v5732_v14 }
0x14e3   :  { %20391 = vmatprep.subr.bf16.mxu1 %v20390_v63  ;;  %20395 = vmatprep.subr.bf16.mxu0 %v20390_v63 }
0x14e4   :  { %20393 = vmatpush3.bf16.msra.mxu1 %v20390_v63  ;;  %20397 = vmatpush3.bf16.msra.mxu0 %v20390_v63 }
0x14e5   :  { %20403 = vmatprep.subr.bf16.mxu0 %v21666_v53 }
0x14e7   :  { %19170 = vmatmul.mubr.msk.f32.vlgmr.msra.gmra.mrb[42].mxu1 %vm193_vm2, %v21998_v23  ;;  %19177 = vmatmul.mubr.msk.f32.vlgmr.msra.gmra.mrb[44].mxu0 %vm193_vm2, %v22025_v40 }
0x14e8   :  { %20405 = vmatpush3.bf16.msra.mxu0 %v21666_v53  ;;  %19190 = vmatprep.mubr.msk.f32.mxu0 %vm193_vm2, %v5664_v26 }
0x14e9   :  { %20411 = vmatprep.subr.bf16.mxu0 %v21680_v59  ;;  %19183 = vmatprep.mubr.msk.f32.mxu1 %vm193_vm2, %v22005_v51 }
0x14eb   :  { %19191 = vmatmul.mubr.msk.f32.vlgmr.msra.gmra.mrb[46].mxu0 %vm193_vm2, %v5665_v18 }
0x14ec   :  { %20413 = vmatpush3.bf16.msra.mxu0 %v21680_v59 }
0x14ed   :  { %20419 = vmatprep.subr.bf16.mxu0 %v21708_v38 }
0x15ba   :  { %v19171_v17 = vpop.f32.mrb[42].mxu1  ;;  %v19178_v42 = vpop.f32.mrb[44].mxu0 }
0x15bb   :  { %v5817_v55 = vmul.f32 2.0, %v19171_v17  ;;  %v5807_v4 = vpop.f32.mrb[43].mxu1  ;;  %v5886_v24 = vpop.f32.mrb[45].mxu0 }
0x15bc   :  { %v5816_v36 = vmul.f32 2.0, %v5807_v4  ;;  %v20398_v52 = vpack.c.bf16 %v19178_v42, %v5886_v24 }
0x15bd   :  { %v5819_v10 = vsub.f32 %v5817_v55, %v5665_v18 }
0x15be   :  { %v5818_v54 = vsub.f32 %v5816_v36, %v5664_v26  ;;  %20399 = vmatprep.subr.bf16.mxu1 %v20398_v52  ;;  %v19192_v44 = vpop.f32.mrb[46].mxu0 }
0x15bf   :  { %6061 = vrot.lane.b32.xlu0 %v19192_v44, %s21303_s28  ;;  %20401 = vmatpush3.bf16.msra.mxu1 %v20398_v52  ;;  %v6048_v31 = vpop.f32.mrb[47].mxu0 }
0x15c0   :  { %6059 = vrot.lane.b32.xlu1 %v6048_v31, %s21303_s28  ;;  %19204 = vmatprep.mubr.msk.f32.mxu0 %vm193_vm2, %v5818_v54  ;;  %v5974_v31 = vadd.f32 %v22093_v35, %v21726_v2 }
0x15c1   :  { %19205 = vmatmul.mubr.msk.f32.vlgmr.msra.gmra.mrb[48].mxu0 %vm193_vm2, %v5819_v10  ;;  %20407 = vmatprep.subr.bf16.mxu1 %v21684_v19  ;;  %v5975_v10 = vadd.f32 %v22090_v46, %v21726_v2 }
0x15c2   :  { %19184 = vmatmul.mubr.msk.f32.vlgmr.msra.gmra.mrb[44].mxu1 %vm193_vm2, %v22025_v40  ;;  %20421 = vmatpush3.bf16.msra.mxu0 %v21708_v38 }
0x15c3   :  { %20409 = vmatpush3.bf16.msra.mxu1 %v21684_v19  ;;  %19197 = vmatprep.mubr.msk.f32.mxu1 %vm193_vm2, %v5732_v14 }
0x15c4   :  { %20415 = vmatprep.subr.bf16.mxu1 %v21691_v34 }
0x15c6   :  { %19198 = vmatmul.mubr.msk.f32.vlgmr.msra.gmra.mrb[46].mxu1 %vm193_vm2, %v19164_v47 }
0x15c7   :  { %20417 = vmatpush3.bf16.msra.mxu1 %v21691_v34  ;;  %19211 = vmatprep.mubr.msk.f32.mxu1 %vm193_vm2, %v5886_v24 }
0x15ca   :  { %19212 = vmatmul.mubr.msk.f32.vlgmr.msra.gmra.mrb[48].mxu1 %vm193_vm2, %v19178_v42 }
0x15cb   :  { %19225 = vmatprep.mubr.msk.f32.mxu1 %vm193_vm2, %v21982_v49 }
0x1631   :  { %v6062_v36 = vpop.permute.xlu0 %6061 }
0x1632   :  { %v6060_v52 = vpop.permute.xlu1 %6059 }
0x1694   :  { %v19206_v7 = vpop.f32.mrb[48].mxu0 }
0x1695   :  { %v19185_v25 = vpop.f32.mrb[44].mxu1  ;;  %6243 = vrot.lane.b32.xlu0 %v19206_v7, %s21303_s28  ;;  %v6230_v21 = vpop.f32.mrb[49].mxu0 }
0x1696   :  { %v5971_v18 = vmul.f32 2.0, %v19185_v25  ;;  %v5961_v26 = vpop.f32.mrb[45].mxu1  ;;  %6241 = vrot.lane.b32.xlu1 %v6230_v21, %s21303_s28  ;;  %v6066_v25 = vadd.f32 %v6062_v36, %v5975_v10  ;;  %v6436_v36 = vsub.f32 1.0, %v22098_v13 }
0x1697   :  { %v5970_v20 = vmul.f32 2.0, %v5961_v26 }
0x1698   :  { %v5973_v63 = vsub.f32 %v5971_v18, %v19164_v47  ;;  %v6065_v18 = vadd.f32 %v6060_v52, %v5974_v31 }
0x1699   :  { %v5972_v17 = vsub.f32 %v5970_v20, %v5732_v14  ;;  %v19199_v55 = vpop.f32.mrb[46].mxu1 }
0x169a   :  { %v6139_v4 = vpop.f32.mrb[47].mxu1  ;;  %6152 = vrot.lane.b32.xlu0 %v19199_v55, %s21303_s28 }
0x169b   :  { %19218 = vmatprep.mubr.msk.f32.mxu0 %vm193_vm2, %v5972_v17  ;;  %6150 = vrot.lane.b32.xlu1 %v6139_v4, %s21303_s28 }
0x169c   :  { %19219 = vmatmul.mubr.msk.f32.vlgmr.msra.gmra.mrb[50].mxu0 %vm193_vm2, %v5973_v63 }
0x169d   :  { %v19213_v42 = vpop.f32.mrb[48].mxu1  ;;  %19232 = vmatprep.mubr.msk.f32.mxu0 %vm193_vm2, %v21982_v49 }
0x169e   :  { %v6321_v24 = vpop.f32.mrb[49].mxu1  ;;  %6334 = vrot.lane.b32.xlu0 %v19213_v42, %s21303_s28 }
0x169f   :  { %6332 = vrot.lane.b32.xlu1 %v6321_v24, %s21303_s28 }
0x1707   :  { %v6244_v54 = vpop.permute.xlu0 %6243 }
0x1708   :  { %v6242_v44 = vpop.permute.xlu1 %6241 }
0x170c   :  { %v6153_v7 = vpop.permute.xlu0 %6152 }
0x170d   :  { %v6151_v21 = vpop.permute.xlu1 %6150  ;;  %v6157_v26 = vadd.f32 %v6153_v7, %v6066_v25 }
0x170e   :  { %v6156_v20 = vadd.f32 %v6151_v21, %v6065_v18 }
0x170f   :  { %v6248_v63 = vadd.f32 %v6244_v54, %v6157_v26  ;;  %v6435_v54 = vsub.f32 1.0, %v22100_v27 }
0x1710   :  { %v6335_v17 = vpop.permute.xlu0 %6334  ;;  %v6247_v55 = vadd.f32 %v6242_v44, %v6156_v20  ;;  %v6434_v44 = vmul.f32 %v22098_v13, %v21737_v8  ;;  %v17538_v8 = vld [vmem:[%s23352_s11 + $0x1] ss:$0 sm:$0xff] }
0x1711   :  { %v6333_v4 = vpop.permute.xlu1 %6332  ;;  %v6339_v42 = vadd.f32 %v6335_v17, %v6248_v63 }
0x1712   :  { %v6338_v24 = vadd.f32 %v6333_v4, %v6247_v55 }
0x176f   :  { %v19220_v47 = vpop.f32.mrb[50].mxu0 }
0x1770   :  { %6425 = vrot.lane.b32.xlu0 %v19220_v47, %s21303_s28  ;;  %v6412_v14 = vpop.f32.mrb[51].mxu0 }
0x1771   :  { %6423 = vrot.lane.b32.xlu1 %v6412_v14, %s21303_s28 }
0x17e2   :  { %v6426_v47 = vpop.permute.xlu0 %6425 }
0x17e3   :  { %v6430_v14 = vadd.f32 %v6426_v47, %v6339_v42  ;;  %v6424_v34 = vpop.permute.xlu1 %6423 }
0x17e4   :  { %v6429_v19 = vadd.f32 %v6424_v34, %v6338_v24  ;;  %v6433_v34 = vmul.f32 %v22100_v27, %v21740_v9 }
0x17e5   :  { %21110 = vtanh.f32 %v6430_v14 }
0x17e6   :  { %21112 = vtanh.f32 %v6429_v19 }
0x17ef   :  { %v21111_v46 = vpop.eup %21110 }
0x17f0   :  { %v21113_v35 = vpop.eup %21112  ;;  %6441 = vrot.lane.b32.xlu0 %v21111_v46, %s21304_s29 }
0x17f1   :  { %6439 = vrot.lane.b32.xlu1 %v21113_v35, %s21304_s29 }
0x1862   :  { %v6442_v52 = vpop.permute.xlu0 %6441 }
0x1863   :  { %v6446_v10 = vmul.f32 %v6442_v52, %v6436_v36  ;;  %v6440_v31 = vpop.permute.xlu1 %6439 }
0x1864   :  { %v6445_v19 = vmul.f32 %v6440_v31, %v6435_v54 }
0x1865   :  { %v22164_v7 = vadd.f32 %v6446_v10, %v6434_v44  ;;  %v4451_v44 = vsub.f32 1.0, %v21883_v48 }
0x1866   :  { %v22166_v25 = vadd.f32 %v6445_v19, %v6433_v34 }
0x1867   :  { %6453 = vrot.lane.b32.xlu0 %v22164_v7, %s21304_s29 }
0x1868   :  { %6451 = vrot.lane.b32.xlu1 %v22166_v25, %s21304_s29 }
0x186b   :  { %4064 = vrot.lane.b32.xlu0 %v21929_v41, %s21303_s28 }
0x186c   :  { %3973 = vrot.lane.b32.xlu1 %v17538_v8, %s21303_s28 }
0x186f   :  { %4158 = vrot.lane.b32.xlu0 %v21973_v45, %s21303_s28 }
0x1870   :  { %4066 = vrot.lane.b32.xlu1 %v21926_v29, %s21303_s28 }
0x1873   :  { %4252 = vrot.lane.b32.xlu0 %v21967_v22, %s21303_s28 }
0x1874   :  { %4160 = vrot.lane.b32.xlu1 %v21971_v11, %s21303_s28 }
0x1877   :  { %4346 = vrot.lane.b32.xlu0 %v21986_v60, %s21303_s28 }
0x1878   :  { %4254 = vrot.lane.b32.xlu1 %v21965_v0, %s21303_s28 }
0x187b   :  { %4440 = vrot.lane.b32.xlu0 %v22011_v50, %s21303_s28 }
0x187c   :  { %4348 = vrot.lane.b32.xlu1 %v21977_v15, %s21303_s28 }
0x1880   :  { %4442 = vrot.lane.b32.xlu1 %v22009_v3, %s21303_s28 }
0x18d9   :  { %v22196_v9 = vpop.permute.xlu0 %6453 }
0x18da   :  { %v22198_v41 = vpop.permute.xlu1 %6451 }
0x18db   :  { %v20422_v29 = vpack.c.bf16 %v22196_v9, %v22198_v41 }
0x18dd   :  { %v4065_v22 = vpop.permute.xlu0 %4064  ;;  %20423 = vmatprep.subr.bf16.mxu1 %v20422_v29 }
0x18de   :  { %20425 = vmatpush3.bf16.msra.mxu1 %v20422_v29  ;;  %v22202_v0 = vpop.permute.xlu1 %3973 }
0x18df   :  { %v3976_v11 = vadd.f32 %v22202_v0, %v21878_v62  ;;  %v3977_v27 = vadd.f32 %v21870_v57, %v22202_v0  ;;  %v4450_v57 = vsub.f32 1.0, %v21885_v16 }
0x18e1   :  { %v4159_v45 = vpop.permute.xlu0 %4158  ;;  %19226 = vmatmul.mubr.msk.f32.vlgmr.msra.gmra.mrb[50].mxu1 %vm193_vm2, %v21998_v23  ;;  %v4070_v15 = vadd.f32 %v4065_v22, %v3976_v11 }
0x18e2   :  { %v4067_v60 = vpop.permute.xlu1 %4066  ;;  %19239 = vmatprep.mubr.msk.f32.mxu1 %vm193_vm2, %v22005_v51 }
0x18e3   :  { %v4164_v50 = vadd.f32 %v4159_v45, %v4070_v15  ;;  %v4071_v20 = vadd.f32 %v4067_v60, %v3977_v27 }
0x18e5   :  { %v4253_v3 = vpop.permute.xlu0 %4252 }
0x18e6   :  { %v4161_v13 = vpop.permute.xlu1 %4160  ;;  %v4258_v18 = vadd.f32 %v4253_v3, %v4164_v50 }
0x18e7   :  { %v4165_v63 = vadd.f32 %v4161_v13, %v4071_v20  ;;  %v23446_v20 = vld [vmem:[#allocation27_spill] sm:$0xff] }
0x18e9   :  { %v4347_v21 = vpop.permute.xlu0 %4346 }
0x18ea   :  { %v4255_v26 = vpop.permute.xlu1 %4254  ;;  %v4352_v62 = vadd.f32 %v4347_v21, %v4258_v18  ;;  %v23445_v18 = vld [vmem:[#allocation24_spill] sm:$0xff] }
0x18eb   :  { %v4259_v42 = vadd.f32 %v4255_v26, %v4165_v63 }
0x18ed   :  { %v4441_v17 = vpop.permute.xlu0 %4440 }
0x18ee   :  { %v4446_v55 = vadd.f32 %v4441_v17, %v4352_v62  ;;  %v4349_v4 = vpop.permute.xlu1 %4348 }
0x18ef   :  { %v4353_v24 = vadd.f32 %v4349_v4, %v4259_v42 }
0x18f0   :  { %21114 = vtanh.f32 %v4446_v55 }
0x18f2   :  { %v4443_v47 = vpop.permute.xlu1 %4442 }
0x18f3   :  { %v4447_v14 = vadd.f32 %v4443_v47, %v4353_v24 }
0x18f5   :  { %21116 = vtanh.f32 %v4447_v14 }
0x18fa   :  { %v21115_v46 = vpop.eup %21114 }
0x18fb   :  { %4454 = vrot.lane.b32.xlu0 %v21115_v46, %s21304_s29 }
0x18ff   :  { %v21117_v35 = vpop.eup %21116 }
0x1900   :  { %4456 = vrot.lane.b32.xlu1 %v21117_v35, %s21304_s29 }
0x196d   :  { %v4455_v36 = vpop.permute.xlu0 %4454 }
0x196e   :  { %v4460_v52 = vmul.f32 %v4455_v36, %v4450_v57  ;;  %v23447_v57 = vld [vmem:[#allocation25_spill] sm:$0xff]  ;;  %v23448_v36 = vld [vmem:[#allocation26_spill] sm:$0xff] }
0x1970   :  { %v22216_v54 = vadd.f32 %v4460_v52, %v21891_v5  ;;  %v23449_v52 = vld [vmem:[#allocation28_spill] sm:$0xff] }
0x1972   :  { %6767 = vrot.lane.b32.xlu0 %v22216_v54, %s21304_s29  ;;  %v4457_v10 = vpop.permute.xlu1 %4456 }
0x1973   :  { %v4461_v31 = vmul.f32 %v4457_v10, %v4451_v44 }
0x1975   :  { %v22222_v34 = vadd.f32 %v4461_v31, %v21888_v56 }
0x1977   :  { %6769 = vrot.lane.b32.xlu1 %v22222_v34, %s21304_s29 }
0x19b4   :  { %v22226_v19 = vpop.f32.mrb[50].mxu1 }
0x19b5   :  { %v22228_v16 = vpop.f32.mrb[51].mxu1 }
0x19b6   :  { %v20426_v5 = vpack.c.bf16 %v22226_v19, %v22228_v16 }
0x19b8   :  { %20427 = vmatprep.subr.bf16.mxu0 %v20426_v5  ;;  %20431 = vmatprep.subr.bf16.mxu1 %v20426_v5 }
0x19b9   :  { %20429 = vmatpush3.bf16.msra.mxu0 %v20426_v5  ;;  %20433 = vmatpush3.bf16.msra.mxu1 %v20426_v5  ;;  %v23450_v5 = vld [vmem:[#allocation29_spill] sm:$0xff] }
0x19bc   :  { %19233 = vmatmul.mubr.msk.f32.vlgmr.msra.gmra.mrb[52].mxu0 %vm193_vm2, %v21998_v23  ;;  %19240 = vmatmul.mubr.msk.f32.vlgmr.msra.gmra.mrb[52].mxu1 %vm193_vm2, %v22025_v40 }
0x19bd   :  { %19253 = vmatprep.mubr.msk.f32.mxu1 %vm193_vm2, %v21982_v49  ;;  %19246 = vmatprep.mubr.msk.f32.mxu0 %vm193_vm2, %v22005_v51 }
0x19e4   :  { %v22240_v48 = vpop.permute.xlu0 %6767 }
0x19e9   :  { %v22242_v56 = vpop.permute.xlu1 %6769 }
0x19ea   :  { %v20438_v8 = vpack.c.bf16 %v22242_v56, %v22240_v48 }
0x19ec   :  { %20439 = vmatprep.subr.bf16.mxu1 %v20438_v8 }
0x19ed   :  { %20441 = vmatpush3.bf16.msra.mxu1 %v20438_v8 }
0x19f0   :  { %19254 = vmatmul.mubr.msk.f32.vlgmr.msra.gmra.mrb[54].mxu1 %vm193_vm2, %v21998_v23 }
0x19f1   :  { %19267 = vmatprep.mubr.msk.f32.mxu1 %vm193_vm2, %v22005_v51 }
0x1a8f   :  { %v19234_v29 = vpop.f32.mrb[52].mxu0  ;;  %v22250_v22 = vpop.f32.mrb[52].mxu1 }
0x1a90   :  { %v6598_v11 = vpop.f32.mrb[53].mxu0  ;;  %v22252_v45 = vpop.f32.mrb[53].mxu1  ;;  %v6608_v21 = vmul.f32 2.0, %v19234_v29  ;;  %v23451_v29 = vld [vmem:[#allocation30_spill] sm:$0xff] }
0x1a91   :  { %v20434_v15 = vpack.c.bf16 %v22250_v22, %v22252_v45  ;;  %v6607_v13 = vmul.f32 2.0, %v6598_v11 }
0x1a92   :  { %v22293_v26 = vsub.f32 %v6608_v21, %v22196_v9 }
0x1a93   :  { %20435 = vmatprep.subr.bf16.mxu0 %v20434_v15  ;;  %v22284_v27 = vsub.f32 %v6607_v13, %v22198_v41 }
0x1a94   :  { %20437 = vmatpush3.bf16.msra.mxu0 %v20434_v15 }
0x1a97   :  { %19247 = vmatmul.mubr.msk.f32.vlgmr.msra.gmra.mrb[54].mxu0 %vm193_vm2, %v22025_v40 }
0x1a98   :  { %19260 = vmatprep.mubr.msk.f32.mxu0 %vm193_vm2, %v21982_v49 }
0x1ac3   :  { %v22260_v60 = vpop.f32.mrb[54].mxu1 }
0x1ac4   :  { %v22262_v3 = vpop.f32.mrb[55].mxu1 }
0x1ac5   :  { %v20442_v50 = vpack.c.bf16 %v22260_v60, %v22262_v3 }
0x1ac7   :  { %20443 = vmatprep.subr.bf16.mxu0 %v20442_v50  ;;  %20447 = vmatprep.subr.bf16.mxu1 %v20442_v50 }
0x1ac8   :  { %20445 = vmatpush3.bf16.msra.mxu0 %v20442_v50  ;;  %20449 = vmatpush3.bf16.msra.mxu1 %v20442_v50 }
0x1ac9   :  { %20455 = vmatprep.subr.bf16.mxu1 %v21762_v28 }
0x1acb   :  { %19261 = vmatmul.mubr.msk.f32.vlgmr.msra.gmra.mrb[56].mxu0 %vm193_vm2, %v21998_v23  ;;  %19268 = vmatmul.mubr.msk.f32.vlgmr.msra.gmra.mrb[56].mxu1 %vm193_vm2, %v22025_v40 }
0x1acc   :  { %20457 = vmatpush3.bf16.msra.mxu1 %v21762_v28  ;;  %19281 = vmatprep.mubr.msk.f32.mxu1 %vm193_vm2, %v22228_v16 }
0x1acd   :  { %20459 = vmatprep.subr.bf16.mxu1 %v21765_v32  ;;  %19274 = vmatprep.mubr.msk.f32.mxu0 %vm193_vm2, %v22005_v51 }
0x1acf   :  { %19282 = vmatmul.mubr.msk.f32.vlgmr.msra.gmra.mrb[58].mxu1 %vm193_vm2, %v22226_v19 }
0x1ad0   :  { %19288 = vmatprep.mubr.msk.f32.mxu1 %vm193_vm2, %v22198_v41  ;;  %20461 = vmatpush3.bf16.msra.mxu1 %v21765_v32 }
0x1ad1   :  { %20471 = vmatprep.subr.bf16.mxu1 %v21784_v39 }
0x1ad7   :  { %19289 = vmatmul.mubr.msk.f32.vlgmr.msra.gmra.mrb[58].mxu1 %vm193_vm2, %v22196_v9 }
0x1ad8   :  { %19309 = vmatprep.mubr.msk.f32.mxu1 %vm193_vm2, %v22284_v27  ;;  %20473 = vmatpush3.bf16.msra.mxu1 %v21784_v39 }
0x1ad9   :  { %20479 = vmatprep.subr.bf16.mxu1 %v23445_v18 }
0x1adf   :  { %19310 = vmatmul.mubr.msk.f32.vlgmr.msra.gmra.mrb[58].mxu1 %vm193_vm2, %v22293_v26 }
0x1ae0   :  { %19323 = vmatprep.mubr.msk.f32.mxu1 %vm193_vm2, %v22252_v45  ;;  %20481 = vmatpush3.bf16.msra.mxu1 %v23445_v18 }
0x1ae1   :  { %20487 = vmatprep.subr.bf16.mxu1 %v23446_v20 }
0x1ae7   :  { %19324 = vmatmul.mubr.msk.f32.vlgmr.msra.gmra.mrb[58].mxu1 %vm193_vm2, %v22250_v22 }
0x1ae8   :  { %20489 = vmatpush3.bf16.msra.mxu1 %v23446_v20 }
0x1b6a   :  { %v19248_v62 = vpop.f32.mrb[54].mxu0 }
0x1b6b   :  { %v6762_v63 = vmul.f32 2.0, %v19248_v62  ;;  %v6752_v17 = vpop.f32.mrb[55].mxu0 }
0x1b6c   :  { %v6761_v55 = vmul.f32 2.0, %v6752_v17 }
0x1b6d   :  { %v22305_v4 = vsub.f32 %v6762_v63, %v22226_v19 }
0x1b6e   :  { %v22308_v42 = vsub.f32 %v6761_v55, %v22228_v16 }
0x1b70   :  { %19337 = vmatprep.mubr.msk.f32.mxu1 %vm193_vm2, %v22308_v42 }
0x1b71   :  { %19338 = vmatmul.mubr.msk.f32.vlgmr.msra.gmra.mrb[58].mxu1 %vm193_vm2, %v22305_v4 }
0x1b72   :  { %19351 = vmatprep.mubr.msk.f32.mxu1 %vm193_vm2, %v21982_v49 }
0x1b9e   :  { %v19262_v24 = vpop.f32.mrb[56].mxu0  ;;  %v19269_v47 = vpop.f32.mrb[56].mxu1 }
0x1b9f   :  { %v6914_v14 = vpop.f32.mrb[57].mxu0  ;;  %v6993_v46 = vpop.f32.mrb[57].mxu1  ;;  %v6924_v31 = vmul.f32 2.0, %v19262_v24 }
0x1ba0   :  { %v20450_v35 = vpack.c.bf16 %v19269_v47, %v6993_v46  ;;  %v6923_v44 = vmul.f32 2.0, %v6914_v14 }
0x1ba1   :  { %v6926_v8 = vsub.f32 %v6924_v31, %v22242_v56 }
0x1ba2   :  { %20451 = vmatprep.subr.bf16.mxu0 %v20450_v35  ;;  %v6925_v10 = vsub.f32 %v6923_v44, %v22240_v48 }
0x1ba3   :  { %20453 = vmatpush3.bf16.msra.mxu0 %v20450_v35 }
0x1ba4   :  { %20463 = vmatprep.subr.bf16.mxu0 %v23447_v57 }
0x1ba6   :  { %19275 = vmatmul.mubr.msk.f32.vlgmr.msra.gmra.mrb[58].mxu0 %vm193_vm2, %v22025_v40 }
0x1ba7   :  { %20465 = vmatpush3.bf16.msra.mxu0 %v23447_v57  ;;  %19295 = vmatprep.mubr.msk.f32.mxu0 %vm193_vm2, %v22262_v3 }
0x1ba8   :  { %20467 = vmatprep.subr.bf16.mxu0 %v23448_v36 }
0x1baa   :  { %19296 = vmatmul.mubr.msk.f32.vlgmr.msra.gmra.mrb[60].mxu0 %vm193_vm2, %v22260_v60 }
0x1bab   :  { %19302 = vmatprep.mubr.msk.f32.mxu0 %vm193_vm2, %v22240_v48  ;;  %20469 = vmatpush3.bf16.msra.mxu0 %v23448_v36 }
0x1bac   :  { %20475 = vmatprep.subr.bf16.mxu0 %v23449_v52 }
0x1bb2   :  { %19303 = vmatmul.mubr.msk.f32.vlgmr.msra.gmra.mrb[60].mxu0 %vm193_vm2, %v22242_v56 }
0x1bb3   :  { %19316 = vmatprep.mubr.msk.f32.mxu0 %vm193_vm2, %v6925_v10  ;;  %20477 = vmatpush3.bf16.msra.mxu0 %v23449_v52 }
0x1bb4   :  { %20483 = vmatprep.subr.bf16.mxu0 %v23450_v5 }
0x1bba   :  { %19317 = vmatmul.mubr.msk.f32.vlgmr.msra.gmra.mrb[60].mxu0 %vm193_vm2, %v6926_v8 }
0x1bbb   :  { %19330 = vmatprep.mubr.msk.f32.mxu0 %vm193_vm2, %v6993_v46  ;;  %20485 = vmatpush3.bf16.msra.mxu0 %v23450_v5  ;;  %v23452_v46 = vld [vmem:[#allocation31_spill] sm:$0xff] }
0x1bbc   :  { %20491 = vmatprep.subr.bf16.mxu0 %v23451_v29 }
0x1bc2   :  { %19331 = vmatmul.mubr.msk.f32.vlgmr.msra.gmra.mrb[60].mxu0 %vm193_vm2, %v19269_v47 }
0x1bc3   :  { %20493 = vmatpush3.bf16.msra.mxu0 %v23451_v29 }
0x1c44   :  { %v22342_v11 = vpop.f32.mrb[58].mxu1 }
0x1c45   :  { %v22344_v15 = vpop.f32.mrb[59].mxu1 }
0x1c79   :  { %v19276_v50 = vpop.f32.mrb[58].mxu0 }
0x1c7a   :  { %v7078_v13 = vmul.f32 2.0, %v19276_v50  ;;  %v7068_v21 = vpop.f32.mrb[59].mxu0 }
0x1c7b   :  { %v7077_v62 = vmul.f32 2.0, %v7068_v21 }
0x1c7c   :  { %v7080_v63 = vsub.f32 %v7078_v13, %v22260_v60 }
0x1c7d   :  { %v7079_v17 = vsub.f32 %v7077_v62, %v22262_v3 }
0x1c7f   :  { %19344 = vmatprep.mubr.msk.f32.mxu0 %vm193_vm2, %v7079_v17 }
0x1c80   :  { %19345 = vmatmul.mubr.msk.f32.vlgmr.msra.gmra.mrb[60].mxu0 %vm193_vm2, %v7080_v63 }
0x1c81   :  { %19358 = vmatprep.mubr.msk.f32.mxu0 %vm193_vm2, %v21982_v49 }
0x1d53   :  { %v19346_v55 = vpop.f32.mrb[60].mxu0 }
0x1d54   :  { %v7900_v24 = vadd.f32 %v19346_v55, %v22342_v11  ;;  %v7888_v47 = vpop.f32.mrb[61].mxu0 }
0x1d55   :  { %v7899_v14 = vadd.f32 %v7888_v47, %v22344_v15 }
0x1d56   :  { %v7902_v35 = vadd.f32 %v23452_v46, %v7900_v24 }
0x1d57   :  { %v7901_v44 = vadd.f32 %v23452_v46, %v7899_v14  ;;  %v23455_v14 = vld [vmem:[#allocation36_spill] sm:$0xff] }
0x1d58   :  { %v17639_v60 = vmul.f32 -1.442695, %v7902_v35 }
0x1d59   :  { %v17638_v10 = vmul.f32 -1.442695, %v7901_v44 }
0x1d5a   :  { %21118 = vpow2.f32 %v17639_v60 }
0x1d5b   :  { %21120 = vpow2.f32 %v17638_v10 }
0x1d64   :  { %v21119_v3 = vpop.eup %21118 }
0x1d65   :  { %v21121_v31 = vpop.eup %21120  ;;  %v7910_v8 = vadd.f32 1.0, %v21119_v3 }
0x1d66   :  { %v7909_v50 = vadd.f32 1.0, %v21121_v31 }
0x1d67   :  { %21122 = vrcp.f32 %v7910_v8 }
0x1d68   :  { %21124 = vrcp.f32 %v7909_v50 }
0x1d71   :  { %v22356_v13 = vpop.eup %21122 }
0x1d72   :  { %v22358_v21 = vpop.eup %21124  ;;  %v7916_v62 = vmul.f32 %v22356_v13, %v22242_v56  ;;  %v23453_v56 = vld [vmem:[#allocation32_spill] sm:$0xff] }
0x1d73   :  { %v7915_v63 = vmul.f32 %v22358_v21, %v22240_v48  ;;  %v23454_v48 = vld [vmem:[#allocation33_spill] sm:$0xff] }
0x1d75   :  { %v20494_v17 = vpack.c.bf16 %v7916_v62, %v7915_v63 }
0x1d77   :  { %20495 = vmatprep.subr.bf16.mxu1 %v20494_v17 }
0x1d78   :  { %20497 = vmatpush3.bf16.msra.mxu1 %v20494_v17 }
0x1d7b   :  { %19352 = vmatmul.mubr.msk.f32.vlgmr.msra.gmra.mrb[60].mxu1 %vm193_vm2, %v21998_v23 }
0x1d7c   :  { %19365 = vmatprep.mubr.msk.f32.mxu1 %vm193_vm2, %v22005_v51 }
0x1e4e   :  { %v19353_v55 = vpop.f32.mrb[60].mxu1 }
0x1e4f   :  { %v7983_v24 = vpop.f32.mrb[61].mxu1 }
0x1e50   :  { %v20498_v47 = vpack.c.bf16 %v19353_v55, %v7983_v24 }
0x1e52   :  { %20499 = vmatprep.subr.bf16.mxu0 %v20498_v47  ;;  %20503 = vmatprep.subr.bf16.mxu1 %v20498_v47 }
0x1e53   :  { %20501 = vmatpush3.bf16.msra.mxu0 %v20498_v47  ;;  %20505 = vmatpush3.bf16.msra.mxu1 %v20498_v47 }
0x1e54   :  { %20511 = vmatprep.subr.bf16.mxu1 %v23453_v56 }
0x1e56   :  { %19359 = vmatmul.mubr.msk.f32.vlgmr.msra.gmra.mrb[62].mxu0 %vm193_vm2, %v21998_v23  ;;  %19366 = vmatmul.mubr.msk.f32.vlgmr.msra.gmra.mrb[62].mxu1 %vm193_vm2, %v22025_v40 }
0x1e57   :  { %20513 = vmatpush3.bf16.msra.mxu1 %v23453_v56  ;;  %19379 = vmatprep.mubr.msk.f32.mxu1 %vm193_vm2, %v7915_v63 }
0x1e58   :  { %20519 = vmatprep.subr.bf16.mxu1 %v23454_v48  ;;  %19372 = vmatprep.mubr.msk.f32.mxu0 %vm193_vm2, %v22005_v51 }
0x1e5a   :  { %19380 = vmatmul.mubr.msk.f32.vlgmr.msra.gmra.mrb[64].mxu1 %vm193_vm2, %v7916_v62 }
0x1e5b   :  { %20521 = vmatpush3.bf16.msra.mxu1 %v23454_v48  ;;  %v23456_v48 = vld [vmem:[#allocation34_spill] sm:$0xff] }
0x1e5c   :  { %20527 = vmatprep.subr.bf16.mxu1 %v23455_v14 }
0x1f29   :  { %v19360_v46 = vpop.f32.mrb[62].mxu0  ;;  %v19367_v35 = vpop.f32.mrb[62].mxu1 }
0x1f2a   :  { %v8068_v44 = vmul.f32 2.0, %v19360_v46  ;;  %v8058_v60 = vpop.f32.mrb[63].mxu0  ;;  %v8137_v10 = vpop.f32.mrb[63].mxu1  ;;  %v17658_v46 = vld [vmem:[%s23341_s0 + $0x20] sm:$0xff] }
0x1f2b   :  { %v8067_v3 = vmul.f32 2.0, %v8058_v60  ;;  %v20506_v31 = vpack.c.bf16 %v19367_v35, %v8137_v10 }
0x1f2c   :  { %v8070_v17 = vsub.f32 %v8068_v44, %v7916_v62  ;;  %v22400_v62 = vld [vmem:[%s23346_s5] sm:$0x3]  ;;  %v17659_v44 = vld [vmem:[%s23341_s0 + $0x28] sm:$0xff]  ;;  %s21269_s5 = scalar_lea.hbm %s23355_s14, 16 }
0x1f2d   :  { %v8069_v8 = vsub.f32 %v8067_v3, %v7915_v63  ;;  %20507 = vmatprep.subr.bf16.mxu0 %v20506_v31  ;;  %v22381_v50 = vpop.f32.mrb[64].mxu1  ;;  %v23457_v63 = vld [vmem:[#allocation35_spill] sm:$0xff]  ;;  %23458 = vst [vmem:[#allocation24_spill] sm:$0xff] %v22400_v62  ;;  %p21270_p10 = scmp.ne.s32.totalorder %s23355_s14, %s21269_s5  ;;  %p21273_p11 = scmp.lt.u32.totalorder %s21269_s5, %s23355_s14 }
0x1f2e   :  { %20509 = vmatpush3.bf16.msra.mxu0 %v20506_v31  ;;  %v22383_v47 = vpop.f32.mrb[65].mxu1 }
0x1f2f   :  { %19393 = vmatprep.mubr.msk.f32.mxu1 %vm193_vm2, %v8069_v8  ;;  %20515 = vmatprep.subr.bf16.mxu0 %v23456_v48  ;;  %p21275_p12 = pnand %p21273_p11, %p21270_p10 }
0x1f30   :  { %19394 = vmatmul.mubr.msk.f32.vlgmr.msra.gmra.mrb[66].mxu1 %vm193_vm2, %v8070_v17 }
0x1f31   :  { %19373 = vmatmul.mubr.msk.f32.vlgmr.msra.gmra.mrb[64].mxu0 %vm193_vm2, %v22025_v40  ;;  %20529 = vmatpush3.bf16.msra.mxu1 %v23455_v14  ;;  %v23459_v14 = vld [vmem:[#allocation37_spill] sm:$0xff] }
0x1f32   :  { %20517 = vmatpush3.bf16.msra.mxu0 %v23456_v48  ;;  %19386 = vmatprep.mubr.msk.f32.mxu0 %vm193_vm2, %v7983_v24 }
0x1f33   :  { %20523 = vmatprep.subr.bf16.mxu0 %v23457_v63 }
0x1f35   :  { %19387 = vmatmul.mubr.msk.f32.vlgmr.msra.gmra.mrb[66].mxu0 %vm193_vm2, %v19353_v55 }
0x1f36   :  { %20525 = vmatpush3.bf16.msra.mxu0 %v23457_v63  ;;  %19400 = vmatprep.mubr.msk.f32.mxu0 %vm193_vm2, %v8137_v10 }
0x1f37   :  { %19410 = vmatprep.subr.msk.mxu0 %vm114_vm0, %v22400_v62 }
0x1f39   :  { %19401 = vmatmul.mubr.msk.f32.vlgmr.msra.gmra.mrb[68].mxu0 %vm193_vm2, %v19367_v35 }
0x1f3a   :  { %19411 = vmatpush3.msk.msra.mxu0 %vm114_vm0, %v22400_v62  ;;  %19412 = vmatprep.mubr.msk.f32.mxu0 %vm107_vm1, %v17658_v46 }
0x1f3d   :  { %19413 = vmatmul.mubr.msk.f32.vlgmr.msra.gmra.mrb[70].mxu0 %vm107_vm1, %v17659_v44 }
0x1f3e   :  { %19426 = vmatprep.mubr.msk.f32.mxu0 %vm193_vm2, %v21982_v49 }
0x2003   :  { %v22417_v60 = vpop.f32.mrb[66].mxu1 }
0x2004   :  { %v19374_v10 = vpop.f32.mrb[64].mxu0  ;;  %v22419_v3 = vpop.f32.mrb[67].mxu1 }
0x2005   :  { %v8222_v35 = vmul.f32 2.0, %v19374_v10  ;;  %v8212_v31 = vpop.f32.mrb[65].mxu0 }
0x2006   :  { %v8221_v8 = vmul.f32 2.0, %v8212_v31 }
0x2007   :  { %v8224_v17 = vsub.f32 %v8222_v35, %v19353_v55 }
0x2008   :  { %v8223_v62 = vsub.f32 %v8221_v8, %v7983_v24  ;;  %v22421_v46 = vpop.f32.mrb[66].mxu0 }
0x2009   :  { %v22423_v63 = vpop.f32.mrb[67].mxu0 }
0x200a   :  { %19407 = vmatprep.mubr.msk.f32.mxu1 %vm193_vm2, %v8223_v62 }
0x200b   :  { %19408 = vmatmul.mubr.msk.f32.vlgmr.msra.gmra.mrb[68].mxu1 %vm193_vm2, %v8224_v17 }
0x200c   :  { %v22427_v44 = vpop.f32.mrb[68].mxu0  ;;  %19419 = vmatprep.mubr.msk.f32.mxu1 %vm193_vm2, %v21982_v49 }
0x200d   :  { %v22431_v48 = vpop.f32.mrb[69].mxu0 }
0x2010   :  { %v19414_v10 = vpop.f32.mrb[70].mxu0 }
0x2011   :  { %v8781_v31 = vadd.f32 %v23459_v14, %v19414_v10  ;;  %v8775_v55 = vpop.f32.mrb[71].mxu0  ;;  %v23460_v10 = vld [vmem:[#allocation15_spill] sm:$0xff] }
0x2012   :  { %v8776_v24 = vadd.f32 %v23459_v14, %v8775_v55 }
0x2014   :  { %v20530_v35 = vpack.c.bf16 %v8781_v31, %v8776_v24 }
0x2016   :  { %20531 = vmatprep.subr.bf16.mxu1 %v20530_v35 }
0x2017   :  { %20533 = vmatpush3.bf16.msra.mxu1 %v20530_v35 }
0x201a   :  { %19420 = vmatmul.mubr.msk.f32.vlgmr.msra.gmra.mrb[70].mxu1 %vm193_vm2, %v21998_v23 }
0x201b   :  { %19433 = vmatprep.mubr.msk.f32.mxu1 %vm193_vm2, %v22005_v51 }
0x20de   :  { %v22439_v62 = vpop.f32.mrb[68].mxu1 }
0x20df   :  { %v22441_v49 = vpop.f32.mrb[69].mxu1 }
0x20ed   :  { %v22443_v8 = vpop.f32.mrb[70].mxu1 }
0x20ee   :  { %v22445_v17 = vpop.f32.mrb[71].mxu1 }
0x20ef   :  { %v20534_v14 = vpack.c.bf16 %v22443_v8, %v22445_v17 }
0x20f1   :  { %20535 = vmatprep.subr.bf16.mxu0 %v20534_v14  ;;  %20539 = vmatprep.subr.bf16.mxu1 %v20534_v14 }
0x20f2   :  { %20537 = vmatpush3.bf16.msra.mxu0 %v20534_v14  ;;  %20541 = vmatpush3.bf16.msra.mxu1 %v20534_v14 }
0x20f3   :  { %20547 = vmatprep.subr.bf16.mxu1 %v23460_v10 }
0x20f5   :  { %19427 = vmatmul.mubr.msk.f32.vlgmr.msra.gmra.mrb[72].mxu0 %vm193_vm2, %v21998_v23  ;;  %19434 = vmatmul.mubr.msk.f32.vlgmr.msra.gmra.mrb[72].mxu1 %vm193_vm2, %v22025_v40 }
0x20f6   :  { %20549 = vmatpush3.bf16.msra.mxu1 %v23460_v10  ;;  %19447 = vmatprep.mubr.msk.f32.mxu1 %vm193_vm2, %v22445_v17 }
0x20f7   :  { %20551 = vmatprep.subr.bf16.mxu1 %v21526_v30  ;;  %19440 = vmatprep.mubr.msk.f32.mxu0 %vm193_vm2, %v22005_v51 }
0x20f9   :  { %19448 = vmatmul.mubr.msk.f32.vlgmr.msra.gmra.mrb[74].mxu1 %vm193_vm2, %v22443_v8 }
0x20fa   :  { %19454 = vmatprep.mubr.msk.f32.mxu1 %vm193_vm2, %v8776_v24  ;;  %20553 = vmatpush3.bf16.msra.mxu1 %v21526_v30 }
0x20fb   :  { %20563 = vmatprep.subr.bf16.mxu1 %v21538_v33 }
0x2101   :  { %19455 = vmatmul.mubr.msk.f32.vlgmr.msra.gmra.mrb[74].mxu1 %vm193_vm2, %v8781_v31 }
0x2102   :  { %20565 = vmatpush3.bf16.msra.mxu1 %v21538_v33 }
0x2103   :  { %20571 = vmatprep.subr.bf16.mxu1 %v21546_v37 }
0x21c8   :  { %v19428_v23 = vpop.f32.mrb[72].mxu0  ;;  %v19435_v55 = vpop.f32.mrb[72].mxu1 }
0x21c9   :  { %v8935_v35 = vmul.f32 2.0, %v19428_v23  ;;  %v8925_v14 = vpop.f32.mrb[73].mxu0  ;;  %v9004_v51 = vpop.f32.mrb[73].mxu1 }
0x21ca   :  { %v8934_v10 = vmul.f32 2.0, %v8925_v14  ;;  %v20542_v56 = vpack.c.bf16 %v19435_v55, %v9004_v51 }
0x21cb   :  { %v8937_v5 = vsub.f32 %v8935_v35, %v8781_v31 }
0x21cc   :  { %v8936_v29 = vsub.f32 %v8934_v10, %v8776_v24  ;;  %20543 = vmatprep.subr.bf16.mxu0 %v20542_v56  ;;  %v22529_v24 = vld [vmem:[%s23351_s10] ss:$0 sm:$0xff] }
0x21cd   :  { %20545 = vmatpush3.bf16.msra.mxu0 %v20542_v56  ;;  %23461 = vst [vmem:[#allocation27_spill] sm:$0xff] %v22529_v24 }
0x21ce   :  { %19475 = vmatprep.mubr.msk.f32.mxu1 %vm193_vm2, %v8936_v29  ;;  %20555 = vmatprep.subr.bf16.mxu0 %v21577_v58 }
0x21cf   :  { %19476 = vmatmul.mubr.msk.f32.vlgmr.msra.gmra.mrb[74].mxu1 %vm193_vm2, %v8937_v5 }
0x21d0   :  { %19441 = vmatmul.mubr.msk.f32.vlgmr.msra.gmra.mrb[74].mxu0 %vm193_vm2, %v22025_v40  ;;  %19489 = vmatprep.mubr.msk.f32.mxu1 %vm193_vm2, %v9004_v51  ;;  %v22510_v40 = vld [vmem:[%s23345_s4] sm:$0xff] }
0x21d1   :  { %20557 = vmatpush3.bf16.msra.mxu0 %v21577_v58  ;;  %19461 = vmatprep.mubr.msk.f32.mxu0 %vm193_vm2, %v22228_v16 }
0x21d2   :  { %20573 = vmatpush3.bf16.msra.mxu1 %v21546_v37  ;;  %20559 = vmatprep.subr.bf16.mxu0 %v21582_v61 }
0x21d3   :  { %20579 = vmatprep.subr.bf16.mxu1 %v21559_v43 }
0x21d4   :  { %19462 = vmatmul.mubr.msk.f32.vlgmr.msra.gmra.mrb[76].mxu0 %vm193_vm2, %v22226_v19 }
0x21d5   :  { %19468 = vmatprep.mubr.msk.f32.mxu0 %vm193_vm2, %v22198_v41  ;;  %20561 = vmatpush3.bf16.msra.mxu0 %v21582_v61 }
0x21d6   :  { %20567 = vmatprep.subr.bf16.mxu0 %v21590_v1 }
0x21d7   :  { %19490 = vmatmul.mubr.msk.f32.vlgmr.msra.gmra.mrb[74].mxu1 %vm193_vm2, %v19435_v55 }
0x21d8   :  { %20581 = vmatpush3.bf16.msra.mxu1 %v21559_v43 }
0x21dc   :  { %19469 = vmatmul.mubr.msk.f32.vlgmr.msra.gmra.mrb[76].mxu0 %vm193_vm2, %v22196_v9 }
0x21dd   :  { %19482 = vmatprep.mubr.msk.f32.mxu0 %vm193_vm2, %v22284_v27  ;;  %20569 = vmatpush3.bf16.msra.mxu0 %v21590_v1 }
0x21de   :  { %20575 = vmatprep.subr.bf16.mxu0 %v21599_v6 }
0x21e4   :  { %19483 = vmatmul.mubr.msk.f32.vlgmr.msra.gmra.mrb[76].mxu0 %vm193_vm2, %v22293_v26 }
0x21e5   :  { %19496 = vmatprep.mubr.msk.f32.mxu0 %vm193_vm2, %v22252_v45  ;;  %20577 = vmatpush3.bf16.msra.mxu0 %v21599_v6 }
0x21e6   :  { %20583 = vmatprep.subr.bf16.mxu0 %v21615_v12 }
0x21ec   :  { %19497 = vmatmul.mubr.msk.f32.vlgmr.msra.gmra.mrb[76].mxu0 %vm193_vm2, %v22250_v22 }
0x21ed   :  { %19510 = vmatprep.mubr.msk.f32.mxu0 %vm193_vm2, %v22308_v42  ;;  %20585 = vmatpush3.bf16.msra.mxu0 %v21615_v12 }
0x21f4   :  { %19511 = vmatmul.mubr.msk.f32.vlgmr.msra.gmra.mrb[76].mxu0 %vm193_vm2, %v22305_v4 }
0x21f5   :  { %19524 = vmatprep.mubr.msk.f32.mxu0 %vm193_vm2, %v22510_v40 }
0x22a3   :  { %v19442_v19 = vpop.f32.mrb[74].mxu0 }
0x22a4   :  { %v9089_v16 = vmul.f32 2.0, %v19442_v19  ;;  %v9079_v45 = vpop.f32.mrb[75].mxu0 }
0x22a5   :  { %v9088_v22 = vmul.f32 2.0, %v9079_v45 }
0x22a6   :  { %v9091_v27 = vsub.f32 %v9089_v16, %v22443_v8 }
0x22a7   :  { %v9090_v26 = vsub.f32 %v9088_v22, %v22445_v17 }
0x22a9   :  { %19503 = vmatprep.mubr.msk.f32.mxu1 %vm193_vm2, %v9090_v26  ;;  %v22544_v26 = vld [vmem:[%s23345_s4 + $0x8] sm:$0xff] }
0x22aa   :  { %19504 = vmatmul.mubr.msk.f32.vlgmr.msra.gmra.mrb[74].mxu1 %vm193_vm2, %v9091_v27 }
0x22ab   :  { %19517 = vmatprep.mubr.msk.f32.mxu1 %vm193_vm2, %v22510_v40 }
0x22c7   :  { %v19512_v4 = vpop.f32.mrb[76].mxu0 }
0x22c8   :  { %v9873_v42 = vpop.f32.mrb[77].mxu0 }
0x237d   :  { %v22520_v5 = vpop.f32.mrb[74].mxu1 }
0x237e   :  { %v9885_v29 = vadd.f32 %v19512_v4, %v22520_v5  ;;  %v22523_v56 = vpop.f32.mrb[75].mxu1  ;;  %v22551_v4 = vld [vmem:[%s23345_s4 + $0x10] sm:$0xff] }
0x237f   :  { %v9884_v31 = vadd.f32 %v9873_v42, %v22523_v56 }
0x2380   :  { %v9887_v8 = vadd.f32 %v22529_v24, %v9885_v29  ;;  %v22561_v29 = vld [vmem:[%s23345_s4 + $0x18] sm:$0xff] }
0x2381   :  { %v9886_v17 = vadd.f32 %v22529_v24, %v9884_v31 }
0x2382   :  { %v17692_v10 = vmul.f32 -1.442695, %v9887_v8 }
0x2383   :  { %v17691_v23 = vmul.f32 -1.442695, %v9886_v17 }
0x2384   :  { %21126 = vpow2.f32 %v17692_v10 }
0x2385   :  { %21128 = vpow2.f32 %v17691_v23 }
0x238e   :  { %v21127_v55 = vpop.eup %21126 }
0x238f   :  { %v21129_v35 = vpop.eup %21128  ;;  %v9895_v14 = vadd.f32 1.0, %v21127_v55 }
0x2390   :  { %v9894_v51 = vadd.f32 1.0, %v21129_v35 }
0x2391   :  { %21130 = vrcp.f32 %v9895_v14 }
0x2392   :  { %21132 = vrcp.f32 %v9894_v51 }
0x239b   :  { %v22533_v19 = vpop.eup %21130 }
0x239c   :  { %v22535_v16 = vpop.eup %21132  ;;  %v9901_v45 = vmul.f32 %v22533_v19, %v22196_v9 }
0x239d   :  { %v9900_v22 = vmul.f32 %v22535_v16, %v22198_v41 }
0x239f   :  { %v20586_v27 = vpack.c.bf16 %v9901_v45, %v9900_v22 }
0x23a1   :  { %20587 = vmatprep.subr.bf16.mxu1 %v20586_v27 }
0x23a2   :  { %20589 = vmatpush3.bf16.msra.mxu1 %v20586_v27 }
0x23a5   :  { %19518 = vmatmul.mubr.msk.f32.vlgmr.msra.gmra.mrb[76].mxu1 %vm193_vm2, %v22544_v26 }
0x23a6   :  { %19531 = vmatprep.mubr.msk.f32.mxu1 %vm193_vm2, %v22551_v4 }
0x2478   :  { %v19519_v9 = vpop.f32.mrb[76].mxu1 }
0x2479   :  { %v9968_v41 = vpop.f32.mrb[77].mxu1 }
0x247a   :  { %v20590_v42 = vpack.c.bf16 %v19519_v9, %v9968_v41 }
0x247c   :  { %20591 = vmatprep.subr.bf16.mxu0 %v20590_v42  ;;  %20595 = vmatprep.subr.bf16.mxu1 %v20590_v42 }
0x247d   :  { %20593 = vmatpush3.bf16.msra.mxu0 %v20590_v42  ;;  %20597 = vmatpush3.bf16.msra.mxu1 %v20590_v42 }
0x247e   :  { %20603 = vmatprep.subr.bf16.mxu1 %v21666_v53 }
0x2480   :  { %19525 = vmatmul.mubr.msk.f32.vlgmr.msra.gmra.mrb[78].mxu0 %vm193_vm2, %v22544_v26  ;;  %19532 = vmatmul.mubr.msk.f32.vlgmr.msra.gmra.mrb[78].mxu1 %vm193_vm2, %v22561_v29 }
0x2481   :  { %20605 = vmatpush3.bf16.msra.mxu1 %v21666_v53  ;;  %19545 = vmatprep.mubr.msk.f32.mxu1 %vm193_vm2, %v9900_v22 }
0x2482   :  { %20611 = vmatprep.subr.bf16.mxu1 %v21680_v59  ;;  %19538 = vmatprep.mubr.msk.f32.mxu0 %vm193_vm2, %v22551_v4 }
0x2484   :  { %19546 = vmatmul.mubr.msk.f32.vlgmr.msra.gmra.mrb[80].mxu1 %vm193_vm2, %v9901_v45 }
0x2485   :  { %20613 = vmatpush3.bf16.msra.mxu1 %v21680_v59  ;;  %v23462_v59 = vld [vmem:[#allocation21_spill] sm:$0xff] }
0x2486   :  { %20619 = vmatprep.subr.bf16.mxu1 %v21708_v38 }
0x2553   :  { %v19526_v31 = vpop.f32.mrb[78].mxu0  ;;  %v19533_v8 = vpop.f32.mrb[78].mxu1 }
0x2554   :  { %v10053_v17 = vmul.f32 2.0, %v19526_v31  ;;  %v10043_v10 = vpop.f32.mrb[79].mxu0  ;;  %v10122_v23 = vpop.f32.mrb[79].mxu1 }
0x2555   :  { %v10052_v55 = vmul.f32 2.0, %v10043_v10  ;;  %v20598_v35 = vpack.c.bf16 %v19533_v8, %v10122_v23 }
0x2556   :  { %v10055_v27 = vsub.f32 %v10053_v17, %v9901_v45  ;;  %v23463_v45 = vld [vmem:[#allocation22_spill] sm:$0xff] }
0x2557   :  { %v10054_v14 = vsub.f32 %v10052_v55, %v9900_v22  ;;  %20599 = vmatprep.subr.bf16.mxu0 %v20598_v35  ;;  %v19547_v51 = vpop.f32.mrb[80].mxu1 }
0x2558   :  { %10297 = vrot.lane.b32.xlu1 %v19547_v51, %s21303_s28  ;;  %20601 = vmatpush3.bf16.msra.mxu0 %v20598_v35  ;;  %v10284_v42 = vpop.f32.mrb[81].mxu1 }
0x2559   :  { %10295 = vrot.lane.b32.xlu0 %v10284_v42, %s21303_s28  ;;  %19559 = vmatprep.mubr.msk.f32.mxu1 %vm193_vm2, %v10054_v14 }
0x255a   :  { %19560 = vmatmul.mubr.msk.f32.vlgmr.msra.gmra.mrb[82].mxu1 %vm193_vm2, %v10055_v27  ;;  %20607 = vmatprep.subr.bf16.mxu0 %v23462_v59 }
0x255b   :  { %19539 = vmatmul.mubr.msk.f32.vlgmr.msra.gmra.mrb[80].mxu0 %vm193_vm2, %v22561_v29  ;;  %20621 = vmatpush3.bf16.msra.mxu1 %v21708_v38 }
0x255c   :  { %20609 = vmatpush3.bf16.msra.mxu0 %v23462_v59  ;;  %19552 = vmatprep.mubr.msk.f32.mxu0 %vm193_vm2, %v9968_v41 }
0x255d   :  { %20615 = vmatprep.subr.bf16.mxu0 %v23463_v45 }
0x255f   :  { %19553 = vmatmul.mubr.msk.f32.vlgmr.msra.gmra.mrb[82].mxu0 %vm193_vm2, %v19519_v9 }
0x2560   :  { %20617 = vmatpush3.bf16.msra.mxu0 %v23463_v45  ;;  %19566 = vmatprep.mubr.msk.f32.mxu0 %vm193_vm2, %v10122_v23 }
0x2563   :  { %19567 = vmatmul.mubr.msk.f32.vlgmr.msra.gmra.mrb[84].mxu0 %vm193_vm2, %v19533_v8 }
0x2564   :  { %19580 = vmatprep.mubr.msk.f32.mxu0 %vm193_vm2, %v22510_v40 }
0x262d   :  { %v19561_v22 = vpop.f32.mrb[82].mxu1 }
0x262e   :  { %v19540_v31 = vpop.f32.mrb[80].mxu0  ;;  %10479 = vrot.lane.b32.xlu1 %v19561_v22, %s21303_s28  ;;  %v10466_v17 = vpop.f32.mrb[83].mxu1 }
0x262f   :  { %v10207_v10 = vmul.f32 2.0, %v19540_v31  ;;  %v10197_v55 = vpop.f32.mrb[81].mxu0  ;;  %10477 = vrot.lane.b32.xlu0 %v10466_v17, %s21303_s28  ;;  %v10298_v22 = vpop.permute.xlu1 %10297 }
0x2630   :  { %v10206_v35 = vmul.f32 2.0, %v10197_v55  ;;  %v10296_v31 = vpop.permute.xlu0 %10295  ;;  %v10211_v55 = vadd.f32 %v22520_v5, %v21726_v2 }
0x2631   :  { %v10209_v14 = vsub.f32 %v10207_v10, %v19519_v9 }
0x2632   :  { %v10208_v51 = vsub.f32 %v10206_v35, %v9968_v41  ;;  %v19554_v27 = vpop.f32.mrb[82].mxu0  ;;  %v10210_v35 = vadd.f32 %v22523_v56, %v21726_v2 }
0x2633   :  { %v10375_v42 = vpop.f32.mrb[83].mxu0  ;;  %10388 = vrot.lane.b32.xlu1 %v19554_v27, %s21303_s28 }
0x2634   :  { %19573 = vmatprep.mubr.msk.f32.mxu1 %vm193_vm2, %v10208_v51  ;;  %10386 = vrot.lane.b32.xlu0 %v10375_v42, %s21303_s28  ;;  %v10302_v51 = vadd.f32 %v10298_v22, %v10211_v55  ;;  %v10301_v42 = vadd.f32 %v10296_v31, %v10210_v35  ;;  %v10672_v22 = vsub.f32 1.0, %v22533_v19 }
0x2635   :  { %19574 = vmatmul.mubr.msk.f32.vlgmr.msra.gmra.mrb[84].mxu1 %vm193_vm2, %v10209_v14 }
0x2636   :  { %v19568_v8 = vpop.f32.mrb[84].mxu0  ;;  %19587 = vmatprep.mubr.msk.f32.mxu1 %vm193_vm2, %v22510_v40 }
0x2637   :  { %v10557_v23 = vpop.f32.mrb[85].mxu0  ;;  %10570 = vrot.lane.b32.xlu1 %v19568_v8, %s21303_s28 }
0x2638   :  { %10568 = vrot.lane.b32.xlu0 %v10557_v23, %s21303_s28 }
0x26a0   :  { %v10480_v17 = vpop.permute.xlu1 %10479 }
0x26a1   :  { %v10478_v10 = vpop.permute.xlu0 %10477 }
0x26a5   :  { %v10389_v14 = vpop.permute.xlu1 %10388 }
0x26a6   :  { %v10387_v27 = vpop.permute.xlu0 %10386  ;;  %v10393_v8 = vadd.f32 %v10389_v14, %v10302_v51 }
0x26a7   :  { %v10392_v23 = vadd.f32 %v10387_v27, %v10301_v42 }
0x26a9   :  { %v10571_v45 = vpop.permute.xlu1 %10570  ;;  %v10483_v59 = vadd.f32 %v10478_v10, %v10392_v23 }
0x2708   :  { %v19575_v9 = vpop.f32.mrb[84].mxu1 }
0x2709   :  { %10661 = vrot.lane.b32.xlu1 %v19575_v9, %s21303_s28  ;;  %v10648_v41 = vpop.f32.mrb[85].mxu1  ;;  %v10484_v9 = vadd.f32 %v10480_v17, %v10393_v8  ;;  %v10671_v17 = vsub.f32 1.0, %v22535_v16 }
0x270a   :  { %10659 = vrot.lane.b32.xlu0 %v10648_v41, %s21303_s28  ;;  %v10569_v41 = vpop.permute.xlu0 %10568 }
0x270b   :  { %v10575_v38 = vadd.f32 %v10571_v45, %v10484_v9  ;;  %v10574_v53 = vadd.f32 %v10569_v41, %v10483_v59  ;;  %v10670_v59 = vmul.f32 %v22533_v19, %v22164_v7  ;;  %v8687_v41 = vsub.f32 1.0, %v22356_v13 }
0x277b   :  { %v10662_v24 = vpop.permute.xlu1 %10661 }
0x277c   :  { %v10666_v12 = vadd.f32 %v10662_v24, %v10575_v38  ;;  %v10660_v6 = vpop.permute.xlu0 %10659 }
0x277d   :  { %v10665_v1 = vadd.f32 %v10660_v6, %v10574_v53  ;;  %v10669_v6 = vmul.f32 %v22535_v16, %v22166_v25 }
0x277e   :  { %21134 = vtanh.f32 %v10666_v12 }
0x277f   :  { %21136 = vtanh.f32 %v10665_v1 }
0x2788   :  { %v21135_v5 = vpop.eup %21134 }
0x2789   :  { %v21137_v56 = vpop.eup %21136  ;;  %10677 = vrot.lane.b32.xlu1 %v21135_v5, %s21304_s29 }
0x278a   :  { %10675 = vrot.lane.b32.xlu0 %v21137_v56, %s21304_s29  ;;  %v8686_v56 = vsub.f32 1.0, %v22358_v21 }
0x27fb   :  { %v10678_v31 = vpop.permute.xlu1 %10677 }
0x27fc   :  { %v10682_v45 = vmul.f32 %v10678_v31, %v10672_v22  ;;  %v10676_v38 = vpop.permute.xlu0 %10675  ;;  %v8685_v22 = vmul.f32 %v22356_v13, %v22222_v34 }
0x27fd   :  { %v10681_v1 = vmul.f32 %v10676_v38, %v10671_v17 }
0x27fe   :  { %v22614_v12 = vadd.f32 %v10682_v45, %v10670_v59  ;;  %v8684_v59 = vmul.f32 %v22358_v21, %v22216_v54 }
0x27ff   :  { %v22616_v53 = vadd.f32 %v10681_v1, %v10669_v6 }
0x2800   :  { %10689 = vrot.lane.b32.xlu1 %v22614_v12, %s21304_s29 }
0x2801   :  { %10687 = vrot.lane.b32.xlu0 %v22616_v53, %s21304_s29 }
0x2804   :  { %8312 = vrot.lane.b32.xlu1 %v22381_v50, %s21303_s28 }
0x2805   :  { %8310 = vrot.lane.b32.xlu0 %v22383_v47, %s21303_s28 }
0x2808   :  { %8403 = vrot.lane.b32.xlu1 %v22421_v46, %s21303_s28  ;;  %v8225_v46 = vadd.f32 %v22344_v15, %v22202_v0 }
0x2809   :  { %8401 = vrot.lane.b32.xlu0 %v22423_v63, %s21303_s28 }
0x280c   :  { %8494 = vrot.lane.b32.xlu1 %v22417_v60, %s21303_s28 }
0x280d   :  { %8492 = vrot.lane.b32.xlu0 %v22419_v3, %s21303_s28  ;;  %v8226_v3 = vadd.f32 %v22342_v11, %v22202_v0 }
0x2810   :  { %8585 = vrot.lane.b32.xlu1 %v22427_v44, %s21303_s28 }
0x2811   :  { %8583 = vrot.lane.b32.xlu0 %v22431_v48, %s21303_s28 }
0x2814   :  { %8676 = vrot.lane.b32.xlu1 %v22439_v62, %s21303_s28 }
0x2815   :  { %8674 = vrot.lane.b32.xlu0 %v22441_v49, %s21303_s28 }
0x2872   :  { %v22642_v7 = vpop.permute.xlu1 %10689 }
0x2873   :  { %v22644_v25 = vpop.permute.xlu0 %10687 }
0x2874   :  { %v20622_v50 = vpack.c.bf16 %v22642_v7, %v22644_v25 }
0x2876   :  { %v8313_v47 = vpop.permute.xlu1 %8312  ;;  %20623 = vmatprep.subr.bf16.mxu0 %v20622_v50 }
0x2877   :  { %20625 = vmatpush3.bf16.msra.mxu0 %v20622_v50  ;;  %v8311_v63 = vpop.permute.xlu0 %8310  ;;  %v8317_v62 = vadd.f32 %v8313_v47, %v8226_v3 }
0x2878   :  { %v8316_v24 = vadd.f32 %v8311_v63, %v8225_v46 }
0x287a   :  { %v8404_v60 = vpop.permute.xlu1 %8403  ;;  %19581 = vmatmul.mubr.msk.f32.vlgmr.msra.gmra.mrb[86].mxu0 %vm193_vm2, %v22544_v26 }
0x287b   :  { %v8402_v48 = vpop.permute.xlu0 %8401  ;;  %19594 = vmatprep.mubr.msk.f32.mxu0 %vm193_vm2, %v22551_v4  ;;  %v8408_v19 = vadd.f32 %v8404_v60, %v8317_v62 }
0x287c   :  { %v8407_v16 = vadd.f32 %v8402_v48, %v8316_v24 }
0x287e   :  { %v8495_v44 = vpop.permute.xlu1 %8494 }
0x287f   :  { %v8493_v49 = vpop.permute.xlu0 %8492  ;;  %v8499_v55 = vadd.f32 %v8495_v44, %v8408_v19 }
0x2880   :  { %v8498_v14 = vadd.f32 %v8493_v49, %v8407_v16 }
0x2882   :  { %v8586_v10 = vpop.permute.xlu1 %8585 }
0x2883   :  { %v8584_v35 = vpop.permute.xlu0 %8583  ;;  %v8590_v51 = vadd.f32 %v8586_v10, %v8499_v55 }
0x2884   :  { %v8589_v27 = vadd.f32 %v8584_v35, %v8498_v14 }
0x2886   :  { %v8677_v42 = vpop.permute.xlu1 %8676 }
0x2887   :  { %v8681_v8 = vadd.f32 %v8677_v42, %v8590_v51  ;;  %v8675_v23 = vpop.permute.xlu0 %8674 }
0x2888   :  { %v8680_v9 = vadd.f32 %v8675_v23, %v8589_v27 }
0x2889   :  { %21138 = vtanh.f32 %v8681_v8 }
0x288a   :  { %21140 = vtanh.f32 %v8680_v9 }
0x2893   :  { %v21139_v11 = vpop.eup %21138 }
0x2894   :  { %v21141_v15 = vpop.eup %21140  ;;  %8692 = vrot.lane.b32.xlu1 %v21139_v11, %s21304_s29 }
0x2895   :  { %8690 = vrot.lane.b32.xlu0 %v21141_v15, %s21304_s29 }
0x2906   :  { %v8693_v5 = vpop.permute.xlu1 %8692 }
0x2907   :  { %v8697_v31 = vmul.f32 %v8693_v5, %v8687_v41  ;;  %v8691_v17 = vpop.permute.xlu0 %8690 }
0x2908   :  { %v8696_v45 = vmul.f32 %v8691_v17, %v8686_v56  ;;  %v23464_v56 = vld [vmem:[#allocation29_spill] sm:$0xff] }
0x2909   :  { %v22664_v38 = vadd.f32 %v8697_v31, %v8685_v22  ;;  %v23465_v31 = vld [vmem:[#allocation30_spill] sm:$0xff] }
0x290a   :  { %v22666_v6 = vadd.f32 %v8696_v45, %v8684_v59 }
0x290b   :  { %11005 = vrot.lane.b32.xlu1 %v22664_v38, %s21304_s29 }
0x290c   :  { %11003 = vrot.lane.b32.xlu0 %v22666_v6, %s21304_s29 }
0x294d   :  { %v22672_v1 = vpop.f32.mrb[86].mxu0 }
0x294e   :  { %v22674_v50 = vpop.f32.mrb[87].mxu0 }
0x294f   :  { %v20626_v34 = vpack.c.bf16 %v22672_v1, %v22674_v50 }
0x2951   :  { %20627 = vmatprep.subr.bf16.mxu1 %v20626_v34  ;;  %20631 = vmatprep.subr.bf16.mxu0 %v20626_v34 }
0x2952   :  { %20629 = vmatpush3.bf16.msra.mxu1 %v20626_v34  ;;  %20633 = vmatpush3.bf16.msra.mxu0 %v20626_v34 }
0x2955   :  { %19588 = vmatmul.mubr.msk.f32.vlgmr.msra.gmra.mrb[86].mxu1 %vm193_vm2, %v22544_v26  ;;  %19595 = vmatmul.mubr.msk.f32.vlgmr.msra.gmra.mrb[88].mxu0 %vm193_vm2, %v22561_v29 }
0x2956   :  { %19608 = vmatprep.mubr.msk.f32.mxu0 %vm193_vm2, %v22510_v40  ;;  %19601 = vmatprep.mubr.msk.f32.mxu1 %vm193_vm2, %v22551_v4 }
0x297d   :  { %v22686_v54 = vpop.permute.xlu1 %11005 }
0x297e   :  { %v22688_v13 = vpop.permute.xlu0 %11003 }
0x297f   :  { %v20638_v21 = vpack.c.bf16 %v22686_v54, %v22688_v13 }
0x2981   :  { %20639 = vmatprep.subr.bf16.mxu0 %v20638_v21 }
0x2982   :  { %20641 = vmatpush3.bf16.msra.mxu0 %v20638_v21 }
0x2985   :  { %19609 = vmatmul.mubr.msk.f32.vlgmr.msra.gmra.mrb[90].mxu0 %vm193_vm2, %v22544_v26 }
0x2986   :  { %19622 = vmatprep.mubr.msk.f32.mxu0 %vm193_vm2, %v22551_v4 }
0x2a28   :  { %v19589_v47 = vpop.f32.mrb[86].mxu1  ;;  %v22696_v63 = vpop.f32.mrb[88].mxu0 }
0x2a29   :  { %v10834_v60 = vpop.f32.mrb[87].mxu1  ;;  %v22698_v48 = vpop.f32.mrb[89].mxu0  ;;  %v10844_v19 = vmul.f32 2.0, %v19589_v47 }
0x2a2a   :  { %v20634_v3 = vpack.c.bf16 %v22696_v63, %v22698_v48  ;;  %v10843_v49 = vmul.f32 2.0, %v10834_v60 }
0x2a2b   :  { %v22739_v16 = vsub.f32 %v10844_v19, %v22642_v7 }
0x2a2c   :  { %20635 = vmatprep.subr.bf16.mxu1 %v20634_v3  ;;  %v22730_v24 = vsub.f32 %v10843_v49, %v22644_v25 }
0x2a2d   :  { %20637 = vmatpush3.bf16.msra.mxu1 %v20634_v3 }
0x2a30   :  { %19602 = vmatmul.mubr.msk.f32.vlgmr.msra.gmra.mrb[88].mxu1 %vm193_vm2, %v22561_v29 }
0x2a31   :  { %19615 = vmatprep.mubr.msk.f32.mxu1 %vm193_vm2, %v22510_v40 }
0x2a58   :  { %v22706_v46 = vpop.f32.mrb[90].mxu0 }
0x2a59   :  { %v22708_v44 = vpop.f32.mrb[91].mxu0 }
0x2a5a   :  { %v20642_v62 = vpack.c.bf16 %v22706_v46, %v22708_v44 }
0x2a5c   :  { %20643 = vmatprep.subr.bf16.mxu1 %v20642_v62  ;;  %20647 = vmatprep.subr.bf16.mxu0 %v20642_v62 }
0x2a5d   :  { %20645 = vmatpush3.bf16.msra.mxu1 %v20642_v62  ;;  %20649 = vmatpush3.bf16.msra.mxu0 %v20642_v62 }
0x2a5e   :  { %20655 = vmatprep.subr.bf16.mxu0 %v21762_v28 }
0x2a60   :  { %19616 = vmatmul.mubr.msk.f32.vlgmr.msra.gmra.mrb[90].mxu1 %vm193_vm2, %v22544_v26  ;;  %19623 = vmatmul.mubr.msk.f32.vlgmr.msra.gmra.mrb[92].mxu0 %vm193_vm2, %v22561_v29 }
0x2a61   :  { %20657 = vmatpush3.bf16.msra.mxu0 %v21762_v28  ;;  %19636 = vmatprep.mubr.msk.f32.mxu0 %vm193_vm2, %v22674_v50 }
0x2a62   :  { %20659 = vmatprep.subr.bf16.mxu0 %v21765_v32  ;;  %19629 = vmatprep.mubr.msk.f32.mxu1 %vm193_vm2, %v22551_v4 }
0x2a64   :  { %19637 = vmatmul.mubr.msk.f32.vlgmr.msra.gmra.mrb[94].mxu0 %vm193_vm2, %v22672_v1 }
0x2a65   :  { %19643 = vmatprep.mubr.msk.f32.mxu0 %vm193_vm2, %v22644_v25  ;;  %20661 = vmatpush3.bf16.msra.mxu0 %v21765_v32 }
0x2a66   :  { %20671 = vmatprep.subr.bf16.mxu0 %v21784_v39 }
0x2a6c   :  { %19644 = vmatmul.mubr.msk.f32.vlgmr.msra.gmra.mrb[94].mxu0 %vm193_vm2, %v22642_v7 }
0x2a6d   :  { %19664 = vmatprep.mubr.msk.f32.mxu0 %vm193_vm2, %v22730_v24  ;;  %20673 = vmatpush3.bf16.msra.mxu0 %v21784_v39 }
0x2a6e   :  { %20679 = vmatprep.subr.bf16.mxu0 %v23445_v18 }
0x2a74   :  { %19665 = vmatmul.mubr.msk.f32.vlgmr.msra.gmra.mrb[94].mxu0 %vm193_vm2, %v22739_v16 }
0x2a75   :  { %19678 = vmatprep.mubr.msk.f32.mxu0 %vm193_vm2, %v22698_v48  ;;  %20681 = vmatpush3.bf16.msra.mxu0 %v23445_v18 }
0x2a76   :  { %20687 = vmatprep.subr.bf16.mxu0 %v23446_v20 }
0x2a7c   :  { %19679 = vmatmul.mubr.msk.f32.vlgmr.msra.gmra.mrb[94].mxu0 %vm193_vm2, %v22696_v63 }
0x2a7d   :  { %20689 = vmatpush3.bf16.msra.mxu0 %v23446_v20 }
0x2b03   :  { %v19603_v10 = vpop.f32.mrb[88].mxu1 }
0x2b04   :  { %v10998_v55 = vmul.f32 2.0, %v19603_v10  ;;  %v10988_v35 = vpop.f32.mrb[89].mxu1 }
0x2b05   :  { %v10997_v14 = vmul.f32 2.0, %v10988_v35 }
0x2b06   :  { %v22751_v51 = vsub.f32 %v10998_v55, %v22672_v1  ;;  %v22803_v55 = vld [vmem:[%s23351_s10 + $0x1] ss:$0 sm:$0xff] }
0x2b07   :  { %v22754_v27 = vsub.f32 %v10997_v14, %v22674_v50 }
0x2b09   :  { %19692 = vmatprep.mubr.msk.f32.mxu0 %vm193_vm2, %v22754_v27 }
0x2b0a   :  { %19693 = vmatmul.mubr.msk.f32.vlgmr.msra.gmra.mrb[94].mxu0 %vm193_vm2, %v22751_v51 }
0x2b0b   :  { %19706 = vmatprep.mubr.msk.f32.mxu0 %vm193_vm2, %v22510_v40 }
0x2b33   :  { %v19617_v42 = vpop.f32.mrb[90].mxu1  ;;  %v19624_v8 = vpop.f32.mrb[92].mxu0 }
0x2b34   :  { %v11150_v23 = vpop.f32.mrb[91].mxu1  ;;  %v11229_v9 = vpop.f32.mrb[93].mxu0  ;;  %v11160_v5 = vmul.f32 2.0, %v19617_v42 }
0x2b35   :  { %v20650_v11 = vpack.c.bf16 %v19624_v8, %v11229_v9  ;;  %v11159_v15 = vmul.f32 2.0, %v11150_v23 }
0x2b36   :  { %v11162_v22 = vsub.f32 %v11160_v5, %v22686_v54 }
0x2b37   :  { %20651 = vmatprep.subr.bf16.mxu1 %v20650_v11  ;;  %v11161_v41 = vsub.f32 %v11159_v15, %v22688_v13 }
0x2b38   :  { %20653 = vmatpush3.bf16.msra.mxu1 %v20650_v11 }
0x2b39   :  { %20663 = vmatprep.subr.bf16.mxu1 %v23447_v57 }
0x2b3b   :  { %19630 = vmatmul.mubr.msk.f32.vlgmr.msra.gmra.mrb[92].mxu1 %vm193_vm2, %v22561_v29 }
0x2b3c   :  { %20665 = vmatpush3.bf16.msra.mxu1 %v23447_v57  ;;  %19650 = vmatprep.mubr.msk.f32.mxu1 %vm193_vm2, %v22708_v44 }
0x2b3d   :  { %20667 = vmatprep.subr.bf16.mxu1 %v23448_v36 }
0x2b3f   :  { %19651 = vmatmul.mubr.msk.f32.vlgmr.msra.gmra.mrb[94].mxu1 %vm193_vm2, %v22706_v46 }
0x2b40   :  { %19657 = vmatprep.mubr.msk.f32.mxu1 %vm193_vm2, %v22688_v13  ;;  %20669 = vmatpush3.bf16.msra.mxu1 %v23448_v36 }
0x2b41   :  { %20675 = vmatprep.subr.bf16.mxu1 %v23449_v52 }
0x2b47   :  { %19658 = vmatmul.mubr.msk.f32.vlgmr.msra.gmra.mrb[94].mxu1 %vm193_vm2, %v22686_v54 }
0x2b48   :  { %19671 = vmatprep.mubr.msk.f32.mxu1 %vm193_vm2, %v11161_v41  ;;  %20677 = vmatpush3.bf16.msra.mxu1 %v23449_v52 }
0x2b49   :  { %20683 = vmatprep.subr.bf16.mxu1 %v23464_v56 }
0x2b4f   :  { %19672 = vmatmul.mubr.msk.f32.vlgmr.msra.gmra.mrb[94].mxu1 %vm193_vm2, %v11162_v22 }
0x2b50   :  { %19685 = vmatprep.mubr.msk.f32.mxu1 %vm193_vm2, %v11229_v9  ;;  %20685 = vmatpush3.bf16.msra.mxu1 %v23464_v56 }
0x2b51   :  { %20691 = vmatprep.subr.bf16.mxu1 %v23465_v31 }
0x2b57   :  { %19686 = vmatmul.mubr.msk.f32.vlgmr.msra.gmra.mrb[94].mxu1 %vm193_vm2, %v19624_v8 }
0x2b58   :  { %20693 = vmatpush3.bf16.msra.mxu1 %v23465_v31 }
0x2bdd   :  { %v22788_v17 = vpop.f32.mrb[94].mxu0 }
0x2bde   :  { %v22790_v59 = vpop.f32.mrb[95].mxu0 }
0x2c0e   :  { %v19631_v45 = vpop.f32.mrb[92].mxu1 }
0x2c0f   :  { %v11314_v34 = vmul.f32 2.0, %v19631_v45  ;;  %v11304_v21 = vpop.f32.mrb[93].mxu1 }
0x2c10   :  { %v11313_v47 = vmul.f32 2.0, %v11304_v21 }
0x2c11   :  { %v11316_v60 = vsub.f32 %v11314_v34, %v22706_v46 }
0x2c12   :  { %v11315_v3 = vsub.f32 %v11313_v47, %v22708_v44  ;;  %v23468_v47 = vld [vmem:[#allocation36_spill] sm:$0xff] }
0x2c14   :  { %19699 = vmatprep.mubr.msk.f32.mxu1 %vm193_vm2, %v11315_v3 }
0x2c15   :  { %19700 = vmatmul.mubr.msk.f32.vlgmr.msra.gmra.mrb[94].mxu1 %vm193_vm2, %v11316_v60 }
0x2c16   :  { %19713 = vmatprep.mubr.msk.f32.mxu1 %vm193_vm2, %v22510_v40 }
0x2ce8   :  { %v19701_v62 = vpop.f32.mrb[94].mxu1 }
0x2ce9   :  { %v12136_v49 = vadd.f32 %v19701_v62, %v22788_v17  ;;  %v12124_v19 = vpop.f32.mrb[95].mxu1 }
0x2cea   :  { %v12135_v10 = vadd.f32 %v12124_v19, %v22790_v59 }
0x2ceb   :  { %v12138_v46 = vadd.f32 %v22803_v55, %v12136_v49 }
0x2cec   :  { %v12137_v44 = vadd.f32 %v22803_v55, %v12135_v10 }
0x2ced   :  { %v17748_v35 = vmul.f32 -1.442695, %v12138_v46 }
0x2cee   :  { %v17747_v14 = vmul.f32 -1.442695, %v12137_v44 }
0x2cef   :  { %21142 = vpow2.f32 %v17748_v35 }
0x2cf0   :  { %21144 = vpow2.f32 %v17747_v14 }
0x2cf9   :  { %v21143_v42 = vpop.eup %21142 }
0x2cfa   :  { %v21145_v8 = vpop.eup %21144  ;;  %v12146_v23 = vadd.f32 1.0, %v21143_v42 }
0x2cfb   :  { %v12145_v9 = vadd.f32 1.0, %v21145_v8  ;;  %v23469_v8 = vld [vmem:[#allocation34_spill] sm:$0xff] }
0x2cfc   :  { %21146 = vrcp.f32 %v12146_v23  ;;  %v23470_v23 = vld [vmem:[#allocation35_spill] sm:$0xff] }
0x2cfd   :  { %21148 = vrcp.f32 %v12145_v9  ;;  %v23471_v9 = vld [vmem:[#allocation24_spill] sm:$0xff] }
0x2d06   :  { %v22807_v11 = vpop.eup %21146 }
0x2d07   :  { %v22809_v15 = vpop.eup %21148  ;;  %v12152_v41 = vmul.f32 %v22807_v11, %v22686_v54  ;;  %v23466_v54 = vld [vmem:[#allocation32_spill] sm:$0xff] }
0x2d08   :  { %v12151_v5 = vmul.f32 %v22809_v15, %v22688_v13  ;;  %v23467_v13 = vld [vmem:[#allocation33_spill] sm:$0xff] }
0x2d0a   :  { %v20694_v22 = vpack.c.bf16 %v12152_v41, %v12151_v5 }
0x2d0c   :  { %20695 = vmatprep.subr.bf16.mxu0 %v20694_v22 }
0x2d0d   :  { %20697 = vmatpush3.bf16.msra.mxu0 %v20694_v22 }
0x2d10   :  { %19707 = vmatmul.mubr.msk.f32.vlgmr.msra.gmra.mrb[96].mxu0 %vm193_vm2, %v22544_v26 }
0x2d11   :  { %19720 = vmatprep.mubr.msk.f32.mxu0 %vm193_vm2, %v22551_v4 }
0x2de3   :  { %v19708_v45 = vpop.f32.mrb[96].mxu0 }
0x2de4   :  { %v12219_v34 = vpop.f32.mrb[97].mxu0 }
0x2de5   :  { %v20698_v21 = vpack.c.bf16 %v19708_v45, %v12219_v34 }
0x2de7   :  { %20699 = vmatprep.subr.bf16.mxu1 %v20698_v21  ;;  %20703 = vmatprep.subr.bf16.mxu0 %v20698_v21 }
0x2de8   :  { %20701 = vmatpush3.bf16.msra.mxu1 %v20698_v21  ;;  %20705 = vmatpush3.bf16.msra.mxu0 %v20698_v21 }
0x2de9   :  { %20711 = vmatprep.subr.bf16.mxu0 %v23466_v54 }
0x2deb   :  { %19714 = vmatmul.mubr.msk.f32.vlgmr.msra.gmra.mrb[96].mxu1 %vm193_vm2, %v22544_v26  ;;  %19721 = vmatmul.mubr.msk.f32.vlgmr.msra.gmra.mrb[98].mxu0 %vm193_vm2, %v22561_v29 }
0x2dec   :  { %20713 = vmatpush3.bf16.msra.mxu0 %v23466_v54  ;;  %19734 = vmatprep.mubr.msk.f32.mxu0 %vm193_vm2, %v12151_v5 }
0x2ded   :  { %20719 = vmatprep.subr.bf16.mxu0 %v23467_v13  ;;  %19727 = vmatprep.mubr.msk.f32.mxu1 %vm193_vm2, %v22551_v4 }
0x2def   :  { %19735 = vmatmul.mubr.msk.f32.vlgmr.msra.gmra.mrb[100].mxu0 %vm193_vm2, %v12152_v41 }
0x2df0   :  { %20721 = vmatpush3.bf16.msra.mxu0 %v23467_v13 }
0x2df1   :  { %20727 = vmatprep.subr.bf16.mxu0 %v23468_v47 }
0x2ebe   :  { %v19715_v60 = vpop.f32.mrb[96].mxu1  ;;  %v19722_v3 = vpop.f32.mrb[98].mxu0 }
0x2ebf   :  { %v12304_v62 = vmul.f32 2.0, %v19715_v60  ;;  %v12294_v49 = vpop.f32.mrb[97].mxu1  ;;  %v12373_v19 = vpop.f32.mrb[99].mxu0 }
0x2ec0   :  { %v12303_v10 = vmul.f32 2.0, %v12294_v49  ;;  %v20706_v46 = vpack.c.bf16 %v19722_v3, %v12373_v19 }
0x2ec1   :  { %v12306_v14 = vsub.f32 %v12304_v62, %v12152_v41  ;;  %v17767_v41 = vld [vmem:[%s23341_s0 + $0x30] sm:$0xff] }
0x2ec2   :  { %v12305_v44 = vsub.f32 %v12303_v10, %v12151_v5  ;;  %20707 = vmatprep.subr.bf16.mxu1 %v20706_v46  ;;  %v22832_v35 = vpop.f32.mrb[100].mxu0  ;;  %v17768_v5 = vld [vmem:[%s23341_s0 + $0x38] sm:$0xff] }
0x2ec3   :  { %20709 = vmatpush3.bf16.msra.mxu1 %v20706_v46  ;;  %v22834_v42 = vpop.f32.mrb[101].mxu0 }
0x2ec4   :  { %19748 = vmatprep.mubr.msk.f32.mxu0 %vm193_vm2, %v12305_v44  ;;  %20715 = vmatprep.subr.bf16.mxu1 %v23469_v8 }
0x2ec5   :  { %19749 = vmatmul.mubr.msk.f32.vlgmr.msra.gmra.mrb[102].mxu0 %vm193_vm2, %v12306_v14 }
0x2ec6   :  { %19728 = vmatmul.mubr.msk.f32.vlgmr.msra.gmra.mrb[98].mxu1 %vm193_vm2, %v22561_v29  ;;  %20729 = vmatpush3.bf16.msra.mxu0 %v23468_v47 }
0x2ec7   :  { %20717 = vmatpush3.bf16.msra.mxu1 %v23469_v8  ;;  %19741 = vmatprep.mubr.msk.f32.mxu1 %vm193_vm2, %v12219_v34 }
0x2ec8   :  { %20723 = vmatprep.subr.bf16.mxu1 %v23470_v23 }
0x2eca   :  { %19742 = vmatmul.mubr.msk.f32.vlgmr.msra.gmra.mrb[100].mxu1 %vm193_vm2, %v19708_v45 }
0x2ecb   :  { %20725 = vmatpush3.bf16.msra.mxu1 %v23470_v23  ;;  %19755 = vmatprep.mubr.msk.f32.mxu1 %vm193_vm2, %v12373_v19 }
0x2ecc   :  { %19765 = vmatprep.subr.msk.mxu1 %vm114_vm0, %v23471_v9 }
0x2ece   :  { %19756 = vmatmul.mubr.msk.f32.vlgmr.msra.gmra.mrb[102].mxu1 %vm193_vm2, %v19722_v3 }
0x2ecf   :  { %19766 = vmatpush3.msk.msra.mxu1 %vm114_vm0, %v23471_v9  ;;  %19767 = vmatprep.mubr.msk.f32.mxu1 %vm107_vm1, %v17767_v41 }
0x2ed2   :  { %19768 = vmatmul.mubr.msk.f32.vlgmr.msra.gmra.mrb[104].mxu1 %vm107_vm1, %v17768_v5 }
0x2ed3   :  { %19781 = vmatprep.mubr.msk.f32.mxu1 %vm193_vm2, %v22510_v40 }
0x2f98   :  { %v22863_v22 = vpop.f32.mrb[102].mxu0 }
0x2f99   :  { %v19729_v21 = vpop.f32.mrb[98].mxu1  ;;  %v22865_v60 = vpop.f32.mrb[103].mxu0 }
0x2f9a   :  { %v12458_v3 = vmul.f32 2.0, %v19729_v21  ;;  %v12448_v62 = vpop.f32.mrb[99].mxu1 }
0x2f9b   :  { %v12457_v49 = vmul.f32 2.0, %v12448_v62 }
0x2f9c   :  { %v12460_v19 = vsub.f32 %v12458_v3, %v19708_v45  ;;  %v21198_v45 = vld [vmem:[%s23347_s6] ss:$0 sm:$0xff] }
0x2f9d   :  { %v12459_v10 = vsub.f32 %v12457_v49, %v12219_v34  ;;  %v22867_v46 = vpop.f32.mrb[100].mxu1 }
0x2f9e   :  { %v22869_v44 = vpop.f32.mrb[101].mxu1 }
0x2f9f   :  { %19762 = vmatprep.mubr.msk.f32.mxu0 %vm193_vm2, %v12459_v10 }
0x2fa0   :  { %19763 = vmatmul.mubr.msk.f32.vlgmr.msra.gmra.mrb[104].mxu0 %vm193_vm2, %v12460_v19 }
0x2fa1   :  { %v22873_v14 = vpop.f32.mrb[102].mxu1  ;;  %19774 = vmatprep.mubr.msk.f32.mxu0 %vm193_vm2, %v22510_v40 }
0x2fa2   :  { %v22877_v9 = vpop.f32.mrb[103].mxu1 }
0x2fa5   :  { %v19769_v41 = vpop.f32.mrb[104].mxu1 }
0x2fa6   :  { %v13017_v34 = vadd.f32 %v21198_v45, %v19769_v41  ;;  %v13011_v5 = vpop.f32.mrb[105].mxu1 }
0x2fa7   :  { %v13012_v21 = vadd.f32 %v21198_v45, %v13011_v5  ;;  %v23472_v45 = vld [vmem:[#allocation15_spill] sm:$0xff] }
0x2fa9   :  { %v20730_v3 = vpack.c.bf16 %v13017_v34, %v13012_v21 }
0x2fab   :  { %20731 = vmatprep.subr.bf16.mxu0 %v20730_v3 }
0x2fac   :  { %20733 = vmatpush3.bf16.msra.mxu0 %v20730_v3 }
0x2faf   :  { %19775 = vmatmul.mubr.msk.f32.vlgmr.msra.gmra.mrb[106].mxu0 %vm193_vm2, %v22544_v26 }
0x2fb0   :  { %19788 = vmatprep.mubr.msk.f32.mxu0 %vm193_vm2, %v22551_v4 }
0x3073   :  { %v22886_v62 = vpop.f32.mrb[104].mxu0 }
0x3074   :  { %v22888_v49 = vpop.f32.mrb[105].mxu0 }
0x3082   :  { %v22890_v19 = vpop.f32.mrb[106].mxu0 }
0x3083   :  { %v22892_v10 = vpop.f32.mrb[107].mxu0 }
0x3084   :  { %v20734_v41 = vpack.c.bf16 %v22890_v19, %v22892_v10 }
0x3086   :  { %20735 = vmatprep.subr.bf16.mxu1 %v20734_v41  ;;  %20739 = vmatprep.subr.bf16.mxu0 %v20734_v41 }
0x3087   :  { %20737 = vmatpush3.bf16.msra.mxu1 %v20734_v41  ;;  %20741 = vmatpush3.bf16.msra.mxu0 %v20734_v41 }
0x3088   :  { %20747 = vmatprep.subr.bf16.mxu0 %v23472_v45 }
0x308a   :  { %19782 = vmatmul.mubr.msk.f32.vlgmr.msra.gmra.mrb[106].mxu1 %vm193_vm2, %v22544_v26  ;;  %19789 = vmatmul.mubr.msk.f32.vlgmr.msra.gmra.mrb[108].mxu0 %vm193_vm2, %v22561_v29 }
0x308b   :  { %20749 = vmatpush3.bf16.msra.mxu0 %v23472_v45  ;;  %19802 = vmatprep.mubr.msk.f32.mxu0 %vm193_vm2, %v22892_v10 }
0x308c   :  { %20751 = vmatprep.subr.bf16.mxu0 %v21526_v30  ;;  %19795 = vmatprep.mubr.msk.f32.mxu1 %vm193_vm2, %v22551_v4 }
0x308e   :  { %19803 = vmatmul.mubr.msk.f32.vlgmr.msra.gmra.mrb[110].mxu0 %vm193_vm2, %v22890_v19 }
0x308f   :  { %19809 = vmatprep.mubr.msk.f32.mxu0 %vm193_vm2, %v13012_v21  ;;  %20753 = vmatpush3.bf16.msra.mxu0 %v21526_v30  ;;  %v23473_v30 = vld [vmem:[#allocation16_spill] sm:$0xff] }
0x3090   :  { %20763 = vmatprep.subr.bf16.mxu0 %v21538_v33 }
0x3096   :  { %19810 = vmatmul.mubr.msk.f32.vlgmr.msra.gmra.mrb[110].mxu0 %vm193_vm2, %v13017_v34 }
0x3097   :  { %20765 = vmatpush3.bf16.msra.mxu0 %v21538_v33  ;;  %v23474_v33 = vld [vmem:[#allocation17_spill] sm:$0xff] }
0x3098   :  { %20771 = vmatprep.subr.bf16.mxu0 %v21546_v37 }
0x315d   :  { %v19783_v5 = vpop.f32.mrb[106].mxu1  ;;  %v19790_v3 = vpop.f32.mrb[108].mxu0 }
0x315e   :  { %v13171_v41 = vmul.f32 2.0, %v19783_v5  ;;  %v13161_v45 = vpop.f32.mrb[107].mxu1  ;;  %v13240_v23 = vpop.f32.mrb[109].mxu0 }
0x315f   :  { %v13170_v8 = vmul.f32 2.0, %v13161_v45  ;;  %v20742_v47 = vpack.c.bf16 %v19790_v3, %v13240_v23 }
0x3160   :  { %v13173_v54 = vsub.f32 %v13171_v41, %v13017_v34 }
0x3161   :  { %v13172_v13 = vsub.f32 %v13170_v8, %v13012_v21  ;;  %20743 = vmatprep.subr.bf16.mxu1 %v20742_v47 }
0x3162   :  { %20745 = vmatpush3.bf16.msra.mxu1 %v20742_v47 }
0x3163   :  { %19830 = vmatprep.mubr.msk.f32.mxu0 %vm193_vm2, %v13172_v13  ;;  %20755 = vmatprep.subr.bf16.mxu1 %v21577_v58  ;;  %v23476_v13 = vld [vmem:[#allocation27_spill] sm:$0xff] }
0x3164   :  { %19831 = vmatmul.mubr.msk.f32.vlgmr.msra.gmra.mrb[110].mxu0 %vm193_vm2, %v13173_v54 }
0x3165   :  { %19796 = vmatmul.mubr.msk.f32.vlgmr.msra.gmra.mrb[108].mxu1 %vm193_vm2, %v22561_v29  ;;  %19844 = vmatprep.mubr.msk.f32.mxu0 %vm193_vm2, %v13240_v23 }
0x3166   :  { %20757 = vmatpush3.bf16.msra.mxu1 %v21577_v58  ;;  %19816 = vmatprep.mubr.msk.f32.mxu1 %vm193_vm2, %v22674_v50 }
0x3167   :  { %20773 = vmatpush3.bf16.msra.mxu0 %v21546_v37  ;;  %20759 = vmatprep.subr.bf16.mxu1 %v21582_v61  ;;  %v23475_v37 = vld [vmem:[#allocation18_spill] sm:$0xff] }
0x3168   :  { %20779 = vmatprep.subr.bf16.mxu0 %v21559_v43 }
0x3169   :  { %19817 = vmatmul.mubr.msk.f32.vlgmr.msra.gmra.mrb[110].mxu1 %vm193_vm2, %v22672_v1 }
0x316a   :  { %19823 = vmatprep.mubr.msk.f32.mxu1 %vm193_vm2, %v22644_v25  ;;  %20761 = vmatpush3.bf16.msra.mxu1 %v21582_v61 }
0x316b   :  { %20767 = vmatprep.subr.bf16.mxu1 %v23473_v30 }
0x316c   :  { %19845 = vmatmul.mubr.msk.f32.vlgmr.msra.gmra.mrb[110].mxu0 %vm193_vm2, %v19790_v3 }
0x316d   :  { %20781 = vmatpush3.bf16.msra.mxu0 %v21559_v43 }
0x3171   :  { %19824 = vmatmul.mubr.msk.f32.vlgmr.msra.gmra.mrb[110].mxu1 %vm193_vm2, %v22642_v7 }
0x3172   :  { %19837 = vmatprep.mubr.msk.f32.mxu1 %vm193_vm2, %v22730_v24  ;;  %20769 = vmatpush3.bf16.msra.mxu1 %v23473_v30 }
0x3173   :  { %20775 = vmatprep.subr.bf16.mxu1 %v23474_v33 }
0x3179   :  { %19838 = vmatmul.mubr.msk.f32.vlgmr.msra.gmra.mrb[110].mxu1 %vm193_vm2, %v22739_v16 }
0x317a   :  { %19851 = vmatprep.mubr.msk.f32.mxu1 %vm193_vm2, %v22698_v48  ;;  %20777 = vmatpush3.bf16.msra.mxu1 %v23474_v33 }
0x317b   :  { %20783 = vmatprep.subr.bf16.mxu1 %v23475_v37 }
0x3181   :  { %19852 = vmatmul.mubr.msk.f32.vlgmr.msra.gmra.mrb[110].mxu1 %vm193_vm2, %v22696_v63 }
0x3182   :  { %19865 = vmatprep.mubr.msk.f32.mxu1 %vm193_vm2, %v22754_v27  ;;  %20785 = vmatpush3.bf16.msra.mxu1 %v23475_v37 }
0x3189   :  { %19866 = vmatmul.mubr.msk.f32.vlgmr.msra.gmra.mrb[110].mxu1 %vm193_vm2, %v22751_v51 }
0x318a   :  { %19879 = vmatprep.mubr.msk.f32.mxu1 %vm193_vm2, %v22510_v40 }
0x3238   :  { %v19797_v43 = vpop.f32.mrb[108].mxu1 }
0x3239   :  { %v13325_v58 = vmul.f32 2.0, %v19797_v43  ;;  %v13315_v61 = vpop.f32.mrb[109].mxu1 }
0x323a   :  { %v13324_v1 = vmul.f32 2.0, %v13315_v61 }
0x323b   :  { %v13327_v50 = vsub.f32 %v13325_v58, %v22890_v19  ;;  %v23479_v58 = vld [vmem:[#allocation23_spill] sm:$0xff] }
0x323c   :  { %v13326_v48 = vsub.f32 %v13324_v1, %v22892_v10 }
0x323e   :  { %19858 = vmatprep.mubr.msk.f32.mxu0 %vm193_vm2, %v13326_v48 }
0x323f   :  { %19859 = vmatmul.mubr.msk.f32.vlgmr.msra.gmra.mrb[110].mxu0 %vm193_vm2, %v13327_v50 }
0x3240   :  { %19872 = vmatprep.mubr.msk.f32.mxu0 %vm193_vm2, %v22510_v40 }
0x325c   :  { %v19867_v63 = vpop.f32.mrb[110].mxu1 }
0x325d   :  { %v14109_v24 = vpop.f32.mrb[111].mxu1 }
0x3312   :  { %v22962_v16 = vpop.f32.mrb[110].mxu0 }
0x3313   :  { %v14121_v51 = vadd.f32 %v19867_v63, %v22962_v16  ;;  %v22965_v27 = vpop.f32.mrb[111].mxu0 }
0x3314   :  { %v14120_v54 = vadd.f32 %v14109_v24, %v22965_v27 }
0x3315   :  { %v14123_v47 = vadd.f32 %v23476_v13, %v14121_v51 }
0x3316   :  { %v14122_v8 = vadd.f32 %v23476_v13, %v14120_v54 }
0x3317   :  { %v17801_v23 = vmul.f32 -1.442695, %v14123_v47  ;;  %v23480_v47 = vld [vmem:[#allocation21_spill] sm:$0xff] }
0x3318   :  { %v17800_v34 = vmul.f32 -1.442695, %v14122_v8  ;;  %v23481_v8 = vld [vmem:[#allocation22_spill] sm:$0xff] }
0x3319   :  { %21150 = vpow2.f32 %v17801_v23 }
0x331a   :  { %21152 = vpow2.f32 %v17800_v34 }
0x3323   :  { %v21151_v21 = vpop.eup %21150 }
0x3324   :  { %v21153_v40 = vpop.eup %21152  ;;  %v14131_v19 = vadd.f32 1.0, %v21151_v21 }
0x3325   :  { %v14130_v10 = vadd.f32 1.0, %v21153_v40 }
0x3326   :  { %21154 = vrcp.f32 %v14131_v19 }
0x3327   :  { %21156 = vrcp.f32 %v14130_v10 }
0x3330   :  { %v22970_v5 = vpop.eup %21154 }
0x3331   :  { %v22972_v3 = vpop.eup %21156  ;;  %v14137_v41 = vmul.f32 %v22970_v5, %v22642_v7  ;;  %v23477_v7 = vld [vmem:[#allocation19_spill] sm:$0xff] }
0x3332   :  { %v14136_v45 = vmul.f32 %v22972_v3, %v22644_v25  ;;  %v23478_v25 = vld [vmem:[#allocation20_spill] sm:$0xff] }
0x3334   :  { %v20786_v30 = vpack.c.bf16 %v14137_v41, %v14136_v45 }
0x3336   :  { %20787 = vmatprep.subr.bf16.mxu0 %v20786_v30 }
0x3337   :  { %20789 = vmatpush3.bf16.msra.mxu0 %v20786_v30 }
0x333a   :  { %19873 = vmatmul.mubr.msk.f32.vlgmr.msra.gmra.mrb[112].mxu0 %vm193_vm2, %v22544_v26 }
0x333b   :  { %19886 = vmatprep.mubr.msk.f32.mxu0 %vm193_vm2, %v22551_v4 }
0x340d   :  { %v19874_v33 = vpop.f32.mrb[112].mxu0 }
0x340e   :  { %v14204_v37 = vpop.f32.mrb[113].mxu0 }
0x340f   :  { %v20790_v43 = vpack.c.bf16 %v19874_v33, %v14204_v37 }
0x3411   :  { %20791 = vmatprep.subr.bf16.mxu1 %v20790_v43  ;;  %20795 = vmatprep.subr.bf16.mxu0 %v20790_v43 }
0x3412   :  { %20793 = vmatpush3.bf16.msra.mxu1 %v20790_v43  ;;  %20797 = vmatpush3.bf16.msra.mxu0 %v20790_v43 }
0x3413   :  { %20803 = vmatprep.subr.bf16.mxu0 %v23477_v7 }
0x3415   :  { %19880 = vmatmul.mubr.msk.f32.vlgmr.msra.gmra.mrb[112].mxu1 %vm193_vm2, %v22544_v26  ;;  %19887 = vmatmul.mubr.msk.f32.vlgmr.msra.gmra.mrb[114].mxu0 %vm193_vm2, %v22561_v29 }
0x3416   :  { %20805 = vmatpush3.bf16.msra.mxu0 %v23477_v7  ;;  %19900 = vmatprep.mubr.msk.f32.mxu0 %vm193_vm2, %v14136_v45 }
0x3417   :  { %20811 = vmatprep.subr.bf16.mxu0 %v23478_v25  ;;  %19893 = vmatprep.mubr.msk.f32.mxu1 %vm193_vm2, %v22551_v4 }
0x3419   :  { %19901 = vmatmul.mubr.msk.f32.vlgmr.msra.gmra.mrb[116].mxu0 %vm193_vm2, %v14137_v41 }
0x341a   :  { %20813 = vmatpush3.bf16.msra.mxu0 %v23478_v25 }
0x341b   :  { %20819 = vmatprep.subr.bf16.mxu0 %v23479_v58 }
0x34e8   :  { %v19881_v61 = vpop.f32.mrb[112].mxu1  ;;  %v19888_v26 = vpop.f32.mrb[114].mxu0 }
0x34e9   :  { %v14289_v1 = vmul.f32 2.0, %v19881_v61  ;;  %v14279_v50 = vpop.f32.mrb[113].mxu1  ;;  %v14358_v48 = vpop.f32.mrb[115].mxu0 }
0x34ea   :  { %v14288_v63 = vmul.f32 2.0, %v14279_v50  ;;  %v20798_v24 = vpack.c.bf16 %v19888_v26, %v14358_v48  ;;  %v14447_v50 = vadd.f32 %v22962_v16, %v21726_v2 }
0x34eb   :  { %v14291_v13 = vsub.f32 %v14289_v1, %v14137_v41 }
0x34ec   :  { %v14290_v51 = vsub.f32 %v14288_v63, %v14136_v45  ;;  %20799 = vmatprep.subr.bf16.mxu1 %v20798_v24  ;;  %v19902_v54 = vpop.f32.mrb[116].mxu0 }
0x34ed   :  { %14533 = vrot.lane.b32.xlu1 %v19902_v54, %s21303_s28  ;;  %20801 = vmatpush3.bf16.msra.mxu1 %v20798_v24  ;;  %v14520_v4 = vpop.f32.mrb[117].mxu0 }
0x34ee   :  { %14531 = vrot.lane.b32.xlu0 %v14520_v4, %s21303_s28  ;;  %19914 = vmatprep.mubr.msk.f32.mxu0 %vm193_vm2, %v14290_v51 }
0x34ef   :  { %19915 = vmatmul.mubr.msk.f32.vlgmr.msra.gmra.mrb[118].mxu0 %vm193_vm2, %v14291_v13  ;;  %20807 = vmatprep.subr.bf16.mxu1 %v23480_v47 }
0x34f0   :  { %19894 = vmatmul.mubr.msk.f32.vlgmr.msra.gmra.mrb[114].mxu1 %vm193_vm2, %v22561_v29  ;;  %20821 = vmatpush3.bf16.msra.mxu0 %v23479_v58  ;;  %v23013_v29 = vld [vmem:[%s23345_s4] sm:$0xff] }
0x34f1   :  { %20809 = vmatpush3.bf16.msra.mxu1 %v23480_v47  ;;  %19907 = vmatprep.mubr.msk.f32.mxu1 %vm193_vm2, %v14204_v37 }
0x34f2   :  { %20815 = vmatprep.subr.bf16.mxu1 %v23481_v8 }
0x34f4   :  { %19908 = vmatmul.mubr.msk.f32.vlgmr.msra.gmra.mrb[116].mxu1 %vm193_vm2, %v19874_v33 }
0x34f5   :  { %20817 = vmatpush3.bf16.msra.mxu1 %v23481_v8  ;;  %19921 = vmatprep.mubr.msk.f32.mxu1 %vm193_vm2, %v14358_v48  ;;  %v14446_v48 = vadd.f32 %v22965_v27, %v21726_v2  ;;  %v14908_v27 = vsub.f32 1.0, %v22970_v5 }
0x34f8   :  { %19922 = vmatmul.mubr.msk.f32.vlgmr.msra.gmra.mrb[118].mxu1 %vm193_vm2, %v19888_v26 }
0x34f9   :  { %19935 = vmatprep.mubr.msk.f32.mxu1 %vm193_vm2, %v23013_v29 }
0x355f   :  { %v14534_v58 = vpop.permute.xlu1 %14533 }
0x3560   :  { %v14532_v61 = vpop.permute.xlu0 %14531  ;;  %v14538_v24 = vadd.f32 %v14534_v58, %v14447_v50 }
0x3561   :  { %v14537_v54 = vadd.f32 %v14532_v61, %v14446_v48 }
0x35c2   :  { %v19916_v23 = vpop.f32.mrb[118].mxu0 }
0x35c3   :  { %v19895_v34 = vpop.f32.mrb[114].mxu1  ;;  %14715 = vrot.lane.b32.xlu1 %v19916_v23, %s21303_s28  ;;  %v14702_v21 = vpop.f32.mrb[119].mxu0 }
0x35c4   :  { %v14443_v40 = vmul.f32 2.0, %v19895_v34  ;;  %v14433_v19 = vpop.f32.mrb[115].mxu1  ;;  %14713 = vrot.lane.b32.xlu0 %v14702_v21, %s21303_s28 }
0x35c5   :  { %v14442_v10 = vmul.f32 2.0, %v14433_v19 }
0x35c6   :  { %v14445_v41 = vsub.f32 %v14443_v40, %v19874_v33 }
0x35c7   :  { %v14444_v45 = vsub.f32 %v14442_v10, %v14204_v37  ;;  %v19909_v30 = vpop.f32.mrb[116].mxu1 }
0x35c8   :  { %v14611_v43 = vpop.f32.mrb[117].mxu1  ;;  %14624 = vrot.lane.b32.xlu1 %v19909_v30, %s21303_s28 }
0x35c9   :  { %19928 = vmatprep.mubr.msk.f32.mxu0 %vm193_vm2, %v14444_v45  ;;  %14622 = vrot.lane.b32.xlu0 %v14611_v43, %s21303_s28  ;;  %v14907_v43 = vsub.f32 1.0, %v22972_v3 }
0x35ca   :  { %19929 = vmatmul.mubr.msk.f32.vlgmr.msra.gmra.mrb[120].mxu0 %vm193_vm2, %v14445_v41 }
0x35cb   :  { %v19923_v7 = vpop.f32.mrb[118].mxu1  ;;  %19942 = vmatprep.mubr.msk.f32.mxu0 %vm193_vm2, %v23013_v29 }
0x35cc   :  { %v14793_v25 = vpop.f32.mrb[119].mxu1  ;;  %14806 = vrot.lane.b32.xlu1 %v19923_v7, %s21303_s28  ;;  %v14906_v7 = vmul.f32 %v22970_v5, %v22614_v12 }
0x35cd   :  { %14804 = vrot.lane.b32.xlu0 %v14793_v25, %s21303_s28 }
0x3635   :  { %v14716_v26 = vpop.permute.xlu1 %14715 }
0x3636   :  { %v14714_v1 = vpop.permute.xlu0 %14713 }
0x363a   :  { %v14625_v63 = vpop.permute.xlu1 %14624 }
0x363b   :  { %v14623_v51 = vpop.permute.xlu0 %14622  ;;  %v14629_v13 = vadd.f32 %v14625_v63, %v14538_v24 }
0x363c   :  { %v14628_v4 = vadd.f32 %v14623_v51, %v14537_v54 }
0x363d   :  { %v14720_v47 = vadd.f32 %v14716_v26, %v14629_v13 }
0x363e   :  { %v14807_v8 = vpop.permute.xlu1 %14806  ;;  %v14719_v23 = vadd.f32 %v14714_v1, %v14628_v4 }
0x363f   :  { %v14805_v34 = vpop.permute.xlu0 %14804  ;;  %v14811_v21 = vadd.f32 %v14807_v8, %v14720_v47 }
0x3640   :  { %v14810_v40 = vadd.f32 %v14805_v34, %v14719_v23 }
0x369d   :  { %v19930_v33 = vpop.f32.mrb[120].mxu0 }
0x369e   :  { %14897 = vrot.lane.b32.xlu1 %v19930_v33, %s21303_s28  ;;  %v14884_v37 = vpop.f32.mrb[121].mxu0 }
0x369f   :  { %14895 = vrot.lane.b32.xlu0 %v14884_v37, %s21303_s28  ;;  %v14905_v37 = vmul.f32 %v22972_v3, %v22616_v53 }
0x3710   :  { %v14898_v19 = vpop.permute.xlu1 %14897 }
0x3711   :  { %v14902_v10 = vadd.f32 %v14898_v19, %v14811_v21  ;;  %v14896_v41 = vpop.permute.xlu0 %14895  ;;  %v12923_v21 = vsub.f32 1.0, %v22807_v11  ;;  %v12922_v19 = vsub.f32 1.0, %v22809_v15 }
0x3712   :  { %v14901_v45 = vadd.f32 %v14896_v41, %v14810_v40 }
0x3713   :  { %21158 = vtanh.f32 %v14902_v10  ;;  %v12921_v10 = vmul.f32 %v22807_v11, %v22664_v38 }
0x3714   :  { %21160 = vtanh.f32 %v14901_v45 }
0x371d   :  { %v21159_v16 = vpop.eup %21158 }
0x371e   :  { %v21161_v2 = vpop.eup %21160  ;;  %14913 = vrot.lane.b32.xlu1 %v21159_v16, %s21304_s29  ;;  %v12920_v16 = vmul.f32 %v22809_v15, %v22666_v6  ;;  %v23114_v6 = vld [vmem:[%s23345_s4 + $0x18] sm:$0xff] }
0x371f   :  { %14911 = vrot.lane.b32.xlu0 %v21161_v2, %s21304_s29 }
0x3790   :  { %v14914_v30 = vpop.permute.xlu1 %14913 }
0x3791   :  { %v14918_v25 = vmul.f32 %v14914_v30, %v14908_v27  ;;  %v14912_v33 = vpop.permute.xlu0 %14911 }
0x3792   :  { %v14917_v58 = vmul.f32 %v14912_v33, %v14907_v43 }
0x3793   :  { %v14920_v61 = vadd.f32 %v14918_v25, %v14906_v7 }
0x3794   :  { %v14919_v26 = vadd.f32 %v14917_v58, %v14905_v37 }
0x3795   :  { %14925 = vrot.lane.b32.xlu1 %v14920_v61, %s21304_s29 }
0x3796   :  { %14923 = vrot.lane.b32.xlu0 %v14919_v26, %s21304_s29 }
0x3799   :  { %12548 = vrot.lane.b32.xlu1 %v22832_v35, %s21303_s28 }
0x379a   :  { %12546 = vrot.lane.b32.xlu0 %v22834_v42, %s21303_s28 }
0x379d   :  { %12639 = vrot.lane.b32.xlu1 %v22867_v46, %s21303_s28  ;;  %v23072_v46 = vld [vmem:[%s23345_s4 + $0x8] sm:$0xff] }
0x379e   :  { %12637 = vrot.lane.b32.xlu0 %v22869_v44, %s21303_s28 }
0x37a1   :  { %12730 = vrot.lane.b32.xlu1 %v22863_v22, %s21303_s28 }
0x37a2   :  { %12728 = vrot.lane.b32.xlu0 %v22865_v60, %s21303_s28 }
0x37a5   :  { %12821 = vrot.lane.b32.xlu1 %v22873_v14, %s21303_s28  ;;  %v23079_v14 = vld [vmem:[%s23345_s4 + $0x10] sm:$0xff] }
0x37a6   :  { %12819 = vrot.lane.b32.xlu0 %v22877_v9, %s21303_s28  ;;  %v12462_v9 = vadd.f32 %v22788_v17, %v22202_v0 }
0x37a9   :  { %12912 = vrot.lane.b32.xlu1 %v22886_v62, %s21303_s28  ;;  %v12461_v62 = vadd.f32 %v22790_v59, %v22202_v0 }
0x37aa   :  { %12910 = vrot.lane.b32.xlu0 %v22888_v49, %s21303_s28 }
0x3807   :  { %v23063_v12 = vpop.permute.xlu1 %14925 }
0x3808   :  { %v23065_v53 = vpop.permute.xlu0 %14923 }
0x3809   :  { %v20822_v35 = vpack.c.bf16 %v23063_v12, %v23065_v53 }
0x380b   :  { %v12549_v42 = vpop.permute.xlu1 %12548  ;;  %20823 = vmatprep.subr.bf16.mxu1 %v20822_v35 }
0x380c   :  { %20825 = vmatpush3.bf16.msra.mxu1 %v20822_v35  ;;  %v12547_v22 = vpop.permute.xlu0 %12546  ;;  %v12553_v5 = vadd.f32 %v12549_v42, %v12462_v9 }
0x380d   :  { %v12552_v1 = vadd.f32 %v12547_v22, %v12461_v62 }
0x380f   :  { %v12640_v60 = vpop.permute.xlu1 %12639  ;;  %19936 = vmatmul.mubr.msk.f32.vlgmr.msra.gmra.mrb[120].mxu1 %vm193_vm2, %v23072_v46 }
0x3810   :  { %v12638_v44 = vpop.permute.xlu0 %12637  ;;  %19949 = vmatprep.mubr.msk.f32.mxu1 %vm193_vm2, %v23079_v14  ;;  %v12644_v50 = vadd.f32 %v12640_v60, %v12553_v5 }
0x3811   :  { %v12643_v48 = vadd.f32 %v12638_v44, %v12552_v1 }
0x3813   :  { %v12731_v49 = vpop.permute.xlu1 %12730 }
0x3814   :  { %v12729_v3 = vpop.permute.xlu0 %12728  ;;  %v12735_v24 = vadd.f32 %v12731_v49, %v12644_v50 }
0x3815   :  { %v12734_v54 = vadd.f32 %v12729_v3, %v12643_v48 }
0x3817   :  { %v12822_v63 = vpop.permute.xlu1 %12821 }
0x3818   :  { %v12820_v51 = vpop.permute.xlu0 %12819  ;;  %v12826_v13 = vadd.f32 %v12822_v63, %v12735_v24 }
0x3819   :  { %v12825_v4 = vadd.f32 %v12820_v51, %v12734_v54 }
0x381b   :  { %v12913_v47 = vpop.permute.xlu1 %12912 }
0x381c   :  { %v12917_v8 = vadd.f32 %v12913_v47, %v12826_v13  ;;  %v12911_v23 = vpop.permute.xlu0 %12910 }
0x381d   :  { %v12916_v34 = vadd.f32 %v12911_v23, %v12825_v4 }
0x381e   :  { %21162 = vtanh.f32 %v12917_v8 }
0x381f   :  { %21164 = vtanh.f32 %v12916_v34 }
0x3828   :  { %v21163_v17 = vpop.eup %21162 }
0x3829   :  { %v21165_v59 = vpop.eup %21164  ;;  %12928 = vrot.lane.b32.xlu1 %v21163_v17, %s21304_s29 }
0x382a   :  { %12926 = vrot.lane.b32.xlu0 %v21165_v59, %s21304_s29 }
0x389b   :  { %v12929_v40 = vpop.permute.xlu1 %12928 }
0x389c   :  { %v12933_v41 = vmul.f32 %v12929_v40, %v12923_v21  ;;  %v12927_v45 = vpop.permute.xlu0 %12926 }
0x389d   :  { %v12932_v2 = vmul.f32 %v12927_v45, %v12922_v19 }
0x389e   :  { %v23095_v27 = vadd.f32 %v12933_v41, %v12921_v10 }
0x389f   :  { %v23097_v30 = vadd.f32 %v12932_v2, %v12920_v16 }
0x38a0   :  { %15241 = vrot.lane.b32.xlu1 %v23095_v27, %s21304_s29 }
0x38a1   :  { %15239 = vrot.lane.b32.xlu0 %v23097_v30, %s21304_s29 }
0x38e2   :  { %v23103_v43 = vpop.f32.mrb[120].mxu1 }
0x38e3   :  { %v23105_v7 = vpop.f32.mrb[121].mxu1 }
0x38e4   :  { %v20826_v38 = vpack.c.bf16 %v23103_v43, %v23105_v7 }
0x38e6   :  { %20827 = vmatprep.subr.bf16.mxu0 %v20826_v38  ;;  %20831 = vmatprep.subr.bf16.mxu1 %v20826_v38 }
0x38e7   :  { %20829 = vmatpush3.bf16.msra.mxu0 %v20826_v38  ;;  %20833 = vmatpush3.bf16.msra.mxu1 %v20826_v38 }
0x38ea   :  { %19943 = vmatmul.mubr.msk.f32.vlgmr.msra.gmra.mrb[122].mxu0 %vm193_vm2, %v23072_v46  ;;  %19950 = vmatmul.mubr.msk.f32.vlgmr.msra.gmra.mrb[122].mxu1 %vm193_vm2, %v23114_v6 }
0x38eb   :  { %19963 = vmatprep.mubr.msk.f32.mxu1 %vm193_vm2, %v23013_v29  ;;  %19956 = vmatprep.mubr.msk.f32.mxu0 %vm193_vm2, %v23079_v14 }
0x3912   :  { %v23122_v11 = vpop.permute.xlu1 %15241 }
0x3913   :  { %v23124_v15 = vpop.permute.xlu0 %15239 }
0x3914   :  { %v20838_v25 = vpack.c.bf16 %v23122_v11, %v23124_v15 }
0x3916   :  { %20839 = vmatprep.subr.bf16.mxu1 %v20838_v25 }
0x3917   :  { %20841 = vmatpush3.bf16.msra.mxu1 %v20838_v25  ;;  %v23484_v25 = vld [vmem:[#allocation36_spill] sm:$0xff] }
0x391a   :  { %19964 = vmatmul.mubr.msk.f32.vlgmr.msra.gmra.mrb[124].mxu1 %vm193_vm2, %v23072_v46 }
0x391b   :  { %19977 = vmatprep.mubr.msk.f32.mxu1 %vm193_vm2, %v23079_v14 }
0x39bd   :  { %v19944_v33 = vpop.f32.mrb[122].mxu0  ;;  %v19951_v37 = vpop.f32.mrb[122].mxu1 }
0x39be   :  { %v15070_v58 = vpop.f32.mrb[123].mxu0  ;;  %v15149_v61 = vpop.f32.mrb[123].mxu1  ;;  %v15080_v44 = vmul.f32 2.0, %v19944_v33 }
0x39bf   :  { %v20834_v26 = vpack.c.bf16 %v19951_v37, %v15149_v61  ;;  %v15079_v60 = vmul.f32 2.0, %v15070_v58 }
0x39c0   :  { %v15082_v9 = vsub.f32 %v15080_v44, %v23063_v12  ;;  %v23486_v44 = vld [vmem:[#allocation35_spill] sm:$0xff] }
0x39c1   :  { %20835 = vmatprep.subr.bf16.mxu0 %v20834_v26 }
0x39c2   :  { %20837 = vmatpush3.bf16.msra.mxu0 %v20834_v26 }
0x39c5   :  { %19957 = vmatmul.mubr.msk.f32.vlgmr.msra.gmra.mrb[124].mxu0 %vm193_vm2, %v23114_v6 }
0x39c6   :  { %19970 = vmatprep.mubr.msk.f32.mxu0 %vm193_vm2, %v23013_v29 }
0x39ed   :  { %v23136_v35 = vpop.f32.mrb[124].mxu1 }
0x39ee   :  { %v23138_v42 = vpop.f32.mrb[125].mxu1 }
0x39ef   :  { %v20842_v22 = vpack.c.bf16 %v23136_v35, %v23138_v42 }
0x39f1   :  { %20843 = vmatprep.subr.bf16.mxu0 %v20842_v22  ;;  %20847 = vmatprep.subr.bf16.mxu1 %v20842_v22 }
0x39f2   :  { %20845 = vmatpush3.bf16.msra.mxu0 %v20842_v22  ;;  %20849 = vmatpush3.bf16.msra.mxu1 %v20842_v22 }
0x39f3   :  { %20855 = vmatprep.subr.bf16.mxu1 %v21762_v28 }
0x39f5   :  { %19971 = vmatmul.mubr.msk.f32.vlgmr.msra.gmra.mrb[126].mxu0 %vm193_vm2, %v23072_v46  ;;  %19978 = vmatmul.mubr.msk.f32.vlgmr.msra.gmra.mrb[126].mxu1 %vm193_vm2, %v23114_v6 }
0x39f6   :  { %20857 = vmatpush3.bf16.msra.mxu1 %v21762_v28  ;;  %19991 = vmatprep.mubr.msk.f32.mxu1 %vm193_vm2, %v23105_v7  ;;  %v15081_v28 = vsub.f32 %v15079_v60, %v23065_v53 }
0x39f7   :  { %20859 = vmatprep.subr.bf16.mxu1 %v21765_v32  ;;  %19984 = vmatprep.mubr.msk.f32.mxu0 %vm193_vm2, %v23079_v14 }
0x39f9   :  { %19992 = vmatmul.mubr.msk.f32.vlgmr.msra.gmra.mrb[128].mxu1 %vm193_vm2, %v23103_v43 }
0x39fa   :  { %19998 = vmatprep.mubr.msk.f32.mxu1 %vm193_vm2, %v23065_v53  ;;  %20861 = vmatpush3.bf16.msra.mxu1 %v21765_v32 }
0x39fb   :  { %20871 = vmatprep.subr.bf16.mxu1 %v21784_v39 }
0x3a01   :  { %19999 = vmatmul.mubr.msk.f32.vlgmr.msra.gmra.mrb[128].mxu1 %vm193_vm2, %v23063_v12 }
0x3a02   :  { %20019 = vmatprep.mubr.msk.f32.mxu1 %vm193_vm2, %v15081_v28  ;;  %20873 = vmatpush3.bf16.msra.mxu1 %v21784_v39  ;;  %v23485_v28 = vld [vmem:[#allocation34_spill] sm:$0xff] }
0x3a03   :  { %20879 = vmatprep.subr.bf16.mxu1 %v23445_v18 }
0x3a09   :  { %20020 = vmatmul.mubr.msk.f32.vlgmr.msra.gmra.mrb[128].mxu1 %vm193_vm2, %v15082_v9 }
0x3a0a   :  { %20033 = vmatprep.mubr.msk.f32.mxu1 %vm193_vm2, %v15149_v61  ;;  %20881 = vmatpush3.bf16.msra.mxu1 %v23445_v18 }
0x3a0b   :  { %20887 = vmatprep.subr.bf16.mxu1 %v23446_v20 }
0x3a11   :  { %20034 = vmatmul.mubr.msk.f32.vlgmr.msra.gmra.mrb[128].mxu1 %vm193_vm2, %v19951_v37 }
0x3a12   :  { %20889 = vmatpush3.bf16.msra.mxu1 %v23446_v20 }
0x3a98   :  { %v19958_v32 = vpop.f32.mrb[124].mxu0 }
0x3a99   :  { %v15234_v53 = vmul.f32 2.0, %v19958_v32  ;;  %v15224_v39 = vpop.f32.mrb[125].mxu0 }
0x3a9a   :  { %v15233_v62 = vmul.f32 2.0, %v15224_v39 }
0x3a9b   :  { %v15236_v49 = vsub.f32 %v15234_v53, %v23103_v43 }
0x3a9c   :  { %v15235_v12 = vsub.f32 %v15233_v62, %v23105_v7 }
0x3a9e   :  { %20047 = vmatprep.mubr.msk.f32.mxu1 %vm193_vm2, %v15235_v12 }
0x3a9f   :  { %20048 = vmatmul.mubr.msk.f32.vlgmr.msra.gmra.mrb[128].mxu1 %vm193_vm2, %v15236_v49 }
0x3aa0   :  { %20061 = vmatprep.mubr.msk.f32.mxu1 %vm193_vm2, %v23013_v29 }
0x3ac8   :  { %v19972_v18 = vpop.f32.mrb[126].mxu0  ;;  %v19979_v5 = vpop.f32.mrb[126].mxu1 }
0x3ac9   :  { %v15386_v3 = vpop.f32.mrb[127].mxu0  ;;  %v15465_v1 = vpop.f32.mrb[127].mxu1 }
0x3aca   :  { %v20850_v20 = vpack.c.bf16 %v19979_v5, %v15465_v1  ;;  %v15395_v50 = vmul.f32 2.0, %v15386_v3 }
0x3acc   :  { %20851 = vmatprep.subr.bf16.mxu0 %v20850_v20  ;;  %v15397_v48 = vsub.f32 %v15395_v50, %v23124_v15 }
0x3acd   :  { %20853 = vmatpush3.bf16.msra.mxu0 %v20850_v20 }
0x3ace   :  { %20863 = vmatprep.subr.bf16.mxu0 %v23447_v57 }
0x3ad0   :  { %19985 = vmatmul.mubr.msk.f32.vlgmr.msra.gmra.mrb[128].mxu0 %vm193_vm2, %v23114_v6 }
0x3ad1   :  { %20865 = vmatpush3.bf16.msra.mxu0 %v23447_v57  ;;  %20005 = vmatprep.mubr.msk.f32.mxu0 %vm193_vm2, %v23138_v42  ;;  %v15396_v57 = vmul.f32 2.0, %v19972_v18 }
0x3ad2   :  { %20867 = vmatprep.subr.bf16.mxu0 %v23448_v36 }
0x3ad3   :  { %v15398_v63 = vsub.f32 %v15396_v57, %v23122_v11 }
0x3ad4   :  { %20006 = vmatmul.mubr.msk.f32.vlgmr.msra.gmra.mrb[130].mxu0 %vm193_vm2, %v23136_v35 }
0x3ad5   :  { %20012 = vmatprep.mubr.msk.f32.mxu0 %vm193_vm2, %v23124_v15  ;;  %20869 = vmatpush3.bf16.msra.mxu0 %v23448_v36 }
0x3ad6   :  { %20875 = vmatprep.subr.bf16.mxu0 %v23449_v52 }
0x3adc   :  { %20013 = vmatmul.mubr.msk.f32.vlgmr.msra.gmra.mrb[130].mxu0 %vm193_vm2, %v23122_v11 }
0x3add   :  { %20026 = vmatprep.mubr.msk.f32.mxu0 %vm193_vm2, %v15397_v48  ;;  %20877 = vmatpush3.bf16.msra.mxu0 %v23449_v52 }
0x3ade   :  { %20883 = vmatprep.subr.bf16.mxu0 %v23464_v56 }
0x3ae4   :  { %20027 = vmatmul.mubr.msk.f32.vlgmr.msra.gmra.mrb[130].mxu0 %vm193_vm2, %v15398_v63 }
0x3ae5   :  { %20040 = vmatprep.mubr.msk.f32.mxu0 %vm193_vm2, %v15465_v1  ;;  %20885 = vmatpush3.bf16.msra.mxu0 %v23464_v56 }
0x3ae6   :  { %20891 = vmatprep.subr.bf16.mxu0 %v23465_v31 }
0x3aec   :  { %20041 = vmatmul.mubr.msk.f32.vlgmr.msra.gmra.mrb[130].mxu0 %vm193_vm2, %v19979_v5 }
0x3aed   :  { %20893 = vmatpush3.bf16.msra.mxu0 %v23465_v31 }
0x3b72   :  { %v23204_v36 = vpop.f32.mrb[128].mxu1 }
0x3b73   :  { %v23206_v52 = vpop.f32.mrb[129].mxu1 }
0x3ba3   :  { %v19986_v24 = vpop.f32.mrb[128].mxu0 }
0x3ba4   :  { %v15550_v51 = vmul.f32 2.0, %v19986_v24  ;;  %v15540_v54 = vpop.f32.mrb[129].mxu0 }
0x3ba5   :  { %v15549_v13 = vmul.f32 2.0, %v15540_v54  ;;  %v16697_v54 = vadd.f32 %v23206_v52, %v22202_v0 }
0x3ba6   :  { %v15552_v4 = vsub.f32 %v15550_v51, %v23136_v35  ;;  %v16698_v51 = vadd.f32 %v23204_v36, %v22202_v0  ;;  %v17302_v0 = vld [vmem:[%s23353_s12] sm:$0xff] }
0x3ba7   :  { %v15551_v47 = vsub.f32 %v15549_v13, %v23138_v42 }
0x3ba9   :  { %20054 = vmatprep.mubr.msk.f32.mxu0 %vm193_vm2, %v15551_v47 }
0x3baa   :  { %20055 = vmatmul.mubr.msk.f32.vlgmr.msra.gmra.mrb[130].mxu0 %vm193_vm2, %v15552_v4 }
0x3bab   :  { %20068 = vmatprep.mubr.msk.f32.mxu0 %vm193_vm2, %v23013_v29 }
0x3c7d   :  { %v20056_v56 = vpop.f32.mrb[130].mxu0 }
0x3c7e   :  { %v16372_v31 = vadd.f32 %v20056_v56, %v23204_v36  ;;  %v16360_v8 = vpop.f32.mrb[131].mxu0  ;;  %v17303_v36 = vld [vmem:[%s23353_s12 + $0x8] sm:$0xff] }
0x3c7f   :  { %v16371_v23 = vadd.f32 %v16360_v8, %v23206_v52  ;;  %v20936_v52 = vpack.c.bf16 %v17303_v36, %v17302_v0 }
0x3c80   :  { %v16374_v34 = vadd.f32 %v22803_v55, %v16372_v31 }
0x3c81   :  { %v16373_v17 = vadd.f32 %v22803_v55, %v16371_v23 }
0x3c82   :  { %v17857_v59 = vmul.f32 -1.442695, %v16374_v34 }
0x3c83   :  { %v17856_v21 = vmul.f32 -1.442695, %v16373_v17 }
0x3c84   :  { %21166 = vpow2.f32 %v17857_v59 }
0x3c85   :  { %21168 = vpow2.f32 %v17856_v21 }
0x3c8e   :  { %v21167_v40 = vpop.eup %21166 }
0x3c8f   :  { %v21169_v19 = vpop.eup %21168  ;;  %v16382_v10 = vadd.f32 1.0, %v21167_v40 }
0x3c90   :  { %v16381_v41 = vadd.f32 1.0, %v21169_v19 }
0x3c91   :  { %21170 = vrcp.f32 %v16382_v10 }
0x3c92   :  { %21172 = vrcp.f32 %v16381_v41 }
0x3c9b   :  { %v23218_v29 = vpop.eup %21170 }
0x3c9c   :  { %v23220_v45 = vpop.eup %21172  ;;  %v16388_v16 = vmul.f32 %v23218_v29, %v23122_v11  ;;  %v23482_v11 = vld [vmem:[#allocation32_spill] sm:$0xff] }
0x3c9d   :  { %v16387_v55 = vmul.f32 %v23220_v45, %v23124_v15  ;;  %v23483_v15 = vld [vmem:[#allocation33_spill] sm:$0xff] }
0x3c9f   :  { %v20894_v2 = vpack.c.bf16 %v16388_v16, %v16387_v55 }
0x3ca1   :  { %20895 = vmatprep.subr.bf16.mxu1 %v20894_v2 }
0x3ca2   :  { %20897 = vmatpush3.bf16.msra.mxu1 %v20894_v2 }
0x3ca5   :  { %20062 = vmatmul.mubr.msk.f32.vlgmr.msra.gmra.mrb[130].mxu1 %vm193_vm2, %v23072_v46 }
0x3ca6   :  { %20075 = vmatprep.mubr.msk.f32.mxu1 %vm193_vm2, %v23079_v14 }
0x3d78   :  { %v20063_v43 = vpop.f32.mrb[130].mxu1 }
0x3d79   :  { %v16455_v7 = vpop.f32.mrb[131].mxu1 }
0x3d7a   :  { %v20898_v38 = vpack.c.bf16 %v20063_v43, %v16455_v7 }
0x3d7c   :  { %20899 = vmatprep.subr.bf16.mxu0 %v20898_v38  ;;  %20903 = vmatprep.subr.bf16.mxu1 %v20898_v38 }
0x3d7d   :  { %20901 = vmatpush3.bf16.msra.mxu0 %v20898_v38  ;;  %20905 = vmatpush3.bf16.msra.mxu1 %v20898_v38  ;;  %v17158_v38 = vsub.f32 1.0, %v23220_v45 }
0x3d7e   :  { %20911 = vmatprep.subr.bf16.mxu1 %v23482_v11 }
0x3d80   :  { %20069 = vmatmul.mubr.msk.f32.vlgmr.msra.gmra.mrb[132].mxu0 %vm193_vm2, %v23072_v46  ;;  %20076 = vmatmul.mubr.msk.f32.vlgmr.msra.gmra.mrb[132].mxu1 %vm193_vm2, %v23114_v6 }
0x3d81   :  { %20913 = vmatpush3.bf16.msra.mxu1 %v23482_v11  ;;  %20089 = vmatprep.mubr.msk.f32.mxu1 %vm193_vm2, %v16387_v55  ;;  %v17157_v11 = vmul.f32 %v23218_v29, %v23095_v27  ;;  %v17880_v27 = vld [vmem:[%s23354_s13] ss:$0 sm:$0xff] }
0x3d82   :  { %20919 = vmatprep.subr.bf16.mxu1 %v23483_v15  ;;  %20082 = vmatprep.mubr.msk.f32.mxu0 %vm193_vm2, %v23079_v14 }
0x3d84   :  { %20090 = vmatmul.mubr.msk.f32.vlgmr.msra.gmra.mrb[134].mxu1 %vm193_vm2, %v16388_v16 }
0x3d85   :  { %20921 = vmatpush3.bf16.msra.mxu1 %v23483_v15 }
0x3d86   :  { %20927 = vmatprep.subr.bf16.mxu1 %v23484_v25 }
0x3e53   :  { %v20070_v33 = vpop.f32.mrb[132].mxu0  ;;  %v20077_v46 = vpop.f32.mrb[132].mxu1 }
0x3e54   :  { %v16540_v37 = vmul.f32 2.0, %v20070_v33  ;;  %v16530_v58 = vpop.f32.mrb[133].mxu0  ;;  %v16609_v61 = vpop.f32.mrb[133].mxu1  ;;  %v17156_v33 = vmul.f32 %v23220_v45, %v23097_v30 }
0x3e55   :  { %v16539_v26 = vmul.f32 2.0, %v16530_v58  ;;  %v20906_v35 = vpack.c.bf16 %v20077_v46, %v16609_v61 }
0x3e56   :  { %v16542_v60 = vsub.f32 %v16540_v37, %v16388_v16 }
0x3e57   :  { %v16541_v42 = vsub.f32 %v16539_v26, %v16387_v55  ;;  %20907 = vmatprep.subr.bf16.mxu0 %v20906_v35  ;;  %v20091_v22 = vpop.f32.mrb[134].mxu1 }
0x3e58   :  { %16784 = vrot.lane.b32.xlu1 %v20091_v22, %s21303_s28  ;;  %20909 = vmatpush3.bf16.msra.mxu0 %v20906_v35  ;;  %v16771_v14 = vpop.f32.mrb[135].mxu1  ;;  %v17386_v22 = vld [vmem:[%s23342_s1] sm:$0xff] }
0x3e59   :  { %16782 = vrot.lane.b32.xlu0 %v16771_v14, %s21303_s28  ;;  %20103 = vmatprep.mubr.msk.f32.mxu1 %vm193_vm2, %v16541_v42 }
0x3e5a   :  { %20104 = vmatmul.mubr.msk.f32.vlgmr.msra.gmra.mrb[136].mxu1 %vm193_vm2, %v16542_v60  ;;  %20915 = vmatprep.subr.bf16.mxu0 %v23485_v28 }
0x3e5b   :  { %20083 = vmatmul.mubr.msk.f32.vlgmr.msra.gmra.mrb[134].mxu0 %vm193_vm2, %v23114_v6  ;;  %20929 = vmatpush3.bf16.msra.mxu1 %v23484_v25 }
0x3e5c   :  { %20917 = vmatpush3.bf16.msra.mxu0 %v23485_v28  ;;  %20096 = vmatprep.mubr.msk.f32.mxu0 %vm193_vm2, %v16455_v7 }
0x3e5d   :  { %20923 = vmatprep.subr.bf16.mxu0 %v23486_v44  ;;  %20937 = vmatprep.subr.bf16.mxu1 %v20936_v52 }
0x3e5f   :  { %20097 = vmatmul.mubr.msk.f32.vlgmr.msra.gmra.mrb[136].mxu0 %vm193_vm2, %v20063_v43 }
0x3e60   :  { %20925 = vmatpush3.bf16.msra.mxu0 %v23486_v44  ;;  %20110 = vmatprep.mubr.msk.f32.mxu0 %vm193_vm2, %v16609_v61 }
0x3e63   :  { %20111 = vmatmul.mubr.msk.f32.vlgmr.msra.gmra.mrb[138].mxu0 %vm193_vm2, %v20077_v46 }
0x3eca   :  { %v16785_v48 = vpop.permute.xlu1 %16784 }
0x3ecb   :  { %v16783_v57 = vpop.permute.xlu0 %16782  ;;  %v16789_v4 = vadd.f32 %v16785_v48, %v16698_v51 }
0x3ecc   :  { %v16788_v56 = vadd.f32 %v16783_v57, %v16697_v54 }
0x3f2d   :  { %v20105_v9 = vpop.f32.mrb[136].mxu1 }
0x3f2e   :  { %v20084_v32 = vpop.f32.mrb[134].mxu0  ;;  %16966 = vrot.lane.b32.xlu1 %v20105_v9, %s21303_s28  ;;  %v16953_v6 = vpop.f32.mrb[137].mxu1 }
0x3f2f   :  { %v16694_v53 = vmul.f32 2.0, %v20084_v32  ;;  %v16684_v39 = vpop.f32.mrb[135].mxu0  ;;  %16964 = vrot.lane.b32.xlu0 %v16953_v6, %s21303_s28 }
0x3f30   :  { %v16693_v62 = vmul.f32 2.0, %v16684_v39 }
0x3f31   :  { %v16696_v49 = vsub.f32 %v16694_v53, %v20063_v43  ;;  %v17159_v43 = vsub.f32 1.0, %v23218_v29  ;;  %v17387_v29 = vld [vmem:[%s23342_s1 + $0x8] sm:$0xff] }
0x3f32   :  { %v16695_v12 = vsub.f32 %v16693_v62, %v16455_v7  ;;  %v20098_v18 = vpop.f32.mrb[136].mxu0 }
0x3f33   :  { %v16862_v5 = vpop.f32.mrb[137].mxu0  ;;  %16875 = vrot.lane.b32.xlu1 %v20098_v18, %s21303_s28 }
0x3f34   :  { %20117 = vmatprep.mubr.msk.f32.mxu1 %vm193_vm2, %v16695_v12  ;;  %16873 = vrot.lane.b32.xlu0 %v16862_v5, %s21303_s28 }
0x3f35   :  { %20118 = vmatmul.mubr.msk.f32.vlgmr.msra.gmra.mrb[138].mxu1 %vm193_vm2, %v16696_v49 }
0x3f36   :  { %v20112_v3 = vpop.f32.mrb[138].mxu0  ;;  %20939 = vmatpush3.bf16.msra.mxu1 %v20936_v52 }
0x3f37   :  { %v17044_v1 = vpop.f32.mrb[139].mxu0  ;;  %17057 = vrot.lane.b32.xlu1 %v20112_v3, %s21303_s28 }
0x3f38   :  { %17055 = vrot.lane.b32.xlu0 %v17044_v1, %s21303_s28 }
0x3fa0   :  { %v16967_v63 = vpop.permute.xlu1 %16966 }
0x3fa1   :  { %v16965_v24 = vpop.permute.xlu0 %16964 }
0x3fa5   :  { %v16876_v13 = vpop.permute.xlu1 %16875 }
0x3fa6   :  { %v16874_v47 = vpop.permute.xlu0 %16873  ;;  %v16880_v31 = vadd.f32 %v16876_v13, %v16789_v4 }
0x3fa7   :  { %v16879_v8 = vadd.f32 %v16874_v47, %v16788_v56 }
0x3fa8   :  { %v16971_v23 = vadd.f32 %v16967_v63, %v16880_v31  ;;  %v17258_v63 = vld [vmem:[%s23343_s2 + $0x8] sm:$0xff] }
0x3fa9   :  { %v17058_v34 = vpop.permute.xlu1 %17057  ;;  %v16970_v17 = vadd.f32 %v16965_v24, %v16879_v8  ;;  %v17257_v24 = vld [vmem:[%s23343_s2] sm:$0xff] }
0x3faa   :  { %v17056_v59 = vpop.permute.xlu0 %17055  ;;  %v17062_v21 = vadd.f32 %v17058_v34, %v16971_v23 }
0x3fab   :  { %v17061_v40 = vadd.f32 %v17056_v59, %v16970_v17  ;;  %v17260_v17 = vld [vmem:[%s23344_s3 + $0x8] sm:$0xff] }
0x4008   :  { %v20119_v20 = vpop.f32.mrb[138].mxu1 }
0x4009   :  { %17148 = vrot.lane.b32.xlu1 %v20119_v20, %s21303_s28  ;;  %v17135_v50 = vpop.f32.mrb[139].mxu1 }
0x400a   :  { %17146 = vrot.lane.b32.xlu0 %v17135_v50, %s21303_s28 }
0x407b   :  { %v17149_v19 = vpop.permute.xlu1 %17148 }
0x407c   :  { %v17153_v10 = vadd.f32 %v17149_v19, %v17062_v21  ;;  %v17147_v41 = vpop.permute.xlu0 %17146  ;;  %v17259_v21 = vld [vmem:[%s23344_s3] sm:$0xff] }
0x407d   :  { %v17152_v16 = vadd.f32 %v17147_v41, %v17061_v40 }
0x407e   :  { %21174 = vtanh.f32 %v17153_v10 }
0x407f   :  { %21176 = vtanh.f32 %v17152_v16 }
0x4088   :  { %v21175_v55 = vpop.eup %21174 }
0x4089   :  { %v21177_v2 = vpop.eup %21176  ;;  %17164 = vrot.lane.b32.xlu1 %v21175_v55, %s21304_s29 }
0x408a   :  { %17162 = vrot.lane.b32.xlu0 %v21177_v2, %s21304_s29 }
0x40fb   :  { %v17165_v7 = vpop.permute.xlu1 %17164 }
0x40fc   :  { %v17169_v15 = vmul.f32 %v17165_v7, %v17159_v43  ;;  %v17163_v25 = vpop.permute.xlu0 %17162 }
0x40fd   :  { %v17168_v46 = vmul.f32 %v17163_v25, %v17158_v38 }
0x40fe   :  { %v17171_v37 = vadd.f32 %v17169_v15, %v17157_v11 }
0x40ff   :  { %v17170_v58 = vadd.f32 %v17168_v46, %v17156_v33 }
0x4100   :  { %17176 = vrot.lane.b32.xlu1 %v17171_v37, %s21304_s29 }
0x4101   :  { %17174 = vrot.lane.b32.xlu0 %v17170_v58, %s21304_s29 }
0x4172   :  { %v17177_v61 = vpop.permute.xlu1 %17176 }
0x4173   :  { %v17175_v26 = vpop.permute.xlu0 %17174 }
0x4174   :  { %v20930_v35 = vpack.c.bf16 %v17177_v61, %v17175_v26  ;;  %20124 = vmatprep.mubr.msk.f32.mxu0 %vm193_vm2, %v17175_v26  ;;  %20131 = vmatprep.mubr.msk.f32.mxu1 %vm193_vm2, %v17175_v26 }
0x4175   :  { %20132 = vmatmul.mubr.msk.f32.vlgmr.msra.gmra.mrb[140].mxu1 %vm193_vm2, %v17177_v61 }
0x4176   :  { %20932 = vmatprep.subr.msk.bf16.mxu0 %vm20931_vm3, %v20930_v35 }
0x4177   :  { %20935 = vmatpush3.bf16.xpose.msk.msra.mxu0 %vm20931_vm3, %v20930_v35 }
0x417e   :  { %20125 = vmatmul.mubr.msk.f32.vlgmr.msra.gmra.mrb[140].mxu0 %vm193_vm2, %v17177_v61 }
0x4248   :  { %v20133_v30 = vpop.f32.mrb[140].mxu1 }
0x4249   :  { %v17383_v45 = vadd.f32 %v20133_v30, %v17880_v27  ;;  %v17377_v42 = vpop.f32.mrb[141].mxu1 }
0x424a   :  { %v17378_v60 = vadd.f32 %v17880_v27, %v17377_v42 }
0x424b   :  { %v17389_v14 = vsub.f32 %v17383_v45, %v17387_v29 }
0x424c   :  { %v17388_v28 = vsub.f32 %v17378_v60, %v17386_v22 }
0x424d   :  { %v17391_v44 = vand.u32 2147483647, %v17389_v14 }
0x424e   :  { %v17390_v9 = vand.u32 2147483647, %v17388_v28 }
0x424f   :  { %v17394_v32 = vsel %vm17392_vm4, %v17391_v44, 0.0 }
0x4250   :  { %v17393_v6 = vsel %vm17392_vm4, %v17390_v9, 0.0 }
0x4251   :  { %v20126_v53 = vpop.f32.mrb[140].mxu0  ;;  %v17395_v39 = vadd.f32 %v17394_v32, %v17393_v6 }
0x4252   :  { %v17268_v62 = vand.u32 2147483647, %v20126_v53  ;;  %v17248_v49 = vpop.f32.mrb[141].mxu0  ;;  %v17262_v51 = vmax.f32 %v20126_v53, 0.0  ;;  %v17264_v54 = vmul.f32 %v20126_v53, %v17258_v63 }
0x4253   :  { %v17267_v12 = vand.u32 2147483647, %v17248_v49  ;;  %17396 = vadd.xlane.f32.xlu1 %v17395_v39  ;;  %v17261_v13 = vmax.f32 %v17248_v49, 0.0  ;;  %v17263_v4 = vmul.f32 %v17257_v24, %v17248_v49 }
0x4254   :  { %v17270_v18 = vsub.f32 0.0, %v17268_v62  ;;  %v17266_v31 = vsub.f32 %v17262_v51, %v17264_v54 }
0x4255   :  { %v17269_v5 = vsub.f32 0.0, %v17267_v12  ;;  %v17265_v23 = vsub.f32 %v17261_v13, %v17263_v4 }
0x4256   :  { %v17273_v3 = vmul.f32 1.442695, %v17270_v18 }
0x4257   :  { %v17271_v1 = vmul.f32 1.442695, %v17269_v5 }
0x4258   :  { %21178 = vpow2.f32 %v17273_v3 }
0x4259   :  { %21180 = vpow2.f32 %v17271_v1 }
0x4262   :  { %v21179_v20 = vpop.eup %21178 }
0x4263   :  { %v21181_v50 = vpop.eup %21180  ;;  %v17276_v48 = vadd.f32 1.0, %v21179_v20 }
0x4264   :  { %v17275_v57 = vadd.f32 1.0, %v21181_v50 }
0x4265   :  { %21182 = vlog2.f32 %v17276_v48 }
0x4266   :  { %21184 = vlog2.f32 %v17275_v57 }
0x426f   :  { %v21183_v47 = vpop.eup %21182 }
0x4270   :  { %v21185_v56 = vpop.eup %21184  ;;  %v17280_v8 = vmul.f32 0.6931472, %v21183_v47 }
0x4271   :  { %v17278_v34 = vmul.f32 0.6931472, %v21185_v56 }
0x4272   :  { %v17282_v59 = vadd.f32 %v17280_v8, %v17266_v31 }
0x4273   :  { %v17281_v40 = vadd.f32 %v17278_v34, %v17265_v23 }
0x4274   :  { %v17284_v19 = vmul.f32 %v17282_v59, %v17260_v17 }
0x4275   :  { %v17283_v10 = vmul.f32 %v17281_v40, %v17259_v21 }
0x4276   :  { %v17286_v41 = vsel %vm193_vm2, %v17284_v19, 0.0 }
0x4277   :  { %v17285_v16 = vsel %vm193_vm2, %v17283_v10, 0.0 }
0x4278   :  { %v17287_v0 = vadd.f32 %v17286_v41, %v17285_v16 }
0x427a   :  { %17288 = vadd.xlane.f32.xlu0 %v17287_v0 }
0x42e0   :  { %v17397_v36 = vpop.xlane.xlu1 %17396 }
0x42e1   :  { %v17398_v52 = vrot.slane %v17397_v36, 4 }
0x42e3   :  { %v17399_v55 = vadd.f32 %v17398_v52, %v17397_v36 }
0x42e5   :  { %v17400_v2 = vrot.slane %v17399_v55, 2 }
0x42e7   :  { %v17401_v11 = vadd.f32 %v17400_v2, %v17399_v55 }
0x42e9   :  { %v17402_v33 = vrot.slane %v17401_v11, 1 }
0x42eb   :  { %v17403_v58 = vadd.f32 %v17402_v33, %v17401_v11 }
0x4307   :  { %v17289_v43 = vpop.xlane.xlu0 %17288 }
0x4308   :  { %v17290_v7 = vrot.slane %v17289_v43, 4 }
0x430a   :  { %v17291_v38 = vadd.f32 %v17290_v7, %v17289_v43 }
0x430c   :  { %v17292_v15 = vrot.slane %v17291_v38, 2 }
0x430e   :  { %v17293_v25 = vadd.f32 %v17292_v15, %v17291_v38 }
0x4310   :  { %v17294_v46 = vrot.slane %v17293_v25, 1 }
0x4312   :  { %v17295_v37 = vadd.f32 %v17294_v46, %v17293_v25 }
0x4314   :  { %21068 = vpush %v17295_v37 }
0x4315   :  { %21070 = vpush %v17403_v58 }
0x4345   :  { %s21069_s2 = spop %21068 }
0x4346   :  { %s17299_s3 = smul.f32 0.0078125, %s21069_s2  ;;  %s21071_s16 = spop %21070 }
0x4347   :  { %s17407_s6 = smul.f32 0.015625, %s21071_s16 }
0x4348   :  { %17301 = sst [smem:[#allocation8]] %s17299_s3 }
0x4349   :  { %21278 = shalt.err (!%p21275_p12)
}
0x434a   :  { %s21305_s4 = smov [#allocation8]   ;;  %17409 = sst [smem:[#allocation9]] %s17407_s6 }
0x434b   :  { %17417 = dma.smem_to_hbm %s21305_s4, 16, %s23355_s14, [#allocation4]  }
0x434c   :  { %s21279_s21 = scalar_lea.hbm %s23356_s15, 16 }
0x434d   :  { %p21280_p13 = scmp.ne.s32.totalorder %s23356_s15, %s21279_s21  ;;  %p21283_p0 = scmp.lt.u32.totalorder %s21279_s21, %s23356_s15 }
0x434f   :  { %p21285_p1 = pnand %p21283_p0, %p21280_p13 }
0x4351   :  { %21288 = shalt.err (!%p21285_p1)
}
0x4352   :  { %s21306_s1 = smov [#allocation9]  }
0x4353   :  { %17425 = dma.smem_to_hbm %s21306_s1, 16, %s23356_s15, [#allocation10]  }
0x4354   :  { %21293 = dma.done.wait [#allocation4], 16  }
0x4355   :  { %21294 = vsyncadd [#allocation4], 4294967280 }
0x4356   :  { %21295 = dma.done.wait [#allocation10], 16  }
0x4357   :  { %21296 = vsyncadd [#allocation10], 4294967280 }
0x4358   :  { %17432 = sfence }
0x4359   :  { %17433 = vsyncpa [#allocation3], 1 }
0x435a   :  { %17434 = vsyncpa [#allocation6], 1 }
0x435b   :  { %17435 = vsyncpa [#allocation4], 1 }
0x435c   :  { %17436 = vsyncpa [#allocation10], 1 }

</bundles_post_ra>
